<compile_context>
chip_gen: v7x
topology: tpu7x:2x2x1
jax: 0.10.0
libtpu: 0.0.40
codegen_flags: <defaults>
</compile_context>

<pallas_src>
import jax
import jax.numpy as jnp
from jax.experimental import pallas as pl
from jax.experimental.pallas import tpu as pltpu

ANC_DIM = 25          # MAX_SCENE_OBJECT_COUNT (forward() slices x[:, :25, :])
N_OFF = 8             # OffsetNet directions
BP = 8                # batch padded to one full sublane tile
SEG = 128             # lane-aligned head softmax segment width
NEG_INF = -1e30


def _tree(vals, op):
    """Pairwise (tree) reduction of a python list of traced arrays."""
    vals = list(vals)
    while len(vals) > 1:
        nxt = [op(vals[i], vals[i + 1]) for i in range(0, len(vals) - 1, 2)]
        if len(vals) % 2:
            nxt.append(vals[-1])
        vals = nxt
    return vals[0]


# ----------------------------------------------------------------------------
# Fused kernel: token one-hot -> 2-layer BiLSTM x3 branches -> dot attention
#               -> AnchorNet x2 + OffsetNet head
# ----------------------------------------------------------------------------
def fused_kernel(tok_ref,                     # (L*BP, 1) int32 tokens (row=t*BP+b)
                 tab0_ref, b0_ref,            # (Vpad, 24H) folded emb@Wih0, (1,24H)
                 whh0_ref,                    # (3H, 24H)  [fwd cols | bwd cols]
                 wih1f_ref, wih1b_ref, b1_ref,  # (3H,24H) x2, (1,24H)
                 whh1_ref,                    # (3H, 24H)
                 gsum_ref, gbc_ref,           # (3H, 3), (3, 3H) group matrices
                 wheadf_ref, wheadb_ref, bhead_ref,  # (3H,384) x2, (1,384)
                 xa0_ref, xa1_ref,            # (BP, 128) padded object x / y
                 offx_ref, offw_ref,          # (BP, 1), (2, 128)
                 out_ref):                    # (BP, 128) lane-padded output
    f32 = jnp.float32
    LBP = tok_ref.shape[0]
    L = LBP // BP
    G3 = whh0_ref.shape[0]                    # 3*H (3 branches stacked)
    G4 = 4 * G3                               # one direction's gate lanes
    VP = tab0_ref.shape[0]                    # padded vocab

    def lstm_cell(gates, c):
        # gates: (2*BP, G4) = [fwd rows ; bwd rows], lanes [i|f|g|o] x (s,t,o) x H
        sif = jax.nn.sigmoid(gates[:, 0:2 * G3])          # fused sigmoid on i|f
        i_g = sif[:, 0:G3]
        f_g = sif[:, G3:2 * G3]
        g_g = jnp.tanh(gates[:, 2 * G3:3 * G3])
        o_g = jax.nn.sigmoid(gates[:, 3 * G3:4 * G3])
        c_new = f_g * c + i_g * g_g
        return o_g * jnp.tanh(c_new), c_new

    def run_bilstm_layer(xp, whh):
        """xp: (L*BP, 2*G4) precomputed input gates [fwd | bwd].
        h/c carried sublane-stacked (2*BP, G3) = [h_fwd ; h_bwd]."""
        h = jnp.zeros((2 * BP, G3), f32)
        c = jnp.zeros((2 * BP, G3), f32)
        fwd = [None] * L
        bwd = [None] * L
        steps = [None] * L
        for s in range(L):                                 # fully unrolled (L=8)
            tf = s
            tb = L - 1 - s
            rec = jnp.dot(h, whh, preferred_element_type=f32)        # (2BP, 2G4)
            g_f = xp[tf * BP:(tf + 1) * BP, 0:G4] + rec[0:BP, 0:G4]
            g_b = xp[tb * BP:(tb + 1) * BP, G4:2 * G4] + rec[BP:2 * BP, G4:2 * G4]
            gates = jnp.concatenate([g_f, g_b], axis=0)              # (2BP, G4)
            h, c = lstm_cell(gates, c)
            fwd[tf] = h[0:BP, :]
            bwd[tb] = h[BP:2 * BP, :]
            steps[s] = h
        # final h: rows 0:BP = fwd hidden at t=L-1, rows BP:2BP = bwd at t=0
        return fwd, bwd, steps, h

    # ---- token -> layer-0 input gates (embedding folded into the table) ------
    iota = jax.lax.broadcasted_iota(jnp.int32, (LBP, VP), 1)
    onehot = jnp.where(tok_ref[...] == iota, 1.0, 0.0).astype(f32)   # (L*BP, VP)
    xp0 = jnp.dot(onehot, tab0_ref[...],
                  preferred_element_type=f32) + b0_ref[...]          # (L*BP, 24H)

    fwd0, bwd0, _, _ = run_bilstm_layer(xp0, whh0_ref[...])

    # ---- layer-1 input projection, split per layer-0 direction ---------------
    f0 = jnp.concatenate(fwd0, axis=0)                               # (L*BP, 3H)
    b0seq = jnp.concatenate(bwd0, axis=0)                            # (L*BP, 3H)
    xp1 = (jnp.dot(f0, wih1f_ref[...], preferred_element_type=f32)
           + jnp.dot(b0seq, wih1b_ref[...], preferred_element_type=f32)
           + b1_ref[...])                                            # (L*BP, 24H)

    _, _, steps1, h_fin = run_bilstm_layer(xp1, whh1_ref[...])

    # ---- dot attention over time; fwd/bwd stay sublane-stacked ---------------
    gsum = gsum_ref[...]                                             # (3H, 3)
    gbc = gbc_ref[...]                                               # (3, 3H)
    scores = [jnp.dot(steps1[s] * h_fin, gsum, preferred_element_type=f32)
              for s in range(L)]                                     # L x (2BP, 3)
    m = _tree(scores, jnp.maximum)                                   # (2BP, 3)
    p = [jnp.exp(sc - m) for sc in scores]
    denom = _tree(p, jnp.add)                                        # (2BP, 3)
    num = _tree([jnp.dot(p[s], gbc, preferred_element_type=f32) * steps1[s]
                 for s in range(L)], jnp.add)                        # (2BP, 3H)
    attn = num * jnp.dot(1.0 / denom, gbc, preferred_element_type=f32)

    # ---- head: packed FC into 3 lane-aligned softmax segments ----------------
    logits = (jnp.dot(attn[0:BP, :], wheadf_ref[...], preferred_element_type=f32)
              + jnp.dot(attn[BP:2 * BP, :], wheadb_ref[...],
                        preferred_element_type=f32)
              + bhead_ref[...])                                      # (BP, 3*SEG)

    def seg_softmax(z):
        zm = jnp.max(z, axis=1, keepdims=True)
        ez = jnp.exp(z - zm)
        return ez * (1.0 / jnp.sum(ez, axis=1, keepdims=True))

    s_p = seg_softmax(logits[:, 0:SEG])                              # (BP, 128)
    t_p = seg_softmax(logits[:, SEG:2 * SEG])
    o_p = seg_softmax(logits[:, 2 * SEG:3 * SEG])

    xa0 = xa0_ref[...]
    xa1 = xa1_ref[...]
    offx = offx_ref[...]
    offw = offw_ref[...]

    s0 = jnp.sum(s_p * xa0, axis=1, keepdims=True)
    s1 = jnp.sum(s_p * xa1, axis=1, keepdims=True)
    t0 = jnp.sum(t_p * xa0, axis=1, keepdims=True)
    t1 = jnp.sum(t_p * xa1, axis=1, keepdims=True)
    o0 = jnp.sum(o_p * offw[0:1, :], axis=1, keepdims=True)
    o1 = jnp.sum(o_p * offw[1:2, :], axis=1, keepdims=True)

    out_ref[...] = jnp.concatenate(
        [s0, s1, t0 + offx * o0, t1 + offx * o1,
         jnp.zeros((BP, out_ref.shape[1] - 4), f32)], axis=1)


def fused_call(tok, packed, xa0, xa1, offx):
    vmem = lambda: pl.BlockSpec(memory_space=pltpu.MemorySpace.VMEM)
    ops = [tok,
           packed["tab0"], packed["b0"], packed["whh0"],
           packed["wih1f"], packed["wih1b"], packed["b1"], packed["whh1"],
           packed["gsum"], packed["gbc"],
           packed["wheadf"], packed["wheadb"], packed["bhead"],
           xa0, xa1, offx, packed["offw"]]
    return pl.pallas_call(
        fused_kernel,
        out_shape=jax.ShapeDtypeStruct((BP, SEG), jnp.float32),
        in_specs=[vmem() for _ in ops],
        out_specs=vmem(),
    )(*ops)


# ----------------------------------------------------------------------------
# Model wrapper: only tiny, fusible pad/scatter prep stays in XLA.
# ----------------------------------------------------------------------------
def model_pallas(s_tok, x, packed):
    B, L = s_tok.shape
    assert B <= BP, "kernel assumes batch <= 8 (one sublane tile)"
    tok = jnp.zeros((L, BP), jnp.int32).at[:, :B].set(
        jnp.transpose(s_tok).astype(jnp.int32)).reshape(L * BP, 1)
    xa0 = jnp.zeros((BP, SEG), jnp.float32).at[:B, :ANC_DIM].set(x[:, :ANC_DIM, 0])
    xa1 = jnp.zeros((BP, SEG), jnp.float32).at[:B, :ANC_DIM].set(x[:, :ANC_DIM, 1])
    offx = jnp.zeros((BP, 1), jnp.float32).at[:B, :].set(x[:, ANC_DIM, 0:1])
    out = fused_call(tok, packed, xa0, xa1, offx)
    return out[:B, :4]


# ----------------------------------------------------------------------------
# Parameter packing (host side, once): natural per-direction weights ->
# fused / block-diagonal / lane-padded operands for the single kernel.
# ----------------------------------------------------------------------------
def pack_params(params):
    f32 = jnp.float32
    branches = [params["s_lstm"], params["t_lstm"], params["o_lstm"]]
    H = branches[0]["whh0f"].shape[0]
    anc = params["sW"].shape[1]
    noff = params["oW"].shape[1]
    vocab = params["emb"].shape[0]
    vocabp = ((vocab + 127) // 128) * 128
    assert anc <= SEG and noff <= SEG

    def pack_gate_cols(mats):
        # per-branch (in, 4H) with col order [i|f|g|o]*H -> (in, 12H) gate-major
        cols = []
        for gate in range(4):
            for m in mats:
                cols.append(m[:, gate * H:(gate + 1) * H])
        return jnp.concatenate(cols, axis=1)

    def pack_dir_pair(key_f, key_b):
        fwd = pack_gate_cols([bp[key_f] for bp in branches])
        bwd = pack_gate_cols([bp[key_b] for bp in branches])
        return jnp.concatenate([fwd, bwd], axis=1)                   # (in, 24H)

    wih0 = pack_dir_pair("wih0f", "wih0b")                           # (E, 24H)
    b0 = pack_dir_pair("b0f", "b0b")
    b1 = pack_dir_pair("b1f", "b1b")

    # Fold the embedding into the layer-0 input projection (token -> gate row).
    # TODO(synk): for large vocabularies replace the in-kernel one-hot matmul
    # with a scalar-prefetch DMA row gather instead of this dense table.
    tab0 = jnp.dot(params["emb"].astype(f32), wih0,
                   precision=jax.lax.Precision.HIGHEST)              # (V, 24H)
    tab0 = jnp.zeros((vocabp, tab0.shape[1]), f32).at[:vocab].set(tab0)

    def pack_whh_dir(key):
        # block-diagonal over branches: (3H, 12H), gate-major columns
        out = jnp.zeros((3 * H, 12 * H), f32)
        for br, bp in enumerate(branches):
            m = bp[key]                                              # (H, 4H)
            for gate in range(4):
                out = out.at[br * H:(br + 1) * H,
                             gate * 3 * H + br * H:
                             gate * 3 * H + (br + 1) * H].set(
                    m[:, gate * H:(gate + 1) * H])
        return out

    def pack_whh(key_f, key_b):
        return jnp.concatenate([pack_whh_dir(key_f), pack_whh_dir(key_b)],
                               axis=1)                               # (3H, 24H)

    def pack_wih1():
        # split by layer-0 input direction so the kernel needs no lane concat
        out_f = jnp.zeros((3 * H, 24 * H), f32)
        out_b = jnp.zeros((3 * H, 24 * H), f32)
        for g1, key in ((0, "wih1f"), (1, "wih1b")):                 # layer-1 dir
            for br, bp in enumerate(branches):
                m = bp[key]                                          # (2H, 4H)
                for gate in range(4):
                    cols = slice(g1 * 12 * H + gate * 3 * H + br * H,
                                 g1 * 12 * H + gate * 3 * H + (br + 1) * H)
                    out_f = out_f.at[br * H:(br + 1) * H, cols].set(
                        m[0:H, gate * H:(gate + 1) * H])
                    out_b = out_b.at[br * H:(br + 1) * H, cols].set(
                        m[H:2 * H, gate * H:(gate + 1) * H])
        return out_f, out_b

    wih1f, wih1b = pack_wih1()

    lane_blk = jnp.arange(3 * H) // H
    gsum = (lane_blk[:, None] == jnp.arange(3)[None, :]).astype(f32)  # (3H, 3)
    gbc = gsum.T                                                      # (3, 3H)

    # head FCs, lane-padded so each softmax segment is 128-lane aligned
    wheadf = jnp.zeros((3 * H, 3 * SEG), f32)
    wheadb = jnp.zeros((3 * H, 3 * SEG), f32)
    bhead = jnp.full((1, 3 * SEG), NEG_INF, f32)
    heads = [(params["sW"], params["sb"], anc),
             (params["tW"], params["tb"], anc),
             (params["oW"], params["ob"], noff)]
    for br, (hw, hb, width) in enumerate(heads):
        c0 = br * SEG
        wheadf = wheadf.at[br * H:(br + 1) * H, c0:c0 + width].set(hw[0:H, :])
        wheadb = wheadb.at[br * H:(br + 1) * H, c0:c0 + width].set(hw[H:2 * H, :])
        bhead = bhead.at[0, c0:c0 + width].set(hb[0, :])

    offw = jnp.zeros((2, SEG), f32).at[:, :noff].set(params["offw"])

    return dict(
        tab0=tab0, b0=b0, whh0=pack_whh("whh0f", "whh0b"),
        wih1f=wih1f, wih1b=wih1b, b1=b1, whh1=pack_whh("whh1f", "whh1b"),
        gsum=gsum, gbc=gbc,
        wheadf=wheadf, wheadb=wheadb, bhead=bhead,
        offw=offw,
    )


# ----------------------------------------------------------------------------
# Pure-JAX reference (same math, natural weights) for the correctness check
# ----------------------------------------------------------------------------
def _lstm_dir_ref(xs, wih_t, whh_t, b, reverse):
    L, B, _ = xs.shape
    H = whh_t.shape[0]
    h = jnp.zeros((B, H), jnp.float32)
    c = jnp.zeros((B, H), jnp.float32)
    outs = [None] * L
    order = range(L - 1, -1, -1) if reverse else range(L)
    for t in order:
        gates = xs[t] @ wih_t + h @ whh_t + b
        i = jax.nn.sigmoid(gates[:, :H])
        f = jax.nn.sigmoid(gates[:, H:2 * H])
        g = jnp.tanh(gates[:, 2 * H:3 * H])
        o = jax.nn.sigmoid(gates[:, 3 * H:])
        c = f * c + i * g
        h = o * jnp.tanh(c)
        outs[t] = h
    return jnp.stack(outs, 0), h


def _bilstm_attn_ref(e, p):
    f0, _ = _lstm_dir_ref(e, p["wih0f"], p["whh0f"], p["b0f"], False)
    b0, _ = _lstm_dir_ref(e, p["wih0b"], p["whh0b"], p["b0b"], True)
    l0 = jnp.concatenate([f0, b0], axis=-1)
    f1, fh = _lstm_dir_ref(l0, p["wih1f"], p["whh1f"], p["b1f"], False)
    b1, bh = _lstm_dir_ref(l0, p["wih1b"], p["whh1b"], p["b1b"], True)

    def attend(enc, hid):
        scores = jnp.einsum("lbh,bh->bl", enc, hid)
        pp = jax.nn.softmax(scores, axis=1)
        return jnp.einsum("lbh,bl->bh", enc, pp)

    return jnp.concatenate([attend(f1, fh), attend(b1, bh)], axis=1)


def model_ref(s_tok, x, params):
    e = jnp.transpose(params["emb"][s_tok], (1, 0, 2)).astype(jnp.float32)
    s_attn = _bilstm_attn_ref(e, params["s_lstm"])
    t_attn = _bilstm_attn_ref(e, params["t_lstm"])
    o_attn = _bilstm_attn_ref(e, params["o_lstm"])

    def fc_softmax(a, W, b):
        return jax.nn.softmax(a @ W + b, axis=1)

    s_p = fc_softmax(s_attn, params["sW"], params["sb"])
    t_p = fc_softmax(t_attn, params["tW"], params["tb"])
    o_p = fc_softmax(o_attn, params["oW"], params["ob"])
    xa = x[:, :ANC_DIM, :]
    s_out = jnp.einsum("bk,bkj->bj", s_p, xa)
    t_anc = jnp.einsum("bk,bkj->bj", t_p, xa)
    t_off = x[:, ANC_DIM, 0:1] * (o_p @ params["offw"].T)
    return jnp.concatenate([s_out, t_anc + t_off], axis=1)


# ----------------------------------------------------------------------------
# Deterministic parameter init (shapes per Model.__init__)
# ----------------------------------------------------------------------------
def init_params(key, *, vocab_size, emb_dim, hidden, anc_dim):
    keys = iter(jax.random.split(key, 128))

    def nrm(shape, scale=0.1):
        return (scale * jax.random.normal(next(keys), shape)).astype(jnp.float32)

    def lstm_params():
        p = {}
        for layer, in_dim in ((0, emb_dim), (1, 2 * hidden)):
            for d in ("f", "b"):
                p[f"wih{layer}{d}"] = nrm((in_dim, 4 * hidden))   # W_ih^T
                p[f"whh{layer}{d}"] = nrm((hidden, 4 * hidden))   # W_hh^T
                p[f"b{layer}{d}"] = nrm((1, 4 * hidden))          # b_ih + b_hh
        return p

    emb = nrm((vocab_size, emb_dim), 1.0)
    emb = emb.at[0].set(0.0)  # padding_idx = 0

    # OffsetNet fixed (non-trainable) weight: (16,1) == flattened (8,2)
    T = 0.166
    base = jnp.array([[-T, -T], [-T, 0.0], [-T, T], [0.0, -T],
                      [0.0, T], [T, -T], [T, 0.0], [T, T]], jnp.float32)  # (8,2)

    return dict(
        emb=emb,
        s_lstm=lstm_params(), t_lstm=lstm_params(), o_lstm=lstm_params(),
        sW=nrm((2 * hidden, anc_dim)), sb=nrm((1, anc_dim)),
        tW=nrm((2 * hidden, anc_dim)), tb=nrm((1, anc_dim)),
        oW=nrm((2 * hidden, 8)), ob=nrm((1, 8)),
        offw=base.T,  # (2, 8)
    )


if __name__ == "__main__":
    B, L = 2, 8
    EMB, HID, VOCAB = 32, 32, 50

    key = jax.random.PRNGKey(0)
    pk, sk, xk = jax.random.split(key, 3)
    params = init_params(pk, vocab_size=VOCAB, emb_dim=EMB, hidden=HID,
                         anc_dim=ANC_DIM)
    packed = pack_params(params)

    s_tok = jax.random.randint(sk, (B, L), 0, VOCAB, dtype=jnp.int32)  # sentences
    x = jax.random.normal(xk, (B, 26, 2), dtype=jnp.float32)           # object states

    out = jax.jit(model_pallas)(s_tok, x, packed)
    out = jax.block_until_ready(out)
    assert out.shape == (B, 4), out.shape

    with jax.default_matmul_precision("highest"):
        ref = model_ref(s_tok, x, params)
    err = float(jnp.max(jnp.abs(out - ref)))
    if err > 1e-3:
        raise AssertionError(f"Pallas output mismatch vs reference, max abs err={err}")

    print("KERNEL_OK")
</pallas_src>

<mosaic_0001>
module attributes {stable_mosaic.version = 11 : i64} {
  func.func @fused_kernel(%arg0: memref<64x1xi32, #tpu.memory_space<vmem>>, %arg1: memref<128x768xf32, #tpu.memory_space<vmem>>, %arg2: memref<1x768xf32, #tpu.memory_space<vmem>>, %arg3: memref<96x768xf32, #tpu.memory_space<vmem>>, %arg4: memref<96x768xf32, #tpu.memory_space<vmem>>, %arg5: memref<96x768xf32, #tpu.memory_space<vmem>>, %arg6: memref<1x768xf32, #tpu.memory_space<vmem>>, %arg7: memref<96x768xf32, #tpu.memory_space<vmem>>, %arg8: memref<96x3xf32, #tpu.memory_space<vmem>>, %arg9: memref<3x96xf32, #tpu.memory_space<vmem>>, %arg10: memref<96x384xf32, #tpu.memory_space<vmem>>, %arg11: memref<96x384xf32, #tpu.memory_space<vmem>>, %arg12: memref<1x384xf32, #tpu.memory_space<vmem>>, %arg13: memref<8x128xf32, #tpu.memory_space<vmem>>, %arg14: memref<8x128xf32, #tpu.memory_space<vmem>>, %arg15: memref<8x1xf32, #tpu.memory_space<vmem>>, %arg16: memref<2x128xf32, #tpu.memory_space<vmem>>, %arg17: memref<8x128xf32, #tpu.memory_space<vmem>>) attributes {dimension_semantics = [], scalar_prefetch = 0 : i64, scratch_operands = 0 : i64, tpu.core_type = #tpu.core_type<tc>} {
    %0 = tpu.iota {dimensions = array<i32: 1>} : vector<64x128xi32>
    %c0 = arith.constant 0 : index
    %c0_0 = arith.constant 0 : index
    %1 = vector.load %arg0[%c0, %c0_0] : memref<64x1xi32, #tpu.memory_space<vmem>>, vector<64x1xi32>
    %2 = vector.broadcast %1 : vector<64x1xi32> to vector<64x128xi32>
    %3 = arith.cmpi eq, %2, %0 : vector<64x128xi32>
    %cst = arith.constant 1.000000e+00 : f32
    %cst_1 = arith.constant 0.000000e+00 : f32
    %4 = vector.broadcast %cst : f32 to vector<64x128xf32>
    %5 = vector.broadcast %cst_1 : f32 to vector<64x128xf32>
    %6 = arith.select %3, %4, %5 : vector<64x128xi1>, vector<64x128xf32>
    %c0_2 = arith.constant 0 : index
    %c0_3 = arith.constant 0 : index
    %7 = vector.load %arg1[%c0_2, %c0_3] : memref<128x768xf32, #tpu.memory_space<vmem>>, vector<128x768xf32>
    %cst_4 = arith.constant dense<0.000000e+00> : vector<64x768xf32>
    %8 = tpu.matmul %6, %7, %cst_4 {dimension_numbers = #tpu.dot_dimension_numbers<[1], [0], [0], [1], [0, 0, 1, 1], [], []>} : vector<64x128xf32>, vector<128x768xf32>, vector<64x768xf32> -> vector<64x768xf32>
    %c0_5 = arith.constant 0 : index
    %c0_6 = arith.constant 0 : index
    %9 = vector.load %arg2[%c0_5, %c0_6] : memref<1x768xf32, #tpu.memory_space<vmem>>, vector<1x768xf32>
    %10 = vector.broadcast %9 : vector<1x768xf32> to vector<64x768xf32>
    %11 = arith.addf %8, %10 : vector<64x768xf32>
    %c0_7 = arith.constant 0 : index
    %c0_8 = arith.constant 0 : index
    %12 = vector.load %arg3[%c0_7, %c0_8] : memref<96x768xf32, #tpu.memory_space<vmem>>, vector<96x768xf32>
    %cst_9 = arith.constant 0.000000e+00 : f32
    %13 = vector.broadcast %cst_9 : f32 to vector<16x96xf32>
    %cst_10 = arith.constant 0.000000e+00 : f32
    %14 = vector.broadcast %cst_10 : f32 to vector<16x96xf32>
    %cst_11 = arith.constant dense<0.000000e+00> : vector<16x768xf32>
    %15 = tpu.matmul %13, %12, %cst_11 {dimension_numbers = #tpu.dot_dimension_numbers<[1], [0], [0], [1], [0, 0, 1, 1], [], []>} : vector<16x96xf32>, vector<96x768xf32>, vector<16x768xf32> -> vector<16x768xf32>
    %16 = vector.extract_strided_slice %11 {offsets = [0, 0], sizes = [8, 384], strides = [1, 1]} : vector<64x768xf32> to vector<8x384xf32>
    %17 = vector.extract_strided_slice %15 {offsets = [0, 0], sizes = [8, 384], strides = [1, 1]} : vector<16x768xf32> to vector<8x384xf32>
    %18 = arith.addf %16, %17 : vector<8x384xf32>
    %19 = vector.extract_strided_slice %11 {offsets = [56, 384], sizes = [8, 384], strides = [1, 1]} : vector<64x768xf32> to vector<8x384xf32>
    %20 = vector.extract_strided_slice %15 {offsets = [8, 384], sizes = [8, 384], strides = [1, 1]} : vector<16x768xf32> to vector<8x384xf32>
    %21 = arith.addf %19, %20 : vector<8x384xf32>
    %22 = tpu.concatenate %18, %21 in 0 : vector<8x384xf32>, vector<8x384xf32> -> vector<16x384xf32>
    %23 = vector.extract_strided_slice %22 {offsets = [0, 0], sizes = [16, 192], strides = [1, 1]} : vector<16x384xf32> to vector<16x192xf32>
    %24 = arith.negf %23 : vector<16x192xf32>
    %25 = math.exp %24 : vector<16x192xf32>
    %cst_12 = arith.constant 1.000000e+00 : f32
    %26 = vector.broadcast %cst_12 : f32 to vector<16x192xf32>
    %27 = arith.addf %26, %25 : vector<16x192xf32>
    %28 = arith.divf %26, %27 : vector<16x192xf32>
    %29 = vector.extract_strided_slice %28 {offsets = [0, 0], sizes = [16, 96], strides = [1, 1]} : vector<16x192xf32> to vector<16x96xf32>
    %30 = vector.extract_strided_slice %28 {offsets = [0, 96], sizes = [16, 96], strides = [1, 1]} : vector<16x192xf32> to vector<16x96xf32>
    %31 = vector.extract_strided_slice %22 {offsets = [0, 192], sizes = [16, 96], strides = [1, 1]} : vector<16x384xf32> to vector<16x96xf32>
    %32 = math.tanh %31 : vector<16x96xf32>
    %33 = vector.extract_strided_slice %22 {offsets = [0, 288], sizes = [16, 96], strides = [1, 1]} : vector<16x384xf32> to vector<16x96xf32>
    %34 = arith.negf %33 : vector<16x96xf32>
    %35 = math.exp %34 : vector<16x96xf32>
    %cst_13 = arith.constant 1.000000e+00 : f32
    %36 = vector.broadcast %cst_13 : f32 to vector<16x96xf32>
    %37 = arith.addf %36, %35 : vector<16x96xf32>
    %38 = arith.divf %36, %37 : vector<16x96xf32>
    %39 = arith.mulf %30, %14 : vector<16x96xf32>
    %40 = arith.mulf %29, %32 : vector<16x96xf32>
    %41 = arith.addf %39, %40 : vector<16x96xf32>
    %42 = math.tanh %41 : vector<16x96xf32>
    %43 = arith.mulf %38, %42 : vector<16x96xf32>
    %44 = vector.extract_strided_slice %43 {offsets = [0, 0], sizes = [8, 96], strides = [1, 1]} : vector<16x96xf32> to vector<8x96xf32>
    %45 = vector.extract_strided_slice %43 {offsets = [8, 0], sizes = [8, 96], strides = [1, 1]} : vector<16x96xf32> to vector<8x96xf32>
    %cst_14 = arith.constant dense<0.000000e+00> : vector<16x768xf32>
    %46 = tpu.matmul %43, %12, %cst_14 {dimension_numbers = #tpu.dot_dimension_numbers<[1], [0], [0], [1], [0, 0, 1, 1], [], []>} : vector<16x96xf32>, vector<96x768xf32>, vector<16x768xf32> -> vector<16x768xf32>
    %47 = vector.extract_strided_slice %11 {offsets = [8, 0], sizes = [8, 384], strides = [1, 1]} : vector<64x768xf32> to vector<8x384xf32>
    %48 = vector.extract_strided_slice %46 {offsets = [0, 0], sizes = [8, 384], strides = [1, 1]} : vector<16x768xf32> to vector<8x384xf32>
    %49 = arith.addf %47, %48 : vector<8x384xf32>
    %50 = vector.extract_strided_slice %11 {offsets = [48, 384], sizes = [8, 384], strides = [1, 1]} : vector<64x768xf32> to vector<8x384xf32>
    %51 = vector.extract_strided_slice %46 {offsets = [8, 384], sizes = [8, 384], strides = [1, 1]} : vector<16x768xf32> to vector<8x384xf32>
    %52 = arith.addf %50, %51 : vector<8x384xf32>
    %53 = tpu.concatenate %49, %52 in 0 : vector<8x384xf32>, vector<8x384xf32> -> vector<16x384xf32>
    %54 = vector.extract_strided_slice %53 {offsets = [0, 0], sizes = [16, 192], strides = [1, 1]} : vector<16x384xf32> to vector<16x192xf32>
    %55 = arith.negf %54 : vector<16x192xf32>
    %56 = math.exp %55 : vector<16x192xf32>
    %cst_15 = arith.constant 1.000000e+00 : f32
    %57 = vector.broadcast %cst_15 : f32 to vector<16x192xf32>
    %58 = arith.addf %57, %56 : vector<16x192xf32>
    %59 = arith.divf %57, %58 : vector<16x192xf32>
    %60 = vector.extract_strided_slice %59 {offsets = [0, 0], sizes = [16, 96], strides = [1, 1]} : vector<16x192xf32> to vector<16x96xf32>
    %61 = vector.extract_strided_slice %59 {offsets = [0, 96], sizes = [16, 96], strides = [1, 1]} : vector<16x192xf32> to vector<16x96xf32>
    %62 = vector.extract_strided_slice %53 {offsets = [0, 192], sizes = [16, 96], strides = [1, 1]} : vector<16x384xf32> to vector<16x96xf32>
    %63 = math.tanh %62 : vector<16x96xf32>
    %64 = vector.extract_strided_slice %53 {offsets = [0, 288], sizes = [16, 96], strides = [1, 1]} : vector<16x384xf32> to vector<16x96xf32>
    %65 = arith.negf %64 : vector<16x96xf32>
    %66 = math.exp %65 : vector<16x96xf32>
    %cst_16 = arith.constant 1.000000e+00 : f32
    %67 = vector.broadcast %cst_16 : f32 to vector<16x96xf32>
    %68 = arith.addf %67, %66 : vector<16x96xf32>
    %69 = arith.divf %67, %68 : vector<16x96xf32>
    %70 = arith.mulf %61, %41 : vector<16x96xf32>
    %71 = arith.mulf %60, %63 : vector<16x96xf32>
    %72 = arith.addf %70, %71 : vector<16x96xf32>
    %73 = math.tanh %72 : vector<16x96xf32>
    %74 = arith.mulf %69, %73 : vector<16x96xf32>
    %75 = vector.extract_strided_slice %74 {offsets = [0, 0], sizes = [8, 96], strides = [1, 1]} : vector<16x96xf32> to vector<8x96xf32>
    %76 = vector.extract_strided_slice %74 {offsets = [8, 0], sizes = [8, 96], strides = [1, 1]} : vector<16x96xf32> to vector<8x96xf32>
    %cst_17 = arith.constant dense<0.000000e+00> : vector<16x768xf32>
    %77 = tpu.matmul %74, %12, %cst_17 {dimension_numbers = #tpu.dot_dimension_numbers<[1], [0], [0], [1], [0, 0, 1, 1], [], []>} : vector<16x96xf32>, vector<96x768xf32>, vector<16x768xf32> -> vector<16x768xf32>
    %78 = vector.extract_strided_slice %11 {offsets = [16, 0], sizes = [8, 384], strides = [1, 1]} : vector<64x768xf32> to vector<8x384xf32>
    %79 = vector.extract_strided_slice %77 {offsets = [0, 0], sizes = [8, 384], strides = [1, 1]} : vector<16x768xf32> to vector<8x384xf32>
    %80 = arith.addf %78, %79 : vector<8x384xf32>
    %81 = vector.extract_strided_slice %11 {offsets = [40, 384], sizes = [8, 384], strides = [1, 1]} : vector<64x768xf32> to vector<8x384xf32>
    %82 = vector.extract_strided_slice %77 {offsets = [8, 384], sizes = [8, 384], strides = [1, 1]} : vector<16x768xf32> to vector<8x384xf32>
    %83 = arith.addf %81, %82 : vector<8x384xf32>
    %84 = tpu.concatenate %80, %83 in 0 : vector<8x384xf32>, vector<8x384xf32> -> vector<16x384xf32>
    %85 = vector.extract_strided_slice %84 {offsets = [0, 0], sizes = [16, 192], strides = [1, 1]} : vector<16x384xf32> to vector<16x192xf32>
    %86 = arith.negf %85 : vector<16x192xf32>
    %87 = math.exp %86 : vector<16x192xf32>
    %cst_18 = arith.constant 1.000000e+00 : f32
    %88 = vector.broadcast %cst_18 : f32 to vector<16x192xf32>
    %89 = arith.addf %88, %87 : vector<16x192xf32>
    %90 = arith.divf %88, %89 : vector<16x192xf32>
    %91 = vector.extract_strided_slice %90 {offsets = [0, 0], sizes = [16, 96], strides = [1, 1]} : vector<16x192xf32> to vector<16x96xf32>
    %92 = vector.extract_strided_slice %90 {offsets = [0, 96], sizes = [16, 96], strides = [1, 1]} : vector<16x192xf32> to vector<16x96xf32>
    %93 = vector.extract_strided_slice %84 {offsets = [0, 192], sizes = [16, 96], strides = [1, 1]} : vector<16x384xf32> to vector<16x96xf32>
    %94 = math.tanh %93 : vector<16x96xf32>
    %95 = vector.extract_strided_slice %84 {offsets = [0, 288], sizes = [16, 96], strides = [1, 1]} : vector<16x384xf32> to vector<16x96xf32>
    %96 = arith.negf %95 : vector<16x96xf32>
    %97 = math.exp %96 : vector<16x96xf32>
    %cst_19 = arith.constant 1.000000e+00 : f32
    %98 = vector.broadcast %cst_19 : f32 to vector<16x96xf32>
    %99 = arith.addf %98, %97 : vector<16x96xf32>
    %100 = arith.divf %98, %99 : vector<16x96xf32>
    %101 = arith.mulf %92, %72 : vector<16x96xf32>
    %102 = arith.mulf %91, %94 : vector<16x96xf32>
    %103 = arith.addf %101, %102 : vector<16x96xf32>
    %104 = math.tanh %103 : vector<16x96xf32>
    %105 = arith.mulf %100, %104 : vector<16x96xf32>
    %106 = vector.extract_strided_slice %105 {offsets = [0, 0], sizes = [8, 96], strides = [1, 1]} : vector<16x96xf32> to vector<8x96xf32>
    %107 = vector.extract_strided_slice %105 {offsets = [8, 0], sizes = [8, 96], strides = [1, 1]} : vector<16x96xf32> to vector<8x96xf32>
    %cst_20 = arith.constant dense<0.000000e+00> : vector<16x768xf32>
    %108 = tpu.matmul %105, %12, %cst_20 {dimension_numbers = #tpu.dot_dimension_numbers<[1], [0], [0], [1], [0, 0, 1, 1], [], []>} : vector<16x96xf32>, vector<96x768xf32>, vector<16x768xf32> -> vector<16x768xf32>
    %109 = vector.extract_strided_slice %11 {offsets = [24, 0], sizes = [8, 384], strides = [1, 1]} : vector<64x768xf32> to vector<8x384xf32>
    %110 = vector.extract_strided_slice %108 {offsets = [0, 0], sizes = [8, 384], strides = [1, 1]} : vector<16x768xf32> to vector<8x384xf32>
    %111 = arith.addf %109, %110 : vector<8x384xf32>
    %112 = vector.extract_strided_slice %11 {offsets = [32, 384], sizes = [8, 384], strides = [1, 1]} : vector<64x768xf32> to vector<8x384xf32>
    %113 = vector.extract_strided_slice %108 {offsets = [8, 384], sizes = [8, 384], strides = [1, 1]} : vector<16x768xf32> to vector<8x384xf32>
    %114 = arith.addf %112, %113 : vector<8x384xf32>
    %115 = tpu.concatenate %111, %114 in 0 : vector<8x384xf32>, vector<8x384xf32> -> vector<16x384xf32>
    %116 = vector.extract_strided_slice %115 {offsets = [0, 0], sizes = [16, 192], strides = [1, 1]} : vector<16x384xf32> to vector<16x192xf32>
    %117 = arith.negf %116 : vector<16x192xf32>
    %118 = math.exp %117 : vector<16x192xf32>
    %cst_21 = arith.constant 1.000000e+00 : f32
    %119 = vector.broadcast %cst_21 : f32 to vector<16x192xf32>
    %120 = arith.addf %119, %118 : vector<16x192xf32>
    %121 = arith.divf %119, %120 : vector<16x192xf32>
    %122 = vector.extract_strided_slice %121 {offsets = [0, 0], sizes = [16, 96], strides = [1, 1]} : vector<16x192xf32> to vector<16x96xf32>
    %123 = vector.extract_strided_slice %121 {offsets = [0, 96], sizes = [16, 96], strides = [1, 1]} : vector<16x192xf32> to vector<16x96xf32>
    %124 = vector.extract_strided_slice %115 {offsets = [0, 192], sizes = [16, 96], strides = [1, 1]} : vector<16x384xf32> to vector<16x96xf32>
    %125 = math.tanh %124 : vector<16x96xf32>
    %126 = vector.extract_strided_slice %115 {offsets = [0, 288], sizes = [16, 96], strides = [1, 1]} : vector<16x384xf32> to vector<16x96xf32>
    %127 = arith.negf %126 : vector<16x96xf32>
    %128 = math.exp %127 : vector<16x96xf32>
    %cst_22 = arith.constant 1.000000e+00 : f32
    %129 = vector.broadcast %cst_22 : f32 to vector<16x96xf32>
    %130 = arith.addf %129, %128 : vector<16x96xf32>
    %131 = arith.divf %129, %130 : vector<16x96xf32>
    %132 = arith.mulf %123, %103 : vector<16x96xf32>
    %133 = arith.mulf %122, %125 : vector<16x96xf32>
    %134 = arith.addf %132, %133 : vector<16x96xf32>
    %135 = math.tanh %134 : vector<16x96xf32>
    %136 = arith.mulf %131, %135 : vector<16x96xf32>
    %137 = vector.extract_strided_slice %136 {offsets = [0, 0], sizes = [8, 96], strides = [1, 1]} : vector<16x96xf32> to vector<8x96xf32>
    %138 = vector.extract_strided_slice %136 {offsets = [8, 0], sizes = [8, 96], strides = [1, 1]} : vector<16x96xf32> to vector<8x96xf32>
    %cst_23 = arith.constant dense<0.000000e+00> : vector<16x768xf32>
    %139 = tpu.matmul %136, %12, %cst_23 {dimension_numbers = #tpu.dot_dimension_numbers<[1], [0], [0], [1], [0, 0, 1, 1], [], []>} : vector<16x96xf32>, vector<96x768xf32>, vector<16x768xf32> -> vector<16x768xf32>
    %140 = vector.extract_strided_slice %11 {offsets = [32, 0], sizes = [8, 384], strides = [1, 1]} : vector<64x768xf32> to vector<8x384xf32>
    %141 = vector.extract_strided_slice %139 {offsets = [0, 0], sizes = [8, 384], strides = [1, 1]} : vector<16x768xf32> to vector<8x384xf32>
    %142 = arith.addf %140, %141 : vector<8x384xf32>
    %143 = vector.extract_strided_slice %11 {offsets = [24, 384], sizes = [8, 384], strides = [1, 1]} : vector<64x768xf32> to vector<8x384xf32>
    %144 = vector.extract_strided_slice %139 {offsets = [8, 384], sizes = [8, 384], strides = [1, 1]} : vector<16x768xf32> to vector<8x384xf32>
    %145 = arith.addf %143, %144 : vector<8x384xf32>
    %146 = tpu.concatenate %142, %145 in 0 : vector<8x384xf32>, vector<8x384xf32> -> vector<16x384xf32>
    %147 = vector.extract_strided_slice %146 {offsets = [0, 0], sizes = [16, 192], strides = [1, 1]} : vector<16x384xf32> to vector<16x192xf32>
    %148 = arith.negf %147 : vector<16x192xf32>
    %149 = math.exp %148 : vector<16x192xf32>
    %cst_24 = arith.constant 1.000000e+00 : f32
    %150 = vector.broadcast %cst_24 : f32 to vector<16x192xf32>
    %151 = arith.addf %150, %149 : vector<16x192xf32>
    %152 = arith.divf %150, %151 : vector<16x192xf32>
    %153 = vector.extract_strided_slice %152 {offsets = [0, 0], sizes = [16, 96], strides = [1, 1]} : vector<16x192xf32> to vector<16x96xf32>
    %154 = vector.extract_strided_slice %152 {offsets = [0, 96], sizes = [16, 96], strides = [1, 1]} : vector<16x192xf32> to vector<16x96xf32>
    %155 = vector.extract_strided_slice %146 {offsets = [0, 192], sizes = [16, 96], strides = [1, 1]} : vector<16x384xf32> to vector<16x96xf32>
    %156 = math.tanh %155 : vector<16x96xf32>
    %157 = vector.extract_strided_slice %146 {offsets = [0, 288], sizes = [16, 96], strides = [1, 1]} : vector<16x384xf32> to vector<16x96xf32>
    %158 = arith.negf %157 : vector<16x96xf32>
    %159 = math.exp %158 : vector<16x96xf32>
    %cst_25 = arith.constant 1.000000e+00 : f32
    %160 = vector.broadcast %cst_25 : f32 to vector<16x96xf32>
    %161 = arith.addf %160, %159 : vector<16x96xf32>
    %162 = arith.divf %160, %161 : vector<16x96xf32>
    %163 = arith.mulf %154, %134 : vector<16x96xf32>
    %164 = arith.mulf %153, %156 : vector<16x96xf32>
    %165 = arith.addf %163, %164 : vector<16x96xf32>
    %166 = math.tanh %165 : vector<16x96xf32>
    %167 = arith.mulf %162, %166 : vector<16x96xf32>
    %168 = vector.extract_strided_slice %167 {offsets = [0, 0], sizes = [8, 96], strides = [1, 1]} : vector<16x96xf32> to vector<8x96xf32>
    %169 = vector.extract_strided_slice %167 {offsets = [8, 0], sizes = [8, 96], strides = [1, 1]} : vector<16x96xf32> to vector<8x96xf32>
    %cst_26 = arith.constant dense<0.000000e+00> : vector<16x768xf32>
    %170 = tpu.matmul %167, %12, %cst_26 {dimension_numbers = #tpu.dot_dimension_numbers<[1], [0], [0], [1], [0, 0, 1, 1], [], []>} : vector<16x96xf32>, vector<96x768xf32>, vector<16x768xf32> -> vector<16x768xf32>
    %171 = vector.extract_strided_slice %11 {offsets = [40, 0], sizes = [8, 384], strides = [1, 1]} : vector<64x768xf32> to vector<8x384xf32>
    %172 = vector.extract_strided_slice %170 {offsets = [0, 0], sizes = [8, 384], strides = [1, 1]} : vector<16x768xf32> to vector<8x384xf32>
    %173 = arith.addf %171, %172 : vector<8x384xf32>
    %174 = vector.extract_strided_slice %11 {offsets = [16, 384], sizes = [8, 384], strides = [1, 1]} : vector<64x768xf32> to vector<8x384xf32>
    %175 = vector.extract_strided_slice %170 {offsets = [8, 384], sizes = [8, 384], strides = [1, 1]} : vector<16x768xf32> to vector<8x384xf32>
    %176 = arith.addf %174, %175 : vector<8x384xf32>
    %177 = tpu.concatenate %173, %176 in 0 : vector<8x384xf32>, vector<8x384xf32> -> vector<16x384xf32>
    %178 = vector.extract_strided_slice %177 {offsets = [0, 0], sizes = [16, 192], strides = [1, 1]} : vector<16x384xf32> to vector<16x192xf32>
    %179 = arith.negf %178 : vector<16x192xf32>
    %180 = math.exp %179 : vector<16x192xf32>
    %cst_27 = arith.constant 1.000000e+00 : f32
    %181 = vector.broadcast %cst_27 : f32 to vector<16x192xf32>
    %182 = arith.addf %181, %180 : vector<16x192xf32>
    %183 = arith.divf %181, %182 : vector<16x192xf32>
    %184 = vector.extract_strided_slice %183 {offsets = [0, 0], sizes = [16, 96], strides = [1, 1]} : vector<16x192xf32> to vector<16x96xf32>
    %185 = vector.extract_strided_slice %183 {offsets = [0, 96], sizes = [16, 96], strides = [1, 1]} : vector<16x192xf32> to vector<16x96xf32>
    %186 = vector.extract_strided_slice %177 {offsets = [0, 192], sizes = [16, 96], strides = [1, 1]} : vector<16x384xf32> to vector<16x96xf32>
    %187 = math.tanh %186 : vector<16x96xf32>
    %188 = vector.extract_strided_slice %177 {offsets = [0, 288], sizes = [16, 96], strides = [1, 1]} : vector<16x384xf32> to vector<16x96xf32>
    %189 = arith.negf %188 : vector<16x96xf32>
    %190 = math.exp %189 : vector<16x96xf32>
    %cst_28 = arith.constant 1.000000e+00 : f32
    %191 = vector.broadcast %cst_28 : f32 to vector<16x96xf32>
    %192 = arith.addf %191, %190 : vector<16x96xf32>
    %193 = arith.divf %191, %192 : vector<16x96xf32>
    %194 = arith.mulf %185, %165 : vector<16x96xf32>
    %195 = arith.mulf %184, %187 : vector<16x96xf32>
    %196 = arith.addf %194, %195 : vector<16x96xf32>
    %197 = math.tanh %196 : vector<16x96xf32>
    %198 = arith.mulf %193, %197 : vector<16x96xf32>
    %199 = vector.extract_strided_slice %198 {offsets = [0, 0], sizes = [8, 96], strides = [1, 1]} : vector<16x96xf32> to vector<8x96xf32>
    %200 = vector.extract_strided_slice %198 {offsets = [8, 0], sizes = [8, 96], strides = [1, 1]} : vector<16x96xf32> to vector<8x96xf32>
    %cst_29 = arith.constant dense<0.000000e+00> : vector<16x768xf32>
    %201 = tpu.matmul %198, %12, %cst_29 {dimension_numbers = #tpu.dot_dimension_numbers<[1], [0], [0], [1], [0, 0, 1, 1], [], []>} : vector<16x96xf32>, vector<96x768xf32>, vector<16x768xf32> -> vector<16x768xf32>
    %202 = vector.extract_strided_slice %11 {offsets = [48, 0], sizes = [8, 384], strides = [1, 1]} : vector<64x768xf32> to vector<8x384xf32>
    %203 = vector.extract_strided_slice %201 {offsets = [0, 0], sizes = [8, 384], strides = [1, 1]} : vector<16x768xf32> to vector<8x384xf32>
    %204 = arith.addf %202, %203 : vector<8x384xf32>
    %205 = vector.extract_strided_slice %11 {offsets = [8, 384], sizes = [8, 384], strides = [1, 1]} : vector<64x768xf32> to vector<8x384xf32>
    %206 = vector.extract_strided_slice %201 {offsets = [8, 384], sizes = [8, 384], strides = [1, 1]} : vector<16x768xf32> to vector<8x384xf32>
    %207 = arith.addf %205, %206 : vector<8x384xf32>
    %208 = tpu.concatenate %204, %207 in 0 : vector<8x384xf32>, vector<8x384xf32> -> vector<16x384xf32>
    %209 = vector.extract_strided_slice %208 {offsets = [0, 0], sizes = [16, 192], strides = [1, 1]} : vector<16x384xf32> to vector<16x192xf32>
    %210 = arith.negf %209 : vector<16x192xf32>
    %211 = math.exp %210 : vector<16x192xf32>
    %cst_30 = arith.constant 1.000000e+00 : f32
    %212 = vector.broadcast %cst_30 : f32 to vector<16x192xf32>
    %213 = arith.addf %212, %211 : vector<16x192xf32>
    %214 = arith.divf %212, %213 : vector<16x192xf32>
    %215 = vector.extract_strided_slice %214 {offsets = [0, 0], sizes = [16, 96], strides = [1, 1]} : vector<16x192xf32> to vector<16x96xf32>
    %216 = vector.extract_strided_slice %214 {offsets = [0, 96], sizes = [16, 96], strides = [1, 1]} : vector<16x192xf32> to vector<16x96xf32>
    %217 = vector.extract_strided_slice %208 {offsets = [0, 192], sizes = [16, 96], strides = [1, 1]} : vector<16x384xf32> to vector<16x96xf32>
    %218 = math.tanh %217 : vector<16x96xf32>
    %219 = vector.extract_strided_slice %208 {offsets = [0, 288], sizes = [16, 96], strides = [1, 1]} : vector<16x384xf32> to vector<16x96xf32>
    %220 = arith.negf %219 : vector<16x96xf32>
    %221 = math.exp %220 : vector<16x96xf32>
    %cst_31 = arith.constant 1.000000e+00 : f32
    %222 = vector.broadcast %cst_31 : f32 to vector<16x96xf32>
    %223 = arith.addf %222, %221 : vector<16x96xf32>
    %224 = arith.divf %222, %223 : vector<16x96xf32>
    %225 = arith.mulf %216, %196 : vector<16x96xf32>
    %226 = arith.mulf %215, %218 : vector<16x96xf32>
    %227 = arith.addf %225, %226 : vector<16x96xf32>
    %228 = math.tanh %227 : vector<16x96xf32>
    %229 = arith.mulf %224, %228 : vector<16x96xf32>
    %230 = vector.extract_strided_slice %229 {offsets = [0, 0], sizes = [8, 96], strides = [1, 1]} : vector<16x96xf32> to vector<8x96xf32>
    %231 = vector.extract_strided_slice %229 {offsets = [8, 0], sizes = [8, 96], strides = [1, 1]} : vector<16x96xf32> to vector<8x96xf32>
    %cst_32 = arith.constant dense<0.000000e+00> : vector<16x768xf32>
    %232 = tpu.matmul %229, %12, %cst_32 {dimension_numbers = #tpu.dot_dimension_numbers<[1], [0], [0], [1], [0, 0, 1, 1], [], []>} : vector<16x96xf32>, vector<96x768xf32>, vector<16x768xf32> -> vector<16x768xf32>
    %233 = vector.extract_strided_slice %11 {offsets = [56, 0], sizes = [8, 384], strides = [1, 1]} : vector<64x768xf32> to vector<8x384xf32>
    %234 = vector.extract_strided_slice %232 {offsets = [0, 0], sizes = [8, 384], strides = [1, 1]} : vector<16x768xf32> to vector<8x384xf32>
    %235 = arith.addf %233, %234 : vector<8x384xf32>
    %236 = vector.extract_strided_slice %11 {offsets = [0, 384], sizes = [8, 384], strides = [1, 1]} : vector<64x768xf32> to vector<8x384xf32>
    %237 = vector.extract_strided_slice %232 {offsets = [8, 384], sizes = [8, 384], strides = [1, 1]} : vector<16x768xf32> to vector<8x384xf32>
    %238 = arith.addf %236, %237 : vector<8x384xf32>
    %239 = tpu.concatenate %235, %238 in 0 : vector<8x384xf32>, vector<8x384xf32> -> vector<16x384xf32>
    %240 = vector.extract_strided_slice %239 {offsets = [0, 0], sizes = [16, 192], strides = [1, 1]} : vector<16x384xf32> to vector<16x192xf32>
    %241 = arith.negf %240 : vector<16x192xf32>
    %242 = math.exp %241 : vector<16x192xf32>
    %cst_33 = arith.constant 1.000000e+00 : f32
    %243 = vector.broadcast %cst_33 : f32 to vector<16x192xf32>
    %244 = arith.addf %243, %242 : vector<16x192xf32>
    %245 = arith.divf %243, %244 : vector<16x192xf32>
    %246 = vector.extract_strided_slice %245 {offsets = [0, 0], sizes = [16, 96], strides = [1, 1]} : vector<16x192xf32> to vector<16x96xf32>
    %247 = vector.extract_strided_slice %245 {offsets = [0, 96], sizes = [16, 96], strides = [1, 1]} : vector<16x192xf32> to vector<16x96xf32>
    %248 = vector.extract_strided_slice %239 {offsets = [0, 192], sizes = [16, 96], strides = [1, 1]} : vector<16x384xf32> to vector<16x96xf32>
    %249 = math.tanh %248 : vector<16x96xf32>
    %250 = vector.extract_strided_slice %239 {offsets = [0, 288], sizes = [16, 96], strides = [1, 1]} : vector<16x384xf32> to vector<16x96xf32>
    %251 = arith.negf %250 : vector<16x96xf32>
    %252 = math.exp %251 : vector<16x96xf32>
    %cst_34 = arith.constant 1.000000e+00 : f32
    %253 = vector.broadcast %cst_34 : f32 to vector<16x96xf32>
    %254 = arith.addf %253, %252 : vector<16x96xf32>
    %255 = arith.divf %253, %254 : vector<16x96xf32>
    %256 = arith.mulf %247, %227 : vector<16x96xf32>
    %257 = arith.mulf %246, %249 : vector<16x96xf32>
    %258 = arith.addf %256, %257 : vector<16x96xf32>
    %259 = math.tanh %258 : vector<16x96xf32>
    %260 = arith.mulf %255, %259 : vector<16x96xf32>
    %261 = vector.extract_strided_slice %260 {offsets = [0, 0], sizes = [8, 96], strides = [1, 1]} : vector<16x96xf32> to vector<8x96xf32>
    %262 = vector.extract_strided_slice %260 {offsets = [8, 0], sizes = [8, 96], strides = [1, 1]} : vector<16x96xf32> to vector<8x96xf32>
    %263 = tpu.concatenate %44, %75, %106, %137, %168, %199, %230, %261 in 0 : vector<8x96xf32>, vector<8x96xf32>, vector<8x96xf32>, vector<8x96xf32>, vector<8x96xf32>, vector<8x96xf32>, vector<8x96xf32>, vector<8x96xf32> -> vector<64x96xf32>
    %264 = tpu.concatenate %262, %231, %200, %169, %138, %107, %76, %45 in 0 : vector<8x96xf32>, vector<8x96xf32>, vector<8x96xf32>, vector<8x96xf32>, vector<8x96xf32>, vector<8x96xf32>, vector<8x96xf32>, vector<8x96xf32> -> vector<64x96xf32>
    %c0_35 = arith.constant 0 : index
    %c0_36 = arith.constant 0 : index
    %265 = vector.load %arg4[%c0_35, %c0_36] : memref<96x768xf32, #tpu.memory_space<vmem>>, vector<96x768xf32>
    %cst_37 = arith.constant dense<0.000000e+00> : vector<64x768xf32>
    %266 = tpu.matmul %263, %265, %cst_37 {dimension_numbers = #tpu.dot_dimension_numbers<[1], [0], [0], [1], [0, 0, 1, 1], [], []>} : vector<64x96xf32>, vector<96x768xf32>, vector<64x768xf32> -> vector<64x768xf32>
    %c0_38 = arith.constant 0 : index
    %c0_39 = arith.constant 0 : index
    %267 = vector.load %arg5[%c0_38, %c0_39] : memref<96x768xf32, #tpu.memory_space<vmem>>, vector<96x768xf32>
    %cst_40 = arith.constant dense<0.000000e+00> : vector<64x768xf32>
    %268 = tpu.matmul %264, %267, %cst_40 {dimension_numbers = #tpu.dot_dimension_numbers<[1], [0], [0], [1], [0, 0, 1, 1], [], []>} : vector<64x96xf32>, vector<96x768xf32>, vector<64x768xf32> -> vector<64x768xf32>
    %269 = arith.addf %266, %268 : vector<64x768xf32>
    %c0_41 = arith.constant 0 : index
    %c0_42 = arith.constant 0 : index
    %270 = vector.load %arg6[%c0_41, %c0_42] : memref<1x768xf32, #tpu.memory_space<vmem>>, vector<1x768xf32>
    %271 = vector.broadcast %270 : vector<1x768xf32> to vector<64x768xf32>
    %272 = arith.addf %269, %271 : vector<64x768xf32>
    %c0_43 = arith.constant 0 : index
    %c0_44 = arith.constant 0 : index
    %273 = vector.load %arg7[%c0_43, %c0_44] : memref<96x768xf32, #tpu.memory_space<vmem>>, vector<96x768xf32>
    %cst_45 = arith.constant 0.000000e+00 : f32
    %274 = vector.broadcast %cst_45 : f32 to vector<16x96xf32>
    %cst_46 = arith.constant 0.000000e+00 : f32
    %275 = vector.broadcast %cst_46 : f32 to vector<16x96xf32>
    %cst_47 = arith.constant dense<0.000000e+00> : vector<16x768xf32>
    %276 = tpu.matmul %274, %273, %cst_47 {dimension_numbers = #tpu.dot_dimension_numbers<[1], [0], [0], [1], [0, 0, 1, 1], [], []>} : vector<16x96xf32>, vector<96x768xf32>, vector<16x768xf32> -> vector<16x768xf32>
    %277 = vector.extract_strided_slice %272 {offsets = [0, 0], sizes = [8, 384], strides = [1, 1]} : vector<64x768xf32> to vector<8x384xf32>
    %278 = vector.extract_strided_slice %276 {offsets = [0, 0], sizes = [8, 384], strides = [1, 1]} : vector<16x768xf32> to vector<8x384xf32>
    %279 = arith.addf %277, %278 : vector<8x384xf32>
    %280 = vector.extract_strided_slice %272 {offsets = [56, 384], sizes = [8, 384], strides = [1, 1]} : vector<64x768xf32> to vector<8x384xf32>
    %281 = vector.extract_strided_slice %276 {offsets = [8, 384], sizes = [8, 384], strides = [1, 1]} : vector<16x768xf32> to vector<8x384xf32>
    %282 = arith.addf %280, %281 : vector<8x384xf32>
    %283 = tpu.concatenate %279, %282 in 0 : vector<8x384xf32>, vector<8x384xf32> -> vector<16x384xf32>
    %284 = vector.extract_strided_slice %283 {offsets = [0, 0], sizes = [16, 192], strides = [1, 1]} : vector<16x384xf32> to vector<16x192xf32>
    %285 = arith.negf %284 : vector<16x192xf32>
    %286 = math.exp %285 : vector<16x192xf32>
    %cst_48 = arith.constant 1.000000e+00 : f32
    %287 = vector.broadcast %cst_48 : f32 to vector<16x192xf32>
    %288 = arith.addf %287, %286 : vector<16x192xf32>
    %289 = arith.divf %287, %288 : vector<16x192xf32>
    %290 = vector.extract_strided_slice %289 {offsets = [0, 0], sizes = [16, 96], strides = [1, 1]} : vector<16x192xf32> to vector<16x96xf32>
    %291 = vector.extract_strided_slice %289 {offsets = [0, 96], sizes = [16, 96], strides = [1, 1]} : vector<16x192xf32> to vector<16x96xf32>
    %292 = vector.extract_strided_slice %283 {offsets = [0, 192], sizes = [16, 96], strides = [1, 1]} : vector<16x384xf32> to vector<16x96xf32>
    %293 = math.tanh %292 : vector<16x96xf32>
    %294 = vector.extract_strided_slice %283 {offsets = [0, 288], sizes = [16, 96], strides = [1, 1]} : vector<16x384xf32> to vector<16x96xf32>
    %295 = arith.negf %294 : vector<16x96xf32>
    %296 = math.exp %295 : vector<16x96xf32>
    %cst_49 = arith.constant 1.000000e+00 : f32
    %297 = vector.broadcast %cst_49 : f32 to vector<16x96xf32>
    %298 = arith.addf %297, %296 : vector<16x96xf32>
    %299 = arith.divf %297, %298 : vector<16x96xf32>
    %300 = arith.mulf %291, %275 : vector<16x96xf32>
    %301 = arith.mulf %290, %293 : vector<16x96xf32>
    %302 = arith.addf %300, %301 : vector<16x96xf32>
    %303 = math.tanh %302 : vector<16x96xf32>
    %304 = arith.mulf %299, %303 : vector<16x96xf32>
    %cst_50 = arith.constant dense<0.000000e+00> : vector<16x768xf32>
    %305 = tpu.matmul %304, %273, %cst_50 {dimension_numbers = #tpu.dot_dimension_numbers<[1], [0], [0], [1], [0, 0, 1, 1], [], []>} : vector<16x96xf32>, vector<96x768xf32>, vector<16x768xf32> -> vector<16x768xf32>
    %306 = vector.extract_strided_slice %272 {offsets = [8, 0], sizes = [8, 384], strides = [1, 1]} : vector<64x768xf32> to vector<8x384xf32>
    %307 = vector.extract_strided_slice %305 {offsets = [0, 0], sizes = [8, 384], strides = [1, 1]} : vector<16x768xf32> to vector<8x384xf32>
    %308 = arith.addf %306, %307 : vector<8x384xf32>
    %309 = vector.extract_strided_slice %272 {offsets = [48, 384], sizes = [8, 384], strides = [1, 1]} : vector<64x768xf32> to vector<8x384xf32>
    %310 = vector.extract_strided_slice %305 {offsets = [8, 384], sizes = [8, 384], strides = [1, 1]} : vector<16x768xf32> to vector<8x384xf32>
    %311 = arith.addf %309, %310 : vector<8x384xf32>
    %312 = tpu.concatenate %308, %311 in 0 : vector<8x384xf32>, vector<8x384xf32> -> vector<16x384xf32>
    %313 = vector.extract_strided_slice %312 {offsets = [0, 0], sizes = [16, 192], strides = [1, 1]} : vector<16x384xf32> to vector<16x192xf32>
    %314 = arith.negf %313 : vector<16x192xf32>
    %315 = math.exp %314 : vector<16x192xf32>
    %cst_51 = arith.constant 1.000000e+00 : f32
    %316 = vector.broadcast %cst_51 : f32 to vector<16x192xf32>
    %317 = arith.addf %316, %315 : vector<16x192xf32>
    %318 = arith.divf %316, %317 : vector<16x192xf32>
    %319 = vector.extract_strided_slice %318 {offsets = [0, 0], sizes = [16, 96], strides = [1, 1]} : vector<16x192xf32> to vector<16x96xf32>
    %320 = vector.extract_strided_slice %318 {offsets = [0, 96], sizes = [16, 96], strides = [1, 1]} : vector<16x192xf32> to vector<16x96xf32>
    %321 = vector.extract_strided_slice %312 {offsets = [0, 192], sizes = [16, 96], strides = [1, 1]} : vector<16x384xf32> to vector<16x96xf32>
    %322 = math.tanh %321 : vector<16x96xf32>
    %323 = vector.extract_strided_slice %312 {offsets = [0, 288], sizes = [16, 96], strides = [1, 1]} : vector<16x384xf32> to vector<16x96xf32>
    %324 = arith.negf %323 : vector<16x96xf32>
    %325 = math.exp %324 : vector<16x96xf32>
    %cst_52 = arith.constant 1.000000e+00 : f32
    %326 = vector.broadcast %cst_52 : f32 to vector<16x96xf32>
    %327 = arith.addf %326, %325 : vector<16x96xf32>
    %328 = arith.divf %326, %327 : vector<16x96xf32>
    %329 = arith.mulf %320, %302 : vector<16x96xf32>
    %330 = arith.mulf %319, %322 : vector<16x96xf32>
    %331 = arith.addf %329, %330 : vector<16x96xf32>
    %332 = math.tanh %331 : vector<16x96xf32>
    %333 = arith.mulf %328, %332 : vector<16x96xf32>
    %cst_53 = arith.constant dense<0.000000e+00> : vector<16x768xf32>
    %334 = tpu.matmul %333, %273, %cst_53 {dimension_numbers = #tpu.dot_dimension_numbers<[1], [0], [0], [1], [0, 0, 1, 1], [], []>} : vector<16x96xf32>, vector<96x768xf32>, vector<16x768xf32> -> vector<16x768xf32>
    %335 = vector.extract_strided_slice %272 {offsets = [16, 0], sizes = [8, 384], strides = [1, 1]} : vector<64x768xf32> to vector<8x384xf32>
    %336 = vector.extract_strided_slice %334 {offsets = [0, 0], sizes = [8, 384], strides = [1, 1]} : vector<16x768xf32> to vector<8x384xf32>
    %337 = arith.addf %335, %336 : vector<8x384xf32>
    %338 = vector.extract_strided_slice %272 {offsets = [40, 384], sizes = [8, 384], strides = [1, 1]} : vector<64x768xf32> to vector<8x384xf32>
    %339 = vector.extract_strided_slice %334 {offsets = [8, 384], sizes = [8, 384], strides = [1, 1]} : vector<16x768xf32> to vector<8x384xf32>
    %340 = arith.addf %338, %339 : vector<8x384xf32>
    %341 = tpu.concatenate %337, %340 in 0 : vector<8x384xf32>, vector<8x384xf32> -> vector<16x384xf32>
    %342 = vector.extract_strided_slice %341 {offsets = [0, 0], sizes = [16, 192], strides = [1, 1]} : vector<16x384xf32> to vector<16x192xf32>
    %343 = arith.negf %342 : vector<16x192xf32>
    %344 = math.exp %343 : vector<16x192xf32>
    %cst_54 = arith.constant 1.000000e+00 : f32
    %345 = vector.broadcast %cst_54 : f32 to vector<16x192xf32>
    %346 = arith.addf %345, %344 : vector<16x192xf32>
    %347 = arith.divf %345, %346 : vector<16x192xf32>
    %348 = vector.extract_strided_slice %347 {offsets = [0, 0], sizes = [16, 96], strides = [1, 1]} : vector<16x192xf32> to vector<16x96xf32>
    %349 = vector.extract_strided_slice %347 {offsets = [0, 96], sizes = [16, 96], strides = [1, 1]} : vector<16x192xf32> to vector<16x96xf32>
    %350 = vector.extract_strided_slice %341 {offsets = [0, 192], sizes = [16, 96], strides = [1, 1]} : vector<16x384xf32> to vector<16x96xf32>
    %351 = math.tanh %350 : vector<16x96xf32>
    %352 = vector.extract_strided_slice %341 {offsets = [0, 288], sizes = [16, 96], strides = [1, 1]} : vector<16x384xf32> to vector<16x96xf32>
    %353 = arith.negf %352 : vector<16x96xf32>
    %354 = math.exp %353 : vector<16x96xf32>
    %cst_55 = arith.constant 1.000000e+00 : f32
    %355 = vector.broadcast %cst_55 : f32 to vector<16x96xf32>
    %356 = arith.addf %355, %354 : vector<16x96xf32>
    %357 = arith.divf %355, %356 : vector<16x96xf32>
    %358 = arith.mulf %349, %331 : vector<16x96xf32>
    %359 = arith.mulf %348, %351 : vector<16x96xf32>
    %360 = arith.addf %358, %359 : vector<16x96xf32>
    %361 = math.tanh %360 : vector<16x96xf32>
    %362 = arith.mulf %357, %361 : vector<16x96xf32>
    %cst_56 = arith.constant dense<0.000000e+00> : vector<16x768xf32>
    %363 = tpu.matmul %362, %273, %cst_56 {dimension_numbers = #tpu.dot_dimension_numbers<[1], [0], [0], [1], [0, 0, 1, 1], [], []>} : vector<16x96xf32>, vector<96x768xf32>, vector<16x768xf32> -> vector<16x768xf32>
    %364 = vector.extract_strided_slice %272 {offsets = [24, 0], sizes = [8, 384], strides = [1, 1]} : vector<64x768xf32> to vector<8x384xf32>
    %365 = vector.extract_strided_slice %363 {offsets = [0, 0], sizes = [8, 384], strides = [1, 1]} : vector<16x768xf32> to vector<8x384xf32>
    %366 = arith.addf %364, %365 : vector<8x384xf32>
    %367 = vector.extract_strided_slice %272 {offsets = [32, 384], sizes = [8, 384], strides = [1, 1]} : vector<64x768xf32> to vector<8x384xf32>
    %368 = vector.extract_strided_slice %363 {offsets = [8, 384], sizes = [8, 384], strides = [1, 1]} : vector<16x768xf32> to vector<8x384xf32>
    %369 = arith.addf %367, %368 : vector<8x384xf32>
    %370 = tpu.concatenate %366, %369 in 0 : vector<8x384xf32>, vector<8x384xf32> -> vector<16x384xf32>
    %371 = vector.extract_strided_slice %370 {offsets = [0, 0], sizes = [16, 192], strides = [1, 1]} : vector<16x384xf32> to vector<16x192xf32>
    %372 = arith.negf %371 : vector<16x192xf32>
    %373 = math.exp %372 : vector<16x192xf32>
    %cst_57 = arith.constant 1.000000e+00 : f32
    %374 = vector.broadcast %cst_57 : f32 to vector<16x192xf32>
    %375 = arith.addf %374, %373 : vector<16x192xf32>
    %376 = arith.divf %374, %375 : vector<16x192xf32>
    %377 = vector.extract_strided_slice %376 {offsets = [0, 0], sizes = [16, 96], strides = [1, 1]} : vector<16x192xf32> to vector<16x96xf32>
    %378 = vector.extract_strided_slice %376 {offsets = [0, 96], sizes = [16, 96], strides = [1, 1]} : vector<16x192xf32> to vector<16x96xf32>
    %379 = vector.extract_strided_slice %370 {offsets = [0, 192], sizes = [16, 96], strides = [1, 1]} : vector<16x384xf32> to vector<16x96xf32>
    %380 = math.tanh %379 : vector<16x96xf32>
    %381 = vector.extract_strided_slice %370 {offsets = [0, 288], sizes = [16, 96], strides = [1, 1]} : vector<16x384xf32> to vector<16x96xf32>
    %382 = arith.negf %381 : vector<16x96xf32>
    %383 = math.exp %382 : vector<16x96xf32>
    %cst_58 = arith.constant 1.000000e+00 : f32
    %384 = vector.broadcast %cst_58 : f32 to vector<16x96xf32>
    %385 = arith.addf %384, %383 : vector<16x96xf32>
    %386 = arith.divf %384, %385 : vector<16x96xf32>
    %387 = arith.mulf %378, %360 : vector<16x96xf32>
    %388 = arith.mulf %377, %380 : vector<16x96xf32>
    %389 = arith.addf %387, %388 : vector<16x96xf32>
    %390 = math.tanh %389 : vector<16x96xf32>
    %391 = arith.mulf %386, %390 : vector<16x96xf32>
    %cst_59 = arith.constant dense<0.000000e+00> : vector<16x768xf32>
    %392 = tpu.matmul %391, %273, %cst_59 {dimension_numbers = #tpu.dot_dimension_numbers<[1], [0], [0], [1], [0, 0, 1, 1], [], []>} : vector<16x96xf32>, vector<96x768xf32>, vector<16x768xf32> -> vector<16x768xf32>
    %393 = vector.extract_strided_slice %272 {offsets = [32, 0], sizes = [8, 384], strides = [1, 1]} : vector<64x768xf32> to vector<8x384xf32>
    %394 = vector.extract_strided_slice %392 {offsets = [0, 0], sizes = [8, 384], strides = [1, 1]} : vector<16x768xf32> to vector<8x384xf32>
    %395 = arith.addf %393, %394 : vector<8x384xf32>
    %396 = vector.extract_strided_slice %272 {offsets = [24, 384], sizes = [8, 384], strides = [1, 1]} : vector<64x768xf32> to vector<8x384xf32>
    %397 = vector.extract_strided_slice %392 {offsets = [8, 384], sizes = [8, 384], strides = [1, 1]} : vector<16x768xf32> to vector<8x384xf32>
    %398 = arith.addf %396, %397 : vector<8x384xf32>
    %399 = tpu.concatenate %395, %398 in 0 : vector<8x384xf32>, vector<8x384xf32> -> vector<16x384xf32>
    %400 = vector.extract_strided_slice %399 {offsets = [0, 0], sizes = [16, 192], strides = [1, 1]} : vector<16x384xf32> to vector<16x192xf32>
    %401 = arith.negf %400 : vector<16x192xf32>
    %402 = math.exp %401 : vector<16x192xf32>
    %cst_60 = arith.constant 1.000000e+00 : f32
    %403 = vector.broadcast %cst_60 : f32 to vector<16x192xf32>
    %404 = arith.addf %403, %402 : vector<16x192xf32>
    %405 = arith.divf %403, %404 : vector<16x192xf32>
    %406 = vector.extract_strided_slice %405 {offsets = [0, 0], sizes = [16, 96], strides = [1, 1]} : vector<16x192xf32> to vector<16x96xf32>
    %407 = vector.extract_strided_slice %405 {offsets = [0, 96], sizes = [16, 96], strides = [1, 1]} : vector<16x192xf32> to vector<16x96xf32>
    %408 = vector.extract_strided_slice %399 {offsets = [0, 192], sizes = [16, 96], strides = [1, 1]} : vector<16x384xf32> to vector<16x96xf32>
    %409 = math.tanh %408 : vector<16x96xf32>
    %410 = vector.extract_strided_slice %399 {offsets = [0, 288], sizes = [16, 96], strides = [1, 1]} : vector<16x384xf32> to vector<16x96xf32>
    %411 = arith.negf %410 : vector<16x96xf32>
    %412 = math.exp %411 : vector<16x96xf32>
    %cst_61 = arith.constant 1.000000e+00 : f32
    %413 = vector.broadcast %cst_61 : f32 to vector<16x96xf32>
    %414 = arith.addf %413, %412 : vector<16x96xf32>
    %415 = arith.divf %413, %414 : vector<16x96xf32>
    %416 = arith.mulf %407, %389 : vector<16x96xf32>
    %417 = arith.mulf %406, %409 : vector<16x96xf32>
    %418 = arith.addf %416, %417 : vector<16x96xf32>
    %419 = math.tanh %418 : vector<16x96xf32>
    %420 = arith.mulf %415, %419 : vector<16x96xf32>
    %cst_62 = arith.constant dense<0.000000e+00> : vector<16x768xf32>
    %421 = tpu.matmul %420, %273, %cst_62 {dimension_numbers = #tpu.dot_dimension_numbers<[1], [0], [0], [1], [0, 0, 1, 1], [], []>} : vector<16x96xf32>, vector<96x768xf32>, vector<16x768xf32> -> vector<16x768xf32>
    %422 = vector.extract_strided_slice %272 {offsets = [40, 0], sizes = [8, 384], strides = [1, 1]} : vector<64x768xf32> to vector<8x384xf32>
    %423 = vector.extract_strided_slice %421 {offsets = [0, 0], sizes = [8, 384], strides = [1, 1]} : vector<16x768xf32> to vector<8x384xf32>
    %424 = arith.addf %422, %423 : vector<8x384xf32>
    %425 = vector.extract_strided_slice %272 {offsets = [16, 384], sizes = [8, 384], strides = [1, 1]} : vector<64x768xf32> to vector<8x384xf32>
    %426 = vector.extract_strided_slice %421 {offsets = [8, 384], sizes = [8, 384], strides = [1, 1]} : vector<16x768xf32> to vector<8x384xf32>
    %427 = arith.addf %425, %426 : vector<8x384xf32>
    %428 = tpu.concatenate %424, %427 in 0 : vector<8x384xf32>, vector<8x384xf32> -> vector<16x384xf32>
    %429 = vector.extract_strided_slice %428 {offsets = [0, 0], sizes = [16, 192], strides = [1, 1]} : vector<16x384xf32> to vector<16x192xf32>
    %430 = arith.negf %429 : vector<16x192xf32>
    %431 = math.exp %430 : vector<16x192xf32>
    %cst_63 = arith.constant 1.000000e+00 : f32
    %432 = vector.broadcast %cst_63 : f32 to vector<16x192xf32>
    %433 = arith.addf %432, %431 : vector<16x192xf32>
    %434 = arith.divf %432, %433 : vector<16x192xf32>
    %435 = vector.extract_strided_slice %434 {offsets = [0, 0], sizes = [16, 96], strides = [1, 1]} : vector<16x192xf32> to vector<16x96xf32>
    %436 = vector.extract_strided_slice %434 {offsets = [0, 96], sizes = [16, 96], strides = [1, 1]} : vector<16x192xf32> to vector<16x96xf32>
    %437 = vector.extract_strided_slice %428 {offsets = [0, 192], sizes = [16, 96], strides = [1, 1]} : vector<16x384xf32> to vector<16x96xf32>
    %438 = math.tanh %437 : vector<16x96xf32>
    %439 = vector.extract_strided_slice %428 {offsets = [0, 288], sizes = [16, 96], strides = [1, 1]} : vector<16x384xf32> to vector<16x96xf32>
    %440 = arith.negf %439 : vector<16x96xf32>
    %441 = math.exp %440 : vector<16x96xf32>
    %cst_64 = arith.constant 1.000000e+00 : f32
    %442 = vector.broadcast %cst_64 : f32 to vector<16x96xf32>
    %443 = arith.addf %442, %441 : vector<16x96xf32>
    %444 = arith.divf %442, %443 : vector<16x96xf32>
    %445 = arith.mulf %436, %418 : vector<16x96xf32>
    %446 = arith.mulf %435, %438 : vector<16x96xf32>
    %447 = arith.addf %445, %446 : vector<16x96xf32>
    %448 = math.tanh %447 : vector<16x96xf32>
    %449 = arith.mulf %444, %448 : vector<16x96xf32>
    %cst_65 = arith.constant dense<0.000000e+00> : vector<16x768xf32>
    %450 = tpu.matmul %449, %273, %cst_65 {dimension_numbers = #tpu.dot_dimension_numbers<[1], [0], [0], [1], [0, 0, 1, 1], [], []>} : vector<16x96xf32>, vector<96x768xf32>, vector<16x768xf32> -> vector<16x768xf32>
    %451 = vector.extract_strided_slice %272 {offsets = [48, 0], sizes = [8, 384], strides = [1, 1]} : vector<64x768xf32> to vector<8x384xf32>
    %452 = vector.extract_strided_slice %450 {offsets = [0, 0], sizes = [8, 384], strides = [1, 1]} : vector<16x768xf32> to vector<8x384xf32>
    %453 = arith.addf %451, %452 : vector<8x384xf32>
    %454 = vector.extract_strided_slice %272 {offsets = [8, 384], sizes = [8, 384], strides = [1, 1]} : vector<64x768xf32> to vector<8x384xf32>
    %455 = vector.extract_strided_slice %450 {offsets = [8, 384], sizes = [8, 384], strides = [1, 1]} : vector<16x768xf32> to vector<8x384xf32>
    %456 = arith.addf %454, %455 : vector<8x384xf32>
    %457 = tpu.concatenate %453, %456 in 0 : vector<8x384xf32>, vector<8x384xf32> -> vector<16x384xf32>
    %458 = vector.extract_strided_slice %457 {offsets = [0, 0], sizes = [16, 192], strides = [1, 1]} : vector<16x384xf32> to vector<16x192xf32>
    %459 = arith.negf %458 : vector<16x192xf32>
    %460 = math.exp %459 : vector<16x192xf32>
    %cst_66 = arith.constant 1.000000e+00 : f32
    %461 = vector.broadcast %cst_66 : f32 to vector<16x192xf32>
    %462 = arith.addf %461, %460 : vector<16x192xf32>
    %463 = arith.divf %461, %462 : vector<16x192xf32>
    %464 = vector.extract_strided_slice %463 {offsets = [0, 0], sizes = [16, 96], strides = [1, 1]} : vector<16x192xf32> to vector<16x96xf32>
    %465 = vector.extract_strided_slice %463 {offsets = [0, 96], sizes = [16, 96], strides = [1, 1]} : vector<16x192xf32> to vector<16x96xf32>
    %466 = vector.extract_strided_slice %457 {offsets = [0, 192], sizes = [16, 96], strides = [1, 1]} : vector<16x384xf32> to vector<16x96xf32>
    %467 = math.tanh %466 : vector<16x96xf32>
    %468 = vector.extract_strided_slice %457 {offsets = [0, 288], sizes = [16, 96], strides = [1, 1]} : vector<16x384xf32> to vector<16x96xf32>
    %469 = arith.negf %468 : vector<16x96xf32>
    %470 = math.exp %469 : vector<16x96xf32>
    %cst_67 = arith.constant 1.000000e+00 : f32
    %471 = vector.broadcast %cst_67 : f32 to vector<16x96xf32>
    %472 = arith.addf %471, %470 : vector<16x96xf32>
    %473 = arith.divf %471, %472 : vector<16x96xf32>
    %474 = arith.mulf %465, %447 : vector<16x96xf32>
    %475 = arith.mulf %464, %467 : vector<16x96xf32>
    %476 = arith.addf %474, %475 : vector<16x96xf32>
    %477 = math.tanh %476 : vector<16x96xf32>
    %478 = arith.mulf %473, %477 : vector<16x96xf32>
    %cst_68 = arith.constant dense<0.000000e+00> : vector<16x768xf32>
    %479 = tpu.matmul %478, %273, %cst_68 {dimension_numbers = #tpu.dot_dimension_numbers<[1], [0], [0], [1], [0, 0, 1, 1], [], []>} : vector<16x96xf32>, vector<96x768xf32>, vector<16x768xf32> -> vector<16x768xf32>
    %480 = vector.extract_strided_slice %272 {offsets = [56, 0], sizes = [8, 384], strides = [1, 1]} : vector<64x768xf32> to vector<8x384xf32>
    %481 = vector.extract_strided_slice %479 {offsets = [0, 0], sizes = [8, 384], strides = [1, 1]} : vector<16x768xf32> to vector<8x384xf32>
    %482 = arith.addf %480, %481 : vector<8x384xf32>
    %483 = vector.extract_strided_slice %272 {offsets = [0, 384], sizes = [8, 384], strides = [1, 1]} : vector<64x768xf32> to vector<8x384xf32>
    %484 = vector.extract_strided_slice %479 {offsets = [8, 384], sizes = [8, 384], strides = [1, 1]} : vector<16x768xf32> to vector<8x384xf32>
    %485 = arith.addf %483, %484 : vector<8x384xf32>
    %486 = tpu.concatenate %482, %485 in 0 : vector<8x384xf32>, vector<8x384xf32> -> vector<16x384xf32>
    %487 = vector.extract_strided_slice %486 {offsets = [0, 0], sizes = [16, 192], strides = [1, 1]} : vector<16x384xf32> to vector<16x192xf32>
    %488 = arith.negf %487 : vector<16x192xf32>
    %489 = math.exp %488 : vector<16x192xf32>
    %cst_69 = arith.constant 1.000000e+00 : f32
    %490 = vector.broadcast %cst_69 : f32 to vector<16x192xf32>
    %491 = arith.addf %490, %489 : vector<16x192xf32>
    %492 = arith.divf %490, %491 : vector<16x192xf32>
    %493 = vector.extract_strided_slice %492 {offsets = [0, 0], sizes = [16, 96], strides = [1, 1]} : vector<16x192xf32> to vector<16x96xf32>
    %494 = vector.extract_strided_slice %492 {offsets = [0, 96], sizes = [16, 96], strides = [1, 1]} : vector<16x192xf32> to vector<16x96xf32>
    %495 = vector.extract_strided_slice %486 {offsets = [0, 192], sizes = [16, 96], strides = [1, 1]} : vector<16x384xf32> to vector<16x96xf32>
    %496 = math.tanh %495 : vector<16x96xf32>
    %497 = vector.extract_strided_slice %486 {offsets = [0, 288], sizes = [16, 96], strides = [1, 1]} : vector<16x384xf32> to vector<16x96xf32>
    %498 = arith.negf %497 : vector<16x96xf32>
    %499 = math.exp %498 : vector<16x96xf32>
    %cst_70 = arith.constant 1.000000e+00 : f32
    %500 = vector.broadcast %cst_70 : f32 to vector<16x96xf32>
    %501 = arith.addf %500, %499 : vector<16x96xf32>
    %502 = arith.divf %500, %501 : vector<16x96xf32>
    %503 = arith.mulf %494, %476 : vector<16x96xf32>
    %504 = arith.mulf %493, %496 : vector<16x96xf32>
    %505 = arith.addf %503, %504 : vector<16x96xf32>
    %506 = math.tanh %505 : vector<16x96xf32>
    %507 = arith.mulf %502, %506 : vector<16x96xf32>
    %c0_71 = arith.constant 0 : index
    %c0_72 = arith.constant 0 : index
    %508 = vector.load %arg8[%c0_71, %c0_72] : memref<96x3xf32, #tpu.memory_space<vmem>>, vector<96x3xf32>
    %c0_73 = arith.constant 0 : index
    %c0_74 = arith.constant 0 : index
    %509 = vector.load %arg9[%c0_73, %c0_74] : memref<3x96xf32, #tpu.memory_space<vmem>>, vector<3x96xf32>
    %510 = arith.mulf %304, %507 : vector<16x96xf32>
    %cst_75 = arith.constant dense<0.000000e+00> : vector<16x3xf32>
    %511 = tpu.matmul %510, %508, %cst_75 {dimension_numbers = #tpu.dot_dimension_numbers<[1], [0], [0], [1], [0, 0, 1, 1], [], []>} : vector<16x96xf32>, vector<96x3xf32>, vector<16x3xf32> -> vector<16x3xf32>
    %512 = arith.mulf %333, %507 : vector<16x96xf32>
    %cst_76 = arith.constant dense<0.000000e+00> : vector<16x3xf32>
    %513 = tpu.matmul %512, %508, %cst_76 {dimension_numbers = #tpu.dot_dimension_numbers<[1], [0], [0], [1], [0, 0, 1, 1], [], []>} : vector<16x96xf32>, vector<96x3xf32>, vector<16x3xf32> -> vector<16x3xf32>
    %514 = arith.mulf %362, %507 : vector<16x96xf32>
    %cst_77 = arith.constant dense<0.000000e+00> : vector<16x3xf32>
    %515 = tpu.matmul %514, %508, %cst_77 {dimension_numbers = #tpu.dot_dimension_numbers<[1], [0], [0], [1], [0, 0, 1, 1], [], []>} : vector<16x96xf32>, vector<96x3xf32>, vector<16x3xf32> -> vector<16x3xf32>
    %516 = arith.mulf %391, %507 : vector<16x96xf32>
    %cst_78 = arith.constant dense<0.000000e+00> : vector<16x3xf32>
    %517 = tpu.matmul %516, %508, %cst_78 {dimension_numbers = #tpu.dot_dimension_numbers<[1], [0], [0], [1], [0, 0, 1, 1], [], []>} : vector<16x96xf32>, vector<96x3xf32>, vector<16x3xf32> -> vector<16x3xf32>
    %518 = arith.mulf %420, %507 : vector<16x96xf32>
    %cst_79 = arith.constant dense<0.000000e+00> : vector<16x3xf32>
    %519 = tpu.matmul %518, %508, %cst_79 {dimension_numbers = #tpu.dot_dimension_numbers<[1], [0], [0], [1], [0, 0, 1, 1], [], []>} : vector<16x96xf32>, vector<96x3xf32>, vector<16x3xf32> -> vector<16x3xf32>
    %520 = arith.mulf %449, %507 : vector<16x96xf32>
    %cst_80 = arith.constant dense<0.000000e+00> : vector<16x3xf32>
    %521 = tpu.matmul %520, %508, %cst_80 {dimension_numbers = #tpu.dot_dimension_numbers<[1], [0], [0], [1], [0, 0, 1, 1], [], []>} : vector<16x96xf32>, vector<96x3xf32>, vector<16x3xf32> -> vector<16x3xf32>
    %522 = arith.mulf %478, %507 : vector<16x96xf32>
    %cst_81 = arith.constant dense<0.000000e+00> : vector<16x3xf32>
    %523 = tpu.matmul %522, %508, %cst_81 {dimension_numbers = #tpu.dot_dimension_numbers<[1], [0], [0], [1], [0, 0, 1, 1], [], []>} : vector<16x96xf32>, vector<96x3xf32>, vector<16x3xf32> -> vector<16x3xf32>
    %524 = arith.mulf %507, %507 : vector<16x96xf32>
    %cst_82 = arith.constant dense<0.000000e+00> : vector<16x3xf32>
    %525 = tpu.matmul %524, %508, %cst_82 {dimension_numbers = #tpu.dot_dimension_numbers<[1], [0], [0], [1], [0, 0, 1, 1], [], []>} : vector<16x96xf32>, vector<96x3xf32>, vector<16x3xf32> -> vector<16x3xf32>
    %526 = arith.maximumf %511, %513 : vector<16x3xf32>
    %527 = arith.maximumf %515, %517 : vector<16x3xf32>
    %528 = arith.maximumf %519, %521 : vector<16x3xf32>
    %529 = arith.maximumf %523, %525 : vector<16x3xf32>
    %530 = arith.maximumf %526, %527 : vector<16x3xf32>
    %531 = arith.maximumf %528, %529 : vector<16x3xf32>
    %532 = arith.maximumf %530, %531 : vector<16x3xf32>
    %533 = arith.subf %511, %532 : vector<16x3xf32>
    %534 = math.exp %533 : vector<16x3xf32>
    %535 = arith.subf %513, %532 : vector<16x3xf32>
    %536 = math.exp %535 : vector<16x3xf32>
    %537 = arith.subf %515, %532 : vector<16x3xf32>
    %538 = math.exp %537 : vector<16x3xf32>
    %539 = arith.subf %517, %532 : vector<16x3xf32>
    %540 = math.exp %539 : vector<16x3xf32>
    %541 = arith.subf %519, %532 : vector<16x3xf32>
    %542 = math.exp %541 : vector<16x3xf32>
    %543 = arith.subf %521, %532 : vector<16x3xf32>
    %544 = math.exp %543 : vector<16x3xf32>
    %545 = arith.subf %523, %532 : vector<16x3xf32>
    %546 = math.exp %545 : vector<16x3xf32>
    %547 = arith.subf %525, %532 : vector<16x3xf32>
    %548 = math.exp %547 : vector<16x3xf32>
    %549 = arith.addf %534, %536 : vector<16x3xf32>
    %550 = arith.addf %538, %540 : vector<16x3xf32>
    %551 = arith.addf %542, %544 : vector<16x3xf32>
    %552 = arith.addf %546, %548 : vector<16x3xf32>
    %553 = arith.addf %549, %550 : vector<16x3xf32>
    %554 = arith.addf %551, %552 : vector<16x3xf32>
    %555 = arith.addf %553, %554 : vector<16x3xf32>
    %cst_83 = arith.constant dense<0.000000e+00> : vector<16x96xf32>
    %556 = tpu.matmul %534, %509, %cst_83 {dimension_numbers = #tpu.dot_dimension_numbers<[1], [0], [0], [1], [0, 0, 1, 1], [], []>} : vector<16x3xf32>, vector<3x96xf32>, vector<16x96xf32> -> vector<16x96xf32>
    %557 = arith.mulf %556, %304 : vector<16x96xf32>
    %cst_84 = arith.constant dense<0.000000e+00> : vector<16x96xf32>
    %558 = tpu.matmul %536, %509, %cst_84 {dimension_numbers = #tpu.dot_dimension_numbers<[1], [0], [0], [1], [0, 0, 1, 1], [], []>} : vector<16x3xf32>, vector<3x96xf32>, vector<16x96xf32> -> vector<16x96xf32>
    %559 = arith.mulf %558, %333 : vector<16x96xf32>
    %cst_85 = arith.constant dense<0.000000e+00> : vector<16x96xf32>
    %560 = tpu.matmul %538, %509, %cst_85 {dimension_numbers = #tpu.dot_dimension_numbers<[1], [0], [0], [1], [0, 0, 1, 1], [], []>} : vector<16x3xf32>, vector<3x96xf32>, vector<16x96xf32> -> vector<16x96xf32>
    %561 = arith.mulf %560, %362 : vector<16x96xf32>
    %cst_86 = arith.constant dense<0.000000e+00> : vector<16x96xf32>
    %562 = tpu.matmul %540, %509, %cst_86 {dimension_numbers = #tpu.dot_dimension_numbers<[1], [0], [0], [1], [0, 0, 1, 1], [], []>} : vector<16x3xf32>, vector<3x96xf32>, vector<16x96xf32> -> vector<16x96xf32>
    %563 = arith.mulf %562, %391 : vector<16x96xf32>
    %cst_87 = arith.constant dense<0.000000e+00> : vector<16x96xf32>
    %564 = tpu.matmul %542, %509, %cst_87 {dimension_numbers = #tpu.dot_dimension_numbers<[1], [0], [0], [1], [0, 0, 1, 1], [], []>} : vector<16x3xf32>, vector<3x96xf32>, vector<16x96xf32> -> vector<16x96xf32>
    %565 = arith.mulf %564, %420 : vector<16x96xf32>
    %cst_88 = arith.constant dense<0.000000e+00> : vector<16x96xf32>
    %566 = tpu.matmul %544, %509, %cst_88 {dimension_numbers = #tpu.dot_dimension_numbers<[1], [0], [0], [1], [0, 0, 1, 1], [], []>} : vector<16x3xf32>, vector<3x96xf32>, vector<16x96xf32> -> vector<16x96xf32>
    %567 = arith.mulf %566, %449 : vector<16x96xf32>
    %cst_89 = arith.constant dense<0.000000e+00> : vector<16x96xf32>
    %568 = tpu.matmul %546, %509, %cst_89 {dimension_numbers = #tpu.dot_dimension_numbers<[1], [0], [0], [1], [0, 0, 1, 1], [], []>} : vector<16x3xf32>, vector<3x96xf32>, vector<16x96xf32> -> vector<16x96xf32>
    %569 = arith.mulf %568, %478 : vector<16x96xf32>
    %cst_90 = arith.constant dense<0.000000e+00> : vector<16x96xf32>
    %570 = tpu.matmul %548, %509, %cst_90 {dimension_numbers = #tpu.dot_dimension_numbers<[1], [0], [0], [1], [0, 0, 1, 1], [], []>} : vector<16x3xf32>, vector<3x96xf32>, vector<16x96xf32> -> vector<16x96xf32>
    %571 = arith.mulf %570, %507 : vector<16x96xf32>
    %572 = arith.addf %557, %559 : vector<16x96xf32>
    %573 = arith.addf %561, %563 : vector<16x96xf32>
    %574 = arith.addf %565, %567 : vector<16x96xf32>
    %575 = arith.addf %569, %571 : vector<16x96xf32>
    %576 = arith.addf %572, %573 : vector<16x96xf32>
    %577 = arith.addf %574, %575 : vector<16x96xf32>
    %578 = arith.addf %576, %577 : vector<16x96xf32>
    %cst_91 = arith.constant 1.000000e+00 : f32
    %579 = vector.broadcast %cst_91 : f32 to vector<16x3xf32>
    %580 = arith.divf %579, %555 : vector<16x3xf32>
    %cst_92 = arith.constant dense<0.000000e+00> : vector<16x96xf32>
    %581 = tpu.matmul %580, %509, %cst_92 {dimension_numbers = #tpu.dot_dimension_numbers<[1], [0], [0], [1], [0, 0, 1, 1], [], []>} : vector<16x3xf32>, vector<3x96xf32>, vector<16x96xf32> -> vector<16x96xf32>
    %582 = arith.mulf %578, %581 : vector<16x96xf32>
    %583 = vector.extract_strided_slice %582 {offsets = [0, 0], sizes = [8, 96], strides = [1, 1]} : vector<16x96xf32> to vector<8x96xf32>
    %c0_93 = arith.constant 0 : index
    %c0_94 = arith.constant 0 : index
    %584 = vector.load %arg10[%c0_93, %c0_94] : memref<96x384xf32, #tpu.memory_space<vmem>>, vector<96x384xf32>
    %cst_95 = arith.constant dense<0.000000e+00> : vector<8x384xf32>
    %585 = tpu.matmul %583, %584, %cst_95 {dimension_numbers = #tpu.dot_dimension_numbers<[1], [0], [0], [1], [0, 0, 1, 1], [], []>} : vector<8x96xf32>, vector<96x384xf32>, vector<8x384xf32> -> vector<8x384xf32>
    %586 = vector.extract_strided_slice %582 {offsets = [8, 0], sizes = [8, 96], strides = [1, 1]} : vector<16x96xf32> to vector<8x96xf32>
    %c0_96 = arith.constant 0 : index
    %c0_97 = arith.constant 0 : index
    %587 = vector.load %arg11[%c0_96, %c0_97] : memref<96x384xf32, #tpu.memory_space<vmem>>, vector<96x384xf32>
    %cst_98 = arith.constant dense<0.000000e+00> : vector<8x384xf32>
    %588 = tpu.matmul %586, %587, %cst_98 {dimension_numbers = #tpu.dot_dimension_numbers<[1], [0], [0], [1], [0, 0, 1, 1], [], []>} : vector<8x96xf32>, vector<96x384xf32>, vector<8x384xf32> -> vector<8x384xf32>
    %589 = arith.addf %585, %588 : vector<8x384xf32>
    %c0_99 = arith.constant 0 : index
    %c0_100 = arith.constant 0 : index
    %590 = vector.load %arg12[%c0_99, %c0_100] : memref<1x384xf32, #tpu.memory_space<vmem>>, vector<1x384xf32>
    %591 = vector.broadcast %590 : vector<1x384xf32> to vector<8x384xf32>
    %592 = arith.addf %589, %591 : vector<8x384xf32>
    %593 = vector.extract_strided_slice %592 {offsets = [0, 0], sizes = [8, 128], strides = [1, 1]} : vector<8x384xf32> to vector<8x128xf32>
    %cst_101 = arith.constant dense<0xFF800000> : vector<8xf32>
    %594 = vector.multi_reduction <maximumf>, %593, %cst_101 [1] : vector<8x128xf32> to vector<8xf32>
    %595 = vector.shape_cast %594 : vector<8xf32> to vector<8x1xf32>
    %596 = vector.broadcast %595 : vector<8x1xf32> to vector<8x128xf32>
    %597 = arith.subf %593, %596 : vector<8x128xf32>
    %598 = math.exp %597 : vector<8x128xf32>
    %cst_102 = arith.constant dense<0.000000e+00> : vector<8xf32>
    %599 = vector.multi_reduction <add>, %598, %cst_102 [1] : vector<8x128xf32> to vector<8xf32>
    %600 = vector.shape_cast %599 : vector<8xf32> to vector<8x1xf32>
    %cst_103 = arith.constant 1.000000e+00 : f32
    %601 = vector.broadcast %cst_103 : f32 to vector<8x1xf32>
    %602 = arith.divf %601, %600 : vector<8x1xf32>
    %603 = vector.broadcast %602 : vector<8x1xf32> to vector<8x128xf32>
    %604 = arith.mulf %598, %603 : vector<8x128xf32>
    %605 = vector.extract_strided_slice %592 {offsets = [0, 128], sizes = [8, 128], strides = [1, 1]} : vector<8x384xf32> to vector<8x128xf32>
    %cst_104 = arith.constant dense<0xFF800000> : vector<8xf32>
    %606 = vector.multi_reduction <maximumf>, %605, %cst_104 [1] : vector<8x128xf32> to vector<8xf32>
    %607 = vector.shape_cast %606 : vector<8xf32> to vector<8x1xf32>
    %608 = vector.broadcast %607 : vector<8x1xf32> to vector<8x128xf32>
    %609 = arith.subf %605, %608 : vector<8x128xf32>
    %610 = math.exp %609 : vector<8x128xf32>
    %cst_105 = arith.constant dense<0.000000e+00> : vector<8xf32>
    %611 = vector.multi_reduction <add>, %610, %cst_105 [1] : vector<8x128xf32> to vector<8xf32>
    %612 = vector.shape_cast %611 : vector<8xf32> to vector<8x1xf32>
    %cst_106 = arith.constant 1.000000e+00 : f32
    %613 = vector.broadcast %cst_106 : f32 to vector<8x1xf32>
    %614 = arith.divf %613, %612 : vector<8x1xf32>
    %615 = vector.broadcast %614 : vector<8x1xf32> to vector<8x128xf32>
    %616 = arith.mulf %610, %615 : vector<8x128xf32>
    %617 = vector.extract_strided_slice %592 {offsets = [0, 256], sizes = [8, 128], strides = [1, 1]} : vector<8x384xf32> to vector<8x128xf32>
    %cst_107 = arith.constant dense<0xFF800000> : vector<8xf32>
    %618 = vector.multi_reduction <maximumf>, %617, %cst_107 [1] : vector<8x128xf32> to vector<8xf32>
    %619 = vector.shape_cast %618 : vector<8xf32> to vector<8x1xf32>
    %620 = vector.broadcast %619 : vector<8x1xf32> to vector<8x128xf32>
    %621 = arith.subf %617, %620 : vector<8x128xf32>
    %622 = math.exp %621 : vector<8x128xf32>
    %cst_108 = arith.constant dense<0.000000e+00> : vector<8xf32>
    %623 = vector.multi_reduction <add>, %622, %cst_108 [1] : vector<8x128xf32> to vector<8xf32>
    %624 = vector.shape_cast %623 : vector<8xf32> to vector<8x1xf32>
    %cst_109 = arith.constant 1.000000e+00 : f32
    %625 = vector.broadcast %cst_109 : f32 to vector<8x1xf32>
    %626 = arith.divf %625, %624 : vector<8x1xf32>
    %627 = vector.broadcast %626 : vector<8x1xf32> to vector<8x128xf32>
    %628 = arith.mulf %622, %627 : vector<8x128xf32>
    %c0_110 = arith.constant 0 : index
    %c0_111 = arith.constant 0 : index
    %629 = vector.load %arg13[%c0_110, %c0_111] : memref<8x128xf32, #tpu.memory_space<vmem>>, vector<8x128xf32>
    %c0_112 = arith.constant 0 : index
    %c0_113 = arith.constant 0 : index
    %630 = vector.load %arg14[%c0_112, %c0_113] : memref<8x128xf32, #tpu.memory_space<vmem>>, vector<8x128xf32>
    %c0_114 = arith.constant 0 : index
    %c0_115 = arith.constant 0 : index
    %631 = vector.load %arg15[%c0_114, %c0_115] : memref<8x1xf32, #tpu.memory_space<vmem>>, vector<8x1xf32>
    %c0_116 = arith.constant 0 : index
    %c0_117 = arith.constant 0 : index
    %632 = vector.load %arg16[%c0_116, %c0_117] : memref<2x128xf32, #tpu.memory_space<vmem>>, vector<2x128xf32>
    %633 = arith.mulf %604, %629 : vector<8x128xf32>
    %cst_118 = arith.constant dense<0.000000e+00> : vector<8xf32>
    %634 = vector.multi_reduction <add>, %633, %cst_118 [1] : vector<8x128xf32> to vector<8xf32>
    %635 = vector.shape_cast %634 : vector<8xf32> to vector<8x1xf32>
    %636 = arith.mulf %604, %630 : vector<8x128xf32>
    %cst_119 = arith.constant dense<0.000000e+00> : vector<8xf32>
    %637 = vector.multi_reduction <add>, %636, %cst_119 [1] : vector<8x128xf32> to vector<8xf32>
    %638 = vector.shape_cast %637 : vector<8xf32> to vector<8x1xf32>
    %639 = arith.mulf %616, %629 : vector<8x128xf32>
    %cst_120 = arith.constant dense<0.000000e+00> : vector<8xf32>
    %640 = vector.multi_reduction <add>, %639, %cst_120 [1] : vector<8x128xf32> to vector<8xf32>
    %641 = vector.shape_cast %640 : vector<8xf32> to vector<8x1xf32>
    %642 = arith.mulf %616, %630 : vector<8x128xf32>
    %cst_121 = arith.constant dense<0.000000e+00> : vector<8xf32>
    %643 = vector.multi_reduction <add>, %642, %cst_121 [1] : vector<8x128xf32> to vector<8xf32>
    %644 = vector.shape_cast %643 : vector<8xf32> to vector<8x1xf32>
    %645 = vector.extract_strided_slice %632 {offsets = [0, 0], sizes = [1, 128], strides = [1, 1]} : vector<2x128xf32> to vector<1x128xf32>
    %646 = vector.broadcast %645 : vector<1x128xf32> to vector<8x128xf32>
    %647 = arith.mulf %628, %646 : vector<8x128xf32>
    %cst_122 = arith.constant dense<0.000000e+00> : vector<8xf32>
    %648 = vector.multi_reduction <add>, %647, %cst_122 [1] : vector<8x128xf32> to vector<8xf32>
    %649 = vector.shape_cast %648 : vector<8xf32> to vector<8x1xf32>
    %650 = vector.extract_strided_slice %632 {offsets = [1, 0], sizes = [1, 128], strides = [1, 1]} : vector<2x128xf32> to vector<1x128xf32>
    %651 = vector.broadcast %650 : vector<1x128xf32> to vector<8x128xf32>
    %652 = arith.mulf %628, %651 : vector<8x128xf32>
    %cst_123 = arith.constant dense<0.000000e+00> : vector<8xf32>
    %653 = vector.multi_reduction <add>, %652, %cst_123 [1] : vector<8x128xf32> to vector<8xf32>
    %654 = vector.shape_cast %653 : vector<8xf32> to vector<8x1xf32>
    %655 = arith.mulf %631, %649 : vector<8x1xf32>
    %656 = arith.addf %641, %655 : vector<8x1xf32>
    %657 = arith.mulf %631, %654 : vector<8x1xf32>
    %658 = arith.addf %644, %657 : vector<8x1xf32>
    %cst_124 = arith.constant 0.000000e+00 : f32
    %659 = vector.broadcast %cst_124 : f32 to vector<8x124xf32>
    %660 = tpu.concatenate %635, %638, %656, %658, %659 in 1 : vector<8x1xf32>, vector<8x1xf32>, vector<8x1xf32>, vector<8x1xf32>, vector<8x124xf32> -> vector<8x128xf32>
    %c0_125 = arith.constant 0 : index
    %c0_126 = arith.constant 0 : index
    %661 = vector.load %arg17[%c0_125, %c0_126] : memref<8x128xf32, #tpu.memory_space<vmem>>, vector<8x128xf32>
    tpu.vector_store %arg17[%c0_125, %c0_126], %660 {strides = array<i32>} : memref<8x128xf32, #tpu.memory_space<vmem>>, vector<8x128xf32>,
    return
  }
}

</mosaic_0001>

<bundles_post_ra>
// kernel: model_pallas.1
= control target key start
LH: loop header
LB: loop body
LE: loop exit
PB: predicated region body
PF: predicated region fallthrough
CT: control target
= control target key end

     0   :  { %s15607_s0 = inlined_call_operand.vmem [shape: s32[64,1], index: 0, kind: input, shape index: {}]   ;;  %s15608_s1 = inlined_call_operand.hbm [shape: f32[128,768], index: 1, kind: input, shape index: {}]   ;;  %s15609_s2 = inlined_call_operand.vmem [shape: f32[1,768], index: 2, kind: input, shape index: {}]   ;;  %s15610_s3 = inlined_call_operand.hbm [shape: f32[96,768], index: 3, kind: input, shape index: {}]   ;;  %s15611_s4 = inlined_call_operand.hbm [shape: f32[96,768], index: 4, kind: input, shape index: {}]   ;;  %s15612_s5 = inlined_call_operand.hbm [shape: f32[96,768], index: 5, kind: input, shape index: {}]   ;;  %s15613_s6 = inlined_call_operand.vmem [shape: f32[1,768], index: 6, kind: input, shape index: {}]   ;;  %s15614_s7 = inlined_call_operand.hbm [shape: f32[96,768], index: 7, kind: input, shape index: {}]   ;;  %s15615_s8 = inlined_call_operand.vmem [shape: f32[96,3], index: 8, kind: input, shape index: {}]   ;;  %s15616_s9 = inlined_call_operand.vmem [shape: f32[3,96], index: 9, kind: input, shape index: {}]   ;;  %s15617_s10 = inlined_call_operand.vmem [shape: f32[96,384], index: 10, kind: input, shape index: {}]   ;;  %s15618_s11 = inlined_call_operand.hbm [shape: f32[96,384], index: 11, kind: input, shape index: {}]   ;;  %s15619_s12 = inlined_call_operand.hbm [shape: f32[1,384], index: 12, kind: input, shape index: {}]   ;;  %s15620_s13 = inlined_call_operand.vmem [shape: f32[8,128], index: 13, kind: input, shape index: {}]   ;;  %s15621_s14 = inlined_call_operand.vmem [shape: f32[8,128], index: 14, kind: input, shape index: {}]   ;;  %s15622_s15 = inlined_call_operand.vmem [shape: f32[8,1], index: 15, kind: input, shape index: {}]   ;;  %s15623_s16 = inlined_call_operand.hbm [shape: f32[2,128], index: 16, kind: input, shape index: {}]   ;;  %s15624_s17 = inlined_call_operand.vmem [shape: f32[8,128], index: 17, kind: output, shape index: {}]  }
   0x1   :  { %15694 = sst [smem:[#allocation50_spill]] %s15607_s0 }
   0x2   :  { %15695 = sst [smem:[#allocation51_spill]] %s15608_s1 }
   0x3   :  { %22 = vsyncpa [#allocation3], 0 }
   0x4   :  { %23 = vsyncpa [#allocation5], 0 }
   0x5   :  { %24 = vsyncpa [#allocation8], 0 }
   0x6   :  { %25 = vsyncpa [#allocation11], 0 }
   0x7   :  { %26 = vsyncpa [#allocation14], 0  ;;  %s12679_s24 = smov [#allocation4]   ;;  %s12680_s26 = smov [#allocation7]  }
   0x8   :  { %s48_s25 = sshll.u32 %s12679_s24, 4  ;;  %s72_s27 = sshll.u32 %s12680_s26, 4  ;;  %s49_s25 = int_to_ptr.vmem [resolvable:$true] %s48_s25  ;;  %s12790_s27 = int_to_ptr.vmem [resolvable:$true] %s72_s27 }
   0x9   :  { %s12493_s0 = scalar_lea.hbm %s15610_s3, 9216 }
   0xa   :  { %p12494_p0 = scmp.ne.s32.totalorder %s15610_s3, %s12493_s0  ;;  %p12497_p1 = scmp.lt.u32.totalorder %s12493_s0, %s15610_s3 }
   0xc   :  { %p12499_p2 = pnand %p12497_p1, %p12494_p0 }
   0xe   :  { %12502 = shalt.err (!%p12499_p2)
}
   0xf   :  { %s12503_s20 = scalar_lea.vmem %s49_s25, 9216  ;;  %p12508_p4 = scmp.lt.s32.totalorder %s49_s25, %s49_s25 }
  0x10   :  { %p12504_p3 = scmp.ne.s32.totalorder %s49_s25, %s12503_s20  ;;  %p12509_p5 = scmp.lt.s32.totalorder %s12503_s20, %s12503_s20 }
  0x12   :  { %p12510_p6 = por %p12509_p5, %p12508_p4 }
  0x14   :  { %p12511_p7 = pnand %p12510_p6, %p12504_p3 }
  0x16   :  { %12514 = shalt.err (!%p12511_p7)
}
  0x17   :  { %s15627_s21 = smov 768   ;;  %s15629_s22 = smov 48  }
  0x18   :  { %54 = dma.hbm_to_vmem [thread:$0]  %s15610_s3, 9216, %s49_s25, [#allocation5], %s15627_s21, %s15627_s21, %s15629_s22  }
  0x19   :  { %s12515_s29 = scalar_lea.hbm %s15612_s5, 9216 }
  0x1a   :  { %p12516_p8 = scmp.ne.s32.totalorder %s15612_s5, %s12515_s29  ;;  %p12519_p9 = scmp.lt.u32.totalorder %s12515_s29, %s15612_s5 }
  0x1c   :  { %p12521_p10 = pnand %p12519_p9, %p12516_p8 }
  0x1e   :  { %12524 = shalt.err (!%p12521_p10)
}
  0x1f   :  { %s12525_s1 = scalar_lea.vmem %s12790_s27, 9216  ;;  %p12530_p12 = scmp.lt.s32.totalorder %s12790_s27, %s12790_s27 }
  0x20   :  { %p12526_p11 = scmp.ne.s32.totalorder %s12790_s27, %s12525_s1  ;;  %p12531_p13 = scmp.lt.s32.totalorder %s12525_s1, %s12525_s1 }
  0x22   :  { %p12532_p0 = por %p12531_p13, %p12530_p12 }
  0x24   :  { %p12533_p1 = pnand %p12532_p0, %p12526_p11 }
  0x26   :  { %12536 = shalt.err (!%p12533_p1)
}
  0x27   :  { %78 = dma.hbm_to_vmem [thread:$0]  %s15612_s5, 9216, %s12790_s27, [#allocation8], %s15627_s21, %s15627_s21, %s15629_s22  }
  0x28   :  { %s12683_s20 = smov [#allocation10]   ;;  %s12537_s28 = scalar_lea.hbm %s15618_s11, 4608 }
  0x29   :  { %s104_s23 = sshll.u32 %s12683_s20, 4  ;;  %p12538_p2 = scmp.ne.s32.totalorder %s15618_s11, %s12537_s28  ;;  %s105_s23 = int_to_ptr.vmem [resolvable:$true] %s104_s23 }
  0x2a   :  { %p12541_p3 = scmp.lt.u32.totalorder %s12537_s28, %s15618_s11 }
  0x2c   :  { %p12543_p4 = pnand %p12541_p3, %p12538_p2 }
  0x2e   :  { %12546 = shalt.err (!%p12543_p4)
}
  0x2f   :  { %s12547_s19 = scalar_lea.vmem %s105_s23, 4608  ;;  %p12552_p6 = scmp.lt.s32.totalorder %s105_s23, %s105_s23 }
  0x30   :  { %p12548_p5 = scmp.ne.s32.totalorder %s105_s23, %s12547_s19  ;;  %p12553_p7 = scmp.lt.s32.totalorder %s12547_s19, %s12547_s19 }
  0x32   :  { %p12554_p8 = por %p12553_p7, %p12552_p6 }
  0x34   :  { %p12555_p9 = pnand %p12554_p8, %p12548_p5 }
  0x36   :  { %12558 = shalt.err (!%p12555_p9)
}
  0x37   :  { %s12684_s5 = smov 384   ;;  %s12685_s27 = smov 24  }
  0x38   :  { %110 = dma.hbm_to_vmem [thread:$0]  %s15618_s11, 4608, %s105_s23, [#allocation11], %s12684_s5, %s12684_s5, %s12685_s27  }
  0x39   :  { %s12686_s25 = smov [#allocation2]   ;;  %s12687_s24 = smov [#allocation6]  }
  0x3a   :  { %s34_s20 = sshll.u32 %s12686_s25, 4  ;;  %s60_s26 = sshll.u32 %s12687_s24, 4  ;;  %s35_s20 = int_to_ptr.vmem [resolvable:$true] %s34_s20  ;;  %s61_s26 = int_to_ptr.vmem [resolvable:$true] %s60_s26 }
  0x3b   :  { %s15696_s0 = sld [smem:[#allocation51_spill]] }
  0x41   :  { %s12559_s30 = scalar_lea.hbm %s15696_s0, 12288 }
  0x42   :  { %p12560_p10 = scmp.ne.s32.totalorder %s15696_s0, %s12559_s30  ;;  %p12563_p11 = scmp.lt.u32.totalorder %s12559_s30, %s15696_s0 }
  0x44   :  { %p12565_p12 = pnand %p12563_p11, %p12560_p10 }
  0x46   :  { %12568 = shalt.err (!%p12565_p12)
}
  0x47   :  { %s12569_s11 = scalar_lea.vmem %s35_s20, 12288  ;;  %p12574_p0 = scmp.lt.s32.totalorder %s35_s20, %s35_s20 }
  0x48   :  { %p12570_p13 = scmp.ne.s32.totalorder %s35_s20, %s12569_s11  ;;  %p12575_p1 = scmp.lt.s32.totalorder %s12569_s11, %s12569_s11 }
  0x4a   :  { %p12576_p2 = por %p12575_p1, %p12574_p0 }
  0x4c   :  { %p12577_p3 = pnand %p12576_p2, %p12570_p13 }
  0x4e   :  { %12580 = shalt.err (!%p12577_p3)
}
  0x4f   :  { %s15697_s23 = smov 48   ;;  %s15698_s5 = smov 768  }
  0x50   :  { %40 = dma.hbm_to_vmem [thread:$0]  %s15696_s0, 12288, %s35_s20, [#allocation3], %s15698_s5, %s15698_s5, %s15697_s23  }
  0x51   :  { %s12581_s22 = scalar_lea.hbm %s15611_s4, 9216 }
  0x52   :  { %p12582_p4 = scmp.ne.s32.totalorder %s15611_s4, %s12581_s22  ;;  %p12585_p5 = scmp.lt.u32.totalorder %s12581_s22, %s15611_s4 }
  0x54   :  { %p12587_p6 = pnand %p12585_p5, %p12582_p4 }
  0x56   :  { %12590 = shalt.err (!%p12587_p6)
}
  0x57   :  { %s12591_s30 = scalar_lea.vmem %s61_s26, 9216  ;;  %p12596_p8 = scmp.lt.s32.totalorder %s61_s26, %s61_s26 }
  0x58   :  { %p12592_p7 = scmp.ne.s32.totalorder %s61_s26, %s12591_s30  ;;  %p12597_p9 = scmp.lt.s32.totalorder %s12591_s30, %s12591_s30 }
  0x5a   :  { %p12598_p10 = por %p12597_p9, %p12596_p8 }
  0x5c   :  { %p12599_p11 = pnand %p12598_p10, %p12592_p7 }
  0x5e   :  { %12602 = shalt.err (!%p12599_p11)
}
  0x5f   :  { %66 = dma.hbm_to_vmem [thread:$0]  %s15611_s4, 9216, %s61_s26, [#allocation5], %s15698_s5, %s15698_s5, %s15697_s23  }
  0x60   :  { %s12688_s18 = smov [#allocation9]   ;;  %s12689_s11 = smov [#allocation12]  }
  0x61   :  { %s86_s19 = sshll.u32 %s12688_s18, 4  ;;  %s117_s27 = sshll.u32 %s12689_s11, 4  ;;  %s87_s19 = int_to_ptr.vmem [resolvable:$true] %s86_s19  ;;  %s118_s27 = int_to_ptr.vmem [resolvable:$true] %s117_s27 }
  0x62   :  { %s12603_s21 = scalar_lea.hbm %s15614_s7, 9216 }
  0x63   :  { %p12604_p12 = scmp.ne.s32.totalorder %s15614_s7, %s12603_s21  ;;  %p12607_p13 = scmp.lt.u32.totalorder %s12603_s21, %s15614_s7 }
  0x65   :  { %p12609_p0 = pnand %p12607_p13, %p12604_p12 }
  0x67   :  { %12612 = shalt.err (!%p12609_p0)
}
  0x68   :  { %s12613_s4 = scalar_lea.vmem %s87_s19, 9216  ;;  %p12618_p2 = scmp.lt.s32.totalorder %s87_s19, %s87_s19 }
  0x69   :  { %p12614_p1 = scmp.ne.s32.totalorder %s87_s19, %s12613_s4  ;;  %p12619_p3 = scmp.lt.s32.totalorder %s12613_s4, %s12613_s4 }
  0x6b   :  { %p12620_p4 = por %p12619_p3, %p12618_p2 }
  0x6d   :  { %p12621_p5 = pnand %p12620_p4, %p12614_p1 }
  0x6f   :  { %12624 = shalt.err (!%p12621_p5)
}
  0x70   :  { %92 = dma.hbm_to_vmem [thread:$0]  %s15614_s7, 9216, %s87_s19, [#allocation8], %s15698_s5, %s15698_s5, %s15697_s23  }
  0x71   :  { %s12625_s0 = scalar_lea.hbm %s15619_s12, 48 }
  0x72   :  { %p12626_p6 = scmp.ne.s32.totalorder %s15619_s12, %s12625_s0  ;;  %p12629_p7 = scmp.lt.u32.totalorder %s12625_s0, %s15619_s12 }
  0x74   :  { %p12631_p8 = pnand %p12629_p7, %p12626_p6 }
  0x76   :  { %12634 = shalt.err (!%p12631_p8)
}
  0x77   :  { %s12635_s21 = scalar_lea.vmem %s118_s27, 48  ;;  %s12639_s22 = scalar_lea.vmem %s118_s27, 64 }
  0x78   :  { %p12636_p9 = scmp.ne.s32.totalorder %s118_s27, %s12635_s21  ;;  %p12640_p10 = scmp.lt.s32.totalorder %s118_s27, %s118_s27 }
  0x79   :  { %p12641_p11 = scmp.lt.s32.totalorder %s12639_s22, %s12635_s21 }
  0x7b   :  { %p12642_p12 = por %p12641_p11, %p12640_p10 }
  0x7d   :  { %p12643_p13 = pnand %p12642_p12, %p12636_p9 }
  0x7f   :  { %12646 = shalt.err (!%p12643_p13)
}
  0x80   :  { %120 = dma.hbm_to_vmem [thread:$0]  %s15619_s12, 48, %s118_s27, [#allocation11]  }
  0x81   :  { %s12690_s5 = smov [#allocation13]   ;;  %s12647_s28 = scalar_lea.hbm %s15623_s16, 32 }
  0x82   :  { %s133_s19 = sshll.u32 %s12690_s5, 4  ;;  %p12648_p0 = scmp.ne.s32.totalorder %s15623_s16, %s12647_s28  ;;  %s134_s19 = int_to_ptr.vmem [resolvable:$true] %s133_s19 }
  0x83   :  { %p12651_p1 = scmp.lt.u32.totalorder %s12647_s28, %s15623_s16 }
  0x85   :  { %p12653_p2 = pnand %p12651_p1, %p12648_p0 }
  0x87   :  { %12656 = shalt.err (!%p12653_p2)
}
  0x88   :  { %s12657_s20 = scalar_lea.vmem %s134_s19, 32  ;;  %p12662_p4 = scmp.lt.s32.totalorder %s134_s19, %s134_s19 }
  0x89   :  { %p12658_p3 = scmp.ne.s32.totalorder %s134_s19, %s12657_s20  ;;  %p12663_p5 = scmp.lt.s32.totalorder %s12657_s20, %s12657_s20 }
  0x8b   :  { %p12664_p6 = por %p12663_p5, %p12662_p4 }
  0x8d   :  { %p12665_p7 = pnand %p12664_p6, %p12658_p3 }
  0x8f   :  { %12668 = shalt.err (!%p12665_p7)
}
  0x90   :  { %136 = dma.hbm_to_vmem [thread:$0]  %s15623_s16, 32, %s134_s19, [#allocation14]  }
  0x91   :  { %12669 = dma.done.wait [#allocation3], 12288  }
  0x92   :  { %12670 = vsyncadd [#allocation3], 4294955008 }
  0x93   :  { %12671 = dma.done.wait [#allocation5], 18432  }
  0x94   :  { %12672 = vsyncadd [#allocation5], 4294948864 }
  0x95   :  { %12673 = dma.done.wait [#allocation8], 18432  }
  0x96   :  { %12674 = vsyncadd [#allocation8], 4294948864 }
  0x97   :  { %12675 = dma.done.wait [#allocation11], 4656  }
  0x98   :  { %12676 = vsyncadd [#allocation11], 4294962640 }
  0x99   :  { %12677 = dma.done.wait [#allocation14], 32  }
  0x9a   :  { %12678 = vsyncadd [#allocation14], 4294967264  ;;  %v12691_v0 = vmov 0   ;;  %s15699_s11 = sld [smem:[#allocation50_spill]]  ;;  %v212_v5 = vld [vmem:[#allocation2 + $0x8] sm:$0xff]  ;;  %v15632_v6 = vmov 0.0  }
  0x9b   :  { %11804 = vset.pattern.permute.xlu1 %v12691_v0  ;;  %11803 = vset.pattern.permute.xlu0 %v12691_v0  ;;  %v218_v7 = vld [vmem:[#allocation2 + $0x38] sm:$0xff]  ;;  %v211_v8 = vld [vmem:[#allocation2] sm:$0xff]  ;;  %v217_v9 = vld [vmem:[#allocation2 + $0x30] sm:$0xff]  ;;  %vm1041_vm8 = vcmask 523264   ;;  %s12695_s20 = smov 96   ;;  %vm750_vm9 = vcmask 785408  }
  0x9c   :  { %403 = vmatprep.mubr.f32.mxu0 %v15632_v6  ;;  %516 = vmatprep.mubr.f32.mxu1 %v15632_v6  ;;  %v9936_v12 = vpack.c.bf16 %v218_v7, %v212_v5  ;;  %v9938_v13 = vpack.c.bf16 %v217_v9, %v211_v8  ;;  %v214_v14 = vld [vmem:[#allocation2 + $0x18] sm:$0xff]  ;;  %v220_v15 = vld [vmem:[#allocation2 + $0x48] sm:$0xff]  ;;  %v213_v16 = vld [vmem:[#allocation2 + $0x10] sm:$0xff]  ;;  %vm7903_vm10 = vcmask 1042432   ;;  %vm7896_vm11 = vcmask 23552  }
  0x9d   :  { %v9968_v17 = vpack.c.bf16 %v220_v15, %v214_v14  ;;  %v219_v18 = vld [vmem:[#allocation2 + $0x40] sm:$0xff]  ;;  %v224_v19 = vld [vmem:[#allocation2 + $0x68] sm:$0xff]  ;;  %v230_v20 = vld [vmem:[#allocation2 + $0x98] sm:$0xff]  ;;  %vm12697_vm12 = vmmov 0   ;;  %vm9140_vm13 = vcmask 7168   ;;  %vm9142_vm14 = vcmask 15360  }
  0x9e   :  { %9937 = vmatprep.subr.bf16.mxu0 %v9936_v12  ;;  %v9970_v21 = vpack.c.bf16 %v219_v18, %v213_v16  ;;  %v9940_v22 = vpack.c.bf16 %v230_v20, %v224_v19  ;;  %v223_v23 = vld [vmem:[#allocation2 + $0x60] sm:$0xff]  ;;  %v229_v24 = vld [vmem:[#allocation2 + $0x90] sm:$0xff]  ;;  %v226_v25 = vld [vmem:[#allocation2 + $0x78] sm:$0xff]  ;;  %vm9145_vm15 = vcmask 31744  }
  0x9f   :  { %9939 = vmatpush1.bf16.msra.mxu0 %v9938_v13  ;;  %9969 = vmatprep.subr.bf16.mxu1 %v9968_v17  ;;  %v9942_v26 = vpack.c.bf16 %v229_v24, %v223_v23  ;;  %v232_v27 = vld [vmem:[#allocation2 + $0xa8] sm:$0xff]  ;;  %v225_v28 = vld [vmem:[#allocation2 + $0x70] sm:$0xff]  ;;  %v231_v29 = vld [vmem:[#allocation2 + $0xa0] sm:$0xff] }
  0xa0   :  { %v165_v1 = vld [vmem:[%s15699_s11 + $0x10] sm:$0xff]  ;;  %v163_v2 = vld [vmem:[%s15699_s11] sm:$0xff]  ;;  %v166_v3 = vld [vmem:[%s15699_s11 + $0x18] sm:$0xff]  ;;  %9971 = vmatpush1.bf16.msra.mxu1 %v9970_v21  ;;  %9941 = vmatprep.subr.bf16.mxu0 %v9940_v22  ;;  %v9972_v32 = vpack.c.bf16 %v232_v27, %v226_v25  ;;  %v9974_v33 = vpack.c.bf16 %v231_v29, %v225_v28 }
  0xa1   :  { %178 = vperm.xlu1 %11804, %v165_v1   ;;  %172 = vperm.xlu0 %11803, %v163_v2   ;;  %v164_v4 = vld [vmem:[%s15699_s11 + $0x8] sm:$0xff]  ;;  %v167_v11 = vld [vmem:[%s15699_s11 + $0x20] sm:$0xff]  ;;  %v170_v30 = vld [vmem:[%s15699_s11 + $0x38] sm:$0xff] }
  0xa2   :  { %v168_v10 = vld [vmem:[%s15699_s11 + $0x28] sm:$0xff]  ;;  %v169_v31 = vld [vmem:[%s15699_s11 + $0x30] sm:$0xff]  ;;  %v242_v35 = vld [vmem:[#allocation2 + $0xf8] sm:$0xff]  ;;  %9973 = vmatprep.subr.bf16.mxu1 %v9972_v32 }
  0xa3   :  { %v236_v34 = vld [vmem:[#allocation2 + $0xc8] sm:$0xff]  ;;  %v235_v36 = vld [vmem:[#allocation2 + $0xc0] sm:$0xff]  ;;  %v241_v38 = vld [vmem:[#allocation2 + $0xf0] sm:$0xff]  ;;  %9943 = vmatpush1.bf16.msra.mxu0 %v9942_v26 }
  0xa4   :  { %v9944_v37 = vpack.c.bf16 %v242_v35, %v236_v34  ;;  %v238_v39 = vld [vmem:[#allocation2 + $0xd8] sm:$0xff]  ;;  %v244_v40 = vld [vmem:[#allocation2 + $0x108] sm:$0xff]  ;;  %v237_v42 = vld [vmem:[#allocation2 + $0xd0] sm:$0xff]  ;;  %v9946_v45 = vpack.c.bf16 %v241_v38, %v235_v36  ;;  %9975 = vmatpush1.bf16.msra.mxu1 %v9974_v33 }
  0xa5   :  { %181 = vperm.xlu1 %11804, %v166_v3   ;;  %175 = vperm.xlu0 %11803, %v164_v4   ;;  %v9976_v41 = vpack.c.bf16 %v244_v40, %v238_v39  ;;  %v243_v43 = vld [vmem:[#allocation2 + $0x100] sm:$0xff]  ;;  %v248_v44 = vld [vmem:[#allocation2 + $0x128] sm:$0xff]  ;;  %v254_v46 = vld [vmem:[#allocation2 + $0x158] sm:$0xff] }
  0xa6   :  { %v247_v47 = vld [vmem:[#allocation2 + $0x120] sm:$0xff]  ;;  %v253_v48 = vld [vmem:[#allocation2 + $0x150] sm:$0xff]  ;;  %9945 = vmatprep.subr.bf16.mxu0 %v9944_v37  ;;  %v9978_v49 = vpack.c.bf16 %v243_v43, %v237_v42  ;;  %v9948_v50 = vpack.c.bf16 %v254_v46, %v248_v44  ;;  %v250_v51 = vld [vmem:[#allocation2 + $0x138] sm:$0xff] }
  0xa7   :  { %v256_v52 = vld [vmem:[#allocation2 + $0x168] sm:$0xff]  ;;  %v249_v53 = vld [vmem:[#allocation2 + $0x130] sm:$0xff]  ;;  %v255_v55 = vld [vmem:[#allocation2 + $0x160] sm:$0xff]  ;;  %9977 = vmatprep.subr.bf16.mxu1 %v9976_v41  ;;  %9947 = vmatpush1.bf16.msra.mxu0 %v9946_v45  ;;  %v9950_v59 = vpack.c.bf16 %v253_v48, %v247_v47 }
  0xa8   :  { %v9980_v54 = vpack.c.bf16 %v256_v52, %v250_v51  ;;  %v260_v56 = vld [vmem:[#allocation2 + $0x188] sm:$0xff]  ;;  %v266_v57 = vld [vmem:[#allocation2 + $0x1b8] sm:$0xff]  ;;  %9979 = vmatpush1.bf16.msra.mxu1 %v9978_v49  ;;  %9949 = vmatprep.subr.bf16.mxu0 %v9948_v50  ;;  %v9982_v61 = vpack.c.bf16 %v255_v55, %v249_v53  ;;  %v259_v63 = vld [vmem:[#allocation2 + $0x180] sm:$0xff]  ;;  %v161_v49 = vlaneseq }
  0xa9   :  { %187 = vperm.xlu1 %11804, %v168_v10   ;;  %184 = vperm.xlu0 %11803, %v167_v11   ;;  %v262_v58 = vld [vmem:[#allocation2 + $0x198] sm:$0xff]  ;;  %v268_v60 = vld [vmem:[#allocation2 + $0x1c8] sm:$0xff]  ;;  %v9952_v62 = vpack.c.bf16 %v266_v57, %v260_v56  ;;  %v265_v0 = vld [vmem:[#allocation2 + $0x1b0] sm:$0xff] }
  0xaa   :  { %v261_v1 = vld [vmem:[#allocation2 + $0x190] sm:$0xff]  ;;  %9981 = vmatprep.subr.bf16.mxu1 %v9980_v54  ;;  %v9984_v2 = vpack.c.bf16 %v268_v60, %v262_v58  ;;  %v267_v3 = vld [vmem:[#allocation2 + $0x1c0] sm:$0xff]  ;;  %v272_v4 = vld [vmem:[#allocation2 + $0x1e8] sm:$0xff]  ;;  %v9954_v9 = vpack.c.bf16 %v265_v0, %v259_v63  ;;  %v12938_v52 = vand.u32 127, %v161_v49 }
  0xab   :  { %v278_v5 = vld [vmem:[#allocation2 + $0x218] sm:$0xff]  ;;  %v280_v8 = vld [vmem:[#allocation2 + $0x228] sm:$0xff]  ;;  %9951 = vmatpush1.bf16.msra.mxu0 %v9950_v59  ;;  %v9986_v10 = vpack.c.bf16 %v267_v3, %v261_v1  ;;  %v271_v12 = vld [vmem:[#allocation2 + $0x1e0] sm:$0xff]  ;;  %v12693_v1 = vmov 1.0  }
  0xac   :  { %v274_v7 = vld [vmem:[#allocation2 + $0x1f8] sm:$0xff]  ;;  %9983 = vmatpush1.bf16.msra.mxu1 %v9982_v61  ;;  %9953 = vmatprep.subr.bf16.mxu0 %v9952_v62  ;;  %v9956_v11 = vpack.c.bf16 %v278_v5, %v272_v4  ;;  %v277_v13 = vld [vmem:[#allocation2 + $0x210] sm:$0xff]  ;;  %v279_v16 = vld [vmem:[#allocation2 + $0x220] sm:$0xff] }
  0xad   :  { %193 = vperm.xlu1 %11804, %v170_v30   ;;  %190 = vperm.xlu0 %11803, %v169_v31   ;;  %v273_v14 = vld [vmem:[#allocation2 + $0x1f0] sm:$0xff]  ;;  %v9988_v15 = vpack.c.bf16 %v280_v8, %v274_v7  ;;  %v284_v17 = vld [vmem:[#allocation2 + $0x248] sm:$0xff]  ;;  %v290_v18 = vld [vmem:[#allocation2 + $0x278] sm:$0xff]  ;;  %v9958_v21 = vpack.c.bf16 %v277_v13, %v271_v12 }
  0xae   :  { %9985 = vmatprep.subr.bf16.mxu1 %v9984_v2  ;;  %v286_v19 = vld [vmem:[#allocation2 + $0x258] sm:$0xff]  ;;  %v292_v20 = vld [vmem:[#allocation2 + $0x288] sm:$0xff]  ;;  %v9990_v22 = vpack.c.bf16 %v279_v16, %v273_v14  ;;  %v9960_v23 = vpack.c.bf16 %v290_v18, %v284_v17  ;;  %v283_v24 = vld [vmem:[#allocation2 + $0x240] sm:$0xff] }
  0xaf   :  { %9955 = vmatpush1.bf16.msra.mxu0 %v9954_v9  ;;  %v289_v25 = vld [vmem:[#allocation2 + $0x270] sm:$0xff]  ;;  %v9992_v27 = vpack.c.bf16 %v292_v20, %v286_v19  ;;  %v291_v28 = vld [vmem:[#allocation2 + $0x280] sm:$0xff]  ;;  %v296_v29 = vld [vmem:[#allocation2 + $0x2a8] sm:$0xff] }
  0xb0   :  { %9987 = vmatpush1.bf16.msra.mxu1 %v9986_v10  ;;  %9957 = vmatprep.subr.bf16.mxu0 %v9956_v11  ;;  %v285_v26 = vld [vmem:[#allocation2 + $0x250] sm:$0xff]  ;;  %v302_v30 = vld [vmem:[#allocation2 + $0x2d8] sm:$0xff]  ;;  %v304_v32 = vld [vmem:[#allocation2 + $0x2e8] sm:$0xff]  ;;  %v9962_v33 = vpack.c.bf16 %v289_v25, %v283_v24 }
  0xb1   :  { %9989 = vmatprep.subr.bf16.mxu1 %v9988_v15  ;;  %v298_v31 = vld [vmem:[#allocation2 + $0x2b8] sm:$0xff]  ;;  %v9994_v34 = vpack.c.bf16 %v291_v28, %v285_v26  ;;  %v9964_v35 = vpack.c.bf16 %v302_v30, %v296_v29  ;;  %v295_v36 = vld [vmem:[#allocation2 + $0x2a0] sm:$0xff]  ;;  %v301_v37 = vld [vmem:[#allocation2 + $0x2d0] sm:$0xff] }
  0xb2   :  { %v297_v38 = vld [vmem:[#allocation2 + $0x2b0] sm:$0xff]  ;;  %v9996_v39 = vpack.c.bf16 %v304_v32, %v298_v31  ;;  %v303_v40 = vld [vmem:[#allocation2 + $0x2e0] sm:$0xff]  ;;  %v216_v41 = vld [vmem:[#allocation2 + $0x28] sm:$0xff]  ;;  %v9966_v45 = vpack.c.bf16 %v301_v37, %v295_v36 }
  0xb3   :  { %9959 = vmatpush1.bf16.msra.mxu0 %v9958_v21  ;;  %v222_v42 = vld [vmem:[#allocation2 + $0x58] sm:$0xff]  ;;  %v687_v44 = vld [vmem:[#allocation4 + $0x48] sm:$0xff]  ;;  %v9998_v46 = vpack.c.bf16 %v303_v40, %v297_v38  ;;  %v215_v50 = vld [vmem:[#allocation2 + $0x20] sm:$0xff] }
  0xb4   :  { %9991 = vmatpush1.bf16.msra.mxu1 %v9990_v22  ;;  %9961 = vmatprep.subr.bf16.mxu0 %v9960_v23  ;;  %v681_v43 = vld [vmem:[#allocation4 + $0x18] sm:$0xff]  ;;  %v10000_v47 = vpack.c.bf16 %v222_v42, %v216_v41  ;;  %v221_v51 = vld [vmem:[#allocation2 + $0x50] sm:$0xff]  ;;  %v228_v53 = vld [vmem:[#allocation2 + $0x88] sm:$0xff] }
  0xb5   :  { %9993 = vmatprep.subr.bf16.mxu1 %v9992_v27  ;;  %v12934_v48 = vpack.c.bf16 %v687_v44, %v681_v43  ;;  %v234_v54 = vld [vmem:[#allocation2 + $0xb8] sm:$0xff]  ;;  %v680_v55 = vld [vmem:[#allocation4 + $0x10] sm:$0xff]  ;;  %v686_v56 = vld [vmem:[#allocation4 + $0x40] sm:$0xff]  ;;  %v10002_v57 = vpack.c.bf16 %v221_v51, %v215_v50 }
  0xb6   :  { %v10004_v59 = vpack.c.bf16 %v234_v54, %v228_v53  ;;  %v227_v60 = vld [vmem:[#allocation2 + $0x80] sm:$0xff]  ;;  %v233_v61 = vld [vmem:[#allocation2 + $0xb0] sm:$0xff]  ;;  %v240_v62 = vld [vmem:[#allocation2 + $0xe8] sm:$0xff]  ;;  %v12944_v0 = vpack.c.bf16 %v686_v56, %v680_v55 }
  0xb7   :  { %9963 = vmatpush1.bf16.msra.mxu0 %v9962_v33  ;;  %v246_v63 = vld [vmem:[#allocation2 + $0x118] sm:$0xff]  ;;  %v699_v3 = vld [vmem:[#allocation4 + $0xa8] sm:$0xff]  ;;  %v10006_v4 = vpack.c.bf16 %v233_v61, %v227_v60  ;;  %v239_v8 = vld [vmem:[#allocation2 + $0xe0] sm:$0xff] }
  0xb8   :  { %9995 = vmatpush1.bf16.msra.mxu1 %v9994_v34  ;;  %9965 = vmatprep.subr.bf16.mxu0 %v9964_v35  ;;  %v693_v2 = vld [vmem:[#allocation4 + $0x78] sm:$0xff]  ;;  %v10008_v7 = vpack.c.bf16 %v246_v63, %v240_v62  ;;  %v245_v9 = vld [vmem:[#allocation2 + $0x110] sm:$0xff]  ;;  %v252_v10 = vld [vmem:[#allocation2 + $0x148] sm:$0xff] }
  0xb9   :  { %9997 = vmatprep.subr.bf16.mxu1 %v9996_v39  ;;  %v258_v11 = vld [vmem:[#allocation2 + $0x178] sm:$0xff]  ;;  %v12961_v12 = vpack.c.bf16 %v699_v3, %v693_v2  ;;  %v692_v14 = vld [vmem:[#allocation4 + $0x70] sm:$0xff]  ;;  %v698_v15 = vld [vmem:[#allocation4 + $0xa0] sm:$0xff]  ;;  %v10010_v16 = vpack.c.bf16 %v245_v9, %v239_v8 }
  0xba   :  { %v10012_v17 = vpack.c.bf16 %v258_v11, %v252_v10  ;;  %v251_v18 = vld [vmem:[#allocation2 + $0x140] sm:$0xff]  ;;  %v257_v19 = vld [vmem:[#allocation2 + $0x170] sm:$0xff]  ;;  %v12978_v20 = vpack.c.bf16 %v698_v15, %v692_v14  ;;  %v264_v21 = vld [vmem:[#allocation2 + $0x1a8] sm:$0xff] }
  0xbb   :  { %9967 = vmatpush1.bf16.msra.mxu0 %v9966_v45  ;;  %v270_v22 = vld [vmem:[#allocation2 + $0x1d8] sm:$0xff]  ;;  %v711_v24 = vld [vmem:[#allocation4 + $0x108] sm:$0xff]  ;;  %v10014_v25 = vpack.c.bf16 %v257_v19, %v251_v18  ;;  %v263_v26 = vld [vmem:[#allocation2 + $0x1a0] sm:$0xff] }
  0xbc   :  { %9999 = vmatpush1.bf16.msra.mxu1 %v9998_v46  ;;  %10001 = vmatprep.subr.bf16.mxu0 %v10000_v47  ;;  %v705_v23 = vld [vmem:[#allocation4 + $0xd8] sm:$0xff]  ;;  %v10016_v28 = vpack.c.bf16 %v270_v22, %v264_v21  ;;  %v269_v29 = vld [vmem:[#allocation2 + $0x1d0] sm:$0xff]  ;;  %v710_v31 = vld [vmem:[#allocation4 + $0x100] sm:$0xff] }
  0xbd   :  { %10057 = vmatprep.subr.bf16.mxu1 %v12934_v48  ;;  %v704_v30 = vld [vmem:[#allocation4 + $0xd0] sm:$0xff]  ;;  %v12995_v32 = vpack.c.bf16 %v711_v24, %v705_v23  ;;  %v276_v33 = vld [vmem:[#allocation2 + $0x208] sm:$0xff]  ;;  %v282_v35 = vld [vmem:[#allocation2 + $0x238] sm:$0xff]  ;;  %v10018_v38 = vpack.c.bf16 %v269_v29, %v263_v26 }
  0xbe   :  { %v717_v36 = vld [vmem:[#allocation4 + $0x138] sm:$0xff]  ;;  %v723_v37 = vld [vmem:[#allocation4 + $0x168] sm:$0xff]  ;;  %v13008_v39 = vpack.c.bf16 %v710_v31, %v704_v30  ;;  %v275_v40 = vld [vmem:[#allocation2 + $0x200] sm:$0xff]  ;;  %v10020_v44 = vpack.c.bf16 %v282_v35, %v276_v33 }
  0xbf   :  { %v281_v41 = vld [vmem:[#allocation2 + $0x230] sm:$0xff]  ;;  %v722_v43 = vld [vmem:[#allocation4 + $0x160] sm:$0xff]  ;;  %v13014_v45 = vpack.c.bf16 %v723_v37, %v717_v36  ;;  %v288_v46 = vld [vmem:[#allocation2 + $0x268] sm:$0xff] }
  0xc0   :  { %v716_v42 = vld [vmem:[#allocation4 + $0x130] sm:$0xff]  ;;  %v294_v50 = vld [vmem:[#allocation2 + $0x298] sm:$0xff]  ;;  %v735_v53 = vld [vmem:[#allocation4 + $0x1c8] sm:$0xff]  ;;  %v10022_v54 = vpack.c.bf16 %v281_v41, %v275_v40 }
  0xc1   :  { %v729_v51 = vld [vmem:[#allocation4 + $0x198] sm:$0xff]  ;;  %v13027_v55 = vpack.c.bf16 %v722_v43, %v716_v42  ;;  %v287_v56 = vld [vmem:[#allocation2 + $0x260] sm:$0xff]  ;;  %v10024_v61 = vpack.c.bf16 %v294_v50, %v288_v46  ;;  %v300_v63 = vld [vmem:[#allocation2 + $0x2c8] sm:$0xff] }
  0xc2   :  { %v734_v60 = vld [vmem:[#allocation4 + $0x1c0] sm:$0xff]  ;;  %v13034_v62 = vpack.c.bf16 %v735_v53, %v729_v51  ;;  %v306_v3 = vld [vmem:[#allocation2 + $0x2f8] sm:$0xff]  ;;  %v305_v11 = vld [vmem:[#allocation2 + $0x2f0] sm:$0xff] }
  0xc3   :  { %v299_v10 = vld [vmem:[#allocation2 + $0x2c0] sm:$0xff]  ;;  %v740_v14 = vld [vmem:[#allocation4 + $0x1f0] sm:$0xff]  ;;  %v679_v18 = vld [vmem:[#allocation4 + $0x8] sm:$0xff] }
  0xc4   :  { %v746_v15 = vld [vmem:[#allocation4 + $0x220] sm:$0xff]  ;;  %v685_v19 = vld [vmem:[#allocation4 + $0x38] sm:$0xff]  ;;  %v10030_v22 = vpack.c.bf16 %v305_v11, %v299_v10  ;;  %v684_v26 = vld [vmem:[#allocation4 + $0x30] sm:$0xff] }
  0xc5   :  { %v13067_v23 = vpack.c.bf16 %v746_v15, %v740_v14  ;;  %v13071_v24 = vpack.c.bf16 %v685_v19, %v679_v18  ;;  %v697_v29 = vld [vmem:[#allocation4 + $0x98] sm:$0xff]  ;;  %v690_v33 = vld [vmem:[#allocation4 + $0x60] sm:$0xff]  ;;  %v696_v35 = vld [vmem:[#allocation4 + $0x90] sm:$0xff] }
  0xc6   :  { %v703_v36 = vld [vmem:[#allocation4 + $0xc8] sm:$0xff]  ;;  %v709_v37 = vld [vmem:[#allocation4 + $0xf8] sm:$0xff]  ;;  %v702_v41 = vld [vmem:[#allocation4 + $0xc0] sm:$0xff] }
  0xc7   :  { %v13104_v40 = vpack.c.bf16 %v709_v37, %v703_v36  ;;  %v708_v42 = vld [vmem:[#allocation4 + $0xf0] sm:$0xff]  ;;  %v715_v43 = vld [vmem:[#allocation4 + $0x128] sm:$0xff]  ;;  %v714_v50 = vld [vmem:[#allocation4 + $0x120] sm:$0xff] }
  0xc8   :  { %v720_v51 = vld [vmem:[#allocation4 + $0x150] sm:$0xff]  ;;  %v727_v53 = vld [vmem:[#allocation4 + $0x188] sm:$0xff]  ;;  %v701_v14 = vld [vmem:[#allocation4 + $0xb8] sm:$0xff] }
  0xc9   :  { %v695_v11 = vld [vmem:[#allocation4 + $0x88] sm:$0xff]  ;;  %v700_v18 = vld [vmem:[#allocation4 + $0xb0] sm:$0xff] }
  0xca   :  { %v707_v19 = vld [vmem:[#allocation4 + $0xe8] sm:$0xff]  ;;  %v724_v36 = vld [vmem:[#allocation4 + $0x170] sm:$0xff] }
  0xcb   :  { %v731_v37 = vld [vmem:[#allocation4 + $0x1a8] sm:$0xff] }
 0x120   :  { %v12940_v58 = vpop.permute.xlu0 %172  ;;  %v12963_v13 = vpop.permute.xlu1 %178 }
 0x121   :  { %vm195_vm0 = vcmp.eq.s32.totalorder %v12940_v58, %v12938_v52  ;;  %vm197_vm2 = vcmp.eq.s32.totalorder %v12963_v13, %v12938_v52  ;;  %v13114_v58 = vpack.c.bf16 %v708_v42, %v702_v41  ;;  %v737_v41 = vld [vmem:[#allocation4 + $0x1d8] sm:$0xff] }
 0x122   :  { %9157 = vmatmul.mubr.msk.f32.vlgmr.msra.gmra.mrb[0].mxu0 %vm195_vm0, %v12693_v1  ;;  %9165 = vmatmul.mubr.msk.f32.vlgmr.msra.gmra.mrb[0].mxu1 %vm195_vm0, %v12693_v1 }
 0x123   :  { %10003 = vmatpush1.bf16.msra.mxu0 %v10002_v57  ;;  %409 = vmatprep.mubr.f32.mxu0 %v15632_v6  ;;  %v293_v57 = vld [vmem:[#allocation2 + $0x290] sm:$0xff] }
 0x124   :  { %v12955_v5 = vpop.permute.xlu0 %175  ;;  %522 = vmatprep.mubr.f32.mxu1 %v15632_v6  ;;  %10005 = vmatprep.subr.bf16.mxu0 %v10004_v59  ;;  %v12989_v27 = vpop.permute.xlu1 %181  ;;  %v728_v59 = vld [vmem:[#allocation4 + $0x190] sm:$0xff]  ;;  %v10026_v8 = vpack.c.bf16 %v293_v57, %v287_v56  ;;  %v726_v57 = vld [vmem:[#allocation4 + $0x180] sm:$0xff] }
 0x125   :  { %vm196_vm1 = vcmp.eq.s32.totalorder %v12955_v5, %v12938_v52  ;;  %10059 = vmatpush1.bf16.msra.mxu1 %v12944_v0  ;;  %vm198_vm3 = vcmp.eq.s32.totalorder %v12989_v27, %v12938_v52  ;;  %v13047_v9 = vpack.c.bf16 %v734_v60, %v728_v59  ;;  %v13129_v5 = vpack.c.bf16 %v720_v51, %v714_v50  ;;  %v732_v59 = vld [vmem:[#allocation4 + $0x1b0] sm:$0xff]  ;;  %v739_v60 = vld [vmem:[#allocation4 + $0x1e8] sm:$0xff] }
 0x126   :  { %9158 = vmatmul.mubr.msk.f32.gmra.mrb[2].mxu0 %vm196_vm1, %v12693_v1  ;;  %9166 = vmatmul.mubr.msk.f32.gmra.mrb[2].mxu1 %vm196_vm1, %v12693_v1  ;;  %v13142_v13 = vpack.c.bf16 %v732_v59, %v726_v57  ;;  %v736_v50 = vld [vmem:[#allocation4 + $0x1d0] sm:$0xff]  ;;  %v743_v51 = vld [vmem:[#allocation4 + $0x208] sm:$0xff]  ;;  %v742_v59 = vld [vmem:[#allocation4 + $0x200] sm:$0xff] }
 0x127   :  { %10007 = vmatpush1.bf16.msra.mxu0 %v10006_v4  ;;  %415 = vmatprep.mubr.f32.mxu0 %v15632_v6  ;;  %v741_v4 = vld [vmem:[#allocation4 + $0x1f8] sm:$0xff] }
 0x128   :  { %528 = vmatprep.mubr.f32.mxu1 %v15632_v6  ;;  %10009 = vmatprep.subr.bf16.mxu0 %v10008_v7  ;;  %v12997_v34 = vpop.permute.xlu0 %184  ;;  %v13016_v47 = vpop.permute.xlu1 %187  ;;  %v747_v7 = vld [vmem:[#allocation4 + $0x228] sm:$0xff] }
 0x129   :  { %10061 = vmatprep.subr.bf16.mxu1 %v12961_v12  ;;  %vm199_vm4 = vcmp.eq.s32.totalorder %v12997_v34, %v12938_v52  ;;  %vm200_vm5 = vcmp.eq.s32.totalorder %v13016_v47, %v12938_v52  ;;  %v682_v34 = vld [vmem:[#allocation4 + $0x20] sm:$0xff]  ;;  %v688_v47 = vld [vmem:[#allocation4 + $0x50] sm:$0xff] }
 0x12a   :  { %9159 = vmatmul.mubr.msk.f32.gmra.mrb[4].mxu0 %vm197_vm2, %v12693_v1  ;;  %9167 = vmatmul.mubr.msk.f32.gmra.mrb[4].mxu1 %vm197_vm2, %v12693_v1  ;;  %v13181_v15 = vpack.c.bf16 %v688_v47, %v682_v34 }
 0x12b   :  { %10011 = vmatpush1.bf16.msra.mxu0 %v10010_v16  ;;  %421 = vmatprep.mubr.f32.mxu0 %v15632_v6  ;;  %v10028_v16 = vpack.c.bf16 %v306_v3, %v300_v63  ;;  %v738_v3 = vld [vmem:[#allocation4 + $0x1e0] sm:$0xff] }
 0x12c   :  { %534 = vmatprep.mubr.f32.mxu1 %v15632_v6  ;;  %10013 = vmatprep.subr.bf16.mxu0 %v10012_v17  ;;  %v13036_v2 = vpop.permute.xlu0 %190  ;;  %v13054_v17 = vpack.c.bf16 %v747_v7, %v741_v4  ;;  %v13056_v21 = vpop.permute.xlu1 %193  ;;  %v744_v4 = vld [vmem:[#allocation4 + $0x210] sm:$0xff]  ;;  %v683_v7 = vld [vmem:[#allocation4 + $0x28] sm:$0xff] }
 0x12d   :  { %10063 = vmatpush1.bf16.msra.mxu1 %v12978_v20  ;;  %vm201_vm6 = vcmp.eq.s32.totalorder %v13036_v2, %v12938_v52  ;;  %vm202_vm7 = vcmp.eq.s32.totalorder %v13056_v21, %v12938_v52  ;;  %v13155_v27 = vpack.c.bf16 %v744_v4, %v738_v3  ;;  %v694_v2 = vld [vmem:[#allocation4 + $0x80] sm:$0xff]  ;;  %v712_v21 = vld [vmem:[#allocation4 + $0x110] sm:$0xff]  ;;  %v13236_v3 = vshrl.u32 %v161_v49, 7 }
 0x12e   :  { %9160 = vmatmul.mubr.msk.f32.gmra.mrb[6].mxu0 %vm198_vm3, %v12693_v1  ;;  %9168 = vmatmul.mubr.msk.f32.gmra.mrb[6].mxu1 %vm198_vm3, %v12693_v1 }
 0x12f   :  { %10015 = vmatpush1.bf16.msra.mxu0 %v10014_v25  ;;  %427 = vmatprep.mubr.f32.mxu0 %v15632_v6  ;;  %v678_v25 = vld [vmem:[#allocation4] sm:$0xff]  ;;  %15700 = vst [vmem:[#allocation20_spill] sm:$0xff] %v13236_v3  ;;  %v15631_v4 = vsub.s32 3, %v13236_v3  ;;  %v13248_v34 = vsub.s32 2, %v13236_v3 }
 0x130   :  { %540 = vmatprep.mubr.f32.mxu1 %v15632_v6  ;;  %10017 = vmatprep.subr.bf16.mxu0 %v10016_v28  ;;  %v691_v28 = vld [vmem:[#allocation4 + $0x68] sm:$0xff]  ;;  %v13085_v30 = vpack.c.bf16 %v684_v26, %v678_v25  ;;  %v13187_v25 = vpack.c.bf16 %v700_v18, %v694_v2 }
 0x131   :  { %10065 = vmatprep.subr.bf16.mxu1 %v12995_v32  ;;  %v13089_v31 = vpack.c.bf16 %v697_v29, %v691_v28  ;;  %v719_v26 = vld [vmem:[#allocation4 + $0x148] sm:$0xff]  ;;  %v725_v28 = vld [vmem:[#allocation4 + $0x178] sm:$0xff]  ;;  %15701 = vst [vmem:[#allocation21_spill] sm:$0xff] %v13248_v34 }
 0x132   :  { %9161 = vmatmul.mubr.msk.f32.gmra.mrb[8].mxu0 %vm199_vm4, %v12693_v1  ;;  %9169 = vmatmul.mubr.msk.f32.gmra.mrb[8].mxu1 %vm199_vm4, %v12693_v1 }
 0x133   :  { %10019 = vmatpush1.bf16.msra.mxu0 %v10018_v38  ;;  %10067 = vmatpush1.bf16.msra.mxu1 %v13008_v39  ;;  %v13100_v38 = vpack.c.bf16 %v696_v35, %v690_v33  ;;  %v13199_v33 = vpack.c.bf16 %v725_v28, %v719_v26  ;;  %v718_v35 = vld [vmem:[#allocation4 + $0x140] sm:$0xff] }
 0x134   :  { %433 = vmatprep.mubr.f32.mxu0 %v15632_v6  ;;  %546 = vmatprep.mubr.f32.mxu1 %v15632_v6  ;;  %v13202_v42 = vpack.c.bf16 %v724_v36, %v718_v35 }
 0x135   :  { %10021 = vmatprep.subr.bf16.mxu0 %v10020_v44  ;;  %10069 = vmatprep.subr.bf16.mxu1 %v13014_v45  ;;  %v721_v44 = vld [vmem:[#allocation4 + $0x158] sm:$0xff] }
 0x136   :  { %9162 = vmatmul.mubr.msk.f32.gmra.mrb[10].mxu0 %vm200_vm5, %v12693_v1  ;;  %9170 = vmatmul.mubr.msk.f32.gmra.mrb[10].mxu1 %vm200_vm5, %v12693_v1  ;;  %v13117_v46 = vpack.c.bf16 %v721_v44, %v715_v43  ;;  %v13205_v43 = vpack.c.bf16 %v737_v41, %v731_v37  ;;  %v730_v44 = vld [vmem:[#allocation4 + $0x1a0] sm:$0xff] }
 0x137   :  { %10023 = vmatpush1.bf16.msra.mxu0 %v10022_v54  ;;  %10071 = vmatpush1.bf16.msra.mxu1 %v13027_v55  ;;  %v733_v54 = vld [vmem:[#allocation4 + $0x1b8] sm:$0xff] }
 0x138   :  { %439 = vmatprep.mubr.f32.mxu0 %v15632_v6  ;;  %552 = vmatprep.mubr.f32.mxu1 %v15632_v6  ;;  %v13132_v56 = vpack.c.bf16 %v733_v54, %v727_v53  ;;  %v749_v53 = vld [vmem:[#allocation4 + $0x238] sm:$0xff]  ;;  %v13208_v54 = vpack.c.bf16 %v736_v50, %v730_v44 }
 0x139   :  { %10025 = vmatprep.subr.bf16.mxu0 %v10024_v61  ;;  %10073 = vmatprep.subr.bf16.mxu1 %v13034_v62  ;;  %v745_v61 = vld [vmem:[#allocation4 + $0x218] sm:$0xff]  ;;  %v13211_v57 = vpack.c.bf16 %v749_v53, %v743_v51 }
 0x13a   :  { %9163 = vmatmul.mubr.msk.f32.gmra.mrb[12].mxu0 %vm201_vm6, %v12693_v1  ;;  %9171 = vmatmul.mubr.msk.f32.gmra.mrb[12].mxu1 %vm201_vm6, %v12693_v1  ;;  %v13145_v63 = vpack.c.bf16 %v745_v61, %v739_v60  ;;  %v748_v60 = vld [vmem:[#allocation4 + $0x230] sm:$0xff] }
 0x13b   :  { %10027 = vmatpush1.bf16.msra.mxu0 %v10026_v8  ;;  %10075 = vmatpush1.bf16.msra.mxu1 %v13047_v9  ;;  %v689_v8 = vld [vmem:[#allocation4 + $0x58] sm:$0xff]  ;;  %v13214_v61 = vpack.c.bf16 %v748_v60, %v742_v59 }
 0x13c   :  { %445 = vmatprep.mubr.f32.mxu0 %v15632_v6  ;;  %558 = vmatprep.mubr.f32.mxu1 %v15632_v6  ;;  %v13158_v10 = vpack.c.bf16 %v689_v8, %v683_v7  ;;  %v13242_v7 = vld [vmem:[%s15609_s2] sm:$0x3f]  ;;  %s12694_s2 = smov 64  }
 0x13d   :  { %10029 = vmatprep.subr.bf16.mxu0 %v10028_v16  ;;  %10077 = vmatprep.subr.bf16.mxu1 %v13054_v17  ;;  %v13183_v16 = vpack.c.bf16 %v701_v14, %v695_v11  ;;  %v324_v8 = vrot.slane %v13242_v7, %v15631_v4  ;;  %v320_v49 = vrot.slane %v13242_v7, %v13248_v34 }
 0x13e   :  { %9164 = vmatmul.mubr.msk.f32.gmra.mrb[14].mxu0 %vm202_vm7, %v12693_v1  ;;  %9172 = vmatmul.mubr.msk.f32.gmra.mrb[14].mxu1 %vm202_vm7, %v12693_v1 }
 0x13f   :  { %10031 = vmatpush1.bf16.msra.mxu0 %v10030_v22  ;;  %10079 = vmatpush1.bf16.msra.mxu1 %v13067_v23  ;;  %v713_v22 = vld [vmem:[#allocation4 + $0x118] sm:$0xff] }
 0x140   :  { %629 = vmatprep.mubr.f32.mxu0 %v15632_v6  ;;  %10033 = vmatprep.subr.bf16.mxu0 %v13071_v24  ;;  %v13191_v52 = vpack.c.bf16 %v713_v22, %v707_v19 }
 0x141   :  { %893 = vmatprep.mubr.f32.mxu1 %v15632_v6  ;;  %10129 = vmatprep.subr.bf16.mxu1 %v12934_v48 }
 0x142   :  { %9173 = vmatmul.mubr.msk.f32.vlgmr.msra.gmra.mrb[16].mxu0 %vm195_vm0, %v12693_v1  ;;  %894 = vmatmul.mubr.f32.vlgmr.msra.gmra.mrb[16].mxu1 %v15632_v6 }
 0x143   :  { %10035 = vmatpush1.bf16.msra.mxu0 %v13085_v30  ;;  %635 = vmatprep.mubr.f32.mxu0 %v15632_v6 }
 0x144   :  { %898 = vmatprep.mubr.f32.mxu1 %v15632_v6  ;;  %10037 = vmatprep.subr.bf16.mxu0 %v13089_v31 }
 0x145   :  { %10131 = vmatpush1.bf16.msra.mxu1 %v12944_v0 }
 0x146   :  { %9174 = vmatmul.mubr.msk.f32.gmra.mrb[18].mxu0 %vm196_vm1, %v12693_v1  ;;  %899 = vmatmul.mubr.f32.gmra.mrb[18].mxu1 %v15632_v6 }
 0x147   :  { %10039 = vmatpush1.bf16.msra.mxu0 %v13100_v38  ;;  %641 = vmatprep.mubr.f32.mxu0 %v15632_v6 }
 0x148   :  { %10041 = vmatprep.subr.bf16.mxu0 %v13104_v40  ;;  %10133 = vmatprep.subr.bf16.mxu1 %v12961_v12 }
 0x149   :  { %10135 = vmatpush1.bf16.msra.mxu1 %v12978_v20  ;;  %1231 = vmatprep.mubr.f32.mxu1 %v15632_v6 }
 0x14a   :  { %9175 = vmatmul.mubr.msk.f32.gmra.mrb[20].mxu0 %vm197_vm2, %v12693_v1  ;;  %10137 = vmatprep.subr.bf16.mxu1 %v12995_v32 }
 0x14b   :  { %647 = vmatprep.mubr.f32.mxu0 %v15632_v6  ;;  %10043 = vmatpush1.bf16.msra.mxu0 %v13114_v58 }
 0x14c   :  { %10045 = vmatprep.subr.bf16.mxu0 %v13117_v46 }
 0x14d   :  { %10139 = vmatpush1.bf16.msra.mxu1 %v13008_v39 }
 0x14e   :  { %9176 = vmatmul.mubr.msk.f32.gmra.mrb[22].mxu0 %vm198_vm3, %v12693_v1  ;;  %10141 = vmatprep.subr.bf16.mxu1 %v13014_v45 }
 0x14f   :  { %653 = vmatprep.mubr.f32.mxu0 %v15632_v6  ;;  %10047 = vmatpush1.bf16.msra.mxu0 %v13129_v5 }
 0x150   :  { %10049 = vmatprep.subr.bf16.mxu0 %v13132_v56 }
 0x151   :  { %10143 = vmatpush1.bf16.msra.mxu1 %v13027_v55 }
 0x152   :  { %9177 = vmatmul.mubr.msk.f32.gmra.mrb[24].mxu0 %vm199_vm4, %v12693_v1  ;;  %10145 = vmatprep.subr.bf16.mxu1 %v13034_v62 }
 0x153   :  { %659 = vmatprep.mubr.f32.mxu0 %v15632_v6  ;;  %10051 = vmatpush1.bf16.msra.mxu0 %v13142_v13 }
 0x154   :  { %10053 = vmatprep.subr.bf16.mxu0 %v13145_v63 }
 0x155   :  { %10147 = vmatpush1.bf16.msra.mxu1 %v13047_v9 }
 0x156   :  { %9178 = vmatmul.mubr.msk.f32.gmra.mrb[26].mxu0 %vm200_vm5, %v12693_v1  ;;  %10149 = vmatprep.subr.bf16.mxu1 %v13054_v17 }
 0x157   :  { %665 = vmatprep.mubr.f32.mxu0 %v15632_v6  ;;  %10055 = vmatpush1.bf16.msra.mxu0 %v13155_v27 }
 0x158   :  { %10081 = vmatprep.subr.bf16.mxu0 %v13158_v10 }
 0x159   :  { %10151 = vmatpush1.bf16.msra.mxu1 %v13067_v23 }
 0x15a   :  { %9179 = vmatmul.mubr.msk.f32.gmra.mrb[28].mxu0 %vm201_vm6, %v12693_v1  ;;  %10201 = vmatprep.subr.bf16.mxu1 %v12934_v48 }
 0x15b   :  { %671 = vmatprep.mubr.f32.mxu0 %v15632_v6 }
 0x15e   :  { %9180 = vmatmul.mubr.msk.f32.gmra.mrb[30].mxu0 %vm202_vm7, %v12693_v1  ;;  %v706_v1 = vld [vmem:[#allocation4 + $0xe0] sm:$0xff] }
 0x15f   :  { %818 = vmatprep.mubr.f32.mxu0 %v15632_v6  ;;  %v13195_v29 = vpack.c.bf16 %v712_v21, %v706_v1 }
 0x162   :  { %819 = vmatmul.mubr.f32.vlgmr.msra.gmra.mrb[0].mxu0 %v15632_v6 }
 0x163   :  { %10083 = vmatpush1.bf16.msra.mxu0 %v13181_v15  ;;  %824 = vmatprep.mubr.f32.mxu0 %v15632_v6 }
 0x164   :  { %10085 = vmatprep.subr.bf16.mxu0 %v13183_v16 }
 0x166   :  { %825 = vmatmul.mubr.f32.gmra.mrb[32].mxu0 %v15632_v6 }
 0x167   :  { %10087 = vmatpush1.bf16.msra.mxu0 %v13187_v25  ;;  %968 = vmatprep.mubr.f32.mxu0 %v15632_v6 }
 0x168   :  { %10089 = vmatprep.subr.bf16.mxu0 %v13191_v52 }
 0x16b   :  { %10091 = vmatpush1.bf16.msra.mxu0 %v13195_v29 }
 0x16c   :  { %10093 = vmatprep.subr.bf16.mxu0 %v13199_v33 }
 0x16f   :  { %10095 = vmatpush1.bf16.msra.mxu0 %v13202_v42 }
 0x170   :  { %10097 = vmatprep.subr.bf16.mxu0 %v13205_v43 }
 0x173   :  { %10099 = vmatpush1.bf16.msra.mxu0 %v13208_v54 }
 0x174   :  { %10101 = vmatprep.subr.bf16.mxu0 %v13211_v57 }
 0x177   :  { %10103 = vmatpush1.bf16.msra.mxu0 %v13214_v61 }
 0x178   :  { %10105 = vmatprep.subr.bf16.mxu0 %v13071_v24 }
 0x17a   :  { %969 = vmatmul.mubr.f32.vlgmr.msra.gmra.mrb[34].mxu0 %v15632_v6 }
 0x17b   :  { %972 = vmatprep.mubr.f32.mxu0 %v15632_v6  ;;  %10107 = vmatpush1.bf16.msra.mxu0 %v13085_v30 }
 0x17c   :  { %10109 = vmatprep.subr.bf16.mxu0 %v13089_v31 }
 0x17e   :  { %973 = vmatmul.mubr.f32.gmra.mrb[30].mxu0 %v15632_v6 }
 0x17f   :  { %10111 = vmatpush1.bf16.msra.mxu0 %v13100_v38  ;;  %1156 = vmatprep.mubr.f32.mxu0 %v15632_v6 }
 0x180   :  { %10113 = vmatprep.subr.bf16.mxu0 %v13104_v40 }
 0x183   :  { %10115 = vmatpush1.bf16.msra.mxu0 %v13114_v58 }
 0x184   :  { %10117 = vmatprep.subr.bf16.mxu0 %v13117_v46 }
 0x187   :  { %10119 = vmatpush1.bf16.msra.mxu0 %v13129_v5 }
 0x188   :  { %10121 = vmatprep.subr.bf16.mxu0 %v13132_v56 }
 0x18b   :  { %10123 = vmatpush1.bf16.msra.mxu0 %v13142_v13 }
 0x18c   :  { %10125 = vmatprep.subr.bf16.mxu0 %v13145_v63 }
 0x18f   :  { %10127 = vmatpush1.bf16.msra.mxu0 %v13155_v27 }
 0x190   :  { %10153 = vmatprep.subr.bf16.mxu0 %v13158_v10 }
 0x1f5   :  { %v518_v47 = vpop.f32.mrb[0].mxu1 }
 0x1f6   :  { %v520_v11 = vpop.f32.mrb[1].mxu1  ;;  %v519_v6 = vadd.f32 %v518_v47, %v320_v49 }
 0x1f7   :  { %v13250_v14 = vadd.f32 %v520_v11, %v324_v8 }
 0x1f9   :  { %15702 = vst [vmem:[#allocation22_spill] sm:$0xff] %v13250_v14  ;;  %v524_v2 = vpop.f32.mrb[2].mxu1 }
 0x1fa   :  { %v13254_v18 = vadd.f32 %v524_v2, %v320_v49  ;;  %v526_v19 = vpop.f32.mrb[3].mxu1 }
 0x1fb   :  { %v13256_v22 = vadd.f32 %v526_v19, %v324_v8 }
 0x1fd   :  { %15703 = vst [vmem:[#allocation23_spill] sm:$0xff] %v13256_v22  ;;  %v530_v1 = vpop.f32.mrb[4].mxu1 }
 0x1fe   :  { %v13258_v21 = vadd.f32 %v530_v1, %v320_v49  ;;  %v532_v26 = vpop.f32.mrb[5].mxu1 }
 0x1ff   :  { %v13260_v28 = vadd.f32 %v532_v26, %v324_v8 }
 0x201   :  { %15704 = vst [vmem:[#allocation24_spill] sm:$0xff] %v13260_v28  ;;  %v536_v35 = vpop.f32.mrb[6].mxu1 }
 0x202   :  { %v13262_v36 = vadd.f32 %v536_v35, %v320_v49  ;;  %v538_v37 = vpop.f32.mrb[7].mxu1 }
 0x203   :  { %v13264_v41 = vadd.f32 %v538_v37, %v324_v8 }
 0x204   :  { %15705 = vst [vmem:[#allocation25_spill] sm:$0xff] %v13262_v36 }
 0x205   :  { %15706 = vst [vmem:[#allocation26_spill] sm:$0xff] %v13264_v41  ;;  %v542_v44 = vpop.f32.mrb[8].mxu1 }
 0x206   :  { %v13266_v50 = vadd.f32 %v542_v44, %v320_v49  ;;  %v544_v51 = vpop.f32.mrb[9].mxu1 }
 0x207   :  { %v13268_v53 = vadd.f32 %v544_v51, %v324_v8 }
 0x208   :  { %15707 = vst [vmem:[#allocation27_spill] sm:$0xff] %v13266_v50 }
 0x209   :  { %15708 = vst [vmem:[#allocation28_spill] sm:$0xff] %v13268_v53  ;;  %v548_v59 = vpop.f32.mrb[10].mxu1 }
 0x20a   :  { %v13270_v60 = vadd.f32 %v548_v59, %v320_v49  ;;  %v550_v11 = vpop.f32.mrb[11].mxu1 }
 0x20b   :  { %v13272_v2 = vadd.f32 %v550_v11, %v324_v8 }
 0x20c   :  { %15709 = vst [vmem:[#allocation29_spill] sm:$0xff] %v13270_v60 }
 0x20d   :  { %v554_v19 = vpop.f32.mrb[12].mxu1 }
 0x20e   :  { %v13274_v1 = vadd.f32 %v554_v19, %v320_v49  ;;  %v556_v26 = vpop.f32.mrb[13].mxu1 }
 0x20f   :  { %v13276_v35 = vadd.f32 %v556_v26, %v324_v8  ;;  %v13285_v26 = vsub.s32 1, %v13236_v3 }
 0x210   :  { %15710 = vst [vmem:[#allocation30_spill] sm:$0xff] %v13274_v1 }
 0x211   :  { %v560_v37 = vpop.f32.mrb[14].mxu1  ;;  %15712 = vst [vmem:[#allocation32_spill] sm:$0xff] %v13285_v26  ;;  %v13289_v47 = vrot.slane %v13242_v7, %v13285_v26 }
 0x212   :  { %v13278_v4 = vadd.f32 %v560_v37, %v320_v49  ;;  %v562_v44 = vpop.f32.mrb[15].mxu1 }
 0x213   :  { %v563_v59 = vadd.f32 %v562_v44, %v324_v8  ;;  %v15639_v44 = vsub.s32 5, %v13236_v3 }
 0x214   :  { %15711 = vst [vmem:[#allocation31_spill] sm:$0xff] %v13278_v4 }
 0x215   :  { %v895_v34 = vpop.f32.mrb[16].mxu1 }
 0x216   :  { %v13280_v51 = vadd.f32 %v895_v34, %v519_v6  ;;  %v897_v14 = vpop.f32.mrb[17].mxu1 }
 0x218   :  { %11805 = vtanh.f32 %v13280_v51 }
 0x219   :  { %v900_v11 = vpop.f32.mrb[18].mxu1 }
 0x21a   :  { %v901_v22 = vpop.f32.mrb[19].mxu1 }
 0x21b   :  { %v982_v28 = vadd.f32 %v901_v22, %v563_v59  ;;  %v15638_v22 = vsub.s32 4, %v13236_v3 }
 0x21d   :  { %v9183_v60 = vmul.f32 -1.442695, %v982_v28 }
 0x222   :  { %v11806_v19 = vpop.eup %11805 }
 0x223   :  { %1035 = vrot.lane.b32.xlu1 %v11806_v19, %s12694_s2  ;;  %v13298_v19 = vrot.slane %v13242_v7, %v15638_v22  ;;  %v13313_v22 = vsub.s32 0, %v13236_v3 }
 0x225   :  { %15713 = vst [vmem:[#allocation33_spill] sm:$0xff] %v13298_v19  ;;  %15715 = vst [vmem:[#allocation35_spill] sm:$0xff] %v13313_v22 }
 0x235   :  { %v820_v6 = vpop.f32.mrb[0].mxu0 }
 0x236   :  { %v822_v34 = vpop.f32.mrb[1].mxu0 }
 0x237   :  { %v11605_v14 = vadd.f32 %v822_v34, %v13289_v47  ;;  %v13303_v34 = vrot.slane %v13242_v7, %v15639_v44  ;;  %v13317_v44 = vrot.slane %v13242_v7, %v13313_v22 }
 0x239   :  { %11807 = vtanh.f32 %v11605_v14  ;;  %v826_v8 = vpop.f32.mrb[32].mxu0  ;;  %15714 = vst [vmem:[#allocation34_spill] sm:$0xff] %v13303_v34  ;;  %15716 = vst [vmem:[#allocation36_spill] sm:$0xff] %v13317_v44 }
 0x23a   :  { %v827_v49 = vpop.f32.mrb[33].mxu0 }
 0x243   :  { %v11808_v37 = vpop.eup %11807 }
 0x244   :  { %1033 = vrot.lane.b32.xlu0 %v11808_v37, %s12694_s2 }
 0x24d   :  { %v970_v59 = vpop.f32.mrb[34].mxu0 }
 0x24e   :  { %v971_v11 = vpop.f32.mrb[35].mxu0 }
 0x251   :  { %v974_v8 = vpop.f32.mrb[30].mxu0 }
 0x252   :  { %v11634_v49 = vadd.f32 %v974_v8, %v13298_v19  ;;  %v976_v37 = vpop.f32.mrb[31].mxu0  ;;  %v11604_v8 = vadd.f32 %v820_v6, %v13317_v44 }
 0x253   :  { %v13307_v26 = vadd.f32 %v976_v37, %v13303_v34 }
 0x254   :  { %11809 = vtanh.f32 %v11634_v49  ;;  %v9181_v37 = vmul.f32 -1.442695, %v11604_v8 }
 0x255   :  { %11811 = vtanh.f32 %v13307_v26 }
 0x256   :  { %11813 = vpow2.f32 %v9181_v37 }
 0x25e   :  { %v11810_v59 = vpop.eup %11809 }
 0x25f   :  { %v11812_v11 = vpop.eup %11811  ;;  %1037 = vrot.lane.b32.xlu0 %v11810_v59, %s12694_s2 }
 0x260   :  { %1039 = vrot.lane.b32.xlu1 %v11812_v11, %s12694_s2  ;;  %v11814_v4 = vpop.eup %11813 }
 0x261   :  { %v997_v1 = vadd.f32 1.0, %v11814_v4 }
 0x263   :  { %11815 = vrcp.f32 %v997_v1  ;;  %v9182_v1 = vmul.f32 -1.442695, %v11605_v14 }
 0x264   :  { %11817 = vpow2.f32 %v9183_v60  ;;  %v9184_v60 = vmul.f32 -1.442695, %v11634_v49 }
 0x26d   :  { %v11816_v50 = vpop.eup %11815 }
 0x26e   :  { %v11818_v7 = vpop.eup %11817 }
 0x26f   :  { %v999_v22 = vadd.f32 1.0, %v11818_v7 }
 0x271   :  { %11819 = vrcp.f32 %v999_v22 }
 0x272   :  { %11821 = vpow2.f32 %v9182_v1 }
 0x27b   :  { %v11820_v37 = vpop.eup %11819 }
 0x27c   :  { %v11822_v53 = vpop.eup %11821 }
 0x295   :  { %v1036_v41 = vpop.permute.xlu1 %1035 }
 0x2b6   :  { %v1034_v59 = vpop.permute.xlu0 %1033 }
 0x2b7   :  { %v1042_v11 = vsel %vm1041_vm8, %v1034_v59, %v1036_v41  ;;  %v998_v41 = vadd.f32 1.0, %v11822_v53  ;;  %v1027_v53 = vmul.f32 0.0, %v11820_v37 }
 0x2b8   :  { %v1046_v3 = vmul.f32 %v11816_v50, %v1042_v11 }
 0x2b9   :  { %11823 = vrcp.f32 %v998_v41 }
 0x2ba   :  { %1050 = vrot.lane.b32.xlu0 %v1046_v3, %s12695_s20  ;;  %11825 = vpow2.f32 %v9184_v60  ;;  %v1025_v3 = vmul.f32 0.0, %v11816_v50 }
 0x2c3   :  { %v11824_v59 = vpop.eup %11823 }
 0x2c4   :  { %v1026_v11 = vmul.f32 0.0, %v11824_v59 }
 0x2d1   :  { %v1038_v6 = vpop.permute.xlu0 %1037 }
 0x2d2   :  { %v1040_v8 = vpop.permute.xlu1 %1039 }
 0x2d3   :  { %v1043_v4 = vsel %vm1041_vm8, %v1038_v6, %v1040_v8  ;;  %v11826_v6 = vpop.eup %11825 }
 0x2d4   :  { %v1047_v28 = vmul.f32 %v11820_v37, %v1043_v4  ;;  %v1000_v14 = vadd.f32 1.0, %v11826_v6 }
 0x2d6   :  { %1052 = vrot.lane.b32.xlu1 %v1047_v28, %s12695_s20 }
 0x32c   :  { %v1051_v7 = vpop.permute.xlu0 %1050 }
 0x32d   :  { %v13324_v22 = vadd.f32 %v1051_v7, %v1025_v3  ;;  %v13326_v36 = vadd.f32 %v1051_v7, %v1026_v11  ;;  %v9185_v3 = vmul.f32 -1.442695, %v13280_v51  ;;  %v9186_v7 = vmul.f32 -1.442695, %v13307_v26 }
 0x32f   :  { %11827 = vtanh.f32 %v13324_v22 }
 0x330   :  { %11829 = vtanh.f32 %v13326_v36 }
 0x331   :  { %11831 = vrcp.f32 %v1000_v14 }
 0x339   :  { %v11828_v8 = vpop.eup %11827 }
 0x33a   :  { %v11830_v4 = vpop.eup %11829  ;;  %1068 = vrot.lane.b32.xlu0 %v11828_v8, %s12694_s2 }
 0x33b   :  { %1070 = vrot.lane.b32.xlu1 %v11830_v4, %s12694_s2  ;;  %v11832_v50 = vpop.eup %11831 }
 0x33c   :  { %v1028_v49 = vmul.f32 0.0, %v11832_v50 }
 0x348   :  { %v1053_v28 = vpop.permute.xlu1 %1052 }
 0x349   :  { %v13332_v1 = vadd.f32 %v1053_v28, %v1027_v53  ;;  %v13334_v41 = vadd.f32 %v1053_v28, %v1028_v49 }
 0x34b   :  { %11833 = vtanh.f32 %v13332_v1 }
 0x34c   :  { %11835 = vtanh.f32 %v13334_v41 }
 0x34d   :  { %11837 = vpow2.f32 %v9185_v3 }
 0x355   :  { %v11834_v60 = vpop.eup %11833 }
 0x356   :  { %v11836_v59 = vpop.eup %11835  ;;  %1072 = vrot.lane.b32.xlu0 %v11834_v60, %s12694_s2 }
 0x357   :  { %1074 = vrot.lane.b32.xlu1 %v11836_v59, %s12694_s2  ;;  %v11838_v37 = vpop.eup %11837 }
 0x358   :  { %v1019_v11 = vadd.f32 1.0, %v11838_v37  ;;  %v15718_v37 = vmov 0.0  }
 0x35a   :  { %11839 = vrcp.f32 %v1019_v11 }
 0x35b   :  { %11841 = vpow2.f32 %v9186_v7 }
 0x364   :  { %v11840_v8 = vpop.eup %11839 }
 0x365   :  { %v11842_v53 = vpop.eup %11841 }
 0x366   :  { %v1020_v49 = vadd.f32 1.0, %v11842_v53 }
 0x368   :  { %11843 = vrcp.f32 %v1020_v49 }
 0x372   :  { %v11844_v60 = vpop.eup %11843 }
 0x3ac   :  { %v1069_v6 = vpop.permute.xlu0 %1068 }
 0x3ad   :  { %v1071_v14 = vpop.permute.xlu1 %1070 }
 0x3ae   :  { %v1076_v4 = vsel %vm1041_vm8, %v1069_v6, %v1071_v14 }
 0x3af   :  { %v1080_v50 = vmul.f32 %v11840_v8, %v1076_v4 }
 0x3b1   :  { %1084 = vrot.lane.b32.xlu0 %v1080_v50, %s12695_s20 }
 0x3c8   :  { %v1073_v28 = vpop.permute.xlu0 %1072 }
 0x3c9   :  { %v1075_v51 = vpop.permute.xlu1 %1074 }
 0x3ca   :  { %v1077_v59 = vsel %vm1041_vm8, %v1073_v28, %v1075_v51 }
 0x3cb   :  { %v1081_v3 = vmul.f32 %v11844_v60, %v1077_v59 }
 0x3cd   :  { %1086 = vrot.lane.b32.xlu1 %v1081_v3, %s12695_s20 }
 0x423   :  { %v13346_v26 = vpop.permute.xlu0 %1084 }
 0x424   :  { %15717 = vst [vmem:[#allocation37_spill] sm:$0xff] %v13346_v26  ;;  %9187 = vmatmul.mubr.msk.f32.vlgmr.msra.gmra.mrb[2].mxu0 %vm750_vm9, %v13346_v26  ;;  %9189 = vmatmul.mubr.msk.f32.vlgmr.msra.gmra.mrb[20].mxu1 %vm750_vm9, %v13346_v26 }
 0x425   :  { %10155 = vmatpush1.bf16.msra.mxu0 %v13181_v15  ;;  %1162 = vmatprep.mubr.f32.mxu0 %v15718_v37 }
 0x426   :  { %10157 = vmatprep.subr.bf16.mxu0 %v13183_v16  ;;  %1236 = vmatprep.mubr.f32.mxu1 %v15718_v37 }
 0x427   :  { %10203 = vmatpush1.bf16.msra.mxu1 %v12944_v0 }
 0x428   :  { %10205 = vmatprep.subr.bf16.mxu1 %v12961_v12 }
 0x429   :  { %10159 = vmatpush1.bf16.msra.mxu0 %v13187_v25 }
 0x42a   :  { %10161 = vmatprep.subr.bf16.mxu0 %v13191_v52 }
 0x42b   :  { %10207 = vmatpush1.bf16.msra.mxu1 %v12978_v20 }
 0x42c   :  { %10209 = vmatprep.subr.bf16.mxu1 %v12995_v32 }
 0x42d   :  { %10163 = vmatpush1.bf16.msra.mxu0 %v13195_v29 }
 0x42e   :  { %10165 = vmatprep.subr.bf16.mxu0 %v13199_v33 }
 0x42f   :  { %10211 = vmatpush1.bf16.msra.mxu1 %v13008_v39 }
 0x430   :  { %10213 = vmatprep.subr.bf16.mxu1 %v13014_v45 }
 0x431   :  { %10167 = vmatpush1.bf16.msra.mxu0 %v13202_v42 }
 0x432   :  { %10169 = vmatprep.subr.bf16.mxu0 %v13205_v43 }
 0x433   :  { %10215 = vmatpush1.bf16.msra.mxu1 %v13027_v55 }
 0x434   :  { %10217 = vmatprep.subr.bf16.mxu1 %v13034_v62 }
 0x435   :  { %10171 = vmatpush1.bf16.msra.mxu0 %v13208_v54 }
 0x436   :  { %10173 = vmatprep.subr.bf16.mxu0 %v13211_v57 }
 0x437   :  { %10219 = vmatpush1.bf16.msra.mxu1 %v13047_v9 }
 0x438   :  { %10221 = vmatprep.subr.bf16.mxu1 %v13054_v17 }
 0x439   :  { %10175 = vmatpush1.bf16.msra.mxu0 %v13214_v61 }
 0x43a   :  { %10177 = vmatprep.subr.bf16.mxu0 %v13071_v24 }
 0x43b   :  { %10223 = vmatpush1.bf16.msra.mxu1 %v13067_v23 }
 0x43c   :  { %10273 = vmatprep.subr.bf16.mxu1 %v12934_v48 }
 0x43f   :  { %v13378_v11 = vpop.permute.xlu1 %1086 }
 0x440   :  { %15719 = vst [vmem:[#allocation38_spill] sm:$0xff] %v13378_v11  ;;  %9188 = vmatmul.mubr.msk.f32.gmra.mrb[36].mxu0 %vm750_vm9, %v13378_v11  ;;  %9190 = vmatmul.mubr.msk.f32.gmra.mrb[22].mxu1 %vm750_vm9, %v13378_v11 }
 0x441   :  { %1306 = vmatprep.mubr.f32.mxu0 %v15718_v37  ;;  %1568 = vmatprep.mubr.f32.mxu1 %v15718_v37 }
 0x444   :  { %9191 = vmatmul.mubr.msk.f32.vlgmr.msra.gmra.mrb[38].mxu0 %vm750_vm9, %v13346_v26 }
 0x445   :  { %1310 = vmatprep.mubr.f32.mxu0 %v15718_v37  ;;  %10179 = vmatpush1.bf16.msra.mxu0 %v13085_v30 }
 0x446   :  { %10181 = vmatprep.subr.bf16.mxu0 %v13089_v31 }
 0x448   :  { %9192 = vmatmul.mubr.msk.f32.gmra.mrb[28].mxu0 %vm750_vm9, %v13378_v11 }
 0x449   :  { %10183 = vmatpush1.bf16.msra.mxu0 %v13100_v38  ;;  %1493 = vmatprep.mubr.f32.mxu0 %v15718_v37 }
 0x44a   :  { %10185 = vmatprep.subr.bf16.mxu0 %v13104_v40 }
 0x44d   :  { %10187 = vmatpush1.bf16.msra.mxu0 %v13114_v58 }
 0x44e   :  { %10189 = vmatprep.subr.bf16.mxu0 %v13117_v46 }
 0x451   :  { %10191 = vmatpush1.bf16.msra.mxu0 %v13129_v5 }
 0x452   :  { %10193 = vmatprep.subr.bf16.mxu0 %v13132_v56 }
 0x455   :  { %10195 = vmatpush1.bf16.msra.mxu0 %v13142_v13 }
 0x456   :  { %10197 = vmatprep.subr.bf16.mxu0 %v13145_v63 }
 0x459   :  { %10199 = vmatpush1.bf16.msra.mxu0 %v13155_v27 }
 0x45a   :  { %10225 = vmatprep.subr.bf16.mxu0 %v13158_v10 }
 0x4f7   :  { %v1158_v7 = vpop.f32.mrb[2].mxu0  ;;  %v1233_v6 = vpop.f32.mrb[20].mxu1 }
 0x4f8   :  { %v13405_v14 = vadd.f32 %v1233_v6, %v13254_v18  ;;  %v1160_v8 = vpop.f32.mrb[3].mxu0  ;;  %v1235_v4 = vpop.f32.mrb[21].mxu1 }
 0x4f9   :  { %v11607_v50 = vadd.f32 %v1160_v8, %v13289_v47 }
 0x4fa   :  { %11845 = vtanh.f32 %v13405_v14 }
 0x4fb   :  { %11847 = vtanh.f32 %v11607_v50 }
 0x504   :  { %v11846_v53 = vpop.eup %11845 }
 0x505   :  { %v11848_v49 = vpop.eup %11847  ;;  %1373 = vrot.lane.b32.xlu1 %v11846_v53, %s12694_s2 }
 0x506   :  { %1371 = vrot.lane.b32.xlu0 %v11848_v49, %s12694_s2 }
 0x513   :  { %v1164_v28 = vpop.f32.mrb[36].mxu0  ;;  %v1238_v51 = vpop.f32.mrb[22].mxu1 }
 0x514   :  { %v1165_v60 = vpop.f32.mrb[37].mxu0  ;;  %v1239_v59 = vpop.f32.mrb[23].mxu1 }
 0x515   :  { %v1320_v18 = vadd.f32 %v1239_v59, %v13276_v35  ;;  %v11606_v35 = vadd.f32 %v1158_v7, %v13317_v44 }
 0x517   :  { %v1308_v3 = vpop.f32.mrb[38].mxu0  ;;  %v9193_v28 = vmul.f32 -1.442695, %v11606_v35 }
 0x518   :  { %v1309_v6 = vpop.f32.mrb[39].mxu0 }
 0x51b   :  { %v1312_v4 = vpop.f32.mrb[28].mxu0 }
 0x51c   :  { %v11632_v8 = vadd.f32 %v1312_v4, %v13298_v19  ;;  %v1314_v26 = vpop.f32.mrb[29].mxu0 }
 0x51d   :  { %v13414_v11 = vadd.f32 %v1314_v26, %v13303_v34  ;;  %v9195_v34 = vmul.f32 -1.442695, %v1320_v18 }
 0x51e   :  { %11849 = vtanh.f32 %v11632_v8 }
 0x51f   :  { %11851 = vtanh.f32 %v13414_v11 }
 0x520   :  { %11853 = vpow2.f32 %v9193_v28 }
 0x528   :  { %v11850_v53 = vpop.eup %11849 }
 0x529   :  { %v11852_v49 = vpop.eup %11851  ;;  %1375 = vrot.lane.b32.xlu0 %v11850_v53, %s12694_s2 }
 0x52a   :  { %1377 = vrot.lane.b32.xlu1 %v11852_v49, %s12694_s2  ;;  %v11854_v51 = vpop.eup %11853 }
 0x52b   :  { %v1335_v60 = vadd.f32 1.0, %v11854_v51 }
 0x52d   :  { %11855 = vrcp.f32 %v1335_v60  ;;  %v9194_v60 = vmul.f32 -1.442695, %v11607_v50 }
 0x52e   :  { %11857 = vpow2.f32 %v9195_v34 }
 0x537   :  { %v11856_v26 = vpop.eup %11855 }
 0x538   :  { %v11858_v53 = vpop.eup %11857  ;;  %v1363_v18 = vmul.f32 %v11856_v26, %v13324_v22 }
 0x539   :  { %v1337_v19 = vadd.f32 1.0, %v11858_v53 }
 0x53b   :  { %11859 = vrcp.f32 %v1337_v19  ;;  %v9196_v19 = vmul.f32 -1.442695, %v11632_v8 }
 0x53c   :  { %11861 = vpow2.f32 %v9194_v60 }
 0x545   :  { %v11860_v35 = vpop.eup %11859 }
 0x546   :  { %v11862_v44 = vpop.eup %11861  ;;  %v1365_v8 = vmul.f32 %v11860_v35, %v13332_v1 }
 0x577   :  { %v1374_v59 = vpop.permute.xlu1 %1373 }
 0x578   :  { %v1372_v3 = vpop.permute.xlu0 %1371 }
 0x579   :  { %v1379_v6 = vsel %vm1041_vm8, %v1372_v3, %v1374_v59  ;;  %v1336_v59 = vadd.f32 1.0, %v11862_v44 }
 0x57a   :  { %v1383_v4 = vmul.f32 %v11856_v26, %v1379_v6 }
 0x57b   :  { %11863 = vrcp.f32 %v1336_v59 }
 0x57c   :  { %1387 = vrot.lane.b32.xlu0 %v1383_v4, %s12695_s20 }
 0x585   :  { %v11864_v3 = vpop.eup %11863 }
 0x586   :  { %v1364_v34 = vmul.f32 %v11864_v3, %v13326_v36  ;;  %v9197_v3 = vmul.f32 -1.442695, %v13405_v14 }
 0x59b   :  { %v1376_v49 = vpop.permute.xlu0 %1375 }
 0x59c   :  { %v1378_v7 = vpop.permute.xlu1 %1377 }
 0x59d   :  { %v1380_v28 = vsel %vm1041_vm8, %v1376_v49, %v1378_v7 }
 0x59e   :  { %v1384_v51 = vmul.f32 %v11860_v35, %v1380_v28 }
 0x5a0   :  { %1389 = vrot.lane.b32.xlu1 %v1384_v51, %s12695_s20 }
 0x5ee   :  { %v1388_v6 = vpop.permute.xlu0 %1387 }
 0x5ef   :  { %v13426_v4 = vadd.f32 %v1388_v6, %v1363_v18  ;;  %v13428_v53 = vadd.f32 %v1388_v6, %v1364_v34 }
 0x5f1   :  { %11865 = vtanh.f32 %v13426_v4 }
 0x5f2   :  { %11867 = vtanh.f32 %v13428_v53 }
 0x5f3   :  { %11869 = vpow2.f32 %v9196_v19 }
 0x5fb   :  { %v11866_v50 = vpop.eup %11865 }
 0x5fc   :  { %v11868_v49 = vpop.eup %11867  ;;  %1405 = vrot.lane.b32.xlu0 %v11866_v50, %s12694_s2  ;;  %v9198_v50 = vmul.f32 -1.442695, %v13414_v11 }
 0x5fd   :  { %v11870_v44 = vpop.eup %11869  ;;  %1407 = vrot.lane.b32.xlu1 %v11868_v49, %s12694_s2 }
 0x5fe   :  { %v1338_v22 = vadd.f32 1.0, %v11870_v44 }
 0x600   :  { %11871 = vrcp.f32 %v1338_v22 }
 0x60a   :  { %v11872_v36 = vpop.eup %11871 }
 0x60b   :  { %v1366_v26 = vmul.f32 %v11872_v36, %v13334_v41 }
 0x612   :  { %v1390_v7 = vpop.permute.xlu1 %1389 }
 0x613   :  { %v13436_v28 = vadd.f32 %v1390_v7, %v1365_v8  ;;  %v13438_v51 = vadd.f32 %v1390_v7, %v1366_v26 }
 0x615   :  { %11873 = vtanh.f32 %v13436_v28 }
 0x616   :  { %11875 = vtanh.f32 %v13438_v51 }
 0x617   :  { %11877 = vpow2.f32 %v9197_v3 }
 0x61f   :  { %v11874_v60 = vpop.eup %11873 }
 0x620   :  { %v11876_v59 = vpop.eup %11875  ;;  %1409 = vrot.lane.b32.xlu0 %v11874_v60, %s12694_s2 }
 0x621   :  { %1411 = vrot.lane.b32.xlu1 %v11876_v59, %s12694_s2  ;;  %v11878_v1 = vpop.eup %11877 }
 0x622   :  { %v1357_v41 = vadd.f32 1.0, %v11878_v1 }
 0x624   :  { %11879 = vrcp.f32 %v1357_v41 }
 0x625   :  { %11881 = vpow2.f32 %v9198_v50 }
 0x62e   :  { %v11880_v34 = vpop.eup %11879 }
 0x62f   :  { %v11882_v49 = vpop.eup %11881 }
 0x630   :  { %v1358_v44 = vadd.f32 1.0, %v11882_v49 }
 0x632   :  { %11883 = vrcp.f32 %v1358_v44 }
 0x63c   :  { %v11884_v36 = vpop.eup %11883 }
 0x66e   :  { %v1406_v35 = vpop.permute.xlu0 %1405 }
 0x66f   :  { %v1408_v18 = vpop.permute.xlu1 %1407 }
 0x670   :  { %v1413_v6 = vsel %vm1041_vm8, %v1406_v35, %v1408_v18 }
 0x671   :  { %v1417_v19 = vmul.f32 %v11880_v34, %v1413_v6 }
 0x673   :  { %1421 = vrot.lane.b32.xlu0 %v1417_v19, %s12695_s20 }
 0x692   :  { %v1410_v22 = vpop.permute.xlu0 %1409 }
 0x693   :  { %v1412_v14 = vpop.permute.xlu1 %1411 }
 0x694   :  { %v1414_v8 = vsel %vm1041_vm8, %v1410_v22, %v1412_v14 }
 0x695   :  { %v1418_v26 = vmul.f32 %v11884_v36, %v1414_v8  ;;  %v15722_v36 = vld [vmem:[#allocation33_spill] sm:$0xff] }
 0x697   :  { %1423 = vrot.lane.b32.xlu1 %v1418_v26, %s12695_s20 }
 0x6e5   :  { %v13450_v7 = vpop.permute.xlu0 %1421 }
 0x6e6   :  { %15720 = vst [vmem:[#allocation39_spill] sm:$0xff] %v13450_v7  ;;  %9199 = vmatmul.mubr.msk.f32.vlgmr.msra.gmra.mrb[4].mxu0 %vm750_vm9, %v13450_v7  ;;  %9201 = vmatmul.mubr.msk.f32.vlgmr.msra.gmra.mrb[24].mxu1 %vm750_vm9, %v13450_v7 }
 0x6e7   :  { %10227 = vmatpush1.bf16.msra.mxu0 %v13181_v15  ;;  %1499 = vmatprep.mubr.f32.mxu0 %v15718_v37 }
 0x6e8   :  { %10229 = vmatprep.subr.bf16.mxu0 %v13183_v16  ;;  %1573 = vmatprep.mubr.f32.mxu1 %v15718_v37 }
 0x6e9   :  { %10275 = vmatpush1.bf16.msra.mxu1 %v12944_v0 }
 0x6ea   :  { %10277 = vmatprep.subr.bf16.mxu1 %v12961_v12 }
 0x6eb   :  { %10231 = vmatpush1.bf16.msra.mxu0 %v13187_v25 }
 0x6ec   :  { %10233 = vmatprep.subr.bf16.mxu0 %v13191_v52 }
 0x6ed   :  { %10279 = vmatpush1.bf16.msra.mxu1 %v12978_v20 }
 0x6ee   :  { %10281 = vmatprep.subr.bf16.mxu1 %v12995_v32 }
 0x6ef   :  { %10235 = vmatpush1.bf16.msra.mxu0 %v13195_v29 }
 0x6f0   :  { %10237 = vmatprep.subr.bf16.mxu0 %v13199_v33 }
 0x6f1   :  { %10283 = vmatpush1.bf16.msra.mxu1 %v13008_v39 }
 0x6f2   :  { %10285 = vmatprep.subr.bf16.mxu1 %v13014_v45 }
 0x6f3   :  { %10239 = vmatpush1.bf16.msra.mxu0 %v13202_v42 }
 0x6f4   :  { %10241 = vmatprep.subr.bf16.mxu0 %v13205_v43 }
 0x6f5   :  { %10287 = vmatpush1.bf16.msra.mxu1 %v13027_v55 }
 0x6f6   :  { %10289 = vmatprep.subr.bf16.mxu1 %v13034_v62 }
 0x6f7   :  { %10243 = vmatpush1.bf16.msra.mxu0 %v13208_v54 }
 0x6f8   :  { %10245 = vmatprep.subr.bf16.mxu0 %v13211_v57 }
 0x6f9   :  { %10291 = vmatpush1.bf16.msra.mxu1 %v13047_v9 }
 0x6fa   :  { %10293 = vmatprep.subr.bf16.mxu1 %v13054_v17 }
 0x6fb   :  { %10247 = vmatpush1.bf16.msra.mxu0 %v13214_v61 }
 0x6fc   :  { %10249 = vmatprep.subr.bf16.mxu0 %v13071_v24 }
 0x6fd   :  { %10295 = vmatpush1.bf16.msra.mxu1 %v13067_v23 }
 0x6fe   :  { %10345 = vmatprep.subr.bf16.mxu1 %v12934_v48 }
 0x709   :  { %v13482_v11 = vpop.permute.xlu1 %1423 }
 0x70a   :  { %15721 = vst [vmem:[#allocation40_spill] sm:$0xff] %v13482_v11  ;;  %9200 = vmatmul.mubr.msk.f32.gmra.mrb[40].mxu0 %vm750_vm9, %v13482_v11  ;;  %9202 = vmatmul.mubr.msk.f32.gmra.mrb[26].mxu1 %vm750_vm9, %v13482_v11 }
 0x70b   :  { %1643 = vmatprep.mubr.f32.mxu0 %v15718_v37  ;;  %1905 = vmatprep.mubr.f32.mxu1 %v15718_v37 }
 0x70e   :  { %9203 = vmatmul.mubr.msk.f32.vlgmr.msra.gmra.mrb[42].mxu0 %vm750_vm9, %v13450_v7 }
 0x70f   :  { %1647 = vmatprep.mubr.f32.mxu0 %v15718_v37  ;;  %10251 = vmatpush1.bf16.msra.mxu0 %v13085_v30 }
 0x710   :  { %10253 = vmatprep.subr.bf16.mxu0 %v13089_v31 }
 0x712   :  { %9204 = vmatmul.mubr.msk.f32.gmra.mrb[26].mxu0 %vm750_vm9, %v13482_v11 }
 0x713   :  { %10255 = vmatpush1.bf16.msra.mxu0 %v13100_v38  ;;  %1830 = vmatprep.mubr.f32.mxu0 %v15718_v37 }
 0x714   :  { %10257 = vmatprep.subr.bf16.mxu0 %v13104_v40 }
 0x717   :  { %10259 = vmatpush1.bf16.msra.mxu0 %v13114_v58 }
 0x718   :  { %10261 = vmatprep.subr.bf16.mxu0 %v13117_v46 }
 0x71b   :  { %10263 = vmatpush1.bf16.msra.mxu0 %v13129_v5 }
 0x71c   :  { %10265 = vmatprep.subr.bf16.mxu0 %v13132_v56 }
 0x71f   :  { %10267 = vmatpush1.bf16.msra.mxu0 %v13142_v13 }
 0x720   :  { %10269 = vmatprep.subr.bf16.mxu0 %v13145_v63 }
 0x723   :  { %10271 = vmatpush1.bf16.msra.mxu0 %v13155_v27 }
 0x724   :  { %10297 = vmatprep.subr.bf16.mxu0 %v13158_v10 }
 0x7b9   :  { %v1495_v60 = vpop.f32.mrb[4].mxu0  ;;  %v1570_v59 = vpop.f32.mrb[24].mxu1 }
 0x7ba   :  { %v13509_v3 = vadd.f32 %v1570_v59, %v13258_v21  ;;  %v1497_v1 = vpop.f32.mrb[5].mxu0  ;;  %v1572_v41 = vpop.f32.mrb[25].mxu1  ;;  %v15723_v59 = vld [vmem:[#allocation34_spill] sm:$0xff] }
 0x7bb   :  { %v11609_v35 = vadd.f32 %v1497_v1, %v13289_v47 }
 0x7bc   :  { %11885 = vtanh.f32 %v13509_v3 }
 0x7bd   :  { %11887 = vtanh.f32 %v11609_v35 }
 0x7c6   :  { %v11886_v18 = vpop.eup %11885 }
 0x7c7   :  { %v11888_v34 = vpop.eup %11887  ;;  %1710 = vrot.lane.b32.xlu1 %v11886_v18, %s12694_s2 }
 0x7c8   :  { %1708 = vrot.lane.b32.xlu0 %v11888_v34, %s12694_s2  ;;  %v15724_v34 = vld [vmem:[#allocation36_spill] sm:$0xff] }
 0x7dd   :  { %v1501_v6 = vpop.f32.mrb[40].mxu0  ;;  %v1575_v19 = vpop.f32.mrb[26].mxu1 }
 0x7de   :  { %v1502_v50 = vpop.f32.mrb[41].mxu0  ;;  %v1576_v49 = vpop.f32.mrb[27].mxu1 }
 0x7df   :  { %v1657_v21 = vadd.f32 %v1576_v49, %v13272_v2  ;;  %v11608_v2 = vadd.f32 %v1495_v60, %v15724_v34 }
 0x7e1   :  { %v1645_v44 = vpop.f32.mrb[42].mxu0  ;;  %v9205_v6 = vmul.f32 -1.442695, %v11608_v2  ;;  %v9207_v7 = vmul.f32 -1.442695, %v1657_v21 }
 0x7e2   :  { %v1646_v22 = vpop.f32.mrb[43].mxu0 }
 0x7e5   :  { %v1649_v14 = vpop.f32.mrb[26].mxu0 }
 0x7e6   :  { %v11630_v8 = vadd.f32 %v1649_v14, %v15722_v36  ;;  %v1651_v26 = vpop.f32.mrb[27].mxu0 }
 0x7e7   :  { %v13518_v1 = vadd.f32 %v1651_v26, %v15723_v59 }
 0x7e8   :  { %11889 = vtanh.f32 %v11630_v8 }
 0x7e9   :  { %11891 = vtanh.f32 %v13518_v1 }
 0x7ea   :  { %11893 = vpow2.f32 %v9205_v6 }
 0x7f2   :  { %v11890_v41 = vpop.eup %11889 }
 0x7f3   :  { %v11892_v18 = vpop.eup %11891  ;;  %1712 = vrot.lane.b32.xlu0 %v11890_v41, %s12694_s2 }
 0x7f4   :  { %1714 = vrot.lane.b32.xlu1 %v11892_v18, %s12694_s2  ;;  %v11894_v19 = vpop.eup %11893 }
 0x7f5   :  { %v1672_v50 = vadd.f32 1.0, %v11894_v19 }
 0x7f7   :  { %11895 = vrcp.f32 %v1672_v50  ;;  %v9206_v50 = vmul.f32 -1.442695, %v11609_v35 }
 0x7f8   :  { %11897 = vpow2.f32 %v9207_v7 }
 0x801   :  { %v11896_v22 = vpop.eup %11895 }
 0x802   :  { %v11898_v41 = vpop.eup %11897  ;;  %v1700_v21 = vmul.f32 %v11896_v22, %v13426_v4 }
 0x803   :  { %v1674_v11 = vadd.f32 1.0, %v11898_v41  ;;  %v9208_v41 = vmul.f32 -1.442695, %v11630_v8 }
 0x805   :  { %11899 = vrcp.f32 %v1674_v11 }
 0x806   :  { %11901 = vpow2.f32 %v9206_v50 }
 0x80f   :  { %v11900_v2 = vpop.eup %11899 }
 0x810   :  { %v11902_v34 = vpop.eup %11901 }
 0x839   :  { %v1711_v49 = vpop.permute.xlu1 %1710 }
 0x83a   :  { %v1709_v44 = vpop.permute.xlu0 %1708 }
 0x83b   :  { %v1716_v14 = vsel %vm1041_vm8, %v1709_v44, %v1711_v49  ;;  %v1673_v49 = vadd.f32 1.0, %v11902_v34 }
 0x83c   :  { %v1720_v26 = vmul.f32 %v11896_v22, %v1716_v14  ;;  %v1702_v22 = vmul.f32 %v11900_v2, %v13436_v28 }
 0x83d   :  { %11903 = vrcp.f32 %v1673_v49 }
 0x83e   :  { %1724 = vrot.lane.b32.xlu0 %v1720_v26, %s12695_s20 }
 0x847   :  { %v11904_v44 = vpop.eup %11903 }
 0x848   :  { %v1701_v7 = vmul.f32 %v11904_v44, %v13428_v53  ;;  %v9209_v44 = vmul.f32 -1.442695, %v13509_v3 }
 0x865   :  { %v1713_v18 = vpop.permute.xlu0 %1712 }
 0x866   :  { %v1715_v60 = vpop.permute.xlu1 %1714 }
 0x867   :  { %v1717_v6 = vsel %vm1041_vm8, %v1713_v18, %v1715_v60 }
 0x868   :  { %v1721_v19 = vmul.f32 %v11900_v2, %v1717_v6 }
 0x86a   :  { %1726 = vrot.lane.b32.xlu1 %v1721_v19, %s12695_s20 }
 0x8b0   :  { %v1725_v14 = vpop.permute.xlu0 %1724 }
 0x8b1   :  { %v13530_v11 = vadd.f32 %v1725_v14, %v1700_v21  ;;  %v13532_v26 = vadd.f32 %v1725_v14, %v1701_v7 }
 0x8b3   :  { %11905 = vtanh.f32 %v13530_v11 }
 0x8b4   :  { %11907 = vtanh.f32 %v13532_v26 }
 0x8b5   :  { %11909 = vpow2.f32 %v9208_v41 }
 0x8bd   :  { %v11906_v35 = vpop.eup %11905 }
 0x8be   :  { %v11908_v18 = vpop.eup %11907  ;;  %1742 = vrot.lane.b32.xlu0 %v11906_v35, %s12694_s2  ;;  %v9210_v35 = vmul.f32 -1.442695, %v13518_v1 }
 0x8bf   :  { %1744 = vrot.lane.b32.xlu1 %v11908_v18, %s12694_s2  ;;  %v11910_v4 = vpop.eup %11909 }
 0x8c0   :  { %v1675_v34 = vadd.f32 1.0, %v11910_v4 }
 0x8c2   :  { %11911 = vrcp.f32 %v1675_v34 }
 0x8cc   :  { %v11912_v53 = vpop.eup %11911 }
 0x8cd   :  { %v1703_v60 = vmul.f32 %v11912_v53, %v13438_v51 }
 0x8dc   :  { %v1727_v6 = vpop.permute.xlu1 %1726 }
 0x8dd   :  { %v13540_v19 = vadd.f32 %v1727_v6, %v1702_v22  ;;  %v13542_v50 = vadd.f32 %v1727_v6, %v1703_v60 }
 0x8df   :  { %11913 = vtanh.f32 %v13540_v19 }
 0x8e0   :  { %11915 = vtanh.f32 %v13542_v50 }
 0x8e1   :  { %11917 = vpow2.f32 %v9209_v44  ;;  %v15727_v44 = vld [vmem:[#allocation25_spill] sm:$0xff] }
 0x8e9   :  { %v11914_v8 = vpop.eup %11913 }
 0x8ea   :  { %v11916_v49 = vpop.eup %11915  ;;  %1746 = vrot.lane.b32.xlu0 %v11914_v8, %s12694_s2 }
 0x8eb   :  { %1748 = vrot.lane.b32.xlu1 %v11916_v49, %s12694_s2  ;;  %v11918_v28 = vpop.eup %11917 }
 0x8ec   :  { %v1694_v51 = vadd.f32 1.0, %v11918_v28 }
 0x8ee   :  { %11919 = vrcp.f32 %v1694_v51 }
 0x8ef   :  { %11921 = vpow2.f32 %v9210_v35 }
 0x8f8   :  { %v11920_v7 = vpop.eup %11919 }
 0x8f9   :  { %v11922_v18 = vpop.eup %11921 }
 0x8fa   :  { %v1695_v4 = vadd.f32 1.0, %v11922_v18 }
 0x8fc   :  { %11923 = vrcp.f32 %v1695_v4 }
 0x906   :  { %v11924_v53 = vpop.eup %11923 }
 0x930   :  { %v1743_v2 = vpop.permute.xlu0 %1742 }
 0x931   :  { %v1745_v21 = vpop.permute.xlu1 %1744 }
 0x932   :  { %v1750_v14 = vsel %vm1041_vm8, %v1743_v2, %v1745_v21 }
 0x933   :  { %v1754_v41 = vmul.f32 %v11920_v7, %v1750_v14 }
 0x935   :  { %1758 = vrot.lane.b32.xlu0 %v1754_v41, %s12695_s20 }
 0x95c   :  { %v1747_v34 = vpop.permute.xlu0 %1746 }
 0x95d   :  { %v1749_v3 = vpop.permute.xlu1 %1748 }
 0x95e   :  { %v1751_v22 = vsel %vm1041_vm8, %v1747_v34, %v1749_v3  ;;  %v15728_v34 = vld [vmem:[#allocation28_spill] sm:$0xff] }
 0x95f   :  { %v1755_v60 = vmul.f32 %v11924_v53, %v1751_v22 }
 0x961   :  { %1760 = vrot.lane.b32.xlu1 %v1755_v60, %s12695_s20 }
 0x9a7   :  { %v13554_v6 = vpop.permute.xlu0 %1758 }
 0x9a8   :  { %15725 = vst [vmem:[#allocation33_spill] sm:$0xff] %v13554_v6  ;;  %9211 = vmatmul.mubr.msk.f32.vlgmr.msra.gmra.mrb[6].mxu0 %vm750_vm9, %v13554_v6  ;;  %9213 = vmatmul.mubr.msk.f32.vlgmr.msra.gmra.mrb[28].mxu1 %vm750_vm9, %v13554_v6 }
 0x9a9   :  { %10299 = vmatpush1.bf16.msra.mxu0 %v13181_v15  ;;  %1836 = vmatprep.mubr.f32.mxu0 %v15718_v37 }
 0x9aa   :  { %10301 = vmatprep.subr.bf16.mxu0 %v13183_v16  ;;  %1910 = vmatprep.mubr.f32.mxu1 %v15718_v37 }
 0x9ab   :  { %10347 = vmatpush1.bf16.msra.mxu1 %v12944_v0 }
 0x9ac   :  { %10349 = vmatprep.subr.bf16.mxu1 %v12961_v12 }
 0x9ad   :  { %10303 = vmatpush1.bf16.msra.mxu0 %v13187_v25 }
 0x9ae   :  { %10305 = vmatprep.subr.bf16.mxu0 %v13191_v52 }
 0x9af   :  { %10351 = vmatpush1.bf16.msra.mxu1 %v12978_v20 }
 0x9b0   :  { %10353 = vmatprep.subr.bf16.mxu1 %v12995_v32 }
 0x9b1   :  { %10307 = vmatpush1.bf16.msra.mxu0 %v13195_v29 }
 0x9b2   :  { %10309 = vmatprep.subr.bf16.mxu0 %v13199_v33 }
 0x9b3   :  { %10355 = vmatpush1.bf16.msra.mxu1 %v13008_v39 }
 0x9b4   :  { %10357 = vmatprep.subr.bf16.mxu1 %v13014_v45 }
 0x9b5   :  { %10311 = vmatpush1.bf16.msra.mxu0 %v13202_v42 }
 0x9b6   :  { %10313 = vmatprep.subr.bf16.mxu0 %v13205_v43 }
 0x9b7   :  { %10359 = vmatpush1.bf16.msra.mxu1 %v13027_v55 }
 0x9b8   :  { %10361 = vmatprep.subr.bf16.mxu1 %v13034_v62 }
 0x9b9   :  { %10315 = vmatpush1.bf16.msra.mxu0 %v13208_v54 }
 0x9ba   :  { %10317 = vmatprep.subr.bf16.mxu0 %v13211_v57 }
 0x9bb   :  { %10363 = vmatpush1.bf16.msra.mxu1 %v13047_v9 }
 0x9bc   :  { %10365 = vmatprep.subr.bf16.mxu1 %v13054_v17 }
 0x9bd   :  { %10319 = vmatpush1.bf16.msra.mxu0 %v13214_v61 }
 0x9be   :  { %10321 = vmatprep.subr.bf16.mxu0 %v13071_v24 }
 0x9bf   :  { %10367 = vmatpush1.bf16.msra.mxu1 %v13067_v23 }
 0x9c0   :  { %10417 = vmatprep.subr.bf16.mxu1 %v12934_v48 }
 0x9d3   :  { %v13586_v1 = vpop.permute.xlu1 %1760 }
 0x9d4   :  { %15726 = vst [vmem:[#allocation34_spill] sm:$0xff] %v13586_v1  ;;  %9212 = vmatmul.mubr.msk.f32.gmra.mrb[44].mxu0 %vm750_vm9, %v13586_v1  ;;  %9214 = vmatmul.mubr.msk.f32.gmra.mrb[30].mxu1 %vm750_vm9, %v13586_v1 }
 0x9d5   :  { %1980 = vmatprep.mubr.f32.mxu0 %v15718_v37  ;;  %2242 = vmatprep.mubr.f32.mxu1 %v15718_v37 }
 0x9d8   :  { %9215 = vmatmul.mubr.msk.f32.vlgmr.msra.gmra.mrb[46].mxu0 %vm750_vm9, %v13554_v6 }
 0x9d9   :  { %1984 = vmatprep.mubr.f32.mxu0 %v15718_v37  ;;  %10323 = vmatpush1.bf16.msra.mxu0 %v13085_v30 }
 0x9da   :  { %10325 = vmatprep.subr.bf16.mxu0 %v13089_v31 }
 0x9dc   :  { %9216 = vmatmul.mubr.msk.f32.gmra.mrb[24].mxu0 %vm750_vm9, %v13586_v1 }
 0x9dd   :  { %10327 = vmatpush1.bf16.msra.mxu0 %v13100_v38  ;;  %2167 = vmatprep.mubr.f32.mxu0 %v15718_v37 }
 0x9de   :  { %10329 = vmatprep.subr.bf16.mxu0 %v13104_v40 }
 0x9e1   :  { %10331 = vmatpush1.bf16.msra.mxu0 %v13114_v58 }
 0x9e2   :  { %10333 = vmatprep.subr.bf16.mxu0 %v13117_v46 }
 0x9e5   :  { %10335 = vmatpush1.bf16.msra.mxu0 %v13129_v5 }
 0x9e6   :  { %10337 = vmatprep.subr.bf16.mxu0 %v13132_v56 }
 0x9e9   :  { %10339 = vmatpush1.bf16.msra.mxu0 %v13142_v13 }
 0x9ea   :  { %10341 = vmatprep.subr.bf16.mxu0 %v13145_v63 }
 0x9ed   :  { %10343 = vmatpush1.bf16.msra.mxu0 %v13155_v27 }
 0x9ee   :  { %10369 = vmatprep.subr.bf16.mxu0 %v13158_v10 }
 0xa7b   :  { %v1832_v8 = vpop.f32.mrb[6].mxu0  ;;  %v1907_v49 = vpop.f32.mrb[28].mxu1 }
 0xa7c   :  { %v13613_v28 = vadd.f32 %v1907_v49, %v15727_v44  ;;  %v1834_v51 = vpop.f32.mrb[7].mxu0  ;;  %v1909_v2 = vpop.f32.mrb[29].mxu1 }
 0xa7d   :  { %v11611_v21 = vadd.f32 %v1834_v51, %v13289_v47 }
 0xa7e   :  { %11925 = vtanh.f32 %v13613_v28 }
 0xa7f   :  { %11927 = vtanh.f32 %v11611_v21 }
 0xa88   :  { %v11926_v7 = vpop.eup %11925 }
 0xa89   :  { %v11928_v14 = vpop.eup %11927  ;;  %2047 = vrot.lane.b32.xlu1 %v11926_v7, %s12694_s2 }
 0xa8a   :  { %2045 = vrot.lane.b32.xlu0 %v11928_v14, %s12694_s2  ;;  %v15729_v14 = vld [vmem:[#allocation36_spill] sm:$0xff] }
 0xaa7   :  { %v1838_v41 = vpop.f32.mrb[44].mxu0  ;;  %v1912_v35 = vpop.f32.mrb[30].mxu1 }
 0xaa8   :  { %v1839_v18 = vpop.f32.mrb[45].mxu0  ;;  %v1913_v4 = vpop.f32.mrb[31].mxu1  ;;  %v11610_v41 = vadd.f32 %v1832_v8, %v15729_v14 }
 0xaa9   :  { %v1994_v3 = vadd.f32 %v1913_v4, %v15728_v34 }
 0xaaa   :  { %v9217_v35 = vmul.f32 -1.442695, %v11610_v41 }
 0xaab   :  { %v1982_v53 = vpop.f32.mrb[46].mxu0  ;;  %v9219_v6 = vmul.f32 -1.442695, %v1994_v3 }
 0xaac   :  { %v1983_v22 = vpop.f32.mrb[47].mxu0 }
 0xaaf   :  { %v1986_v60 = vpop.f32.mrb[24].mxu0 }
 0xab0   :  { %v11628_v49 = vadd.f32 %v1986_v60, %v15722_v36  ;;  %v1988_v44 = vpop.f32.mrb[25].mxu0 }
 0xab1   :  { %v13622_v51 = vadd.f32 %v1988_v44, %v15723_v59 }
 0xab2   :  { %11929 = vtanh.f32 %v11628_v49 }
 0xab3   :  { %11931 = vtanh.f32 %v13622_v51 }
 0xab4   :  { %11933 = vpow2.f32 %v9217_v35 }
 0xabc   :  { %v11930_v2 = vpop.eup %11929 }
 0xabd   :  { %v11932_v7 = vpop.eup %11931  ;;  %2049 = vrot.lane.b32.xlu0 %v11930_v2, %s12694_s2 }
 0xabe   :  { %2051 = vrot.lane.b32.xlu1 %v11932_v7, %s12694_s2  ;;  %v11934_v18 = vpop.eup %11933 }
 0xabf   :  { %v2009_v4 = vadd.f32 1.0, %v11934_v18 }
 0xac1   :  { %11935 = vrcp.f32 %v2009_v4  ;;  %v9218_v4 = vmul.f32 -1.442695, %v11611_v21 }
 0xac2   :  { %11937 = vpow2.f32 %v9219_v6 }
 0xacb   :  { %v11936_v22 = vpop.eup %11935 }
 0xacc   :  { %v11938_v2 = vpop.eup %11937  ;;  %v2037_v3 = vmul.f32 %v11936_v22, %v13530_v11 }
 0xacd   :  { %v2011_v1 = vadd.f32 1.0, %v11938_v2 }
 0xacf   :  { %11939 = vrcp.f32 %v2011_v1 }
 0xad0   :  { %11941 = vpow2.f32 %v9218_v4 }
 0xad9   :  { %v11940_v41 = vpop.eup %11939 }
 0xada   :  { %v11942_v14 = vpop.eup %11941 }
 0xafb   :  { %v2048_v34 = vpop.permute.xlu1 %2047 }
 0xafc   :  { %v2046_v53 = vpop.permute.xlu0 %2045 }
 0xafd   :  { %v2053_v60 = vsel %vm1041_vm8, %v2046_v53, %v2048_v34  ;;  %v2010_v34 = vadd.f32 1.0, %v11942_v14  ;;  %v9220_v14 = vmul.f32 -1.442695, %v11628_v49 }
 0xafe   :  { %v2057_v44 = vmul.f32 %v11936_v22, %v2053_v60 }
 0xaff   :  { %11943 = vrcp.f32 %v2010_v34 }
 0xb00   :  { %2061 = vrot.lane.b32.xlu0 %v2057_v44, %s12695_s20 }
 0xb09   :  { %v11944_v53 = vpop.eup %11943 }
 0xb0a   :  { %v2038_v6 = vmul.f32 %v11944_v53, %v13532_v26  ;;  %v9221_v53 = vmul.f32 -1.442695, %v13613_v28 }
 0xb2f   :  { %v2050_v7 = vpop.permute.xlu0 %2049 }
 0xb30   :  { %v2052_v8 = vpop.permute.xlu1 %2051 }
 0xb31   :  { %v2054_v35 = vsel %vm1041_vm8, %v2050_v7, %v2052_v8  ;;  %v2039_v7 = vmul.f32 %v11940_v41, %v13540_v19 }
 0xb32   :  { %v2058_v18 = vmul.f32 %v11940_v41, %v2054_v35 }
 0xb34   :  { %2063 = vrot.lane.b32.xlu1 %v2058_v18, %s12695_s20 }
 0xb72   :  { %v2062_v60 = vpop.permute.xlu0 %2061 }
 0xb73   :  { %v13634_v1 = vadd.f32 %v2062_v60, %v2037_v3  ;;  %v13636_v44 = vadd.f32 %v2062_v60, %v2038_v6 }
 0xb75   :  { %11945 = vtanh.f32 %v13634_v1 }
 0xb76   :  { %11947 = vtanh.f32 %v13636_v44 }
 0xb77   :  { %11949 = vpow2.f32 %v9220_v14 }
 0xb7f   :  { %v11946_v2 = vpop.eup %11945 }
 0xb80   :  { %v11948_v21 = vpop.eup %11947  ;;  %2079 = vrot.lane.b32.xlu0 %v11946_v2, %s12694_s2 }
 0xb81   :  { %2081 = vrot.lane.b32.xlu1 %v11948_v21, %s12694_s2  ;;  %v11950_v11 = vpop.eup %11949  ;;  %v9222_v21 = vmul.f32 -1.442695, %v13622_v51 }
 0xb82   :  { %v2012_v22 = vadd.f32 1.0, %v11950_v11 }
 0xb84   :  { %11951 = vrcp.f32 %v2012_v22 }
 0xb8e   :  { %v11952_v26 = vpop.eup %11951 }
 0xb8f   :  { %v2040_v8 = vmul.f32 %v11952_v26, %v13542_v50 }
 0xba6   :  { %v2064_v35 = vpop.permute.xlu1 %2063 }
 0xba7   :  { %v13644_v18 = vadd.f32 %v2064_v35, %v2039_v7  ;;  %v13646_v4 = vadd.f32 %v2064_v35, %v2040_v8 }
 0xba9   :  { %11953 = vtanh.f32 %v13644_v18 }
 0xbaa   :  { %11955 = vtanh.f32 %v13646_v4 }
 0xbab   :  { %11957 = vpow2.f32 %v9221_v53  ;;  %v15732_v53 = vld [vmem:[#allocation27_spill] sm:$0xff] }
 0xbb3   :  { %v11954_v34 = vpop.eup %11953 }
 0xbb4   :  { %v11956_v49 = vpop.eup %11955  ;;  %2083 = vrot.lane.b32.xlu0 %v11954_v34, %s12694_s2 }
 0xbb5   :  { %2085 = vrot.lane.b32.xlu1 %v11956_v49, %s12694_s2  ;;  %v11958_v19 = vpop.eup %11957 }
 0xbb6   :  { %v2031_v50 = vadd.f32 1.0, %v11958_v19 }
 0xbb8   :  { %11959 = vrcp.f32 %v2031_v50 }
 0xbb9   :  { %11961 = vpow2.f32 %v9222_v21 }
 0xbc2   :  { %v11960_v6 = vpop.eup %11959 }
 0xbc3   :  { %v11962_v14 = vpop.eup %11961 }
 0xbc4   :  { %v2032_v11 = vadd.f32 1.0, %v11962_v14 }
 0xbc6   :  { %11963 = vrcp.f32 %v2032_v11 }
 0xbd0   :  { %v11964_v26 = vpop.eup %11963 }
 0xbf2   :  { %v2080_v41 = vpop.permute.xlu0 %2079 }
 0xbf3   :  { %v2082_v3 = vpop.permute.xlu1 %2081 }
 0xbf4   :  { %v2087_v60 = vsel %vm1041_vm8, %v2080_v41, %v2082_v3 }
 0xbf5   :  { %v2091_v2 = vmul.f32 %v11960_v6, %v2087_v60 }
 0xbf7   :  { %2095 = vrot.lane.b32.xlu0 %v2091_v2, %s12695_s20 }
 0xc26   :  { %v2084_v22 = vpop.permute.xlu0 %2083 }
 0xc27   :  { %v2086_v28 = vpop.permute.xlu1 %2085 }
 0xc28   :  { %v2088_v7 = vsel %vm1041_vm8, %v2084_v22, %v2086_v28  ;;  %v15733_v22 = vld [vmem:[#allocation26_spill] sm:$0xff] }
 0xc29   :  { %v2092_v8 = vmul.f32 %v11964_v26, %v2088_v7 }
 0xc2b   :  { %2097 = vrot.lane.b32.xlu1 %v2092_v8, %s12695_s20 }
 0xc69   :  { %v13658_v35 = vpop.permute.xlu0 %2095 }
 0xc6a   :  { %15730 = vst [vmem:[#allocation25_spill] sm:$0xff] %v13658_v35  ;;  %9223 = vmatmul.mubr.msk.f32.vlgmr.msra.gmra.mrb[8].mxu0 %vm750_vm9, %v13658_v35  ;;  %9225 = vmatmul.mubr.msk.f32.vlgmr.msra.gmra.mrb[32].mxu1 %vm750_vm9, %v13658_v35 }
 0xc6b   :  { %10371 = vmatpush1.bf16.msra.mxu0 %v13181_v15  ;;  %2173 = vmatprep.mubr.f32.mxu0 %v15718_v37 }
 0xc6c   :  { %10373 = vmatprep.subr.bf16.mxu0 %v13183_v16  ;;  %2247 = vmatprep.mubr.f32.mxu1 %v15718_v37 }
 0xc6d   :  { %10419 = vmatpush1.bf16.msra.mxu1 %v12944_v0 }
 0xc6e   :  { %10421 = vmatprep.subr.bf16.mxu1 %v12961_v12 }
 0xc6f   :  { %10375 = vmatpush1.bf16.msra.mxu0 %v13187_v25 }
 0xc70   :  { %10377 = vmatprep.subr.bf16.mxu0 %v13191_v52 }
 0xc71   :  { %10423 = vmatpush1.bf16.msra.mxu1 %v12978_v20 }
 0xc72   :  { %10425 = vmatprep.subr.bf16.mxu1 %v12995_v32 }
 0xc73   :  { %10379 = vmatpush1.bf16.msra.mxu0 %v13195_v29 }
 0xc74   :  { %10381 = vmatprep.subr.bf16.mxu0 %v13199_v33 }
 0xc75   :  { %10427 = vmatpush1.bf16.msra.mxu1 %v13008_v39 }
 0xc76   :  { %10429 = vmatprep.subr.bf16.mxu1 %v13014_v45 }
 0xc77   :  { %10383 = vmatpush1.bf16.msra.mxu0 %v13202_v42 }
 0xc78   :  { %10385 = vmatprep.subr.bf16.mxu0 %v13205_v43 }
 0xc79   :  { %10431 = vmatpush1.bf16.msra.mxu1 %v13027_v55 }
 0xc7a   :  { %10433 = vmatprep.subr.bf16.mxu1 %v13034_v62 }
 0xc7b   :  { %10387 = vmatpush1.bf16.msra.mxu0 %v13208_v54 }
 0xc7c   :  { %10389 = vmatprep.subr.bf16.mxu0 %v13211_v57 }
 0xc7d   :  { %10435 = vmatpush1.bf16.msra.mxu1 %v13047_v9 }
 0xc7e   :  { %10437 = vmatprep.subr.bf16.mxu1 %v13054_v17 }
 0xc7f   :  { %10391 = vmatpush1.bf16.msra.mxu0 %v13214_v61 }
 0xc80   :  { %10393 = vmatprep.subr.bf16.mxu0 %v13071_v24 }
 0xc81   :  { %10439 = vmatpush1.bf16.msra.mxu1 %v13067_v23 }
 0xc82   :  { %10489 = vmatprep.subr.bf16.mxu1 %v12934_v48 }
 0xc9d   :  { %v13690_v51 = vpop.permute.xlu1 %2097 }
 0xc9e   :  { %15731 = vst [vmem:[#allocation28_spill] sm:$0xff] %v13690_v51  ;;  %9224 = vmatmul.mubr.msk.f32.gmra.mrb[48].mxu0 %vm750_vm9, %v13690_v51  ;;  %9226 = vmatmul.mubr.msk.f32.gmra.mrb[34].mxu1 %vm750_vm9, %v13690_v51 }
 0xc9f   :  { %2317 = vmatprep.mubr.f32.mxu0 %v15718_v37  ;;  %2579 = vmatprep.mubr.f32.mxu1 %v15718_v37 }
 0xca2   :  { %9227 = vmatmul.mubr.msk.f32.vlgmr.msra.gmra.mrb[50].mxu0 %vm750_vm9, %v13658_v35 }
 0xca3   :  { %2321 = vmatprep.mubr.f32.mxu0 %v15718_v37  ;;  %10395 = vmatpush1.bf16.msra.mxu0 %v13085_v30 }
 0xca4   :  { %10397 = vmatprep.subr.bf16.mxu0 %v13089_v31 }
 0xca6   :  { %9228 = vmatmul.mubr.msk.f32.gmra.mrb[22].mxu0 %vm750_vm9, %v13690_v51 }
 0xca7   :  { %10399 = vmatpush1.bf16.msra.mxu0 %v13100_v38  ;;  %2504 = vmatprep.mubr.f32.mxu0 %v15718_v37 }
 0xca8   :  { %10401 = vmatprep.subr.bf16.mxu0 %v13104_v40 }
 0xcab   :  { %10403 = vmatpush1.bf16.msra.mxu0 %v13114_v58 }
 0xcac   :  { %10405 = vmatprep.subr.bf16.mxu0 %v13117_v46 }
 0xcaf   :  { %10407 = vmatpush1.bf16.msra.mxu0 %v13129_v5 }
 0xcb0   :  { %10409 = vmatprep.subr.bf16.mxu0 %v13132_v56 }
 0xcb3   :  { %10411 = vmatpush1.bf16.msra.mxu0 %v13142_v13 }
 0xcb4   :  { %10413 = vmatprep.subr.bf16.mxu0 %v13145_v63 }
 0xcb7   :  { %10415 = vmatpush1.bf16.msra.mxu0 %v13155_v27 }
 0xcb8   :  { %10441 = vmatprep.subr.bf16.mxu0 %v13158_v10 }
 0xd3d   :  { %v2169_v34 = vpop.f32.mrb[8].mxu0  ;;  %v2244_v49 = vpop.f32.mrb[32].mxu1 }
 0xd3e   :  { %v13717_v19 = vadd.f32 %v2244_v49, %v15732_v53  ;;  %v2171_v50 = vpop.f32.mrb[9].mxu0  ;;  %v2246_v41 = vpop.f32.mrb[33].mxu1 }
 0xd3f   :  { %v11613_v3 = vadd.f32 %v2171_v50, %v13289_v47 }
 0xd40   :  { %11965 = vtanh.f32 %v13717_v19 }
 0xd41   :  { %11967 = vtanh.f32 %v11613_v3 }
 0xd4a   :  { %v11966_v6 = vpop.eup %11965 }
 0xd4b   :  { %v11968_v60 = vpop.eup %11967  ;;  %2384 = vrot.lane.b32.xlu1 %v11966_v6, %s12694_s2 }
 0xd4c   :  { %2382 = vrot.lane.b32.xlu0 %v11968_v60, %s12694_s2  ;;  %v15734_v60 = vld [vmem:[#allocation36_spill] sm:$0xff] }
 0xd71   :  { %v2175_v2 = vpop.f32.mrb[48].mxu0  ;;  %v2249_v21 = vpop.f32.mrb[34].mxu1 }
 0xd72   :  { %v2176_v14 = vpop.f32.mrb[49].mxu0  ;;  %v2250_v11 = vpop.f32.mrb[35].mxu1  ;;  %v11612_v2 = vadd.f32 %v2169_v34, %v15734_v60 }
 0xd73   :  { %v2331_v28 = vadd.f32 %v2250_v11, %v15733_v22 }
 0xd74   :  { %v9229_v21 = vmul.f32 -1.442695, %v11612_v2 }
 0xd75   :  { %v2319_v26 = vpop.f32.mrb[50].mxu0  ;;  %v9231_v35 = vmul.f32 -1.442695, %v2331_v28 }
 0xd76   :  { %v2320_v7 = vpop.f32.mrb[51].mxu0 }
 0xd79   :  { %v2323_v8 = vpop.f32.mrb[22].mxu0 }
 0xd7a   :  { %v11626_v49 = vadd.f32 %v2323_v8, %v15722_v36  ;;  %v2325_v53 = vpop.f32.mrb[23].mxu0 }
 0xd7b   :  { %v13726_v50 = vadd.f32 %v2325_v53, %v15723_v59 }
 0xd7c   :  { %11969 = vtanh.f32 %v11626_v49 }
 0xd7d   :  { %11971 = vtanh.f32 %v13726_v50 }
 0xd7e   :  { %11973 = vpow2.f32 %v9229_v21 }
 0xd86   :  { %v11970_v41 = vpop.eup %11969 }
 0xd87   :  { %v11972_v6 = vpop.eup %11971  ;;  %2386 = vrot.lane.b32.xlu0 %v11970_v41, %s12694_s2 }
 0xd88   :  { %2388 = vrot.lane.b32.xlu1 %v11972_v6, %s12694_s2  ;;  %v11974_v14 = vpop.eup %11973 }
 0xd89   :  { %v2346_v11 = vadd.f32 1.0, %v11974_v14 }
 0xd8b   :  { %11975 = vrcp.f32 %v2346_v11  ;;  %v9230_v11 = vmul.f32 -1.442695, %v11613_v3 }
 0xd8c   :  { %11977 = vpow2.f32 %v9231_v35 }
 0xd95   :  { %v11976_v7 = vpop.eup %11975 }
 0xd96   :  { %v11978_v41 = vpop.eup %11977  ;;  %v2374_v28 = vmul.f32 %v11976_v7, %v13634_v1 }
 0xd97   :  { %v2348_v51 = vadd.f32 1.0, %v11978_v41 }
 0xd99   :  { %11979 = vrcp.f32 %v2348_v51 }
 0xd9a   :  { %11981 = vpow2.f32 %v9230_v11 }
 0xda3   :  { %v11980_v2 = vpop.eup %11979 }
 0xda4   :  { %v11982_v60 = vpop.eup %11981 }
 0xdbd   :  { %v2385_v22 = vpop.permute.xlu1 %2384 }
 0xdbe   :  { %v2383_v26 = vpop.permute.xlu0 %2382 }
 0xdbf   :  { %v2390_v8 = vsel %vm1041_vm8, %v2383_v26, %v2385_v22  ;;  %v2347_v22 = vadd.f32 1.0, %v11982_v60  ;;  %v9232_v60 = vmul.f32 -1.442695, %v11626_v49 }
 0xdc0   :  { %v2394_v53 = vmul.f32 %v11976_v7, %v2390_v8 }
 0xdc1   :  { %11983 = vrcp.f32 %v2347_v22 }
 0xdc2   :  { %2398 = vrot.lane.b32.xlu0 %v2394_v53, %s12695_s20 }
 0xdcb   :  { %v11984_v26 = vpop.eup %11983 }
 0xdcc   :  { %v2375_v35 = vmul.f32 %v11984_v26, %v13636_v44  ;;  %v9233_v26 = vmul.f32 -1.442695, %v13717_v19 }
 0xdf9   :  { %v2387_v6 = vpop.permute.xlu0 %2386 }
 0xdfa   :  { %v2389_v34 = vpop.permute.xlu1 %2388 }
 0xdfb   :  { %v2391_v21 = vsel %vm1041_vm8, %v2387_v6, %v2389_v34  ;;  %v2376_v6 = vmul.f32 %v11980_v2, %v13644_v18 }
 0xdfc   :  { %v2395_v14 = vmul.f32 %v11980_v2, %v2391_v21 }
 0xdfe   :  { %2400 = vrot.lane.b32.xlu1 %v2395_v14, %s12695_s20 }
 0xe34   :  { %v2399_v8 = vpop.permute.xlu0 %2398 }
 0xe35   :  { %v13738_v51 = vadd.f32 %v2399_v8, %v2374_v28  ;;  %v13740_v53 = vadd.f32 %v2399_v8, %v2375_v35 }
 0xe37   :  { %11985 = vtanh.f32 %v13738_v51 }
 0xe38   :  { %11987 = vtanh.f32 %v13740_v53 }
 0xe39   :  { %11989 = vpow2.f32 %v9232_v60 }
 0xe41   :  { %v11986_v41 = vpop.eup %11985 }
 0xe42   :  { %v11988_v3 = vpop.eup %11987  ;;  %2416 = vrot.lane.b32.xlu0 %v11986_v41, %s12694_s2 }
 0xe43   :  { %2418 = vrot.lane.b32.xlu1 %v11988_v3, %s12694_s2  ;;  %v11990_v1 = vpop.eup %11989  ;;  %v9234_v3 = vmul.f32 -1.442695, %v13726_v50 }
 0xe44   :  { %v2349_v7 = vadd.f32 1.0, %v11990_v1 }
 0xe46   :  { %11991 = vrcp.f32 %v2349_v7 }
 0xe50   :  { %v11992_v44 = vpop.eup %11991 }
 0xe51   :  { %v2377_v34 = vmul.f32 %v11992_v44, %v13646_v4 }
 0xe70   :  { %v2401_v21 = vpop.permute.xlu1 %2400 }
 0xe71   :  { %v13748_v14 = vadd.f32 %v2401_v21, %v2376_v6  ;;  %v13750_v11 = vadd.f32 %v2401_v21, %v2377_v34 }
 0xe73   :  { %11993 = vtanh.f32 %v13748_v14 }
 0xe74   :  { %11995 = vtanh.f32 %v13750_v11 }
 0xe75   :  { %11997 = vpow2.f32 %v9233_v26 }
 0xe7d   :  { %v11994_v22 = vpop.eup %11993 }
 0xe7e   :  { %v11996_v49 = vpop.eup %11995  ;;  %2420 = vrot.lane.b32.xlu0 %v11994_v22, %s12694_s2 }
 0xe7f   :  { %2422 = vrot.lane.b32.xlu1 %v11996_v49, %s12694_s2  ;;  %v11998_v18 = vpop.eup %11997  ;;  %v15737_v49 = vld [vmem:[#allocation29_spill] sm:$0xff] }
 0xe80   :  { %v2368_v4 = vadd.f32 1.0, %v11998_v18 }
 0xe82   :  { %11999 = vrcp.f32 %v2368_v4 }
 0xe83   :  { %12001 = vpow2.f32 %v9234_v3 }
 0xe8c   :  { %v12000_v35 = vpop.eup %11999 }
 0xe8d   :  { %v12002_v60 = vpop.eup %12001 }
 0xe8e   :  { %v2369_v1 = vadd.f32 1.0, %v12002_v60 }
 0xe90   :  { %12003 = vrcp.f32 %v2369_v1  ;;  %v15738_v1 = vld [vmem:[#allocation24_spill] sm:$0xff] }
 0xe9a   :  { %v12004_v44 = vpop.eup %12003 }
 0xeb4   :  { %v2417_v2 = vpop.permute.xlu0 %2416 }
 0xeb5   :  { %v2419_v28 = vpop.permute.xlu1 %2418 }
 0xeb6   :  { %v2424_v8 = vsel %vm1041_vm8, %v2417_v2, %v2419_v28 }
 0xeb7   :  { %v2428_v41 = vmul.f32 %v12000_v35, %v2424_v8 }
 0xeb9   :  { %2432 = vrot.lane.b32.xlu0 %v2428_v41, %s12695_s20 }
 0xef0   :  { %v2421_v7 = vpop.permute.xlu0 %2420 }
 0xef1   :  { %v2423_v19 = vpop.permute.xlu1 %2422 }
 0xef2   :  { %v2425_v6 = vsel %vm1041_vm8, %v2421_v7, %v2423_v19 }
 0xef3   :  { %v2429_v34 = vmul.f32 %v12004_v44, %v2425_v6 }
 0xef5   :  { %2434 = vrot.lane.b32.xlu1 %v2429_v34, %s12695_s20 }
 0xf2b   :  { %v13762_v21 = vpop.permute.xlu0 %2432 }
 0xf2c   :  { %15735 = vst [vmem:[#allocation27_spill] sm:$0xff] %v13762_v21  ;;  %9235 = vmatmul.mubr.msk.f32.vlgmr.msra.gmra.mrb[10].mxu0 %vm750_vm9, %v13762_v21  ;;  %9237 = vmatmul.mubr.msk.f32.vlgmr.msra.gmra.mrb[36].mxu1 %vm750_vm9, %v13762_v21 }
 0xf2d   :  { %10443 = vmatpush1.bf16.msra.mxu0 %v13181_v15  ;;  %2510 = vmatprep.mubr.f32.mxu0 %v15718_v37 }
 0xf2e   :  { %10445 = vmatprep.subr.bf16.mxu0 %v13183_v16  ;;  %2584 = vmatprep.mubr.f32.mxu1 %v15718_v37 }
 0xf2f   :  { %10491 = vmatpush1.bf16.msra.mxu1 %v12944_v0 }
 0xf30   :  { %10493 = vmatprep.subr.bf16.mxu1 %v12961_v12 }
 0xf31   :  { %10447 = vmatpush1.bf16.msra.mxu0 %v13187_v25 }
 0xf32   :  { %10449 = vmatprep.subr.bf16.mxu0 %v13191_v52 }
 0xf33   :  { %10495 = vmatpush1.bf16.msra.mxu1 %v12978_v20 }
 0xf34   :  { %10497 = vmatprep.subr.bf16.mxu1 %v12995_v32 }
 0xf35   :  { %10451 = vmatpush1.bf16.msra.mxu0 %v13195_v29 }
 0xf36   :  { %10453 = vmatprep.subr.bf16.mxu0 %v13199_v33 }
 0xf37   :  { %10499 = vmatpush1.bf16.msra.mxu1 %v13008_v39 }
 0xf38   :  { %10501 = vmatprep.subr.bf16.mxu1 %v13014_v45 }
 0xf39   :  { %10455 = vmatpush1.bf16.msra.mxu0 %v13202_v42 }
 0xf3a   :  { %10457 = vmatprep.subr.bf16.mxu0 %v13205_v43 }
 0xf3b   :  { %10503 = vmatpush1.bf16.msra.mxu1 %v13027_v55 }
 0xf3c   :  { %10505 = vmatprep.subr.bf16.mxu1 %v13034_v62 }
 0xf3d   :  { %10459 = vmatpush1.bf16.msra.mxu0 %v13208_v54 }
 0xf3e   :  { %10461 = vmatprep.subr.bf16.mxu0 %v13211_v57 }
 0xf3f   :  { %10507 = vmatpush1.bf16.msra.mxu1 %v13047_v9 }
 0xf40   :  { %10509 = vmatprep.subr.bf16.mxu1 %v13054_v17 }
 0xf41   :  { %10463 = vmatpush1.bf16.msra.mxu0 %v13214_v61 }
 0xf42   :  { %10465 = vmatprep.subr.bf16.mxu0 %v13071_v24 }
 0xf43   :  { %10511 = vmatpush1.bf16.msra.mxu1 %v13067_v23 }
 0xf44   :  { %10561 = vmatprep.subr.bf16.mxu1 %v12934_v48 }
 0xf67   :  { %v13794_v50 = vpop.permute.xlu1 %2434 }
 0xf68   :  { %15736 = vst [vmem:[#allocation26_spill] sm:$0xff] %v13794_v50  ;;  %9236 = vmatmul.mubr.msk.f32.gmra.mrb[52].mxu0 %vm750_vm9, %v13794_v50  ;;  %9238 = vmatmul.mubr.msk.f32.gmra.mrb[38].mxu1 %vm750_vm9, %v13794_v50 }
 0xf69   :  { %2654 = vmatprep.mubr.f32.mxu0 %v15718_v37  ;;  %2916 = vmatprep.mubr.f32.mxu1 %v15718_v37 }
 0xf6c   :  { %9239 = vmatmul.mubr.msk.f32.vlgmr.msra.gmra.mrb[54].mxu0 %vm750_vm9, %v13762_v21 }
 0xf6d   :  { %2658 = vmatprep.mubr.f32.mxu0 %v15718_v37  ;;  %10467 = vmatpush1.bf16.msra.mxu0 %v13085_v30 }
 0xf6e   :  { %10469 = vmatprep.subr.bf16.mxu0 %v13089_v31 }
 0xf70   :  { %9240 = vmatmul.mubr.msk.f32.gmra.mrb[20].mxu0 %vm750_vm9, %v13794_v50 }
 0xf71   :  { %10471 = vmatpush1.bf16.msra.mxu0 %v13100_v38  ;;  %2841 = vmatprep.mubr.f32.mxu0 %v15718_v37 }
 0xf72   :  { %10473 = vmatprep.subr.bf16.mxu0 %v13104_v40 }
 0xf75   :  { %10475 = vmatpush1.bf16.msra.mxu0 %v13114_v58 }
 0xf76   :  { %10477 = vmatprep.subr.bf16.mxu0 %v13117_v46 }
 0xf79   :  { %10479 = vmatpush1.bf16.msra.mxu0 %v13129_v5 }
 0xf7a   :  { %10481 = vmatprep.subr.bf16.mxu0 %v13132_v56 }
 0xf7d   :  { %10483 = vmatpush1.bf16.msra.mxu0 %v13142_v13 }
 0xf7e   :  { %10485 = vmatprep.subr.bf16.mxu0 %v13145_v63 }
 0xf81   :  { %10487 = vmatpush1.bf16.msra.mxu0 %v13155_v27 }
 0xf82   :  { %10513 = vmatprep.subr.bf16.mxu0 %v13158_v10 }
 0xfff   :  { %v2506_v48 = vpop.f32.mrb[10].mxu0  ;;  %v2581_v22 = vpop.f32.mrb[36].mxu1 }
0x1000   :  { %v13821_v26 = vadd.f32 %v2581_v22, %v15737_v49  ;;  %v2508_v18 = vpop.f32.mrb[11].mxu0  ;;  %v2583_v4 = vpop.f32.mrb[37].mxu1 }
0x1001   :  { %v11615_v2 = vadd.f32 %v2508_v18, %v13289_v47 }
0x1002   :  { %12005 = vtanh.f32 %v13821_v26 }
0x1003   :  { %12007 = vtanh.f32 %v11615_v2 }
0x100c   :  { %v12006_v28 = vpop.eup %12005 }
0x100d   :  { %v12008_v35 = vpop.eup %12007  ;;  %2721 = vrot.lane.b32.xlu1 %v12006_v28, %s12694_s2  ;;  %v15739_v28 = vld [vmem:[#allocation36_spill] sm:$0xff] }
0x100e   :  { %2719 = vrot.lane.b32.xlu0 %v12008_v35, %s12694_s2  ;;  %v11614_v35 = vadd.f32 %v2506_v48, %v15739_v28 }
0x103b   :  { %v2512_v8 = vpop.f32.mrb[52].mxu0  ;;  %v2586_v41 = vpop.f32.mrb[38].mxu1 }
0x103c   :  { %v2513_v3 = vpop.f32.mrb[53].mxu0  ;;  %v2587_v60 = vpop.f32.mrb[39].mxu1  ;;  %v9241_v8 = vmul.f32 -1.442695, %v11614_v35 }
0x103d   :  { %v2668_v7 = vadd.f32 %v2587_v60, %v15738_v1 }
0x103f   :  { %v2656_v19 = vpop.f32.mrb[54].mxu0 }
0x1040   :  { %v2657_v44 = vpop.f32.mrb[55].mxu0 }
0x1043   :  { %v2660_v6 = vpop.f32.mrb[20].mxu0 }
0x1044   :  { %v11624_v34 = vadd.f32 %v2660_v6, %v15722_v36  ;;  %v2662_v22 = vpop.f32.mrb[21].mxu0 }
0x1045   :  { %v13830_v49 = vadd.f32 %v2662_v22, %v15723_v59  ;;  %v9243_v22 = vmul.f32 -1.442695, %v2668_v7 }
0x1046   :  { %12009 = vtanh.f32 %v11624_v34 }
0x1047   :  { %12011 = vtanh.f32 %v13830_v49 }
0x1048   :  { %12013 = vpow2.f32 %v9241_v8 }
0x1050   :  { %v12010_v18 = vpop.eup %12009 }
0x1051   :  { %v12012_v4 = vpop.eup %12011  ;;  %2723 = vrot.lane.b32.xlu0 %v12010_v18, %s12694_s2 }
0x1052   :  { %2725 = vrot.lane.b32.xlu1 %v12012_v4, %s12694_s2  ;;  %v12014_v41 = vpop.eup %12013 }
0x1053   :  { %v2683_v3 = vadd.f32 1.0, %v12014_v41 }
0x1055   :  { %12015 = vrcp.f32 %v2683_v3  ;;  %v9242_v3 = vmul.f32 -1.442695, %v11615_v2 }
0x1056   :  { %12017 = vpow2.f32 %v9243_v22 }
0x105f   :  { %v12016_v19 = vpop.eup %12015 }
0x1060   :  { %v12018_v18 = vpop.eup %12017  ;;  %v2711_v7 = vmul.f32 %v12016_v19, %v13738_v51 }
0x1061   :  { %v2685_v21 = vadd.f32 1.0, %v12018_v18 }
0x1063   :  { %12019 = vrcp.f32 %v2685_v21 }
0x1064   :  { %12021 = vpow2.f32 %v9242_v3 }
0x106d   :  { %v12020_v35 = vpop.eup %12019 }
0x106e   :  { %v12022_v50 = vpop.eup %12021 }
0x107f   :  { %v2722_v60 = vpop.permute.xlu1 %2721 }
0x1080   :  { %v2720_v1 = vpop.permute.xlu0 %2719 }
0x1081   :  { %v2727_v44 = vsel %vm1041_vm8, %v2720_v1, %v2722_v60  ;;  %v2684_v60 = vadd.f32 1.0, %v12022_v50  ;;  %v9244_v50 = vmul.f32 -1.442695, %v11624_v34 }
0x1082   :  { %v2731_v6 = vmul.f32 %v12016_v19, %v2727_v44 }
0x1083   :  { %12023 = vrcp.f32 %v2684_v60 }
0x1084   :  { %2735 = vrot.lane.b32.xlu0 %v2731_v6, %s12695_s20 }
0x108d   :  { %v12024_v1 = vpop.eup %12023 }
0x108e   :  { %v2712_v44 = vmul.f32 %v12024_v1, %v13740_v53  ;;  %v9245_v1 = vmul.f32 -1.442695, %v13821_v26 }
0x10c3   :  { %v2724_v4 = vpop.permute.xlu0 %2723 }
0x10c4   :  { %v2726_v48 = vpop.permute.xlu1 %2725 }
0x10c5   :  { %v2728_v8 = vsel %vm1041_vm8, %v2724_v4, %v2726_v48  ;;  %v2713_v4 = vmul.f32 %v12020_v35, %v13748_v14 }
0x10c6   :  { %v2732_v41 = vmul.f32 %v12020_v35, %v2728_v8 }
0x10c8   :  { %2737 = vrot.lane.b32.xlu1 %v2732_v41, %s12695_s20 }
0x10f6   :  { %v2736_v6 = vpop.permute.xlu0 %2735 }
0x10f7   :  { %v13842_v21 = vadd.f32 %v2736_v6, %v2711_v7  ;;  %v13844_v22 = vadd.f32 %v2736_v6, %v2712_v44 }
0x10f9   :  { %12025 = vtanh.f32 %v13842_v21 }
0x10fa   :  { %12027 = vtanh.f32 %v13844_v22 }
0x10fb   :  { %12029 = vpow2.f32 %v9244_v50 }
0x1103   :  { %v12026_v18 = vpop.eup %12025 }
0x1104   :  { %v12028_v2 = vpop.eup %12027  ;;  %2753 = vrot.lane.b32.xlu0 %v12026_v18, %s12694_s2 }
0x1105   :  { %2755 = vrot.lane.b32.xlu1 %v12028_v2, %s12694_s2  ;;  %v12030_v51 = vpop.eup %12029  ;;  %v9246_v2 = vmul.f32 -1.442695, %v13830_v49 }
0x1106   :  { %v2686_v19 = vadd.f32 1.0, %v12030_v51 }
0x1108   :  { %12031 = vrcp.f32 %v2686_v19 }
0x1112   :  { %v12032_v53 = vpop.eup %12031 }
0x1113   :  { %v2714_v48 = vmul.f32 %v12032_v53, %v13750_v11 }
0x113a   :  { %v2738_v8 = vpop.permute.xlu1 %2737 }
0x113b   :  { %v13852_v41 = vadd.f32 %v2738_v8, %v2713_v4  ;;  %v13854_v3 = vadd.f32 %v2738_v8, %v2714_v48 }
0x113d   :  { %12033 = vtanh.f32 %v13852_v41 }
0x113e   :  { %12035 = vtanh.f32 %v13854_v3 }
0x113f   :  { %12037 = vpow2.f32 %v9245_v1 }
0x1147   :  { %v12034_v60 = vpop.eup %12033 }
0x1148   :  { %v12036_v34 = vpop.eup %12035  ;;  %2757 = vrot.lane.b32.xlu0 %v12034_v60, %s12694_s2 }
0x1149   :  { %2759 = vrot.lane.b32.xlu1 %v12036_v34, %s12694_s2  ;;  %v12038_v14 = vpop.eup %12037 }
0x114a   :  { %v2705_v11 = vadd.f32 1.0, %v12038_v14 }
0x114c   :  { %12039 = vrcp.f32 %v2705_v11 }
0x114d   :  { %12041 = vpow2.f32 %v9246_v2 }
0x1156   :  { %v12040_v44 = vpop.eup %12039 }
0x1157   :  { %v12042_v50 = vpop.eup %12041 }
0x1158   :  { %v2706_v51 = vadd.f32 1.0, %v12042_v50 }
0x115a   :  { %12043 = vrcp.f32 %v2706_v51 }
0x1164   :  { %v12044_v53 = vpop.eup %12043 }
0x1176   :  { %v2754_v35 = vpop.permute.xlu0 %2753 }
0x1177   :  { %v2756_v7 = vpop.permute.xlu1 %2755 }
0x1178   :  { %v2761_v6 = vsel %vm1041_vm8, %v2754_v35, %v2756_v7 }
0x1179   :  { %v2765_v18 = vmul.f32 %v12040_v44, %v2761_v6 }
0x117b   :  { %2769 = vrot.lane.b32.xlu0 %v2765_v18, %s12695_s20 }
0x11ba   :  { %v2758_v19 = vpop.permute.xlu0 %2757 }
0x11bb   :  { %v2760_v26 = vpop.permute.xlu1 %2759 }
0x11bc   :  { %v2762_v4 = vsel %vm1041_vm8, %v2758_v19, %v2760_v26 }
0x11bd   :  { %v2766_v48 = vmul.f32 %v12044_v53, %v2762_v4 }
0x11bf   :  { %2771 = vrot.lane.b32.xlu1 %v2766_v48, %s12695_s20 }
0x11ed   :  { %v13866_v8 = vpop.permute.xlu0 %2769 }
0x11ee   :  { %9247 = vmatmul.mubr.msk.f32.vlgmr.msra.gmra.mrb[12].mxu0 %vm750_vm9, %v13866_v8  ;;  %9249 = vmatmul.mubr.msk.f32.vlgmr.msra.gmra.mrb[40].mxu1 %vm750_vm9, %v13866_v8 }
0x11ef   :  { %10515 = vmatpush1.bf16.msra.mxu0 %v13181_v15  ;;  %2847 = vmatprep.mubr.f32.mxu0 %v15718_v37 }
0x11f0   :  { %10517 = vmatprep.subr.bf16.mxu0 %v13183_v16  ;;  %2921 = vmatprep.mubr.f32.mxu1 %v15718_v37 }
0x11f1   :  { %10563 = vmatpush1.bf16.msra.mxu1 %v12944_v0 }
0x11f2   :  { %10565 = vmatprep.subr.bf16.mxu1 %v12961_v12 }
0x11f3   :  { %10519 = vmatpush1.bf16.msra.mxu0 %v13187_v25 }
0x11f4   :  { %10521 = vmatprep.subr.bf16.mxu0 %v13191_v52 }
0x11f5   :  { %10567 = vmatpush1.bf16.msra.mxu1 %v12978_v20 }
0x11f6   :  { %10569 = vmatprep.subr.bf16.mxu1 %v12995_v32  ;;  %v15740_v32 = vld [vmem:[#allocation30_spill] sm:$0xff] }
0x11f7   :  { %10523 = vmatpush1.bf16.msra.mxu0 %v13195_v29 }
0x11f8   :  { %10525 = vmatprep.subr.bf16.mxu0 %v13199_v33 }
0x11f9   :  { %10571 = vmatpush1.bf16.msra.mxu1 %v13008_v39 }
0x11fa   :  { %10573 = vmatprep.subr.bf16.mxu1 %v13014_v45 }
0x11fb   :  { %10527 = vmatpush1.bf16.msra.mxu0 %v13202_v42 }
0x11fc   :  { %10529 = vmatprep.subr.bf16.mxu0 %v13205_v43 }
0x11fd   :  { %10575 = vmatpush1.bf16.msra.mxu1 %v13027_v55 }
0x11fe   :  { %10577 = vmatprep.subr.bf16.mxu1 %v13034_v62 }
0x11ff   :  { %10531 = vmatpush1.bf16.msra.mxu0 %v13208_v54 }
0x1200   :  { %10533 = vmatprep.subr.bf16.mxu0 %v13211_v57 }
0x1201   :  { %10579 = vmatpush1.bf16.msra.mxu1 %v13047_v9 }
0x1202   :  { %10581 = vmatprep.subr.bf16.mxu1 %v13054_v17 }
0x1203   :  { %10535 = vmatpush1.bf16.msra.mxu0 %v13214_v61 }
0x1204   :  { %10537 = vmatprep.subr.bf16.mxu0 %v13071_v24 }
0x1205   :  { %10583 = vmatpush1.bf16.msra.mxu1 %v13067_v23 }
0x1231   :  { %v13897_v0 = vpop.permute.xlu1 %2771 }
0x1232   :  { %9248 = vmatmul.mubr.msk.f32.gmra.mrb[56].mxu0 %vm750_vm9, %v13897_v0  ;;  %9250 = vmatmul.mubr.msk.f32.gmra.mrb[42].mxu1 %vm750_vm9, %v13897_v0 }
0x1233   :  { %2991 = vmatprep.mubr.f32.mxu0 %v15718_v37  ;;  %3253 = vmatprep.mubr.f32.mxu1 %v15718_v37 }
0x1236   :  { %9251 = vmatmul.mubr.msk.f32.vlgmr.msra.gmra.mrb[58].mxu0 %vm750_vm9, %v13866_v8 }
0x1237   :  { %2995 = vmatprep.mubr.f32.mxu0 %v15718_v37  ;;  %10539 = vmatpush1.bf16.msra.mxu0 %v13085_v30 }
0x1238   :  { %10541 = vmatprep.subr.bf16.mxu0 %v13089_v31 }
0x123a   :  { %9252 = vmatmul.mubr.msk.f32.gmra.mrb[18].mxu0 %vm750_vm9, %v13897_v0 }
0x123b   :  { %10543 = vmatpush1.bf16.msra.mxu0 %v13100_v38  ;;  %3178 = vmatprep.mubr.f32.mxu0 %v15718_v37  ;;  %v15741_v38 = vld [vmem:[#allocation23_spill] sm:$0xff] }
0x123c   :  { %10545 = vmatprep.subr.bf16.mxu0 %v13104_v40 }
0x123f   :  { %10547 = vmatpush1.bf16.msra.mxu0 %v13114_v58 }
0x1240   :  { %10549 = vmatprep.subr.bf16.mxu0 %v13117_v46 }
0x1243   :  { %10551 = vmatpush1.bf16.msra.mxu0 %v13129_v5 }
0x1244   :  { %10553 = vmatprep.subr.bf16.mxu0 %v13132_v56 }
0x1247   :  { %10555 = vmatpush1.bf16.msra.mxu0 %v13142_v13 }
0x1248   :  { %10557 = vmatprep.subr.bf16.mxu0 %v13145_v63 }
0x124b   :  { %10559 = vmatpush1.bf16.msra.mxu0 %v13155_v27 }
0x124c   :  { %10585 = vmatprep.subr.bf16.mxu0 %v13158_v10 }
0x12c1   :  { %v2843_v12 = vpop.f32.mrb[12].mxu0  ;;  %v2918_v20 = vpop.f32.mrb[40].mxu1 }
0x12c2   :  { %v13924_v39 = vadd.f32 %v2918_v20, %v15740_v32  ;;  %v2845_v45 = vpop.f32.mrb[13].mxu0  ;;  %v2920_v55 = vpop.f32.mrb[41].mxu1  ;;  %v11616_v49 = vadd.f32 %v2843_v12, %v15739_v28 }
0x12c3   :  { %v11617_v62 = vadd.f32 %v2845_v45, %v13289_v47 }
0x12c4   :  { %12045 = vtanh.f32 %v13924_v39  ;;  %v9253_v60 = vmul.f32 -1.442695, %v11616_v49 }
0x12c5   :  { %12047 = vtanh.f32 %v11617_v62  ;;  %v9254_v4 = vmul.f32 -1.442695, %v11617_v62 }
0x12ce   :  { %v12046_v9 = vpop.eup %12045 }
0x12cf   :  { %v12048_v17 = vpop.eup %12047  ;;  %3058 = vrot.lane.b32.xlu1 %v12046_v9, %s12694_s2 }
0x12d0   :  { %3056 = vrot.lane.b32.xlu0 %v12048_v17, %s12694_s2 }
0x1305   :  { %v2849_v23 = vpop.f32.mrb[56].mxu0  ;;  %v2923_v24 = vpop.f32.mrb[42].mxu1 }
0x1306   :  { %v2850_v30 = vpop.f32.mrb[57].mxu0  ;;  %v2924_v31 = vpop.f32.mrb[43].mxu1 }
0x1307   :  { %v3005_v40 = vadd.f32 %v2924_v31, %v15741_v38 }
0x1309   :  { %v2993_v58 = vpop.f32.mrb[58].mxu0  ;;  %v9255_v6 = vmul.f32 -1.442695, %v3005_v40 }
0x130a   :  { %v2994_v46 = vpop.f32.mrb[59].mxu0 }
0x130d   :  { %v2997_v5 = vpop.f32.mrb[18].mxu0 }
0x130e   :  { %v11622_v56 = vadd.f32 %v2997_v5, %v15722_v36  ;;  %v2999_v13 = vpop.f32.mrb[19].mxu0 }
0x130f   :  { %v13933_v63 = vadd.f32 %v2999_v13, %v15723_v59  ;;  %v9257_v13 = vmul.f32 -1.442695, %v13924_v39 }
0x1310   :  { %12049 = vtanh.f32 %v11622_v56  ;;  %v9256_v24 = vmul.f32 -1.442695, %v11622_v56 }
0x1311   :  { %12051 = vtanh.f32 %v13933_v63 }
0x1312   :  { %12053 = vpow2.f32 %v9253_v60 }
0x131a   :  { %v12050_v27 = vpop.eup %12049 }
0x131b   :  { %v12052_v10 = vpop.eup %12051  ;;  %3060 = vrot.lane.b32.xlu0 %v12050_v27, %s12694_s2 }
0x131c   :  { %3062 = vrot.lane.b32.xlu1 %v12052_v10, %s12694_s2  ;;  %v12054_v34 = vpop.eup %12053 }
0x131d   :  { %v3020_v1 = vadd.f32 1.0, %v12054_v34 }
0x131f   :  { %12055 = vrcp.f32 %v3020_v1  ;;  %v9258_v1 = vmul.f32 -1.442695, %v13933_v63  ;;  %v15743_v63 = vld [vmem:[#allocation22_spill] sm:$0xff] }
0x1320   :  { %12057 = vpow2.f32 %v9255_v6 }
0x1329   :  { %v12056_v35 = vpop.eup %12055 }
0x132a   :  { %v12058_v18 = vpop.eup %12057  ;;  %v3048_v32 = vmul.f32 %v12056_v35, %v13842_v21 }
0x132b   :  { %v3022_v2 = vadd.f32 1.0, %v12058_v18 }
0x132d   :  { %12059 = vrcp.f32 %v3022_v2 }
0x132e   :  { %12061 = vpow2.f32 %v9254_v4 }
0x1337   :  { %v12060_v19 = vpop.eup %12059 }
0x1338   :  { %v12062_v48 = vpop.eup %12061  ;;  %v3050_v31 = vmul.f32 %v12060_v19, %v13852_v41 }
0x1339   :  { %v3021_v12 = vadd.f32 1.0, %v12062_v48 }
0x133b   :  { %12063 = vrcp.f32 %v3021_v12 }
0x1341   :  { %v3059_v14 = vpop.permute.xlu1 %3058 }
0x1342   :  { %v3057_v11 = vpop.permute.xlu0 %3056 }
0x1343   :  { %v3064_v7 = vsel %vm1041_vm8, %v3057_v11, %v3059_v14 }
0x1344   :  { %v3068_v44 = vmul.f32 %v12056_v35, %v3064_v7 }
0x1345   :  { %v12064_v20 = vpop.eup %12063 }
0x1346   :  { %3072 = vrot.lane.b32.xlu0 %v3068_v44, %s12695_s20  ;;  %v3049_v45 = vmul.f32 %v12064_v20, %v13844_v22 }
0x138d   :  { %v3061_v50 = vpop.permute.xlu0 %3060 }
0x138e   :  { %v3063_v51 = vpop.permute.xlu1 %3062 }
0x138f   :  { %v3065_v26 = vsel %vm1041_vm8, %v3061_v50, %v3063_v51 }
0x1390   :  { %v3069_v53 = vmul.f32 %v12060_v19, %v3065_v26 }
0x1392   :  { %3074 = vrot.lane.b32.xlu1 %v3069_v53, %s12695_s20 }
0x13b8   :  { %v3073_v55 = vpop.permute.xlu0 %3072 }
0x13b9   :  { %v13945_v9 = vadd.f32 %v3073_v55, %v3048_v32  ;;  %v13947_v17 = vadd.f32 %v3073_v55, %v3049_v45 }
0x13bb   :  { %12065 = vtanh.f32 %v13945_v9 }
0x13bc   :  { %12067 = vtanh.f32 %v13947_v17 }
0x13bd   :  { %12069 = vpow2.f32 %v9256_v24 }
0x13c5   :  { %v12066_v23 = vpop.eup %12065 }
0x13c6   :  { %v12068_v62 = vpop.eup %12067  ;;  %3090 = vrot.lane.b32.xlu0 %v12066_v23, %s12694_s2 }
0x13c7   :  { %3092 = vrot.lane.b32.xlu1 %v12068_v62, %s12694_s2  ;;  %v12070_v21 = vpop.eup %12069 }
0x13c8   :  { %v3023_v30 = vadd.f32 1.0, %v12070_v21 }
0x13ca   :  { %12071 = vrcp.f32 %v3023_v30 }
0x13d4   :  { %v12072_v22 = vpop.eup %12071 }
0x13d5   :  { %v3051_v38 = vmul.f32 %v12072_v22, %v13854_v3 }
0x1404   :  { %v3075_v40 = vpop.permute.xlu1 %3074 }
0x1405   :  { %v13955_v58 = vadd.f32 %v3075_v40, %v3050_v31  ;;  %v13957_v46 = vadd.f32 %v3075_v40, %v3051_v38 }
0x1407   :  { %12073 = vtanh.f32 %v13955_v58 }
0x1408   :  { %12075 = vtanh.f32 %v13957_v46 }
0x1409   :  { %12077 = vpow2.f32 %v9257_v13 }
0x1411   :  { %v12074_v5 = vpop.eup %12073 }
0x1412   :  { %v12076_v56 = vpop.eup %12075  ;;  %3094 = vrot.lane.b32.xlu0 %v12074_v5, %s12694_s2 }
0x1413   :  { %3096 = vrot.lane.b32.xlu1 %v12076_v56, %s12694_s2  ;;  %v12078_v41 = vpop.eup %12077 }
0x1414   :  { %v3042_v3 = vadd.f32 1.0, %v12078_v41 }
0x1416   :  { %12079 = vrcp.f32 %v3042_v3 }
0x1417   :  { %12081 = vpow2.f32 %v9258_v1 }
0x1420   :  { %v12080_v49 = vpop.eup %12079 }
0x1421   :  { %v12082_v14 = vpop.eup %12081 }
0x1422   :  { %v3043_v11 = vadd.f32 1.0, %v12082_v14 }
0x1424   :  { %12083 = vrcp.f32 %v3043_v11 }
0x142e   :  { %v12084_v7 = vpop.eup %12083 }
0x1438   :  { %v3091_v27 = vpop.permute.xlu0 %3090 }
0x1439   :  { %v3093_v10 = vpop.permute.xlu1 %3092 }
0x143a   :  { %v3098_v60 = vsel %vm1041_vm8, %v3091_v27, %v3093_v10 }
0x143b   :  { %v3102_v34 = vmul.f32 %v12080_v49, %v3098_v60 }
0x143d   :  { %3106 = vrot.lane.b32.xlu0 %v3102_v34, %s12695_s20 }
0x1484   :  { %v3095_v35 = vpop.permute.xlu0 %3094 }
0x1485   :  { %v3097_v39 = vpop.permute.xlu1 %3096 }
0x1486   :  { %v3099_v44 = vsel %vm1041_vm8, %v3095_v35, %v3097_v39  ;;  %v3520_v35 = vld [vmem:[#allocation7 + $0x38] sm:$0xff]  ;;  %v3513_v39 = vld [vmem:[#allocation7] sm:$0xff] }
0x1487   :  { %v3103_v6 = vmul.f32 %v12084_v7, %v3099_v44  ;;  %v3519_v44 = vld [vmem:[#allocation7 + $0x30] sm:$0xff] }
0x1489   :  { %3108 = vrot.lane.b32.xlu1 %v3103_v6, %s12695_s20  ;;  %v3526_v6 = vld [vmem:[#allocation7 + $0x68] sm:$0xff] }
0x14af   :  { %v13969_v18 = vpop.permute.xlu0 %3106 }
0x14b0   :  { %9259 = vmatmul.mubr.msk.f32.vlgmr.msra.gmra.mrb[14].mxu0 %vm750_vm9, %v13969_v18  ;;  %9261 = vmatmul.mubr.msk.f32.vlgmr.msra.gmra.mrb[44].mxu1 %vm750_vm9, %v13969_v18 }
0x14b1   :  { %10587 = vmatpush1.bf16.msra.mxu0 %v13181_v15  ;;  %3184 = vmatprep.mubr.f32.mxu0 %v15718_v37 }
0x14b2   :  { %10589 = vmatprep.subr.bf16.mxu0 %v13183_v16  ;;  %3258 = vmatprep.mubr.f32.mxu1 %v15718_v37 }
0x14b5   :  { %10591 = vmatpush1.bf16.msra.mxu0 %v13187_v25 }
0x14b6   :  { %10593 = vmatprep.subr.bf16.mxu0 %v13191_v52  ;;  %v15742_v52 = vld [vmem:[#allocation31_spill] sm:$0xff] }
0x14b9   :  { %10595 = vmatpush1.bf16.msra.mxu0 %v13195_v29 }
0x14ba   :  { %10597 = vmatprep.subr.bf16.mxu0 %v13199_v33 }
0x14bd   :  { %10599 = vmatpush1.bf16.msra.mxu0 %v13202_v42 }
0x14be   :  { %10601 = vmatprep.subr.bf16.mxu0 %v13205_v43 }
0x14c1   :  { %10603 = vmatpush1.bf16.msra.mxu0 %v13208_v54 }
0x14c2   :  { %10605 = vmatprep.subr.bf16.mxu0 %v13211_v57 }
0x14c5   :  { %10607 = vmatpush1.bf16.msra.mxu0 %v13214_v61 }
0x14fb   :  { %v13988_v15 = vpop.permute.xlu1 %3108 }
0x14fc   :  { %9260 = vmatmul.mubr.msk.f32.gmra.mrb[60].mxu0 %vm750_vm9, %v13988_v15  ;;  %9262 = vmatmul.mubr.msk.f32.gmra.mrb[46].mxu1 %vm750_vm9, %v13988_v15 }
0x14fd   :  { %3328 = vmatprep.mubr.f32.mxu0 %v15718_v37  ;;  %3654 = vmatprep.mubr.f32.mxu1 %v15718_v37 }
0x1500   :  { %9263 = vmatmul.mubr.msk.f32.vlgmr.msra.gmra.mrb[62].mxu0 %vm750_vm9, %v13969_v18 }
0x1501   :  { %3332 = vmatprep.mubr.f32.mxu0 %v15718_v37 }
0x1504   :  { %9264 = vmatmul.mubr.msk.f32.gmra.mrb[16].mxu0 %vm750_vm9, %v13988_v15 }
0x1505   :  { %4901 = vmatprep.mubr.f32.mxu0 %v15718_v37 }
0x1583   :  { %v3180_v16 = vpop.f32.mrb[14].mxu0  ;;  %v3255_v25 = vpop.f32.mrb[44].mxu1 }
0x1584   :  { %v14003_v29 = vadd.f32 %v3255_v25, %v15742_v52  ;;  %v3182_v33 = vpop.f32.mrb[15].mxu0  ;;  %v3257_v42 = vpop.f32.mrb[45].mxu1  ;;  %v11618_v31 = vadd.f32 %v3180_v16, %v15739_v28  ;;  %v3532_v16 = vld [vmem:[#allocation7 + $0x98] sm:$0xff]  ;;  %v10610_v25 = vpack.c.bf16 %v3519_v44, %v3513_v39  ;;  %v3515_v44 = vld [vmem:[#allocation7 + $0x10] sm:$0xff] }
0x1585   :  { %v14011_v48 = vadd.f32 %v3182_v33, %v13289_v47  ;;  %v10612_v52 = vpack.c.bf16 %v3532_v16, %v3526_v6  ;;  %v3525_v33 = vld [vmem:[#allocation7 + $0x60] sm:$0xff]  ;;  %v3531_v42 = vld [vmem:[#allocation7 + $0x90] sm:$0xff] }
0x1586   :  { %v9265_v40 = vmul.f32 -1.442695, %v11618_v31 }
0x1587   :  { %v9266_v31 = vmul.f32 -1.442695, %v14011_v48 }
0x15cf   :  { %v3186_v43 = vpop.f32.mrb[60].mxu0  ;;  %v3260_v54 = vpop.f32.mrb[46].mxu1 }
0x15d0   :  { %v3187_v57 = vpop.f32.mrb[61].mxu0  ;;  %v3261_v61 = vpop.f32.mrb[47].mxu1  ;;  %v3538_v43 = vld [vmem:[#allocation7 + $0xc8] sm:$0xff]  ;;  %v3544_v54 = vld [vmem:[#allocation7 + $0xf8] sm:$0xff] }
0x15d1   :  { %v3342_v2 = vadd.f32 %v3261_v61, %v15743_v63  ;;  %v10614_v57 = vpack.c.bf16 %v3531_v42, %v3525_v33  ;;  %v10616_v61 = vpack.c.bf16 %v3544_v54, %v3538_v43  ;;  %v3537_v63 = vld [vmem:[#allocation7 + $0xc0] sm:$0xff]  ;;  %v3540_v43 = vld [vmem:[#allocation7 + $0xd8] sm:$0xff]  ;;  %v3546_v54 = vld [vmem:[#allocation7 + $0x108] sm:$0xff] }
0x15d2   :  { %v3533_v33 = vld [vmem:[#allocation7 + $0xa0] sm:$0xff] }
0x15d3   :  { %v3330_v50 = vpop.f32.mrb[62].mxu0 }
0x15d4   :  { %v3331_v51 = vpop.f32.mrb[63].mxu0  ;;  %v3550_v50 = vld [vmem:[#allocation7 + $0x128] sm:$0xff] }
0x15d5   :  { %v3556_v51 = vld [vmem:[#allocation7 + $0x158] sm:$0xff] }
0x15d7   :  { %v3334_v19 = vpop.f32.mrb[16].mxu0 }
0x15d8   :  { %v11620_v26 = vadd.f32 %v3334_v19, %v15722_v36  ;;  %v3336_v53 = vpop.f32.mrb[17].mxu0  ;;  %v9267_v36 = vmul.f32 -1.442695, %v3342_v2  ;;  %v3543_v2 = vld [vmem:[#allocation7 + $0xf0] sm:$0xff] }
0x15d9   :  { %v14008_v4 = vadd.f32 %v3336_v53, %v15723_v59  ;;  %v10618_v19 = vpack.c.bf16 %v3543_v2, %v3537_v63  ;;  %v3549_v53 = vld [vmem:[#allocation7 + $0x120] sm:$0xff]  ;;  %v3539_v63 = vld [vmem:[#allocation7 + $0xd0] sm:$0xff] }
0x15da   :  { %12085 = vtanh.f32 %v11620_v26  ;;  %v9268_v30 = vmul.f32 -1.442695, %v11620_v26  ;;  %v10620_v26 = vpack.c.bf16 %v3556_v51, %v3550_v50  ;;  %v3545_v2 = vld [vmem:[#allocation7 + $0x100] sm:$0xff]  ;;  %v3552_v50 = vld [vmem:[#allocation7 + $0x138] sm:$0xff]  ;;  %v3558_v51 = vld [vmem:[#allocation7 + $0x168] sm:$0xff] }
0x15db   :  { %12087 = vtanh.f32 %v14008_v4 }
0x15dc   :  { %12089 = vtanh.f32 %v14011_v48 }
0x15dd   :  { %12091 = vpow2.f32 %v9267_v36 }
0x15e4   :  { %v12086_v12 = vpop.eup %12085 }
0x15e5   :  { %v12088_v20 = vpop.eup %12087  ;;  %3397 = vrot.lane.b32.xlu0 %v12086_v12, %s12694_s2  ;;  %v3555_v12 = vld [vmem:[#allocation7 + $0x150] sm:$0xff] }
0x15e6   :  { %3399 = vrot.lane.b32.xlu1 %v12088_v20, %s12694_s2  ;;  %v12090_v32 = vpop.eup %12089  ;;  %v3562_v20 = vld [vmem:[#allocation7 + $0x188] sm:$0xff]  ;;  %v10622_v36 = vpack.c.bf16 %v3555_v12, %v3549_v53  ;;  %v3551_v53 = vld [vmem:[#allocation7 + $0x130] sm:$0xff]  ;;  %v3557_v12 = vld [vmem:[#allocation7 + $0x160] sm:$0xff] }
0x15e7   :  { %v12092_v59 = vpop.eup %12091 }
0x15e8   :  { %v3359_v45 = vadd.f32 1.0, %v12092_v59 }
0x15ea   :  { %3393 = vrot.lane.b32.xlu1 %v12090_v32, %s12694_s2  ;;  %12093 = vrcp.f32 %v3359_v45  ;;  %v3568_v32 = vld [vmem:[#allocation7 + $0x1b8] sm:$0xff]  ;;  %v3561_v45 = vld [vmem:[#allocation7 + $0x180] sm:$0xff] }
0x15eb   :  { %12095 = vtanh.f32 %v14003_v29  ;;  %v10624_v59 = vpack.c.bf16 %v3568_v32, %v3562_v20  ;;  %v3564_v20 = vld [vmem:[#allocation7 + $0x198] sm:$0xff]  ;;  %v3570_v32 = vld [vmem:[#allocation7 + $0x1c8] sm:$0xff] }
0x15ec   :  { %12097 = vpow2.f32 %v9268_v30  ;;  %v3579_v30 = vld [vmem:[#allocation7 + $0x210] sm:$0xff] }
0x15f4   :  { %v12094_v23 = vpop.eup %12093 }
0x15f5   :  { %v12096_v21 = vpop.eup %12095  ;;  %v3387_v13 = vmul.f32 %v12094_v23, %v13955_v58 }
0x15f6   :  { %v12098_v22 = vpop.eup %12097 }
0x15f7   :  { %v3360_v38 = vadd.f32 1.0, %v12098_v22 }
0x15f9   :  { %12099 = vrcp.f32 %v3360_v38  ;;  %v9270_v38 = vmul.f32 -1.442695, %v14008_v4 }
0x15fa   :  { %12101 = vpow2.f32 %v9265_v40 }
0x1603   :  { %v12100_v5 = vpop.eup %12099 }
0x1604   :  { %v12102_v56 = vpop.eup %12101  ;;  %v3388_v41 = vmul.f32 %v12100_v5, %v13957_v46  ;;  %v3514_v46 = vld [vmem:[#allocation7 + $0x8] sm:$0xff] }
0x1605   :  { %v3357_v27 = vadd.f32 1.0, %v12102_v56  ;;  %v10608_v7 = vpack.c.bf16 %v3520_v35, %v3514_v46 }
0x1607   :  { %10609 = vmatprep.subr.bf16.mxu1 %v10608_v7  ;;  %v9269_v7 = vmul.f32 -1.442695, %v14003_v29 }
0x1608   :  { %10611 = vmatpush1.bf16.msra.mxu1 %v10610_v25 }
0x1609   :  { %10613 = vmatprep.subr.bf16.mxu1 %v10612_v52  ;;  %v3527_v52 = vld [vmem:[#allocation7 + $0x70] sm:$0xff] }
0x160a   :  { %v10638_v29 = vpack.c.bf16 %v3533_v33, %v3527_v52  ;;  %v3553_v33 = vld [vmem:[#allocation7 + $0x140] sm:$0xff] }
0x160c   :  { %10615 = vmatpush1.bf16.msra.mxu1 %v10614_v57 }
0x160d   :  { %10617 = vmatprep.subr.bf16.mxu1 %v10616_v61  ;;  %v10640_v61 = vpack.c.bf16 %v3546_v54, %v3540_v43  ;;  %v3559_v43 = vld [vmem:[#allocation7 + $0x170] sm:$0xff]  ;;  %v3566_v54 = vld [vmem:[#allocation7 + $0x1a8] sm:$0xff] }
0x1610   :  { %10619 = vmatpush1.bf16.msra.mxu1 %v10618_v19  ;;  %v10642_v19 = vpack.c.bf16 %v3545_v2, %v3539_v63  ;;  %v3565_v63 = vld [vmem:[#allocation7 + $0x1a0] sm:$0xff]  ;;  %v3571_v2 = vld [vmem:[#allocation7 + $0x1d0] sm:$0xff] }
0x1611   :  { %10621 = vmatprep.subr.bf16.mxu1 %v10620_v26  ;;  %v10644_v26 = vpack.c.bf16 %v3558_v51, %v3552_v50  ;;  %v3578_v50 = vld [vmem:[#allocation7 + $0x208] sm:$0xff]  ;;  %v3584_v51 = vld [vmem:[#allocation7 + $0x238] sm:$0xff] }
0x1614   :  { %10623 = vmatpush1.bf16.msra.mxu1 %v10622_v36  ;;  %v10646_v36 = vpack.c.bf16 %v3557_v12, %v3551_v53  ;;  %v3577_v53 = vld [vmem:[#allocation7 + $0x200] sm:$0xff]  ;;  %v3583_v12 = vld [vmem:[#allocation7 + $0x230] sm:$0xff] }
0x1615   :  { %10625 = vmatprep.subr.bf16.mxu1 %v10624_v59  ;;  %v10648_v59 = vpack.c.bf16 %v3570_v32, %v3564_v20  ;;  %v3442_v20 = vld [vmem:[#allocation6 + $0x8] sm:$0xff]  ;;  %v3448_v32 = vld [vmem:[#allocation6 + $0x38] sm:$0xff] }
0x1657   :  { %v3398_v47 = vpop.permute.xlu0 %3397 }
0x1658   :  { %v3400_v55 = vpop.permute.xlu1 %3399 }
0x1659   :  { %v3402_v62 = vsel %vm1041_vm8, %v3398_v47, %v3400_v55  ;;  %v3567_v47 = vld [vmem:[#allocation7 + $0x1b0] sm:$0xff]  ;;  %v3574_v55 = vld [vmem:[#allocation7 + $0x1e8] sm:$0xff] }
0x165a   :  { %v3406_v24 = vmul.f32 %v12094_v23, %v3402_v62  ;;  %v3580_v23 = vld [vmem:[#allocation7 + $0x218] sm:$0xff]  ;;  %v10626_v62 = vpack.c.bf16 %v3567_v47, %v3561_v45  ;;  %v3563_v45 = vld [vmem:[#allocation7 + $0x190] sm:$0xff]  ;;  %v3569_v47 = vld [vmem:[#allocation7 + $0x1c0] sm:$0xff] }
0x165c   :  { %3411 = vrot.lane.b32.xlu0 %v3406_v24, %s12695_s20  ;;  %v3394_v34 = vpop.permute.xlu1 %3393  ;;  %v10628_v24 = vpack.c.bf16 %v3580_v23, %v3574_v55  ;;  %10627 = vmatpush1.bf16.msra.mxu1 %v10626_v62  ;;  %v15744_v55 = vld [vmem:[#allocation26_spill] sm:$0xff] }
0x165d   :  { %v3576_v62 = vld [vmem:[#allocation7 + $0x1f8] sm:$0xff] }
0x165e   :  { %10629 = vmatprep.subr.bf16.mxu1 %v10628_v24  ;;  %v3582_v24 = vld [vmem:[#allocation7 + $0x228] sm:$0xff] }
0x1660   :  { %3395 = vrot.lane.b32.xlu0 %v12096_v21, %s12694_s2  ;;  %v3573_v21 = vld [vmem:[#allocation7 + $0x1e0] sm:$0xff] }
0x1661   :  { %v10630_v22 = vpack.c.bf16 %v3579_v30, %v3573_v21 }
0x1663   :  { %10631 = vmatpush1.bf16.msra.mxu1 %v10630_v22 }
0x16ce   :  { %v3412_v3 = vpop.permute.xlu0 %3411 }
0x16cf   :  { %v3417_v10 = vadd.f32 %v3412_v3, %v3387_v13  ;;  %v3418_v49 = vadd.f32 %v3412_v3, %v3388_v41  ;;  %v3516_v41 = vld [vmem:[#allocation7 + $0x18] sm:$0xff]  ;;  %v3522_v3 = vld [vmem:[#allocation7 + $0x48] sm:$0xff] }
0x16d1   :  { %12103 = vtanh.f32 %v3417_v10 }
0x16d2   :  { %12105 = vtanh.f32 %v3418_v49  ;;  %v3396_v60 = vpop.permute.xlu0 %3395 }
0x16d3   :  { %12107 = vrcp.f32 %v3357_v27  ;;  %v3401_v1 = vsel %vm1041_vm8, %v3394_v34, %v3396_v60  ;;  %v10632_v27 = vpack.c.bf16 %v3522_v3, %v3516_v41  ;;  %v3518_v41 = vld [vmem:[#allocation7 + $0x28] sm:$0xff]  ;;  %v3524_v3 = vld [vmem:[#allocation7 + $0x58] sm:$0xff] }
0x16d4   :  { %12109 = vpow2.f32 %v9266_v31  ;;  %v10650_v31 = vpack.c.bf16 %v3569_v47, %v3563_v45  ;;  %v3441_v45 = vld [vmem:[#allocation6] sm:$0xff]  ;;  %v3447_v47 = vld [vmem:[#allocation6 + $0x30] sm:$0xff] }
0x16d5   :  { %12111 = vpow2.f32 %v9270_v38  ;;  %10633 = vmatprep.subr.bf16.mxu1 %v10632_v27 }
0x16db   :  { %v12104_v28 = vpop.eup %12103 }
0x16dc   :  { %v12106_v14 = vpop.eup %12105  ;;  %3431 = vrot.lane.b32.xlu1 %v12104_v28, %s12694_s2 }
0x16dd   :  { %v14027_v11 = vpop.eup %12107  ;;  %3433 = vrot.lane.b32.xlu0 %v12106_v14, %s12694_s2 }
0x16de   :  { %v3405_v58 = vmul.f32 %v14027_v11, %v3401_v1  ;;  %v12110_v40 = vpop.eup %12109  ;;  %v3385_v4 = vmul.f32 %v14027_v11, %v13945_v9  ;;  %v3521_v9 = vld [vmem:[#allocation7 + $0x40] sm:$0xff]  ;;  %v3528_v11 = vld [vmem:[#allocation7 + $0x78] sm:$0xff] }
0x16df   :  { %v12112_v5 = vpop.eup %12111  ;;  %v3358_v56 = vadd.f32 1.0, %v12110_v40  ;;  %v10634_v16 = vpack.c.bf16 %v3521_v9, %v3515_v44  ;;  %v10652_v40 = vpack.c.bf16 %v3582_v24, %v3576_v62  ;;  %v3460_v62 = vld [vmem:[#allocation6 + $0x98] sm:$0xff]  ;;  %v10682_v24 = vpack.c.bf16 %v3447_v47, %v3441_v45  ;;  %v4391_v45 = vld [vmem:[#allocation9 + $0x130] sm:$0xff]  ;;  %v4397_v47 = vld [vmem:[#allocation9 + $0x160] sm:$0xff] }
0x16e0   :  { %3409 = vrot.lane.b32.xlu1 %v3405_v58, %s12695_s20  ;;  %v3380_v13 = vadd.f32 1.0, %v12112_v5  ;;  %v3575_v5 = vld [vmem:[#allocation7 + $0x1f0] sm:$0xff] }
0x16e1   :  { %12113 = vrcp.f32 %v3358_v56  ;;  %v3581_v56 = vld [vmem:[#allocation7 + $0x220] sm:$0xff] }
0x16e2   :  { %12115 = vrcp.f32 %v3380_v13  ;;  %v15745_v13 = vld [vmem:[#allocation28_spill] sm:$0xff]  ;;  %v10654_v27 = vpack.c.bf16 %v3581_v56, %v3575_v5 }
0x16e3   :  { %v3465_v56 = vld [vmem:[#allocation6 + $0xc0] sm:$0xff] }
0x16eb   :  { %v12114_v10 = vpop.eup %12113 }
0x16ec   :  { %v12116_v34 = vpop.eup %12115  ;;  %v3386_v1 = vmul.f32 %v12114_v10, %v13947_v17  ;;  %v3534_v17 = vld [vmem:[#allocation7 + $0xa8] sm:$0xff]  ;;  %v10656_v10 = vpack.c.bf16 %v3524_v3, %v3518_v41  ;;  %v3471_v41 = vld [vmem:[#allocation6 + $0xf0] sm:$0xff] }
0x16ed   :  { %v10636_v25 = vpack.c.bf16 %v3534_v17, %v3528_v11  ;;  %v3541_v11 = vld [vmem:[#allocation7 + $0xe0] sm:$0xff]  ;;  %v3547_v17 = vld [vmem:[#allocation7 + $0x110] sm:$0xff]  ;;  %v3478_v3 = vld [vmem:[#allocation6 + $0x128] sm:$0xff] }
0x174e   :  { %v3432_v49 = vpop.permute.xlu1 %3431 }
0x174f   :  { %v3434_v60 = vpop.permute.xlu0 %3433 }
0x1750   :  { %v3436_v48 = vsel %vm1041_vm8, %v3432_v49, %v3434_v60  ;;  %v15746_v49 = vld [vmem:[#allocation34_spill] sm:$0xff]  ;;  %v15747_v60 = vld [vmem:[#allocation40_spill] sm:$0xff] }
0x1751   :  { %v3440_v28 = vmul.f32 %v12116_v34, %v3436_v48  ;;  %v3517_v34 = vld [vmem:[#allocation7 + $0x20] sm:$0xff]  ;;  %v3523_v48 = vld [vmem:[#allocation7 + $0x50] sm:$0xff] }
0x1752   :  { %v3410_v14 = vpop.permute.xlu1 %3409 }
0x1753   :  { %3586 = vrot.lane.b32.xlu0 %v3440_v28, %s12695_s20  ;;  %v3415_v58 = vadd.f32 %v3410_v14, %v3385_v4  ;;  %v3416_v46 = vadd.f32 %v3410_v14, %v3386_v1  ;;  %v3530_v28 = vld [vmem:[#allocation7 + $0x88] sm:$0xff]  ;;  %v3536_v4 = vld [vmem:[#allocation7 + $0xb8] sm:$0xff]  ;;  %v10658_v14 = vpack.c.bf16 %v3523_v48, %v3517_v34  ;;  %v10690_v48 = vpack.c.bf16 %v3471_v41, %v3465_v56  ;;  %v4415_v56 = vld [vmem:[#allocation9 + $0x1f0] sm:$0xff] }
0x1754   :  { %v15748_v1 = vld [vmem:[#allocation38_spill] sm:$0xff]  ;;  %v4362_v34 = vld [vmem:[#allocation9 + $0x48] sm:$0xff]  ;;  %v4421_v41 = vld [vmem:[#allocation9 + $0x220] sm:$0xff] }
0x1755   :  { %12117 = vtanh.f32 %v3415_v58  ;;  %v10660_v58 = vpack.c.bf16 %v3536_v4, %v3530_v28  ;;  %v4355_v28 = vld [vmem:[#allocation9 + $0x10] sm:$0xff]  ;;  %v4361_v4 = vld [vmem:[#allocation9 + $0x40] sm:$0xff] }
0x1756   :  { %12119 = vtanh.f32 %v3416_v46  ;;  %v3529_v46 = vld [vmem:[#allocation7 + $0x80] sm:$0xff] }
0x1757   :  { %12121 = vpow2.f32 %v9269_v7  ;;  %v3548_v7 = vld [vmem:[#allocation7 + $0x118] sm:$0xff] }
0x175f   :  { %v12118_v35 = vpop.eup %12117 }
0x1760   :  { %v12120_v39 = vpop.eup %12119  ;;  %3427 = vrot.lane.b32.xlu1 %v12118_v35, %s12694_s2  ;;  %v3535_v35 = vld [vmem:[#allocation7 + $0xb0] sm:$0xff] }
0x1761   :  { %3429 = vrot.lane.b32.xlu0 %v12120_v39, %s12694_s2  ;;  %v12122_v6 = vpop.eup %12121  ;;  %v3542_v39 = vld [vmem:[#allocation7 + $0xe8] sm:$0xff]  ;;  %v10662_v44 = vpack.c.bf16 %v3535_v35, %v3529_v46  ;;  %v3483_v46 = vld [vmem:[#allocation6 + $0x150] sm:$0xff]  ;;  %v14102_v35 = vpack.c.bf16 %v4361_v4, %v4355_v28  ;;  %v3461_v28 = vld [vmem:[#allocation6 + $0xa0] sm:$0xff] }
0x1762   :  { %v3379_v57 = vadd.f32 1.0, %v12122_v6  ;;  %v10664_v9 = vpack.c.bf16 %v3548_v7, %v3542_v39  ;;  %v3554_v6 = vld [vmem:[#allocation7 + $0x148] sm:$0xff]  ;;  %v3496_v7 = vld [vmem:[#allocation6 + $0x1b8] sm:$0xff] }
0x1763   :  { %v3490_v39 = vld [vmem:[#allocation6 + $0x188] sm:$0xff]  ;;  %v3468_v4 = vld [vmem:[#allocation6 + $0xd8] sm:$0xff] }
0x1764   :  { %12123 = vrcp.f32 %v3379_v57  ;;  %v3572_v57 = vld [vmem:[#allocation7 + $0x1d8] sm:$0xff] }
0x176e   :  { %v12124_v30 = vpop.eup %12123 }
0x17c5   :  { %v14042_v42 = vpop.permute.xlu0 %3586 }
0x17c6   :  { %9271 = vmatmul.mubr.msk.f32.vlgmr.msra.gmra.mrb[48].mxu1 %vm750_vm9, %v14042_v42 }
0x17c7   :  { %3660 = vmatprep.mubr.f32.mxu1 %v15718_v37  ;;  %10635 = vmatpush1.bf16.msra.mxu1 %v10634_v16  ;;  %v3560_v16 = vld [vmem:[#allocation7 + $0x178] sm:$0xff] }
0x17c8   :  { %10637 = vmatprep.subr.bf16.mxu1 %v10636_v25  ;;  %v10666_v25 = vpack.c.bf16 %v3547_v17, %v3541_v11  ;;  %v10668_v52 = vpack.c.bf16 %v3560_v16, %v3554_v6  ;;  %v4374_v11 = vld [vmem:[#allocation9 + $0xa8] sm:$0xff]  ;;  %v10696_v17 = vpack.c.bf16 %v3496_v7, %v3490_v39  ;;  %v3495_v6 = vld [vmem:[#allocation6 + $0x1b0] sm:$0xff]  ;;  %v3473_v7 = vld [vmem:[#allocation6 + $0x100] sm:$0xff] }
0x17c9   :  { %v3467_v39 = vld [vmem:[#allocation6 + $0xd0] sm:$0xff] }
0x17ca   :  { %9272 = vmatmul.mubr.msk.f32.gmra.mrb[50].mxu1 %vm750_vm9, %v13988_v15 }
0x17cb   :  { %3666 = vmatprep.mubr.f32.mxu1 %v15718_v37  ;;  %10639 = vmatpush1.bf16.msra.mxu1 %v10638_v29  ;;  %v10670_v29 = vpack.c.bf16 %v3559_v43, %v3553_v33  ;;  %v3502_v33 = vld [vmem:[#allocation6 + $0x1e8] sm:$0xff]  ;;  %v3508_v43 = vld [vmem:[#allocation6 + $0x218] sm:$0xff] }
0x17cc   :  { %10641 = vmatprep.subr.bf16.mxu1 %v10640_v61  ;;  %v10672_v61 = vpack.c.bf16 %v3572_v57, %v3566_v54  ;;  %v3501_v57 = vld [vmem:[#allocation6 + $0x1e0] sm:$0xff] }
0x17ce   :  { %9273 = vmatmul.mubr.msk.f32.gmra.mrb[52].mxu1 %vm750_vm9, %v13897_v0 }
0x17cf   :  { %3672 = vmatprep.mubr.f32.mxu1 %v15718_v37  ;;  %10643 = vmatpush1.bf16.msra.mxu1 %v10642_v19  ;;  %v10674_v19 = vpack.c.bf16 %v3571_v2, %v3565_v63  ;;  %v10700_v63 = vpack.c.bf16 %v3508_v43, %v3502_v33  ;;  %v3507_v2 = vld [vmem:[#allocation6 + $0x210] sm:$0xff]  ;;  %v3498_v33 = vld [vmem:[#allocation6 + $0x1c8] sm:$0xff] }
0x17d0   :  { %10645 = vmatprep.subr.bf16.mxu1 %v10644_v26  ;;  %v10676_v26 = vpack.c.bf16 %v3584_v51, %v3578_v50  ;;  %v4379_v51 = vld [vmem:[#allocation9 + $0xd0] sm:$0xff] }
0x17d1   :  { %v15751_v43 = vld [vmem:[#allocation33_spill] sm:$0xff] }
0x17d2   :  { %9274 = vmatmul.mubr.msk.f32.gmra.mrb[54].mxu1 %vm750_vm9, %v15744_v55  ;;  %v3428_v23 = vpop.permute.xlu1 %3427 }
0x17d3   :  { %v3430_v21 = vpop.permute.xlu0 %3429  ;;  %3678 = vmatprep.mubr.f32.mxu1 %v15718_v37  ;;  %10647 = vmatpush1.bf16.msra.mxu1 %v10646_v36  ;;  %v10678_v36 = vpack.c.bf16 %v3583_v12, %v3577_v53  ;;  %v10702_v12 = vpack.c.bf16 %v3507_v2, %v3501_v57  ;;  %v3510_v2 = vld [vmem:[#allocation6 + $0x228] sm:$0xff] }
0x17d4   :  { %v3435_v22 = vsel %vm1041_vm8, %v3428_v23, %v3430_v21  ;;  %10649 = vmatprep.subr.bf16.mxu1 %v10648_v59  ;;  %v10680_v59 = vpack.c.bf16 %v3448_v32, %v3442_v20  ;;  %v3454_v23 = vld [vmem:[#allocation6 + $0x68] sm:$0xff]  ;;  %v4392_v20 = vld [vmem:[#allocation9 + $0x138] sm:$0xff] }
0x17d5   :  { %v3439_v38 = vmul.f32 %v12124_v30, %v3435_v22  ;;  %v10684_v21 = vpack.c.bf16 %v3460_v62, %v3454_v23  ;;  %v3453_v30 = vld [vmem:[#allocation6 + $0x60] sm:$0xff]  ;;  %v3459_v22 = vld [vmem:[#allocation6 + $0x90] sm:$0xff]  ;;  %v4398_v32 = vld [vmem:[#allocation9 + $0x168] sm:$0xff] }
0x17d6   :  { %9275 = vmatmul.mubr.msk.f32.gmra.mrb[56].mxu1 %vm750_vm9, %v15745_v13  ;;  %v4404_v23 = vld [vmem:[#allocation9 + $0x198] sm:$0xff]  ;;  %v4410_v62 = vld [vmem:[#allocation9 + $0x1c8] sm:$0xff] }
0x17d7   :  { %3930 = vrot.lane.b32.xlu1 %v3439_v38, %s12695_s20  ;;  %3684 = vmatprep.mubr.f32.mxu1 %v15718_v37  ;;  %v3472_v38 = vld [vmem:[#allocation6 + $0xf8] sm:$0xff] }
0x17d8   :  { %10651 = vmatpush1.bf16.msra.mxu1 %v10650_v31  ;;  %v3466_v31 = vld [vmem:[#allocation6 + $0xc8] sm:$0xff] }
0x17d9   :  { %10653 = vmatprep.subr.bf16.mxu1 %v10652_v40  ;;  %v10686_v40 = vpack.c.bf16 %v3459_v22, %v3453_v30  ;;  %v10688_v5 = vpack.c.bf16 %v3472_v38, %v3466_v31  ;;  %v4409_v30 = vld [vmem:[#allocation9 + $0x1c0] sm:$0xff]  ;;  %v3443_v22 = vld [vmem:[#allocation6 + $0x10] sm:$0xff]  ;;  %v4416_v31 = vld [vmem:[#allocation9 + $0x1f8] sm:$0xff] }
0x17da   :  { %9276 = vmatmul.mubr.msk.f32.gmra.mrb[58].mxu1 %vm750_vm9, %v15746_v49  ;;  %v4422_v38 = vld [vmem:[#allocation9 + $0x228] sm:$0xff] }
0x17db   :  { %3690 = vmatprep.mubr.f32.mxu1 %v15718_v37 }
0x17dc   :  { %10655 = vmatpush1.bf16.msra.mxu1 %v10654_v27  ;;  %v3484_v27 = vld [vmem:[#allocation6 + $0x158] sm:$0xff] }
0x17dd   :  { %10657 = vmatprep.subr.bf16.mxu1 %v10656_v10  ;;  %v4356_v10 = vld [vmem:[#allocation9 + $0x18] sm:$0xff] }
0x17de   :  { %9277 = vmatmul.mubr.msk.f32.gmra.mrb[60].mxu1 %vm750_vm9, %v15747_v60 }
0x17df   :  { %3696 = vmatprep.mubr.f32.mxu1 %v15718_v37 }
0x17e2   :  { %9278 = vmatmul.mubr.msk.f32.gmra.mrb[62].mxu1 %vm750_vm9, %v15748_v1 }
0x17e3   :  { %3767 = vmatprep.mubr.f32.mxu1 %v15718_v37 }
0x17e6   :  { %9279 = vmatmul.mubr.msk.f32.vlgmr.msra.gmra.mrb[64].mxu1 %vm750_vm9, %v14042_v42 }
0x17e7   :  { %3773 = vmatprep.mubr.f32.mxu1 %v15718_v37  ;;  %10659 = vmatpush1.bf16.msra.mxu1 %v10658_v14  ;;  %v10692_v14 = vpack.c.bf16 %v3484_v27, %v3478_v3  ;;  %v3456_v3 = vld [vmem:[#allocation6 + $0x78] sm:$0xff]  ;;  %v3462_v27 = vld [vmem:[#allocation6 + $0xa8] sm:$0xff] }
0x17e8   :  { %10661 = vmatprep.subr.bf16.mxu1 %v10660_v58  ;;  %v3477_v58 = vld [vmem:[#allocation6 + $0x120] sm:$0xff] }
0x17ea   :  { %9280 = vmatmul.mubr.msk.f32.gmra.mrb[66].mxu1 %vm750_vm9, %v13988_v15 }
0x17eb   :  { %3779 = vmatprep.mubr.f32.mxu1 %v15718_v37  ;;  %10663 = vmatpush1.bf16.msra.mxu1 %v10662_v44  ;;  %v3489_v44 = vld [vmem:[#allocation6 + $0x180] sm:$0xff] }
0x17ec   :  { %10665 = vmatprep.subr.bf16.mxu1 %v10664_v9  ;;  %v4368_v9 = vld [vmem:[#allocation9 + $0x78] sm:$0xff]  ;;  %v10698_v54 = vpack.c.bf16 %v3495_v6, %v3489_v44  ;;  %v3486_v44 = vld [vmem:[#allocation6 + $0x168] sm:$0xff]  ;;  %v3479_v6 = vld [vmem:[#allocation6 + $0x130] sm:$0xff] }
0x17ed   :  { %v14109_v16 = vpack.c.bf16 %v4374_v11, %v4368_v9  ;;  %v15750_v9 = vld [vmem:[#allocation39_spill] sm:$0xff]  ;;  %v10714_v11 = vpack.c.bf16 %v3473_v7, %v3467_v39  ;;  %v3487_v39 = vld [vmem:[#allocation6 + $0x170] sm:$0xff]  ;;  %v3494_v7 = vld [vmem:[#allocation6 + $0x1a8] sm:$0xff] }
0x17ee   :  { %9281 = vmatmul.mubr.msk.f32.gmra.mrb[68].mxu1 %vm750_vm9, %v13897_v0 }
0x17ef   :  { %3785 = vmatprep.mubr.f32.mxu1 %v15718_v37  ;;  %10667 = vmatpush1.bf16.msra.mxu1 %v10666_v25  ;;  %v4367_v25 = vld [vmem:[#allocation9 + $0x70] sm:$0xff] }
0x17f0   :  { %10669 = vmatprep.subr.bf16.mxu1 %v10668_v52  ;;  %v4373_v52 = vld [vmem:[#allocation9 + $0xa0] sm:$0xff] }
0x17f2   :  { %9282 = vmatmul.mubr.msk.f32.gmra.mrb[70].mxu1 %vm750_vm9, %v15744_v55 }
0x17f3   :  { %3791 = vmatprep.mubr.f32.mxu1 %v15718_v37  ;;  %10671 = vmatpush1.bf16.msra.mxu1 %v10670_v29  ;;  %v4380_v29 = vld [vmem:[#allocation9 + $0xd8] sm:$0xff] }
0x17f4   :  { %10673 = vmatprep.subr.bf16.mxu1 %v10672_v61  ;;  %v4386_v61 = vld [vmem:[#allocation9 + $0x108] sm:$0xff] }
0x17f5   :  { %v14117_v50 = vpack.c.bf16 %v4386_v61, %v4380_v29  ;;  %v3491_v29 = vld [vmem:[#allocation6 + $0x190] sm:$0xff]  ;;  %v3497_v61 = vld [vmem:[#allocation6 + $0x1c0] sm:$0xff] }
0x17f6   :  { %9283 = vmatmul.mubr.msk.f32.gmra.mrb[72].mxu1 %vm750_vm9, %v15745_v13 }
0x17f7   :  { %3797 = vmatprep.mubr.f32.mxu1 %v15718_v37  ;;  %10675 = vmatpush1.bf16.msra.mxu1 %v10674_v19  ;;  %v4385_v19 = vld [vmem:[#allocation9 + $0x100] sm:$0xff] }
0x17f8   :  { %10677 = vmatprep.subr.bf16.mxu1 %v10676_v26  ;;  %v3450_v26 = vld [vmem:[#allocation6 + $0x48] sm:$0xff]  ;;  %v14122_v53 = vpack.c.bf16 %v4385_v19, %v4379_v51  ;;  %v10722_v19 = vpack.c.bf16 %v3497_v61, %v3491_v29  ;;  %v3511_v29 = vld [vmem:[#allocation6 + $0x230] sm:$0xff] }
0x17f9   :  { %v15752_v51 = vld [vmem:[#allocation25_spill] sm:$0xff] }
0x17fa   :  { %9284 = vmatmul.mubr.msk.f32.gmra.mrb[74].mxu1 %vm750_vm9, %v15746_v49  ;;  %v4354_v61 = vld [vmem:[#allocation9 + $0x8] sm:$0xff] }
0x17fb   :  { %3803 = vmatprep.mubr.f32.mxu1 %v15718_v37  ;;  %10679 = vmatpush1.bf16.msra.mxu1 %v10678_v36 }
0x17fc   :  { %10681 = vmatprep.subr.bf16.mxu1 %v10680_v59  ;;  %v14126_v59 = vpack.c.bf16 %v4398_v32, %v4392_v20  ;;  %v3446_v20 = vld [vmem:[#allocation6 + $0x28] sm:$0xff]  ;;  %v3452_v32 = vld [vmem:[#allocation6 + $0x58] sm:$0xff] }
0x17fe   :  { %9285 = vmatmul.mubr.msk.f32.gmra.mrb[76].mxu1 %vm750_vm9, %v15747_v60 }
0x17ff   :  { %3809 = vmatprep.mubr.f32.mxu1 %v15718_v37 }
0x1802   :  { %9286 = vmatmul.mubr.msk.f32.gmra.mrb[78].mxu1 %vm750_vm9, %v15748_v1 }
0x1803   :  { %3880 = vmatprep.mubr.f32.mxu1 %v15718_v37 }
0x1806   :  { %9287 = vmatmul.mubr.msk.f32.vlgmr.msra.gmra.mrb[80].mxu1 %vm750_vm9, %v14042_v42  ;;  %v14100_v42 = vpack.c.bf16 %v4362_v34, %v4356_v10  ;;  %v10708_v34 = vpack.c.bf16 %v3462_v27, %v3456_v3  ;;  %v3476_v3 = vld [vmem:[#allocation6 + $0x118] sm:$0xff] }
0x1807   :  { %3886 = vmatprep.mubr.f32.mxu1 %v15718_v37  ;;  %10683 = vmatpush1.bf16.msra.mxu1 %v10682_v24  ;;  %v14135_v24 = vpack.c.bf16 %v4410_v62, %v4404_v23  ;;  %v3445_v23 = vld [vmem:[#allocation6 + $0x20] sm:$0xff]  ;;  %v3451_v62 = vld [vmem:[#allocation6 + $0x50] sm:$0xff] }
0x1808   :  { %10685 = vmatprep.subr.bf16.mxu1 %v10684_v21  ;;  %10849 = vmatprep.subr.bf16.mxu0 %v14100_v42  ;;  %v4403_v21 = vld [vmem:[#allocation9 + $0x190] sm:$0xff] }
0x1809   :  { %10851 = vmatpush1.bf16.msra.mxu0 %v14102_v35 }
0x180a   :  { %9288 = vmatmul.mubr.msk.f32.gmra.mrb[82].mxu1 %vm750_vm9, %v13988_v15  ;;  %v10694_v15 = vpack.c.bf16 %v3483_v46, %v3477_v58  ;;  %10853 = vmatprep.subr.bf16.mxu0 %v14109_v16  ;;  %v15749_v58 = vld [vmem:[#allocation37_spill] sm:$0xff] }
0x180b   :  { %3892 = vmatprep.mubr.f32.mxu1 %v15718_v37  ;;  %10687 = vmatpush1.bf16.msra.mxu1 %v10686_v40  ;;  %v3449_v40 = vld [vmem:[#allocation6 + $0x40] sm:$0xff] }
0x180c   :  { %10689 = vmatprep.subr.bf16.mxu1 %v10688_v5  ;;  %v14144_v5 = vpack.c.bf16 %v4422_v38, %v4416_v31  ;;  %v10706_v10 = vpack.c.bf16 %v3449_v40, %v3443_v22  ;;  %v3464_v22 = vld [vmem:[#allocation6 + $0xb8] sm:$0xff]  ;;  %v10730_v31 = vpack.c.bf16 %v3451_v62, %v3445_v23  ;;  %v3457_v40 = vld [vmem:[#allocation6 + $0x80] sm:$0xff]  ;;  %v4371_v23 = vld [vmem:[#allocation9 + $0x90] sm:$0xff] }
0x180d   :  { %v4378_v62 = vld [vmem:[#allocation9 + $0xc8] sm:$0xff] }
0x180e   :  { %9289 = vmatmul.mubr.msk.f32.gmra.mrb[84].mxu1 %vm750_vm9, %v13897_v0  ;;  %v14113_v0 = vpack.c.bf16 %v4373_v52, %v4367_v25  ;;  %v3485_v25 = vld [vmem:[#allocation6 + $0x160] sm:$0xff]  ;;  %v3492_v52 = vld [vmem:[#allocation6 + $0x198] sm:$0xff] }
0x180f   :  { %3898 = vmatprep.mubr.f32.mxu1 %v15718_v37  ;;  %10691 = vmatpush1.bf16.msra.mxu1 %v10690_v48  ;;  %v3455_v48 = vld [vmem:[#allocation6 + $0x70] sm:$0xff]  ;;  %v10720_v57 = vpack.c.bf16 %v3498_v33, %v3492_v52  ;;  %v3512_v52 = vld [vmem:[#allocation6 + $0x238] sm:$0xff] }
0x1810   :  { %10693 = vmatprep.subr.bf16.mxu1 %v10692_v14  ;;  %10855 = vmatpush1.bf16.msra.mxu0 %v14113_v0  ;;  %v3474_v14 = vld [vmem:[#allocation6 + $0x108] sm:$0xff] }
0x1811   :  { %10857 = vmatprep.subr.bf16.mxu0 %v14117_v50  ;;  %v10712_v46 = vpack.c.bf16 %v3474_v14, %v3468_v4  ;;  %v3488_v4 = vld [vmem:[#allocation6 + $0x178] sm:$0xff] }
0x1812   :  { %9290 = vmatmul.mubr.msk.f32.gmra.mrb[86].mxu1 %vm750_vm9, %v15744_v55  ;;  %v3444_v55 = vld [vmem:[#allocation6 + $0x18] sm:$0xff] }
0x1813   :  { %3904 = vmatprep.mubr.f32.mxu1 %v15718_v37  ;;  %10695 = vmatpush1.bf16.msra.mxu1 %v10694_v15  ;;  %v10704_v36 = vpack.c.bf16 %v3450_v26, %v3444_v55  ;;  %v3480_v15 = vld [vmem:[#allocation6 + $0x138] sm:$0xff]  ;;  %v3503_v26 = vld [vmem:[#allocation6 + $0x1f0] sm:$0xff] }
0x1814   :  { %10697 = vmatprep.subr.bf16.mxu1 %v10696_v17  ;;  %10859 = vmatpush1.bf16.msra.mxu0 %v14122_v53  ;;  %v10716_v17 = vpack.c.bf16 %v3486_v44, %v3480_v15  ;;  %v3500_v15 = vld [vmem:[#allocation6 + $0x1d8] sm:$0xff] }
0x1815   :  { %10861 = vmatprep.subr.bf16.mxu0 %v14126_v59 }
0x1816   :  { %9291 = vmatmul.mubr.msk.f32.gmra.mrb[88].mxu1 %vm750_vm9, %v15745_v13  ;;  %v14131_v13 = vpack.c.bf16 %v4397_v47, %v4391_v45  ;;  %v10728_v47 = vpack.c.bf16 %v3452_v32, %v3446_v20  ;;  %v4372_v20 = vld [vmem:[#allocation9 + $0x98] sm:$0xff] }
0x1817   :  { %3910 = vmatprep.mubr.f32.mxu1 %v15718_v37  ;;  %10699 = vmatpush1.bf16.msra.mxu1 %v10698_v54  ;;  %v10718_v54 = vpack.c.bf16 %v3485_v25, %v3479_v6  ;;  %v3499_v6 = vld [vmem:[#allocation6 + $0x1d0] sm:$0xff]  ;;  %v3506_v25 = vld [vmem:[#allocation6 + $0x208] sm:$0xff] }
0x1818   :  { %10701 = vmatprep.subr.bf16.mxu1 %v10700_v63  ;;  %10863 = vmatpush1.bf16.msra.mxu0 %v14131_v13  ;;  %v3504_v63 = vld [vmem:[#allocation6 + $0x1f8] sm:$0xff] }
0x1819   :  { %10865 = vmatprep.subr.bf16.mxu0 %v14135_v24  ;;  %v10724_v55 = vpack.c.bf16 %v3510_v2, %v3504_v63  ;;  %v4360_v63 = vld [vmem:[#allocation9 + $0x38] sm:$0xff] }
0x181a   :  { %9292 = vmatmul.mubr.msk.f32.gmra.mrb[90].mxu1 %vm750_vm9, %v15746_v49  ;;  %v14140_v49 = vpack.c.bf16 %v4409_v30, %v4403_v21  ;;  %v3458_v30 = vld [vmem:[#allocation6 + $0x88] sm:$0xff] }
0x181b   :  { %3916 = vmatprep.mubr.f32.mxu1 %v15718_v37  ;;  %10703 = vmatpush1.bf16.msra.mxu1 %v10702_v12  ;;  %v3509_v12 = vld [vmem:[#allocation6 + $0x220] sm:$0xff]  ;;  %v10732_v38 = vpack.c.bf16 %v3464_v22, %v3458_v30  ;;  %v4384_v30 = vld [vmem:[#allocation9 + $0xf8] sm:$0xff] }
0x181c   :  { %10705 = vmatprep.subr.bf16.mxu1 %v10704_v36  ;;  %10867 = vmatpush1.bf16.msra.mxu0 %v14140_v49  ;;  %v15753_v36 = vld [vmem:[#allocation27_spill] sm:$0xff]  ;;  %v10726_v45 = vpack.c.bf16 %v3509_v12, %v3503_v26  ;;  %v4359_v26 = vld [vmem:[#allocation9 + $0x30] sm:$0xff]  ;;  %v4366_v12 = vld [vmem:[#allocation9 + $0x68] sm:$0xff] }
0x181d   :  { %10869 = vmatprep.subr.bf16.mxu0 %v14144_v5 }
0x181e   :  { %9293 = vmatmul.mubr.msk.f32.gmra.mrb[92].mxu1 %vm750_vm9, %v15747_v60  ;;  %v14149_v60 = vpack.c.bf16 %v4421_v41, %v4415_v56  ;;  %v3463_v56 = vld [vmem:[#allocation6 + $0xb0] sm:$0xff]  ;;  %v3470_v41 = vld [vmem:[#allocation6 + $0xe8] sm:$0xff] }
0x181f   :  { %3922 = vmatprep.mubr.f32.mxu1 %v15718_v37  ;;  %v10734_v27 = vpack.c.bf16 %v3463_v56, %v3457_v40  ;;  %v4383_v40 = vld [vmem:[#allocation9 + $0xf0] sm:$0xff]  ;;  %v4390_v56 = vld [vmem:[#allocation9 + $0x128] sm:$0xff] }
0x1820   :  { %10871 = vmatpush1.bf16.msra.mxu0 %v14149_v60 }
0x1821   :  { %10921 = vmatprep.subr.bf16.mxu0 %v14100_v42 }
0x1822   :  { %9294 = vmatmul.mubr.msk.f32.gmra.mrb[94].mxu1 %vm750_vm9, %v15748_v1  ;;  %v10710_v1 = vpack.c.bf16 %v3461_v28, %v3455_v48  ;;  %v3475_v48 = vld [vmem:[#allocation6 + $0x110] sm:$0xff]  ;;  %v3482_v28 = vld [vmem:[#allocation6 + $0x148] sm:$0xff] }
0x1823   :  { %3998 = vmatprep.mubr.f32.mxu1 %v15718_v37 }
0x1826   :  { %9295 = vmatmul.mubr.msk.f32.vlgmr.msra.gmra.mrb[48].mxu1 %vm750_vm9, %v15749_v58 }
0x1827   :  { %4004 = vmatprep.mubr.f32.mxu1 %v15718_v37  ;;  %10707 = vmatpush1.bf16.msra.mxu1 %v10706_v10  ;;  %v10736_v10 = vpack.c.bf16 %v3476_v3, %v3470_v41  ;;  %v4396_v41 = vld [vmem:[#allocation9 + $0x158] sm:$0xff] }
0x1828   :  { %10709 = vmatprep.subr.bf16.mxu1 %v10708_v34  ;;  %v3469_v34 = vld [vmem:[#allocation6 + $0xe0] sm:$0xff]  ;;  %v14228_v3 = vpack.c.bf16 %v4396_v41, %v4390_v56  ;;  %v4411_v41 = vld [vmem:[#allocation9 + $0x1d0] sm:$0xff] }
0x1829   :  { %v10738_v14 = vpack.c.bf16 %v3475_v48, %v3469_v34  ;;  %v4402_v34 = vld [vmem:[#allocation9 + $0x188] sm:$0xff]  ;;  %v4408_v48 = vld [vmem:[#allocation9 + $0x1b8] sm:$0xff]  ;;  %v4405_v56 = vld [vmem:[#allocation9 + $0x1a0] sm:$0xff] }
0x182a   :  { %9296 = vmatmul.mubr.msk.f32.gmra.mrb[50].mxu1 %vm750_vm9, %v15750_v9 }
0x182b   :  { %4010 = vmatprep.mubr.f32.mxu1 %v15718_v37  ;;  %10711 = vmatpush1.bf16.msra.mxu1 %v10710_v1  ;;  %v10740_v1 = vpack.c.bf16 %v3488_v4, %v3482_v28  ;;  %v14237_v28 = vpack.c.bf16 %v4408_v48, %v4402_v34  ;;  %v4401_v4 = vld [vmem:[#allocation9 + $0x180] sm:$0xff]  ;;  %v14311_v34 = vpack.c.bf16 %v4411_v41, %v4405_v56 }
0x182c   :  { %10713 = vmatprep.subr.bf16.mxu1 %v10712_v46  ;;  %v3481_v46 = vld [vmem:[#allocation6 + $0x140] sm:$0xff] }
0x182d   :  { %v10742_v44 = vpack.c.bf16 %v3487_v39, %v3481_v46  ;;  %v4420_v46 = vld [vmem:[#allocation9 + $0x218] sm:$0xff] }
0x182e   :  { %9297 = vmatmul.mubr.msk.f32.gmra.mrb[52].mxu1 %vm750_vm9, %v15751_v43 }
0x182f   :  { %4016 = vmatprep.mubr.f32.mxu1 %v15718_v37  ;;  %10715 = vmatpush1.bf16.msra.mxu1 %v10714_v11  ;;  %v10744_v11 = vpack.c.bf16 %v3500_v15, %v3494_v7  ;;  %v4413_v7 = vld [vmem:[#allocation9 + $0x1e0] sm:$0xff]  ;;  %v4419_v15 = vld [vmem:[#allocation9 + $0x210] sm:$0xff] }
0x1830   :  { %10717 = vmatprep.subr.bf16.mxu1 %v10716_v17  ;;  %v3493_v17 = vld [vmem:[#allocation6 + $0x1a0] sm:$0xff] }
0x1831   :  { %v10746_v33 = vpack.c.bf16 %v3499_v6, %v3493_v17  ;;  %v4376_v17 = vld [vmem:[#allocation9 + $0xb8] sm:$0xff] }
0x1832   :  { %9298 = vmatmul.mubr.msk.f32.gmra.mrb[54].mxu1 %vm750_vm9, %v15752_v51 }
0x1833   :  { %4022 = vmatprep.mubr.f32.mxu1 %v15718_v37  ;;  %10719 = vmatpush1.bf16.msra.mxu1 %v10718_v54  ;;  %v10748_v54 = vpack.c.bf16 %v3512_v52, %v3506_v25  ;;  %v4369_v52 = vld [vmem:[#allocation9 + $0x80] sm:$0xff] }
0x1834   :  { %10721 = vmatprep.subr.bf16.mxu1 %v10720_v57  ;;  %v3505_v57 = vld [vmem:[#allocation6 + $0x200] sm:$0xff] }
0x1835   :  { %v10750_v2 = vpack.c.bf16 %v3511_v29, %v3505_v57  ;;  %v4388_v57 = vld [vmem:[#allocation9 + $0x118] sm:$0xff] }
0x1836   :  { %9299 = vmatmul.mubr.msk.f32.gmra.mrb[56].mxu1 %vm750_vm9, %v15753_v36 }
0x1837   :  { %4028 = vmatprep.mubr.f32.mxu1 %v15718_v37  ;;  %10723 = vmatpush1.bf16.msra.mxu1 %v10722_v19  ;;  %v14196_v19 = vpack.c.bf16 %v4360_v63, %v4354_v61  ;;  %v4381_v63 = vld [vmem:[#allocation9 + $0xe0] sm:$0xff] }
0x1838   :  { %10725 = vmatprep.subr.bf16.mxu1 %v10724_v55  ;;  %v4353_v55 = vld [vmem:[#allocation9] sm:$0xff] }
0x1839   :  { %v14208_v32 = vpack.c.bf16 %v4359_v26, %v4353_v55  ;;  %v4394_v55 = vld [vmem:[#allocation9 + $0x148] sm:$0xff]  ;;  %v4400_v26 = vld [vmem:[#allocation9 + $0x178] sm:$0xff] }
0x183a   :  { %9300 = vmatmul.mubr.msk.f32.gmra.mrb[58].mxu1 %vm750_vm9, %v13866_v8 }
0x183b   :  { %4034 = vmatprep.mubr.f32.mxu1 %v15718_v37  ;;  %10727 = vmatpush1.bf16.msra.mxu1 %v10726_v45  ;;  %v14210_v45 = vpack.c.bf16 %v4372_v20, %v4366_v12  ;;  %v14302_v20 = vpack.c.bf16 %v4400_v26, %v4394_v55 }
0x183c   :  { %10729 = vmatprep.subr.bf16.mxu1 %v10728_v47  ;;  %v4365_v47 = vld [vmem:[#allocation9 + $0x60] sm:$0xff] }
0x183d   :  { %v14216_v22 = vpack.c.bf16 %v4371_v23, %v4365_v47  ;;  %v4393_v47 = vld [vmem:[#allocation9 + $0x140] sm:$0xff]  ;;  %v4399_v23 = vld [vmem:[#allocation9 + $0x170] sm:$0xff] }
0x183e   :  { %9301 = vmatmul.mubr.msk.f32.gmra.mrb[60].mxu1 %vm750_vm9, %v13969_v18 }
0x183f   :  { %4040 = vmatprep.mubr.f32.mxu1 %v15718_v37 }
0x1849   :  { %v14176_v21 = vpop.permute.xlu1 %3930 }
0x184a   :  { %9302 = vmatmul.mubr.msk.f32.gmra.mrb[62].mxu1 %vm750_vm9, %v14176_v21 }
0x184b   :  { %4111 = vmatprep.mubr.f32.mxu1 %v15718_v37 }
0x184e   :  { %9303 = vmatmul.mubr.msk.f32.vlgmr.msra.gmra.mrb[64].mxu1 %vm750_vm9, %v15749_v58 }
0x184f   :  { %10731 = vmatpush1.bf16.msra.mxu1 %v10730_v31  ;;  %4117 = vmatprep.mubr.f32.mxu1 %v15718_v37  ;;  %v14219_v31 = vpack.c.bf16 %v4384_v30, %v4378_v62  ;;  %v4406_v62 = vld [vmem:[#allocation9 + $0x1a8] sm:$0xff]  ;;  %v4412_v30 = vld [vmem:[#allocation9 + $0x1d8] sm:$0xff] }
0x1850   :  { %10733 = vmatprep.subr.bf16.mxu1 %v10732_v38  ;;  %v4377_v38 = vld [vmem:[#allocation9 + $0xc0] sm:$0xff] }
0x1852   :  { %9304 = vmatmul.mubr.msk.f32.gmra.mrb[66].mxu1 %vm750_vm9, %v15750_v9 }
0x1853   :  { %10735 = vmatpush1.bf16.msra.mxu1 %v10734_v27  ;;  %4123 = vmatprep.mubr.f32.mxu1 %v15718_v37  ;;  %v4389_v27 = vld [vmem:[#allocation9 + $0x120] sm:$0xff] }
0x1854   :  { %10737 = vmatprep.subr.bf16.mxu1 %v10736_v10  ;;  %v4395_v10 = vld [vmem:[#allocation9 + $0x150] sm:$0xff] }
0x1856   :  { %9305 = vmatmul.mubr.msk.f32.gmra.mrb[68].mxu1 %vm750_vm9, %v15751_v43 }
0x1857   :  { %4129 = vmatprep.mubr.f32.mxu1 %v15718_v37  ;;  %10739 = vmatpush1.bf16.msra.mxu1 %v10738_v14  ;;  %v4407_v14 = vld [vmem:[#allocation9 + $0x1b0] sm:$0xff] }
0x1858   :  { %10741 = vmatprep.subr.bf16.mxu1 %v10740_v1  ;;  %v4414_v1 = vld [vmem:[#allocation9 + $0x1e8] sm:$0xff] }
0x1859   :  { %v14246_v39 = vpack.c.bf16 %v4420_v46, %v4414_v1  ;;  %v14341_v46 = vld [vmem:[%s15613_s6] sm:$0x3f] }
0x185a   :  { %9306 = vmatmul.mubr.msk.f32.gmra.mrb[70].mxu1 %vm750_vm9, %v15752_v51 }
0x185b   :  { %4135 = vmatprep.mubr.f32.mxu1 %v15718_v37  ;;  %10743 = vmatpush1.bf16.msra.mxu1 %v10742_v44  ;;  %v4363_v44 = vld [vmem:[#allocation9 + $0x50] sm:$0xff] }
0x185c   :  { %10745 = vmatprep.subr.bf16.mxu1 %v10744_v11  ;;  %v4370_v11 = vld [vmem:[#allocation9 + $0x88] sm:$0xff] }
0x185d   :  { %v14286_v25 = vpack.c.bf16 %v4376_v17, %v4370_v11  ;;  %v15757_v11 = vld [vmem:[#allocation21_spill] sm:$0xff] }
0x185e   :  { %9307 = vmatmul.mubr.msk.f32.gmra.mrb[72].mxu1 %vm750_vm9, %v15753_v36  ;;  %v4286_v17 = vrot.slane %v14341_v46, %v15757_v11  ;;  %v15768_v11 = vld [vmem:[#allocation32_spill] sm:$0xff] }
0x185f   :  { %4141 = vmatprep.mubr.f32.mxu1 %v15718_v37  ;;  %10747 = vmatpush1.bf16.msra.mxu1 %v10746_v33  ;;  %v4375_v33 = vld [vmem:[#allocation9 + $0xb0] sm:$0xff] }
0x1860   :  { %10749 = vmatprep.subr.bf16.mxu1 %v10748_v54  ;;  %v4382_v54 = vld [vmem:[#allocation9 + $0xe8] sm:$0xff]  ;;  %v14291_v29 = vpack.c.bf16 %v4375_v33, %v4369_v52 }
0x1861   :  { %v14294_v61 = vpack.c.bf16 %v4388_v57, %v4382_v54 }
0x1862   :  { %9308 = vmatmul.mubr.msk.f32.gmra.mrb[74].mxu1 %vm750_vm9, %v13866_v8 }
0x1863   :  { %4147 = vmatprep.mubr.f32.mxu1 %v15718_v37  ;;  %10751 = vmatpush1.bf16.msra.mxu1 %v10750_v2  ;;  %v4387_v2 = vld [vmem:[#allocation9 + $0x110] sm:$0xff] }
0x1864   :  { %10753 = vmatprep.subr.bf16.mxu1 %v14196_v19  ;;  %v14298_v12 = vpack.c.bf16 %v4387_v2, %v4381_v63 }
0x1866   :  { %9309 = vmatmul.mubr.msk.f32.gmra.mrb[76].mxu1 %vm750_vm9, %v13969_v18 }
0x1867   :  { %4153 = vmatprep.mubr.f32.mxu1 %v15718_v37 }
0x186a   :  { %9310 = vmatmul.mubr.msk.f32.gmra.mrb[78].mxu1 %vm750_vm9, %v14176_v21 }
0x186b   :  { %4224 = vmatprep.mubr.f32.mxu1 %v15718_v37 }
0x186e   :  { %9311 = vmatmul.mubr.msk.f32.vlgmr.msra.gmra.mrb[80].mxu1 %vm750_vm9, %v15749_v58  ;;  %v14225_v58 = vpack.c.bf16 %v4383_v40, %v4377_v38  ;;  %v14305_v38 = vpack.c.bf16 %v4399_v23, %v4393_v47  ;;  %v14308_v40 = vpack.c.bf16 %v4412_v30, %v4406_v62 }
0x186f   :  { %10755 = vmatpush1.bf16.msra.mxu1 %v14208_v32  ;;  %4230 = vmatprep.mubr.f32.mxu1 %v15718_v37 }
0x1870   :  { %10757 = vmatprep.subr.bf16.mxu1 %v14210_v45 }
0x1872   :  { %9312 = vmatmul.mubr.msk.f32.gmra.mrb[82].mxu1 %vm750_vm9, %v15750_v9  ;;  %v14234_v9 = vpack.c.bf16 %v4395_v10, %v4389_v27  ;;  %v4418_v27 = vld [vmem:[#allocation9 + $0x208] sm:$0xff]  ;;  %v4424_v10 = vld [vmem:[#allocation9 + $0x238] sm:$0xff] }
0x1873   :  { %10759 = vmatpush1.bf16.msra.mxu1 %v14216_v22  ;;  %4236 = vmatprep.mubr.f32.mxu1 %v15718_v37  ;;  %v14314_v48 = vpack.c.bf16 %v4424_v10, %v4418_v27 }
0x1874   :  { %10761 = vmatprep.subr.bf16.mxu1 %v14219_v31 }
0x1876   :  { %9313 = vmatmul.mubr.msk.f32.gmra.mrb[84].mxu1 %vm750_vm9, %v15751_v43  ;;  %v14243_v43 = vpack.c.bf16 %v4407_v14, %v4401_v4  ;;  %v4417_v4 = vld [vmem:[#allocation9 + $0x200] sm:$0xff]  ;;  %v4423_v14 = vld [vmem:[#allocation9 + $0x230] sm:$0xff] }
0x1877   :  { %4242 = vmatprep.mubr.f32.mxu1 %v15718_v37  ;;  %10763 = vmatpush1.bf16.msra.mxu1 %v14225_v58  ;;  %v14317_v1 = vpack.c.bf16 %v4423_v14, %v4417_v4 }
0x1878   :  { %10765 = vmatprep.subr.bf16.mxu1 %v14228_v3 }
0x187a   :  { %9314 = vmatmul.mubr.msk.f32.gmra.mrb[86].mxu1 %vm750_vm9, %v15752_v51  ;;  %v14252_v51 = vpack.c.bf16 %v4419_v15, %v4413_v7  ;;  %v15754_v7 = vld [vmem:[#allocation20_spill] sm:$0xff] }
0x187b   :  { %4248 = vmatprep.mubr.f32.mxu1 %v15718_v37  ;;  %10767 = vmatpush1.bf16.msra.mxu1 %v14234_v9  ;;  %v15755_v15 = vsub.s32 3, %v15754_v7 }
0x187c   :  { %10769 = vmatprep.subr.bf16.mxu1 %v14237_v28 }
0x187e   :  { %9315 = vmatmul.mubr.msk.f32.gmra.mrb[88].mxu1 %vm750_vm9, %v15753_v36 }
0x187f   :  { %4254 = vmatprep.mubr.f32.mxu1 %v15718_v37  ;;  %10771 = vmatpush1.bf16.msra.mxu1 %v14243_v43 }
0x1880   :  { %10773 = vmatprep.subr.bf16.mxu1 %v14246_v39 }
0x1882   :  { %9316 = vmatmul.mubr.msk.f32.gmra.mrb[90].mxu1 %vm750_vm9, %v13866_v8  ;;  %v4358_v8 = vld [vmem:[#allocation9 + $0x28] sm:$0xff] }
0x1883   :  { %4260 = vmatprep.mubr.f32.mxu1 %v15718_v37  ;;  %10775 = vmatpush1.bf16.msra.mxu1 %v14252_v51 }
0x1884   :  { %10777 = vmatprep.subr.bf16.mxu1 %v14100_v42 }
0x1886   :  { %9317 = vmatmul.mubr.msk.f32.gmra.mrb[92].mxu1 %vm750_vm9, %v13969_v18  ;;  %v4364_v18 = vld [vmem:[#allocation9 + $0x58] sm:$0xff] }
0x1887   :  { %4266 = vmatprep.mubr.f32.mxu1 %v15718_v37  ;;  %v14280_v36 = vpack.c.bf16 %v4364_v18, %v4358_v8  ;;  %v4290_v8 = vrot.slane %v14341_v46, %v15755_v15 }
0x188a   :  { %9318 = vmatmul.mubr.msk.f32.gmra.mrb[94].mxu1 %vm750_vm9, %v14176_v21  ;;  %v4357_v21 = vld [vmem:[#allocation9 + $0x20] sm:$0xff] }
0x188b   :  { %4489 = vmatprep.mubr.f32.mxu1 %v15718_v37  ;;  %v14283_v6 = vpack.c.bf16 %v4363_v44, %v4357_v21 }
0x188e   :  { %4490 = vmatmul.mubr.f32.vlgmr.msra.gmra.mrb[48].mxu1 %v15718_v37 }
0x188f   :  { %10779 = vmatpush1.bf16.msra.mxu1 %v14102_v35  ;;  %4495 = vmatprep.mubr.f32.mxu1 %v15718_v37 }
0x1890   :  { %10781 = vmatprep.subr.bf16.mxu1 %v14109_v16 }
0x1892   :  { %4496 = vmatmul.mubr.f32.gmra.mrb[96].mxu1 %v15718_v37 }
0x1893   :  { %10783 = vmatpush1.bf16.msra.mxu1 %v14113_v0  ;;  %4564 = vmatprep.mubr.f32.mxu1 %v15718_v37 }
0x1894   :  { %10785 = vmatprep.subr.bf16.mxu1 %v14117_v50 }
0x1897   :  { %10787 = vmatpush1.bf16.msra.mxu1 %v14122_v53 }
0x1898   :  { %10789 = vmatprep.subr.bf16.mxu1 %v14126_v59 }
0x189b   :  { %10791 = vmatpush1.bf16.msra.mxu1 %v14131_v13 }
0x189c   :  { %10793 = vmatprep.subr.bf16.mxu1 %v14135_v24 }
0x189f   :  { %10795 = vmatpush1.bf16.msra.mxu1 %v14140_v49 }
0x18a0   :  { %10797 = vmatprep.subr.bf16.mxu1 %v14144_v5 }
0x18a3   :  { %10799 = vmatpush1.bf16.msra.mxu1 %v14149_v60 }
0x18a4   :  { %10801 = vmatprep.subr.bf16.mxu1 %v14280_v36 }
0x18a6   :  { %4565 = vmatmul.mubr.f32.vlgmr.msra.gmra.mrb[98].mxu1 %v15718_v37 }
0x18a7   :  { %10803 = vmatpush1.bf16.msra.mxu1 %v14283_v6  ;;  %4569 = vmatprep.mubr.f32.mxu1 %v15718_v37 }
0x18a8   :  { %10805 = vmatprep.subr.bf16.mxu1 %v14286_v25 }
0x18aa   :  { %4570 = vmatmul.mubr.f32.gmra.mrb[100].mxu1 %v15718_v37 }
0x18ab   :  { %10807 = vmatpush1.bf16.msra.mxu1 %v14291_v29  ;;  %4639 = vmatprep.mubr.f32.mxu1 %v15718_v37 }
0x18ac   :  { %10809 = vmatprep.subr.bf16.mxu1 %v14294_v61 }
0x18af   :  { %10811 = vmatpush1.bf16.msra.mxu1 %v14298_v12 }
0x18b0   :  { %10813 = vmatprep.subr.bf16.mxu1 %v14302_v20 }
0x18b3   :  { %10815 = vmatpush1.bf16.msra.mxu1 %v14305_v38 }
0x18b4   :  { %10817 = vmatprep.subr.bf16.mxu1 %v14308_v40 }
0x18b7   :  { %10819 = vmatpush1.bf16.msra.mxu1 %v14311_v34 }
0x18b8   :  { %10821 = vmatprep.subr.bf16.mxu1 %v14314_v48 }
0x18bb   :  { %10823 = vmatpush1.bf16.msra.mxu1 %v14317_v1 }
0x18bc   :  { %10825 = vmatprep.subr.bf16.mxu1 %v14196_v19 }
0x18be   :  { %4640 = vmatmul.mubr.f32.vlgmr.msra.gmra.mrb[102].mxu1 %v15718_v37 }
0x18bf   :  { %4643 = vmatprep.mubr.f32.mxu1 %v15718_v37  ;;  %10827 = vmatpush1.bf16.msra.mxu1 %v14208_v32 }
0x18c0   :  { %10829 = vmatprep.subr.bf16.mxu1 %v14210_v45 }
0x18c2   :  { %4644 = vmatmul.mubr.f32.gmra.mrb[94].mxu1 %v15718_v37 }
0x18c3   :  { %10831 = vmatpush1.bf16.msra.mxu1 %v14216_v22  ;;  %4826 = vmatprep.mubr.f32.mxu1 %v15718_v37 }
0x18c4   :  { %10833 = vmatprep.subr.bf16.mxu1 %v14219_v31 }
0x18c7   :  { %10835 = vmatpush1.bf16.msra.mxu1 %v14225_v58 }
0x18c8   :  { %10837 = vmatprep.subr.bf16.mxu1 %v14228_v3 }
0x18cb   :  { %10839 = vmatpush1.bf16.msra.mxu1 %v14234_v9 }
0x18cc   :  { %10841 = vmatprep.subr.bf16.mxu1 %v14237_v28 }
0x18cf   :  { %10843 = vmatpush1.bf16.msra.mxu1 %v14243_v43 }
0x18d0   :  { %10845 = vmatprep.subr.bf16.mxu1 %v14246_v39 }
0x18d3   :  { %10847 = vmatpush1.bf16.msra.mxu1 %v14252_v51 }
0x18d4   :  { %10873 = vmatprep.subr.bf16.mxu1 %v14280_v36 }
0x1921   :  { %v4113_v18 = vpop.f32.mrb[64].mxu1 }
0x1922   :  { %v4115_v21 = vpop.f32.mrb[65].mxu1 }
0x1923   :  { %v14346_v44 = vadd.f32 %v4290_v8, %v4115_v21 }
0x1925   :  { %15756 = vst [vmem:[#allocation29_spill] sm:$0xff] %v14346_v44  ;;  %v4119_v52 = vpop.f32.mrb[66].mxu1 }
0x1926   :  { %v14350_v33 = vadd.f32 %v4286_v17, %v4119_v52  ;;  %v4121_v54 = vpop.f32.mrb[67].mxu1 }
0x1927   :  { %v14352_v57 = vadd.f32 %v4290_v8, %v4121_v54 }
0x1929   :  { %15758 = vst [vmem:[#allocation24_spill] sm:$0xff] %v14352_v57  ;;  %v4125_v63 = vpop.f32.mrb[68].mxu1 }
0x192a   :  { %v14354_v2 = vadd.f32 %v4286_v17, %v4125_v63  ;;  %v4127_v55 = vpop.f32.mrb[69].mxu1 }
0x192b   :  { %v14356_v26 = vadd.f32 %v4290_v8, %v4127_v55 }
0x192d   :  { %15759 = vst [vmem:[#allocation36_spill] sm:$0xff] %v14356_v26  ;;  %v4131_v47 = vpop.f32.mrb[70].mxu1 }
0x192e   :  { %v14358_v23 = vadd.f32 %v4286_v17, %v4131_v47  ;;  %v4133_v62 = vpop.f32.mrb[71].mxu1 }
0x192f   :  { %v14360_v30 = vadd.f32 %v4290_v8, %v4133_v62 }
0x1930   :  { %15760 = vst [vmem:[#allocation30_spill] sm:$0xff] %v14358_v23 }
0x1931   :  { %15761 = vst [vmem:[#allocation23_spill] sm:$0xff] %v14360_v30  ;;  %v4137_v56 = vpop.f32.mrb[72].mxu1 }
0x1932   :  { %v14362_v41 = vadd.f32 %v4286_v17, %v4137_v56  ;;  %v4139_v27 = vpop.f32.mrb[73].mxu1 }
0x1933   :  { %v14364_v10 = vadd.f32 %v4290_v8, %v4139_v27  ;;  %v14378_v27 = vrot.slane %v14341_v46, %v15768_v11 }
0x1934   :  { %15762 = vst [vmem:[#allocation31_spill] sm:$0xff] %v14362_v41 }
0x1935   :  { %15763 = vst [vmem:[#allocation22_spill] sm:$0xff] %v14364_v10  ;;  %v4143_v4 = vpop.f32.mrb[74].mxu1 }
0x1936   :  { %v14366_v14 = vadd.f32 %v4286_v17, %v4143_v4  ;;  %v4145_v15 = vpop.f32.mrb[75].mxu1 }
0x1937   :  { %v14368_v21 = vadd.f32 %v4290_v8, %v4145_v15 }
0x1938   :  { %15764 = vst [vmem:[#allocation26_spill] sm:$0xff] %v14366_v14 }
0x1939   :  { %15765 = vst [vmem:[#allocation28_spill] sm:$0xff] %v14368_v21  ;;  %v4149_v52 = vpop.f32.mrb[76].mxu1 }
0x193a   :  { %v14370_v54 = vadd.f32 %v4286_v17, %v4149_v52  ;;  %v4151_v63 = vpop.f32.mrb[77].mxu1 }
0x193b   :  { %v14372_v55 = vadd.f32 %v4290_v8, %v4151_v63  ;;  %v4307_v63 = vadd.f32 %v4286_v17, %v4113_v18  ;;  %v15770_v18 = vsub.s32 5, %v15754_v7 }
0x193c   :  { %15766 = vst [vmem:[#allocation34_spill] sm:$0xff] %v14370_v54 }
0x193d   :  { %v4155_v47 = vpop.f32.mrb[78].mxu1 }
0x193e   :  { %v14374_v62 = vadd.f32 %v4286_v17, %v4155_v47  ;;  %v4157_v56 = vpop.f32.mrb[79].mxu1  ;;  %v14394_v17 = vrot.slane %v14341_v46, %v15770_v18 }
0x1940   :  { %15767 = vst [vmem:[#allocation40_spill] sm:$0xff] %v14374_v62  ;;  %v4350_v62 = vadd.f32 %v4290_v8, %v4157_v56  ;;  %15771 = vst [vmem:[#allocation38_spill] sm:$0xff] %v14394_v17 }
0x1961   :  { %v4491_v44 = vpop.f32.mrb[48].mxu1 }
0x1962   :  { %v4493_v4 = vpop.f32.mrb[49].mxu1 }
0x1963   :  { %v11637_v57 = vadd.f32 %v4493_v4, %v14378_v27 }
0x1965   :  { %12125 = vtanh.f32 %v11637_v57  ;;  %v4497_v15 = vpop.f32.mrb[96].mxu1 }
0x1966   :  { %v4498_v26 = vpop.f32.mrb[97].mxu1 }
0x1967   :  { %v15769_v26 = vsub.s32 4, %v15754_v7  ;;  %v15772_v7 = vld [vmem:[#allocation35_spill] sm:$0xff] }
0x1968   :  { %v14405_v56 = vrot.slane %v14341_v46, %v15772_v7 }
0x196a   :  { %15773 = vst [vmem:[#allocation37_spill] sm:$0xff] %v14405_v56 }
0x196f   :  { %v12126_v52 = vpop.eup %12125 }
0x1970   :  { %4704 = vrot.lane.b32.xlu0 %v12126_v52, %s12694_s2  ;;  %v14389_v52 = vrot.slane %v14341_v46, %v15769_v26 }
0x1979   :  { %v4566_v54 = vpop.f32.mrb[98].mxu1 }
0x197a   :  { %v14382_v14 = vadd.f32 %v4566_v54, %v4307_v63  ;;  %v4568_v47 = vpop.f32.mrb[99].mxu1  ;;  %v11636_v63 = vadd.f32 %v4491_v44, %v14405_v56 }
0x197c   :  { %12127 = vtanh.f32 %v14382_v14  ;;  %v9319_v47 = vmul.f32 -1.442695, %v11636_v63 }
0x197d   :  { %v4571_v11 = vpop.f32.mrb[100].mxu1 }
0x197e   :  { %v4572_v30 = vpop.f32.mrb[101].mxu1 }
0x197f   :  { %v4653_v41 = vadd.f32 %v4572_v30, %v4350_v62 }
0x1981   :  { %v9321_v26 = vmul.f32 -1.442695, %v4653_v41  ;;  %v9320_v41 = vmul.f32 -1.442695, %v11637_v57 }
0x1986   :  { %v12128_v10 = vpop.eup %12127 }
0x1987   :  { %4706 = vrot.lane.b32.xlu1 %v12128_v10, %s12694_s2 }
0x1991   :  { %v4641_v4 = vpop.f32.mrb[102].mxu1 }
0x1992   :  { %v4642_v15 = vpop.f32.mrb[103].mxu1 }
0x1995   :  { %v4645_v54 = vpop.f32.mrb[94].mxu1 }
0x1996   :  { %v11666_v8 = vadd.f32 %v4645_v54, %v14389_v52  ;;  %v4647_v11 = vpop.f32.mrb[95].mxu1 }
0x1997   :  { %v14398_v30 = vadd.f32 %v4647_v11, %v14394_v17 }
0x1998   :  { %12129 = vtanh.f32 %v11666_v8 }
0x1999   :  { %12131 = vtanh.f32 %v14398_v30 }
0x199a   :  { %12133 = vpow2.f32 %v9319_v47 }
0x19a2   :  { %v12130_v10 = vpop.eup %12129 }
0x19a3   :  { %v12132_v62 = vpop.eup %12131  ;;  %4708 = vrot.lane.b32.xlu0 %v12130_v10, %s12694_s2 }
0x19a4   :  { %4710 = vrot.lane.b32.xlu1 %v12132_v62, %s12694_s2  ;;  %v12134_v4 = vpop.eup %12133 }
0x19a5   :  { %v4668_v15 = vadd.f32 1.0, %v12134_v4 }
0x19a7   :  { %12135 = vrcp.f32 %v4668_v15 }
0x19a8   :  { %12137 = vpow2.f32 %v9321_v26 }
0x19b1   :  { %v12136_v11 = vpop.eup %12135 }
0x19b2   :  { %v12138_v62 = vpop.eup %12137 }
0x19b3   :  { %v4670_v46 = vadd.f32 1.0, %v12138_v62 }
0x19b5   :  { %12139 = vrcp.f32 %v4670_v46 }
0x19b6   :  { %12141 = vpow2.f32 %v9320_v41 }
0x19bf   :  { %v12140_v63 = vpop.eup %12139 }
0x19c0   :  { %v12142_v15 = vpop.eup %12141 }
0x19c1   :  { %v4669_v21 = vadd.f32 1.0, %v12142_v15 }
0x19c3   :  { %12143 = vrcp.f32 %v4669_v21 }
0x19cd   :  { %v12144_v26 = vpop.eup %12143 }
0x19e2   :  { %v4705_v18 = vpop.permute.xlu0 %4704 }
0x19f9   :  { %v4707_v54 = vpop.permute.xlu1 %4706 }
0x19fa   :  { %v4712_v23 = vsel %vm1041_vm8, %v4705_v18, %v4707_v54  ;;  %v4696_v18 = vmul.f32 0.0, %v12136_v11  ;;  %v4697_v54 = vmul.f32 0.0, %v12144_v26 }
0x19fb   :  { %v4716_v10 = vmul.f32 %v12136_v11, %v4712_v23  ;;  %v9322_v23 = vmul.f32 -1.442695, %v11666_v8  ;;  %v4698_v11 = vmul.f32 0.0, %v12140_v63 }
0x19fd   :  { %4720 = vrot.lane.b32.xlu0 %v4716_v10, %s12695_s20  ;;  %12145 = vpow2.f32 %v9322_v23 }
0x1a15   :  { %v4709_v7 = vpop.permute.xlu0 %4708 }
0x1a16   :  { %v4711_v44 = vpop.permute.xlu1 %4710 }
0x1a17   :  { %v4713_v47 = vsel %vm1041_vm8, %v4709_v7, %v4711_v44  ;;  %v12146_v7 = vpop.eup %12145 }
0x1a18   :  { %v4717_v4 = vmul.f32 %v12140_v63, %v4713_v47  ;;  %v4671_v57 = vadd.f32 1.0, %v12146_v7 }
0x1a1a   :  { %4722 = vrot.lane.b32.xlu1 %v4717_v4, %s12695_s20 }
0x1a6f   :  { %v4721_v10 = vpop.permute.xlu0 %4720 }
0x1a70   :  { %v14412_v62 = vadd.f32 %v4721_v10, %v4696_v18  ;;  %v14414_v46 = vadd.f32 %v4721_v10, %v4697_v54  ;;  %v9323_v18 = vmul.f32 -1.442695, %v14382_v14  ;;  %v9324_v10 = vmul.f32 -1.442695, %v14398_v30 }
0x1a72   :  { %12147 = vtanh.f32 %v14412_v62 }
0x1a73   :  { %12149 = vtanh.f32 %v14414_v46 }
0x1a74   :  { %12151 = vrcp.f32 %v4671_v57 }
0x1a7c   :  { %v12148_v44 = vpop.eup %12147 }
0x1a7d   :  { %v12150_v47 = vpop.eup %12149  ;;  %4738 = vrot.lane.b32.xlu0 %v12148_v44, %s12694_s2 }
0x1a7e   :  { %4740 = vrot.lane.b32.xlu1 %v12150_v47, %s12694_s2  ;;  %v12152_v21 = vpop.eup %12151 }
0x1a7f   :  { %v4699_v8 = vmul.f32 0.0, %v12152_v21 }
0x1a8c   :  { %v4723_v4 = vpop.permute.xlu1 %4722 }
0x1a8d   :  { %v14420_v41 = vadd.f32 %v4723_v4, %v4698_v11  ;;  %v14422_v15 = vadd.f32 %v4723_v4, %v4699_v8 }
0x1a8f   :  { %12153 = vtanh.f32 %v14420_v41 }
0x1a90   :  { %12155 = vtanh.f32 %v14422_v15 }
0x1a91   :  { %12157 = vpow2.f32 %v9323_v18 }
0x1a99   :  { %v12154_v23 = vpop.eup %12153 }
0x1a9a   :  { %v12156_v26 = vpop.eup %12155  ;;  %4742 = vrot.lane.b32.xlu0 %v12154_v23, %s12694_s2 }
0x1a9b   :  { %4744 = vrot.lane.b32.xlu1 %v12156_v26, %s12694_s2  ;;  %v12158_v54 = vpop.eup %12157 }
0x1a9c   :  { %v4690_v63 = vadd.f32 1.0, %v12158_v54 }
0x1a9e   :  { %12159 = vrcp.f32 %v4690_v63 }
0x1a9f   :  { %12161 = vpow2.f32 %v9324_v10 }
0x1aa8   :  { %v12160_v44 = vpop.eup %12159 }
0x1aa9   :  { %v12162_v8 = vpop.eup %12161 }
0x1aaa   :  { %v4691_v11 = vadd.f32 1.0, %v12162_v8 }
0x1aac   :  { %12163 = vrcp.f32 %v4691_v11 }
0x1ab6   :  { %v12164_v23 = vpop.eup %12163 }
0x1aef   :  { %v4739_v7 = vpop.permute.xlu0 %4738 }
0x1af0   :  { %v4741_v57 = vpop.permute.xlu1 %4740 }
0x1af1   :  { %v4746_v47 = vsel %vm1041_vm8, %v4739_v7, %v4741_v57 }
0x1af2   :  { %v14431_v21 = vmul.f32 %v12160_v44, %v4746_v47 }
0x1af4   :  { %15774 = vst [vmem:[#allocation39_spill] sm:$0xff] %v14431_v21  ;;  %4754 = vrot.lane.b32.xlu0 %v14431_v21, %s12695_s20 }
0x1b0c   :  { %v4743_v14 = vpop.permute.xlu0 %4742 }
0x1b0d   :  { %v4745_v4 = vpop.permute.xlu1 %4744 }
0x1b0e   :  { %v4747_v26 = vsel %vm1041_vm8, %v4743_v14, %v4745_v4 }
0x1b0f   :  { %v14436_v30 = vmul.f32 %v12164_v23, %v4747_v26 }
0x1b11   :  { %15775 = vst [vmem:[#allocation33_spill] sm:$0xff] %v14436_v30  ;;  %4756 = vrot.lane.b32.xlu1 %v14436_v30, %s12695_s20 }
0x1b66   :  { %v14440_v18 = vpop.permute.xlu0 %4754 }
0x1b67   :  { %15776 = vst [vmem:[#allocation25_spill] sm:$0xff] %v14440_v18  ;;  %9325 = vmatmul.mubr.msk.f32.vlgmr.msra.gmra.mrb[50].mxu1 %vm750_vm9, %v14440_v18  ;;  %9327 = vmatmul.mubr.msk.f32.vlgmr.msra.gmra.mrb[64].mxu0 %vm750_vm9, %v14440_v18 }
0x1b68   :  { %10875 = vmatpush1.bf16.msra.mxu1 %v14283_v6  ;;  %4832 = vmatprep.mubr.f32.mxu1 %v15718_v37 }
0x1b69   :  { %10877 = vmatprep.subr.bf16.mxu1 %v14286_v25  ;;  %4906 = vmatprep.mubr.f32.mxu0 %v15718_v37 }
0x1b6a   :  { %10923 = vmatpush1.bf16.msra.mxu0 %v14102_v35 }
0x1b6b   :  { %10925 = vmatprep.subr.bf16.mxu0 %v14109_v16 }
0x1b6c   :  { %10879 = vmatpush1.bf16.msra.mxu1 %v14291_v29 }
0x1b6d   :  { %10881 = vmatprep.subr.bf16.mxu1 %v14294_v61 }
0x1b6e   :  { %10927 = vmatpush1.bf16.msra.mxu0 %v14113_v0 }
0x1b6f   :  { %10929 = vmatprep.subr.bf16.mxu0 %v14117_v50 }
0x1b70   :  { %10883 = vmatpush1.bf16.msra.mxu1 %v14298_v12 }
0x1b71   :  { %10885 = vmatprep.subr.bf16.mxu1 %v14302_v20 }
0x1b72   :  { %10931 = vmatpush1.bf16.msra.mxu0 %v14122_v53 }
0x1b73   :  { %10933 = vmatprep.subr.bf16.mxu0 %v14126_v59 }
0x1b74   :  { %10887 = vmatpush1.bf16.msra.mxu1 %v14305_v38 }
0x1b75   :  { %10889 = vmatprep.subr.bf16.mxu1 %v14308_v40 }
0x1b76   :  { %10935 = vmatpush1.bf16.msra.mxu0 %v14131_v13 }
0x1b77   :  { %10937 = vmatprep.subr.bf16.mxu0 %v14135_v24 }
0x1b78   :  { %10891 = vmatpush1.bf16.msra.mxu1 %v14311_v34 }
0x1b79   :  { %10893 = vmatprep.subr.bf16.mxu1 %v14314_v48 }
0x1b7a   :  { %10939 = vmatpush1.bf16.msra.mxu0 %v14140_v49 }
0x1b7b   :  { %10941 = vmatprep.subr.bf16.mxu0 %v14144_v5 }
0x1b7c   :  { %10895 = vmatpush1.bf16.msra.mxu1 %v14317_v1 }
0x1b7d   :  { %10897 = vmatprep.subr.bf16.mxu1 %v14196_v19 }
0x1b7e   :  { %10943 = vmatpush1.bf16.msra.mxu0 %v14149_v60 }
0x1b7f   :  { %10993 = vmatprep.subr.bf16.mxu0 %v14100_v42 }
0x1b83   :  { %v14472_v54 = vpop.permute.xlu1 %4756 }
0x1b84   :  { %15777 = vst [vmem:[#allocation27_spill] sm:$0xff] %v14472_v54  ;;  %9326 = vmatmul.mubr.msk.f32.gmra.mrb[104].mxu1 %vm750_vm9, %v14472_v54  ;;  %9328 = vmatmul.mubr.msk.f32.gmra.mrb[66].mxu0 %vm750_vm9, %v14472_v54 }
0x1b85   :  { %4976 = vmatprep.mubr.f32.mxu1 %v15718_v37  ;;  %5238 = vmatprep.mubr.f32.mxu0 %v15718_v37 }
0x1b88   :  { %9329 = vmatmul.mubr.msk.f32.vlgmr.msra.gmra.mrb[106].mxu1 %vm750_vm9, %v14440_v18 }
0x1b89   :  { %4980 = vmatprep.mubr.f32.mxu1 %v15718_v37  ;;  %10899 = vmatpush1.bf16.msra.mxu1 %v14208_v32 }
0x1b8a   :  { %10901 = vmatprep.subr.bf16.mxu1 %v14210_v45 }
0x1b8c   :  { %9330 = vmatmul.mubr.msk.f32.gmra.mrb[92].mxu1 %vm750_vm9, %v14472_v54 }
0x1b8d   :  { %10903 = vmatpush1.bf16.msra.mxu1 %v14216_v22  ;;  %5163 = vmatprep.mubr.f32.mxu1 %v15718_v37 }
0x1b8e   :  { %10905 = vmatprep.subr.bf16.mxu1 %v14219_v31 }
0x1b91   :  { %10907 = vmatpush1.bf16.msra.mxu1 %v14225_v58 }
0x1b92   :  { %10909 = vmatprep.subr.bf16.mxu1 %v14228_v3 }
0x1b95   :  { %10911 = vmatpush1.bf16.msra.mxu1 %v14234_v9 }
0x1b96   :  { %10913 = vmatprep.subr.bf16.mxu1 %v14237_v28 }
0x1b99   :  { %10915 = vmatpush1.bf16.msra.mxu1 %v14243_v43 }
0x1b9a   :  { %10917 = vmatprep.subr.bf16.mxu1 %v14246_v39 }
0x1b9d   :  { %10919 = vmatpush1.bf16.msra.mxu1 %v14252_v51 }
0x1b9e   :  { %10945 = vmatprep.subr.bf16.mxu1 %v14280_v36 }
0x1c3a   :  { %v4828_v63 = vpop.f32.mrb[50].mxu1  ;;  %v4903_v10 = vpop.f32.mrb[64].mxu0 }
0x1c3b   :  { %v14499_v7 = vadd.f32 %v4903_v10, %v14350_v33  ;;  %v4830_v57 = vpop.f32.mrb[51].mxu1  ;;  %v4905_v44 = vpop.f32.mrb[65].mxu0 }
0x1c3c   :  { %v11639_v47 = vadd.f32 %v4830_v57, %v14378_v27 }
0x1c3d   :  { %12165 = vtanh.f32 %v14499_v7 }
0x1c3e   :  { %12167 = vtanh.f32 %v11639_v47 }
0x1c47   :  { %v12166_v8 = vpop.eup %12165 }
0x1c48   :  { %v12168_v11 = vpop.eup %12167  ;;  %5043 = vrot.lane.b32.xlu1 %v12166_v8, %s12694_s2 }
0x1c49   :  { %5041 = vrot.lane.b32.xlu0 %v12168_v11, %s12694_s2 }
0x1c57   :  { %v4834_v14 = vpop.f32.mrb[104].mxu1  ;;  %v4908_v4 = vpop.f32.mrb[66].mxu0 }
0x1c58   :  { %v4835_v23 = vpop.f32.mrb[105].mxu1  ;;  %v4909_v26 = vpop.f32.mrb[67].mxu0 }
0x1c59   :  { %v4990_v33 = vadd.f32 %v4909_v26, %v14372_v55  ;;  %v11638_v55 = vadd.f32 %v4828_v63, %v14405_v56 }
0x1c5b   :  { %v4978_v10 = vpop.f32.mrb[106].mxu1  ;;  %v9331_v14 = vmul.f32 -1.442695, %v11638_v55  ;;  %v9333_v21 = vmul.f32 -1.442695, %v4990_v33 }
0x1c5c   :  { %v4979_v18 = vpop.f32.mrb[107].mxu1 }
0x1c5f   :  { %v4982_v44 = vpop.f32.mrb[92].mxu1 }
0x1c60   :  { %v11664_v57 = vadd.f32 %v4982_v44, %v14389_v52  ;;  %v4984_v54 = vpop.f32.mrb[93].mxu1 }
0x1c61   :  { %v14508_v30 = vadd.f32 %v4984_v54, %v14394_v17 }
0x1c62   :  { %12169 = vtanh.f32 %v11664_v57 }
0x1c63   :  { %12171 = vtanh.f32 %v14508_v30 }
0x1c64   :  { %12173 = vpow2.f32 %v9331_v14 }
0x1c6c   :  { %v12170_v8 = vpop.eup %12169 }
0x1c6d   :  { %v12172_v11 = vpop.eup %12171  ;;  %5045 = vrot.lane.b32.xlu0 %v12170_v8, %s12694_s2 }
0x1c6e   :  { %5047 = vrot.lane.b32.xlu1 %v12172_v11, %s12694_s2  ;;  %v12174_v18 = vpop.eup %12173 }
0x1c6f   :  { %v5005_v4 = vadd.f32 1.0, %v12174_v18 }
0x1c71   :  { %12175 = vrcp.f32 %v5005_v4  ;;  %v9332_v4 = vmul.f32 -1.442695, %v11639_v47 }
0x1c72   :  { %12177 = vpow2.f32 %v9333_v21 }
0x1c7b   :  { %v12176_v54 = vpop.eup %12175 }
0x1c7c   :  { %v12178_v8 = vpop.eup %12177  ;;  %v5033_v33 = vmul.f32 %v12176_v54, %v14412_v62 }
0x1c7d   :  { %v5007_v17 = vadd.f32 1.0, %v12178_v8  ;;  %v9334_v8 = vmul.f32 -1.442695, %v11664_v57 }
0x1c7f   :  { %12179 = vrcp.f32 %v5007_v17 }
0x1c80   :  { %12181 = vpow2.f32 %v9332_v4 }
0x1c89   :  { %v12180_v55 = vpop.eup %12179 }
0x1c8a   :  { %v12182_v56 = vpop.eup %12181 }
0x1cba   :  { %v5044_v23 = vpop.permute.xlu1 %5043 }
0x1cbb   :  { %v5042_v26 = vpop.permute.xlu0 %5041 }
0x1cbc   :  { %v5049_v10 = vsel %vm1041_vm8, %v5042_v26, %v5044_v23  ;;  %v5006_v23 = vadd.f32 1.0, %v12182_v56 }
0x1cbd   :  { %v5053_v44 = vmul.f32 %v12176_v54, %v5049_v10  ;;  %v5035_v54 = vmul.f32 %v12180_v55, %v14420_v41 }
0x1cbe   :  { %12183 = vrcp.f32 %v5006_v23 }
0x1cbf   :  { %5057 = vrot.lane.b32.xlu0 %v5053_v44, %s12695_s20 }
0x1cc8   :  { %v12184_v26 = vpop.eup %12183 }
0x1cc9   :  { %v5034_v21 = vmul.f32 %v12184_v26, %v14414_v46  ;;  %v9335_v26 = vmul.f32 -1.442695, %v14499_v7 }
0x1cdf   :  { %v5046_v11 = vpop.permute.xlu0 %5045 }
0x1ce0   :  { %v5048_v63 = vpop.permute.xlu1 %5047 }
0x1ce1   :  { %v5050_v14 = vsel %vm1041_vm8, %v5046_v11, %v5048_v63 }
0x1ce2   :  { %v5054_v18 = vmul.f32 %v12180_v55, %v5050_v14 }
0x1ce4   :  { %5059 = vrot.lane.b32.xlu1 %v5054_v18, %s12695_s20 }
0x1d31   :  { %v5058_v10 = vpop.permute.xlu0 %5057 }
0x1d32   :  { %v14520_v17 = vadd.f32 %v5058_v10, %v5033_v33  ;;  %v14522_v44 = vadd.f32 %v5058_v10, %v5034_v21 }
0x1d34   :  { %12185 = vtanh.f32 %v14520_v17 }
0x1d35   :  { %12187 = vtanh.f32 %v14522_v44 }
0x1d36   :  { %12189 = vpow2.f32 %v9334_v8 }
0x1d3e   :  { %v12186_v47 = vpop.eup %12185 }
0x1d3f   :  { %v12188_v11 = vpop.eup %12187  ;;  %5075 = vrot.lane.b32.xlu0 %v12186_v47, %s12694_s2  ;;  %v9336_v47 = vmul.f32 -1.442695, %v14508_v30 }
0x1d40   :  { %5077 = vrot.lane.b32.xlu1 %v12188_v11, %s12694_s2  ;;  %v12190_v56 = vpop.eup %12189 }
0x1d41   :  { %v5008_v62 = vadd.f32 1.0, %v12190_v56 }
0x1d43   :  { %12191 = vrcp.f32 %v5008_v62 }
0x1d4d   :  { %v12192_v46 = vpop.eup %12191 }
0x1d4e   :  { %v5036_v63 = vmul.f32 %v12192_v46, %v14422_v15 }
0x1d56   :  { %v5060_v57 = vpop.permute.xlu1 %5059 }
0x1d57   :  { %v14530_v14 = vadd.f32 %v5060_v57, %v5035_v54  ;;  %v14532_v18 = vadd.f32 %v5060_v57, %v5036_v63 }
0x1d59   :  { %12193 = vtanh.f32 %v14530_v14 }
0x1d5a   :  { %12195 = vtanh.f32 %v14532_v18 }
0x1d5b   :  { %12197 = vpow2.f32 %v9335_v26 }
0x1d63   :  { %v12194_v4 = vpop.eup %12193 }
0x1d64   :  { %v12196_v23 = vpop.eup %12195  ;;  %5079 = vrot.lane.b32.xlu0 %v12194_v4, %s12694_s2 }
0x1d65   :  { %5081 = vrot.lane.b32.xlu1 %v12196_v23, %s12694_s2  ;;  %v12198_v41 = vpop.eup %12197 }
0x1d66   :  { %v5027_v15 = vadd.f32 1.0, %v12198_v41 }
0x1d68   :  { %12199 = vrcp.f32 %v5027_v15 }
0x1d69   :  { %12201 = vpow2.f32 %v9336_v47 }
0x1d72   :  { %v12200_v21 = vpop.eup %12199 }
0x1d73   :  { %v12202_v11 = vpop.eup %12201 }
0x1d74   :  { %v5028_v56 = vadd.f32 1.0, %v12202_v11 }
0x1d76   :  { %12203 = vrcp.f32 %v5028_v56 }
0x1d80   :  { %v12204_v46 = vpop.eup %12203 }
0x1db1   :  { %v5076_v55 = vpop.permute.xlu0 %5075 }
0x1db2   :  { %v5078_v33 = vpop.permute.xlu1 %5077 }
0x1db3   :  { %v5083_v10 = vsel %vm1041_vm8, %v5076_v55, %v5078_v33 }
0x1db4   :  { %v14540_v8 = vmul.f32 %v12200_v21, %v5083_v10 }
0x1db6   :  { %15778 = vst [vmem:[#allocation20_spill] sm:$0xff] %v14540_v8  ;;  %5091 = vrot.lane.b32.xlu0 %v14540_v8, %s12695_s20 }
0x1dd6   :  { %v5080_v7 = vpop.permute.xlu0 %5079 }
0x1dd7   :  { %v5082_v62 = vpop.permute.xlu1 %5081 }
0x1dd8   :  { %v5084_v54 = vsel %vm1041_vm8, %v5080_v7, %v5082_v62  ;;  %v15782_v7 = vld [vmem:[#allocation28_spill] sm:$0xff] }
0x1dd9   :  { %v14546_v63 = vmul.f32 %v12204_v46, %v5084_v54 }
0x1ddb   :  { %15779 = vst [vmem:[#allocation41_spill] sm:$0xff] %v14546_v63  ;;  %5093 = vrot.lane.b32.xlu1 %v14546_v63, %s12695_s20 }
0x1e28   :  { %v14550_v57 = vpop.permute.xlu0 %5091 }
0x1e29   :  { %15780 = vst [vmem:[#allocation42_spill] sm:$0xff] %v14550_v57  ;;  %9337 = vmatmul.mubr.msk.f32.vlgmr.msra.gmra.mrb[52].mxu1 %vm750_vm9, %v14550_v57  ;;  %9339 = vmatmul.mubr.msk.f32.vlgmr.msra.gmra.mrb[68].mxu0 %vm750_vm9, %v14550_v57 }
0x1e2a   :  { %10947 = vmatpush1.bf16.msra.mxu1 %v14283_v6  ;;  %5169 = vmatprep.mubr.f32.mxu1 %v15718_v37 }
0x1e2b   :  { %10949 = vmatprep.subr.bf16.mxu1 %v14286_v25  ;;  %5243 = vmatprep.mubr.f32.mxu0 %v15718_v37 }
0x1e2c   :  { %10995 = vmatpush1.bf16.msra.mxu0 %v14102_v35 }
0x1e2d   :  { %10997 = vmatprep.subr.bf16.mxu0 %v14109_v16 }
0x1e2e   :  { %10951 = vmatpush1.bf16.msra.mxu1 %v14291_v29 }
0x1e2f   :  { %10953 = vmatprep.subr.bf16.mxu1 %v14294_v61 }
0x1e30   :  { %10999 = vmatpush1.bf16.msra.mxu0 %v14113_v0 }
0x1e31   :  { %11001 = vmatprep.subr.bf16.mxu0 %v14117_v50 }
0x1e32   :  { %10955 = vmatpush1.bf16.msra.mxu1 %v14298_v12 }
0x1e33   :  { %10957 = vmatprep.subr.bf16.mxu1 %v14302_v20 }
0x1e34   :  { %11003 = vmatpush1.bf16.msra.mxu0 %v14122_v53 }
0x1e35   :  { %11005 = vmatprep.subr.bf16.mxu0 %v14126_v59 }
0x1e36   :  { %10959 = vmatpush1.bf16.msra.mxu1 %v14305_v38 }
0x1e37   :  { %10961 = vmatprep.subr.bf16.mxu1 %v14308_v40 }
0x1e38   :  { %11007 = vmatpush1.bf16.msra.mxu0 %v14131_v13 }
0x1e39   :  { %11009 = vmatprep.subr.bf16.mxu0 %v14135_v24 }
0x1e3a   :  { %10963 = vmatpush1.bf16.msra.mxu1 %v14311_v34 }
0x1e3b   :  { %10965 = vmatprep.subr.bf16.mxu1 %v14314_v48 }
0x1e3c   :  { %11011 = vmatpush1.bf16.msra.mxu0 %v14140_v49 }
0x1e3d   :  { %11013 = vmatprep.subr.bf16.mxu0 %v14144_v5 }
0x1e3e   :  { %10967 = vmatpush1.bf16.msra.mxu1 %v14317_v1 }
0x1e3f   :  { %10969 = vmatprep.subr.bf16.mxu1 %v14196_v19 }
0x1e40   :  { %11015 = vmatpush1.bf16.msra.mxu0 %v14149_v60 }
0x1e41   :  { %11065 = vmatprep.subr.bf16.mxu0 %v14100_v42 }
0x1e4d   :  { %v14582_v30 = vpop.permute.xlu1 %5093 }
0x1e4e   :  { %15781 = vst [vmem:[#allocation43_spill] sm:$0xff] %v14582_v30  ;;  %9338 = vmatmul.mubr.msk.f32.gmra.mrb[108].mxu1 %vm750_vm9, %v14582_v30  ;;  %9340 = vmatmul.mubr.msk.f32.gmra.mrb[70].mxu0 %vm750_vm9, %v14582_v30 }
0x1e4f   :  { %5313 = vmatprep.mubr.f32.mxu1 %v15718_v37  ;;  %5575 = vmatprep.mubr.f32.mxu0 %v15718_v37 }
0x1e52   :  { %9341 = vmatmul.mubr.msk.f32.vlgmr.msra.gmra.mrb[110].mxu1 %vm750_vm9, %v14550_v57 }
0x1e53   :  { %5317 = vmatprep.mubr.f32.mxu1 %v15718_v37  ;;  %10971 = vmatpush1.bf16.msra.mxu1 %v14208_v32 }
0x1e54   :  { %10973 = vmatprep.subr.bf16.mxu1 %v14210_v45 }
0x1e56   :  { %9342 = vmatmul.mubr.msk.f32.gmra.mrb[90].mxu1 %vm750_vm9, %v14582_v30 }
0x1e57   :  { %10975 = vmatpush1.bf16.msra.mxu1 %v14216_v22  ;;  %5500 = vmatprep.mubr.f32.mxu1 %v15718_v37 }
0x1e58   :  { %10977 = vmatprep.subr.bf16.mxu1 %v14219_v31 }
0x1e5b   :  { %10979 = vmatpush1.bf16.msra.mxu1 %v14225_v58 }
0x1e5c   :  { %10981 = vmatprep.subr.bf16.mxu1 %v14228_v3 }
0x1e5f   :  { %10983 = vmatpush1.bf16.msra.mxu1 %v14234_v9 }
0x1e60   :  { %10985 = vmatprep.subr.bf16.mxu1 %v14237_v28 }
0x1e63   :  { %10987 = vmatpush1.bf16.msra.mxu1 %v14243_v43 }
0x1e64   :  { %10989 = vmatprep.subr.bf16.mxu1 %v14246_v39 }
0x1e67   :  { %10991 = vmatpush1.bf16.msra.mxu1 %v14252_v51 }
0x1e68   :  { %11017 = vmatprep.subr.bf16.mxu1 %v14280_v36 }
0x1efc   :  { %v5165_v4 = vpop.f32.mrb[52].mxu1  ;;  %v5240_v23 = vpop.f32.mrb[68].mxu0 }
0x1efd   :  { %v14609_v26 = vadd.f32 %v5240_v23, %v14354_v2  ;;  %v5167_v41 = vpop.f32.mrb[53].mxu1  ;;  %v5242_v15 = vpop.f32.mrb[69].mxu0 }
0x1efe   :  { %v11641_v55 = vadd.f32 %v5167_v41, %v14378_v27  ;;  %v15783_v15 = vld [vmem:[#allocation38_spill] sm:$0xff] }
0x1eff   :  { %12205 = vtanh.f32 %v14609_v26 }
0x1f00   :  { %12207 = vtanh.f32 %v11641_v55 }
0x1f09   :  { %v12206_v33 = vpop.eup %12205 }
0x1f0a   :  { %v12208_v21 = vpop.eup %12207  ;;  %5380 = vrot.lane.b32.xlu1 %v12206_v33, %s12694_s2 }
0x1f0b   :  { %5378 = vrot.lane.b32.xlu0 %v12208_v21, %s12694_s2 }
0x1f21   :  { %v5171_v10 = vpop.f32.mrb[108].mxu1  ;;  %v5245_v47 = vpop.f32.mrb[70].mxu0 }
0x1f22   :  { %v5172_v11 = vpop.f32.mrb[109].mxu1  ;;  %v5246_v56 = vpop.f32.mrb[71].mxu0  ;;  %v15784_v10 = vld [vmem:[#allocation37_spill] sm:$0xff] }
0x1f23   :  { %v5327_v2 = vadd.f32 %v5246_v56, %v15782_v7  ;;  %v11640_v47 = vadd.f32 %v5165_v4, %v15784_v10 }
0x1f25   :  { %v5315_v62 = vpop.f32.mrb[110].mxu1  ;;  %v9343_v11 = vmul.f32 -1.442695, %v11640_v47  ;;  %v9345_v63 = vmul.f32 -1.442695, %v5327_v2 }
0x1f26   :  { %v5316_v46 = vpop.f32.mrb[111].mxu1 }
0x1f29   :  { %v5319_v54 = vpop.f32.mrb[90].mxu1 }
0x1f2a   :  { %v11662_v23 = vadd.f32 %v5319_v54, %v14389_v52  ;;  %v5321_v41 = vpop.f32.mrb[91].mxu1 }
0x1f2b   :  { %v14618_v57 = vadd.f32 %v5321_v41, %v15783_v15 }
0x1f2c   :  { %12209 = vtanh.f32 %v11662_v23 }
0x1f2d   :  { %12211 = vtanh.f32 %v14618_v57 }
0x1f2e   :  { %12213 = vpow2.f32 %v9343_v11 }
0x1f36   :  { %v12210_v33 = vpop.eup %12209 }
0x1f37   :  { %v12212_v21 = vpop.eup %12211  ;;  %5382 = vrot.lane.b32.xlu0 %v12210_v33, %s12694_s2 }
0x1f38   :  { %5384 = vrot.lane.b32.xlu1 %v12212_v21, %s12694_s2  ;;  %v12214_v56 = vpop.eup %12213 }
0x1f39   :  { %v5342_v7 = vadd.f32 1.0, %v12214_v56 }
0x1f3b   :  { %12215 = vrcp.f32 %v5342_v7  ;;  %v9344_v7 = vmul.f32 -1.442695, %v11641_v55 }
0x1f3c   :  { %12217 = vpow2.f32 %v9345_v63 }
0x1f45   :  { %v12216_v54 = vpop.eup %12215 }
0x1f46   :  { %v12218_v33 = vpop.eup %12217 }
0x1f47   :  { %v5344_v8 = vadd.f32 1.0, %v12218_v33  ;;  %v9346_v33 = vmul.f32 -1.442695, %v11662_v23 }
0x1f49   :  { %12219 = vrcp.f32 %v5344_v8 }
0x1f4a   :  { %12221 = vpow2.f32 %v9344_v7 }
0x1f53   :  { %v12220_v47 = vpop.eup %12219 }
0x1f54   :  { %v12222_v10 = vpop.eup %12221 }
0x1f7c   :  { %v5381_v62 = vpop.permute.xlu1 %5380 }
0x1f7d   :  { %v5379_v46 = vpop.permute.xlu0 %5378 }
0x1f7e   :  { %v5386_v41 = vsel %vm1041_vm8, %v5379_v46, %v5381_v62  ;;  %v5343_v62 = vadd.f32 1.0, %v12222_v10 }
0x1f7f   :  { %v5390_v30 = vmul.f32 %v12216_v54, %v5386_v41 }
0x1f80   :  { %12223 = vrcp.f32 %v5343_v62 }
0x1f81   :  { %5394 = vrot.lane.b32.xlu0 %v5390_v30, %s12695_s20  ;;  %v5370_v30 = vmul.f32 %v12216_v54, %v14520_v17  ;;  %v5372_v54 = vmul.f32 %v12220_v47, %v14530_v14 }
0x1f8a   :  { %v12224_v46 = vpop.eup %12223 }
0x1f8b   :  { %v5371_v63 = vmul.f32 %v12224_v46, %v14522_v44  ;;  %v9347_v46 = vmul.f32 -1.442695, %v14609_v26 }
0x1fa9   :  { %v5383_v21 = vpop.permute.xlu0 %5382 }
0x1faa   :  { %v5385_v4 = vpop.permute.xlu1 %5384 }
0x1fab   :  { %v5387_v11 = vsel %vm1041_vm8, %v5383_v21, %v5385_v4 }
0x1fac   :  { %v5391_v56 = vmul.f32 %v12220_v47, %v5387_v11 }
0x1fae   :  { %5396 = vrot.lane.b32.xlu1 %v5391_v56, %s12695_s20 }
0x1ff3   :  { %v5395_v2 = vpop.permute.xlu0 %5394 }
0x1ff4   :  { %v14630_v8 = vadd.f32 %v5395_v2, %v5370_v30  ;;  %v14632_v41 = vadd.f32 %v5395_v2, %v5371_v63 }
0x1ff6   :  { %12225 = vtanh.f32 %v14630_v8 }
0x1ff7   :  { %12227 = vtanh.f32 %v14632_v41 }
0x1ff8   :  { %12229 = vpow2.f32 %v9346_v33 }
0x2000   :  { %v12226_v55 = vpop.eup %12225 }
0x2001   :  { %v12228_v21 = vpop.eup %12227  ;;  %5412 = vrot.lane.b32.xlu0 %v12226_v55, %s12694_s2  ;;  %v9348_v55 = vmul.f32 -1.442695, %v14618_v57 }
0x2002   :  { %5414 = vrot.lane.b32.xlu1 %v12228_v21, %s12694_s2  ;;  %v12230_v17 = vpop.eup %12229 }
0x2003   :  { %v5345_v10 = vadd.f32 1.0, %v12230_v17 }
0x2005   :  { %12231 = vrcp.f32 %v5345_v10 }
0x200f   :  { %v12232_v44 = vpop.eup %12231 }
0x2010   :  { %v5373_v4 = vmul.f32 %v12232_v44, %v14532_v18 }
0x2020   :  { %v5397_v11 = vpop.permute.xlu1 %5396 }
0x2021   :  { %v14640_v56 = vadd.f32 %v5397_v11, %v5372_v54  ;;  %v14642_v7 = vadd.f32 %v5397_v11, %v5373_v4 }
0x2023   :  { %12233 = vtanh.f32 %v14640_v56 }
0x2024   :  { %12235 = vtanh.f32 %v14642_v7 }
0x2025   :  { %12237 = vpow2.f32 %v9347_v46  ;;  %v15789_v46 = vld [vmem:[#allocation30_spill] sm:$0xff] }
0x202d   :  { %v12234_v23 = vpop.eup %12233 }
0x202e   :  { %v12236_v62 = vpop.eup %12235  ;;  %5416 = vrot.lane.b32.xlu0 %v12234_v23, %s12694_s2 }
0x202f   :  { %5418 = vrot.lane.b32.xlu1 %v12236_v62, %s12694_s2  ;;  %v12238_v14 = vpop.eup %12237 }
0x2030   :  { %v5364_v18 = vadd.f32 1.0, %v12238_v14 }
0x2032   :  { %12239 = vrcp.f32 %v5364_v18 }
0x2033   :  { %12241 = vpow2.f32 %v9348_v55 }
0x203c   :  { %v12240_v63 = vpop.eup %12239 }
0x203d   :  { %v12242_v21 = vpop.eup %12241 }
0x203e   :  { %v5365_v17 = vadd.f32 1.0, %v12242_v21 }
0x2040   :  { %12243 = vrcp.f32 %v5365_v17 }
0x204a   :  { %v12244_v44 = vpop.eup %12243 }
0x2073   :  { %v5413_v47 = vpop.permute.xlu0 %5412 }
0x2074   :  { %v5415_v30 = vpop.permute.xlu1 %5414 }
0x2075   :  { %v5420_v2 = vsel %vm1041_vm8, %v5413_v47, %v5415_v30 }
0x2076   :  { %v14650_v33 = vmul.f32 %v12240_v63, %v5420_v2 }
0x2078   :  { %15785 = vst [vmem:[#allocation28_spill] sm:$0xff] %v14650_v33  ;;  %5428 = vrot.lane.b32.xlu0 %v14650_v33, %s12695_s20 }
0x20a0   :  { %v5417_v26 = vpop.permute.xlu0 %5416 }
0x20a1   :  { %v5419_v10 = vpop.permute.xlu1 %5418 }
0x20a2   :  { %v5421_v54 = vsel %vm1041_vm8, %v5417_v26, %v5419_v10  ;;  %v15790_v10 = vld [vmem:[#allocation22_spill] sm:$0xff] }
0x20a3   :  { %v14656_v4 = vmul.f32 %v12244_v44, %v5421_v54 }
0x20a5   :  { %15786 = vst [vmem:[#allocation38_spill] sm:$0xff] %v14656_v4  ;;  %5430 = vrot.lane.b32.xlu1 %v14656_v4, %s12695_s20 }
0x20ea   :  { %v14660_v11 = vpop.permute.xlu0 %5428 }
0x20eb   :  { %15787 = vst [vmem:[#allocation44_spill] sm:$0xff] %v14660_v11  ;;  %9349 = vmatmul.mubr.msk.f32.vlgmr.msra.gmra.mrb[54].mxu1 %vm750_vm9, %v14660_v11  ;;  %9351 = vmatmul.mubr.msk.f32.vlgmr.msra.gmra.mrb[72].mxu0 %vm750_vm9, %v14660_v11 }
0x20ec   :  { %11019 = vmatpush1.bf16.msra.mxu1 %v14283_v6  ;;  %5506 = vmatprep.mubr.f32.mxu1 %v15718_v37 }
0x20ed   :  { %11021 = vmatprep.subr.bf16.mxu1 %v14286_v25  ;;  %5580 = vmatprep.mubr.f32.mxu0 %v15718_v37 }
0x20ee   :  { %11067 = vmatpush1.bf16.msra.mxu0 %v14102_v35 }
0x20ef   :  { %11069 = vmatprep.subr.bf16.mxu0 %v14109_v16 }
0x20f0   :  { %11023 = vmatpush1.bf16.msra.mxu1 %v14291_v29 }
0x20f1   :  { %11025 = vmatprep.subr.bf16.mxu1 %v14294_v61 }
0x20f2   :  { %11071 = vmatpush1.bf16.msra.mxu0 %v14113_v0 }
0x20f3   :  { %11073 = vmatprep.subr.bf16.mxu0 %v14117_v50 }
0x20f4   :  { %11027 = vmatpush1.bf16.msra.mxu1 %v14298_v12 }
0x20f5   :  { %11029 = vmatprep.subr.bf16.mxu1 %v14302_v20 }
0x20f6   :  { %11075 = vmatpush1.bf16.msra.mxu0 %v14122_v53 }
0x20f7   :  { %11077 = vmatprep.subr.bf16.mxu0 %v14126_v59 }
0x20f8   :  { %11031 = vmatpush1.bf16.msra.mxu1 %v14305_v38 }
0x20f9   :  { %11033 = vmatprep.subr.bf16.mxu1 %v14308_v40 }
0x20fa   :  { %11079 = vmatpush1.bf16.msra.mxu0 %v14131_v13 }
0x20fb   :  { %11081 = vmatprep.subr.bf16.mxu0 %v14135_v24 }
0x20fc   :  { %11035 = vmatpush1.bf16.msra.mxu1 %v14311_v34 }
0x20fd   :  { %11037 = vmatprep.subr.bf16.mxu1 %v14314_v48 }
0x20fe   :  { %11083 = vmatpush1.bf16.msra.mxu0 %v14140_v49 }
0x20ff   :  { %11085 = vmatprep.subr.bf16.mxu0 %v14144_v5 }
0x2100   :  { %11039 = vmatpush1.bf16.msra.mxu1 %v14317_v1 }
0x2101   :  { %11041 = vmatprep.subr.bf16.mxu1 %v14196_v19 }
0x2102   :  { %11087 = vmatpush1.bf16.msra.mxu0 %v14149_v60 }
0x2103   :  { %11137 = vmatprep.subr.bf16.mxu0 %v14100_v42 }
0x2117   :  { %v14692_v57 = vpop.permute.xlu1 %5430 }
0x2118   :  { %15788 = vst [vmem:[#allocation45_spill] sm:$0xff] %v14692_v57  ;;  %9350 = vmatmul.mubr.msk.f32.gmra.mrb[112].mxu1 %vm750_vm9, %v14692_v57  ;;  %9352 = vmatmul.mubr.msk.f32.gmra.mrb[74].mxu0 %vm750_vm9, %v14692_v57 }
0x2119   :  { %5650 = vmatprep.mubr.f32.mxu1 %v15718_v37  ;;  %5912 = vmatprep.mubr.f32.mxu0 %v15718_v37 }
0x211c   :  { %9353 = vmatmul.mubr.msk.f32.vlgmr.msra.gmra.mrb[114].mxu1 %vm750_vm9, %v14660_v11 }
0x211d   :  { %5654 = vmatprep.mubr.f32.mxu1 %v15718_v37  ;;  %11043 = vmatpush1.bf16.msra.mxu1 %v14208_v32 }
0x211e   :  { %11045 = vmatprep.subr.bf16.mxu1 %v14210_v45 }
0x2120   :  { %9354 = vmatmul.mubr.msk.f32.gmra.mrb[88].mxu1 %vm750_vm9, %v14692_v57 }
0x2121   :  { %11047 = vmatpush1.bf16.msra.mxu1 %v14216_v22  ;;  %5837 = vmatprep.mubr.f32.mxu1 %v15718_v37 }
0x2122   :  { %11049 = vmatprep.subr.bf16.mxu1 %v14219_v31 }
0x2125   :  { %11051 = vmatpush1.bf16.msra.mxu1 %v14225_v58 }
0x2126   :  { %11053 = vmatprep.subr.bf16.mxu1 %v14228_v3 }
0x2129   :  { %11055 = vmatpush1.bf16.msra.mxu1 %v14234_v9 }
0x212a   :  { %11057 = vmatprep.subr.bf16.mxu1 %v14237_v28 }
0x212d   :  { %11059 = vmatpush1.bf16.msra.mxu1 %v14243_v43 }
0x212e   :  { %11061 = vmatprep.subr.bf16.mxu1 %v14246_v39 }
0x2131   :  { %11063 = vmatpush1.bf16.msra.mxu1 %v14252_v51 }
0x2132   :  { %11089 = vmatprep.subr.bf16.mxu1 %v14280_v36 }
0x21be   :  { %v5502_v23 = vpop.f32.mrb[54].mxu1  ;;  %v5577_v62 = vpop.f32.mrb[72].mxu0 }
0x21bf   :  { %v14719_v14 = vadd.f32 %v5577_v62, %v15789_v46  ;;  %v5504_v18 = vpop.f32.mrb[55].mxu1  ;;  %v5579_v47 = vpop.f32.mrb[73].mxu0 }
0x21c0   :  { %v11643_v30 = vadd.f32 %v5504_v18, %v14378_v27 }
0x21c1   :  { %12245 = vtanh.f32 %v14719_v14 }
0x21c2   :  { %12247 = vtanh.f32 %v11643_v30 }
0x21cb   :  { %v12246_v63 = vpop.eup %12245 }
0x21cc   :  { %v12248_v2 = vpop.eup %12247  ;;  %5717 = vrot.lane.b32.xlu1 %v12246_v63, %s12694_s2 }
0x21cd   :  { %5715 = vrot.lane.b32.xlu0 %v12248_v2, %s12694_s2 }
0x21eb   :  { %v5508_v55 = vpop.f32.mrb[112].mxu1  ;;  %v5582_v21 = vpop.f32.mrb[74].mxu0 }
0x21ec   :  { %v5509_v17 = vpop.f32.mrb[113].mxu1  ;;  %v5583_v26 = vpop.f32.mrb[75].mxu0  ;;  %v15791_v55 = vld [vmem:[#allocation37_spill] sm:$0xff] }
0x21ed   :  { %v5664_v44 = vadd.f32 %v5583_v26, %v15790_v10  ;;  %v11642_v21 = vadd.f32 %v5502_v23, %v15791_v55 }
0x21ef   :  { %v5652_v54 = vpop.f32.mrb[114].mxu1  ;;  %v9355_v17 = vmul.f32 -1.442695, %v11642_v21  ;;  %v9357_v4 = vmul.f32 -1.442695, %v5664_v44 }
0x21f0   :  { %v5653_v62 = vpop.f32.mrb[115].mxu1 }
0x21f3   :  { %v5656_v46 = vpop.f32.mrb[88].mxu1 }
0x21f4   :  { %v11660_v18 = vadd.f32 %v5656_v46, %v14389_v52  ;;  %v5658_v47 = vpop.f32.mrb[89].mxu1 }
0x21f5   :  { %v14728_v11 = vadd.f32 %v5658_v47, %v15783_v15 }
0x21f6   :  { %12249 = vtanh.f32 %v11660_v18 }
0x21f7   :  { %12251 = vtanh.f32 %v14728_v11 }
0x21f8   :  { %12253 = vpow2.f32 %v9355_v17 }
0x2200   :  { %v12250_v63 = vpop.eup %12249 }
0x2201   :  { %v12252_v2 = vpop.eup %12251  ;;  %5719 = vrot.lane.b32.xlu0 %v12250_v63, %s12694_s2 }
0x2202   :  { %5721 = vrot.lane.b32.xlu1 %v12252_v2, %s12694_s2  ;;  %v12254_v26 = vpop.eup %12253 }
0x2203   :  { %v5679_v10 = vadd.f32 1.0, %v12254_v26 }
0x2205   :  { %12255 = vrcp.f32 %v5679_v10  ;;  %v9356_v10 = vmul.f32 -1.442695, %v11643_v30 }
0x2206   :  { %12257 = vpow2.f32 %v9357_v4 }
0x220f   :  { %v12256_v46 = vpop.eup %12255 }
0x2210   :  { %v12258_v63 = vpop.eup %12257 }
0x2211   :  { %v5681_v33 = vadd.f32 1.0, %v12258_v63 }
0x2213   :  { %12259 = vrcp.f32 %v5681_v33 }
0x2214   :  { %12261 = vpow2.f32 %v9356_v10 }
0x221d   :  { %v12260_v21 = vpop.eup %12259 }
0x221e   :  { %v12262_v55 = vpop.eup %12261 }
0x223e   :  { %v5718_v54 = vpop.permute.xlu1 %5717 }
0x223f   :  { %v5716_v62 = vpop.permute.xlu0 %5715 }
0x2240   :  { %v5723_v47 = vsel %vm1041_vm8, %v5716_v62, %v5718_v54  ;;  %v5680_v54 = vadd.f32 1.0, %v12262_v55  ;;  %v9358_v55 = vmul.f32 -1.442695, %v11660_v18 }
0x2241   :  { %v5727_v57 = vmul.f32 %v12256_v46, %v5723_v47 }
0x2242   :  { %12263 = vrcp.f32 %v5680_v54 }
0x2243   :  { %5731 = vrot.lane.b32.xlu0 %v5727_v57, %s12695_s20  ;;  %v5707_v57 = vmul.f32 %v12256_v46, %v14630_v8 }
0x224c   :  { %v12264_v62 = vpop.eup %12263 }
0x224d   :  { %v5708_v4 = vmul.f32 %v12264_v62, %v14632_v41  ;;  %v9359_v62 = vmul.f32 -1.442695, %v14719_v14 }
0x2273   :  { %v5720_v2 = vpop.permute.xlu0 %5719 }
0x2274   :  { %v5722_v23 = vpop.permute.xlu1 %5721 }
0x2275   :  { %v5724_v17 = vsel %vm1041_vm8, %v5720_v2, %v5722_v23  ;;  %v5709_v2 = vmul.f32 %v12260_v21, %v14640_v56 }
0x2276   :  { %v5728_v26 = vmul.f32 %v12260_v21, %v5724_v17 }
0x2278   :  { %5733 = vrot.lane.b32.xlu1 %v5728_v26, %s12695_s20 }
0x22b5   :  { %v5732_v44 = vpop.permute.xlu0 %5731 }
0x22b6   :  { %v14740_v33 = vadd.f32 %v5732_v44, %v5707_v57  ;;  %v14742_v47 = vadd.f32 %v5732_v44, %v5708_v4 }
0x22b8   :  { %12265 = vtanh.f32 %v14740_v33 }
0x22b9   :  { %12267 = vtanh.f32 %v14742_v47 }
0x22ba   :  { %12269 = vpow2.f32 %v9358_v55 }
0x22c2   :  { %v12266_v63 = vpop.eup %12265 }
0x22c3   :  { %v12268_v30 = vpop.eup %12267  ;;  %5749 = vrot.lane.b32.xlu0 %v12266_v63, %s12694_s2 }
0x22c4   :  { %5751 = vrot.lane.b32.xlu1 %v12268_v30, %s12694_s2  ;;  %v12270_v8 = vpop.eup %12269  ;;  %v9360_v30 = vmul.f32 -1.442695, %v14728_v11 }
0x22c5   :  { %v5682_v46 = vadd.f32 1.0, %v12270_v8 }
0x22c7   :  { %12271 = vrcp.f32 %v5682_v46 }
0x22d1   :  { %v12272_v41 = vpop.eup %12271 }
0x22d2   :  { %v5710_v23 = vmul.f32 %v12272_v41, %v14642_v7 }
0x22ea   :  { %v5734_v17 = vpop.permute.xlu1 %5733 }
0x22eb   :  { %v14750_v26 = vadd.f32 %v5734_v17, %v5709_v2  ;;  %v14752_v10 = vadd.f32 %v5734_v17, %v5710_v23 }
0x22ed   :  { %12273 = vtanh.f32 %v14750_v26 }
0x22ee   :  { %12275 = vtanh.f32 %v14752_v10 }
0x22ef   :  { %12277 = vpow2.f32 %v9359_v62  ;;  %v15796_v62 = vld [vmem:[#allocation31_spill] sm:$0xff] }
0x22f7   :  { %v12274_v54 = vpop.eup %12273 }
0x22f8   :  { %v12276_v18 = vpop.eup %12275  ;;  %5753 = vrot.lane.b32.xlu0 %v12274_v54, %s12694_s2 }
0x22f9   :  { %5755 = vrot.lane.b32.xlu1 %v12276_v18, %s12694_s2  ;;  %v12278_v56 = vpop.eup %12277 }
0x22fa   :  { %v5701_v7 = vadd.f32 1.0, %v12278_v56 }
0x22fc   :  { %12279 = vrcp.f32 %v5701_v7 }
0x22fd   :  { %12281 = vpow2.f32 %v9360_v30 }
0x2306   :  { %v12280_v4 = vpop.eup %12279 }
0x2307   :  { %v12282_v55 = vpop.eup %12281 }
0x2308   :  { %v5702_v8 = vadd.f32 1.0, %v12282_v55 }
0x230a   :  { %12283 = vrcp.f32 %v5702_v8 }
0x2314   :  { %v12284_v41 = vpop.eup %12283 }
0x2335   :  { %v5750_v21 = vpop.permute.xlu0 %5749 }
0x2336   :  { %v5752_v57 = vpop.permute.xlu1 %5751 }
0x2337   :  { %v5757_v44 = vsel %vm1041_vm8, %v5750_v21, %v5752_v57 }
0x2338   :  { %v14760_v63 = vmul.f32 %v12280_v4, %v5757_v44 }
0x233a   :  { %15792 = vst [vmem:[#allocation30_spill] sm:$0xff] %v14760_v63  ;;  %5765 = vrot.lane.b32.xlu0 %v14760_v63, %s12695_s20 }
0x236a   :  { %v5754_v14 = vpop.permute.xlu0 %5753 }
0x236b   :  { %v5756_v46 = vpop.permute.xlu1 %5755 }
0x236c   :  { %v5758_v2 = vsel %vm1041_vm8, %v5754_v14, %v5756_v46  ;;  %v15797_v46 = vld [vmem:[#allocation23_spill] sm:$0xff] }
0x236d   :  { %v14766_v23 = vmul.f32 %v12284_v41, %v5758_v2 }
0x236f   :  { %15793 = vst [vmem:[#allocation22_spill] sm:$0xff] %v14766_v23  ;;  %5767 = vrot.lane.b32.xlu1 %v14766_v23, %s12695_s20 }
0x23ac   :  { %v14770_v17 = vpop.permute.xlu0 %5765 }
0x23ad   :  { %15794 = vst [vmem:[#allocation46_spill] sm:$0xff] %v14770_v17  ;;  %9361 = vmatmul.mubr.msk.f32.vlgmr.msra.gmra.mrb[56].mxu1 %vm750_vm9, %v14770_v17  ;;  %9363 = vmatmul.mubr.msk.f32.vlgmr.msra.gmra.mrb[76].mxu0 %vm750_vm9, %v14770_v17 }
0x23ae   :  { %11091 = vmatpush1.bf16.msra.mxu1 %v14283_v6  ;;  %5843 = vmatprep.mubr.f32.mxu1 %v15718_v37 }
0x23af   :  { %11093 = vmatprep.subr.bf16.mxu1 %v14286_v25  ;;  %5917 = vmatprep.mubr.f32.mxu0 %v15718_v37 }
0x23b0   :  { %11139 = vmatpush1.bf16.msra.mxu0 %v14102_v35 }
0x23b1   :  { %11141 = vmatprep.subr.bf16.mxu0 %v14109_v16 }
0x23b2   :  { %11095 = vmatpush1.bf16.msra.mxu1 %v14291_v29 }
0x23b3   :  { %11097 = vmatprep.subr.bf16.mxu1 %v14294_v61 }
0x23b4   :  { %11143 = vmatpush1.bf16.msra.mxu0 %v14113_v0 }
0x23b5   :  { %11145 = vmatprep.subr.bf16.mxu0 %v14117_v50 }
0x23b6   :  { %11099 = vmatpush1.bf16.msra.mxu1 %v14298_v12 }
0x23b7   :  { %11101 = vmatprep.subr.bf16.mxu1 %v14302_v20 }
0x23b8   :  { %11147 = vmatpush1.bf16.msra.mxu0 %v14122_v53 }
0x23b9   :  { %11149 = vmatprep.subr.bf16.mxu0 %v14126_v59 }
0x23ba   :  { %11103 = vmatpush1.bf16.msra.mxu1 %v14305_v38 }
0x23bb   :  { %11105 = vmatprep.subr.bf16.mxu1 %v14308_v40 }
0x23bc   :  { %11151 = vmatpush1.bf16.msra.mxu0 %v14131_v13 }
0x23bd   :  { %11153 = vmatprep.subr.bf16.mxu0 %v14135_v24 }
0x23be   :  { %11107 = vmatpush1.bf16.msra.mxu1 %v14311_v34 }
0x23bf   :  { %11109 = vmatprep.subr.bf16.mxu1 %v14314_v48 }
0x23c0   :  { %11155 = vmatpush1.bf16.msra.mxu0 %v14140_v49 }
0x23c1   :  { %11157 = vmatprep.subr.bf16.mxu0 %v14144_v5 }
0x23c2   :  { %11111 = vmatpush1.bf16.msra.mxu1 %v14317_v1 }
0x23c3   :  { %11113 = vmatprep.subr.bf16.mxu1 %v14196_v19 }
0x23c4   :  { %11159 = vmatpush1.bf16.msra.mxu0 %v14149_v60 }
0x23c5   :  { %11209 = vmatprep.subr.bf16.mxu0 %v14100_v42 }
0x23e1   :  { %v14802_v11 = vpop.permute.xlu1 %5767 }
0x23e2   :  { %15795 = vst [vmem:[#allocation47_spill] sm:$0xff] %v14802_v11  ;;  %9362 = vmatmul.mubr.msk.f32.gmra.mrb[116].mxu1 %vm750_vm9, %v14802_v11  ;;  %9364 = vmatmul.mubr.msk.f32.gmra.mrb[78].mxu0 %vm750_vm9, %v14802_v11 }
0x23e3   :  { %5987 = vmatprep.mubr.f32.mxu1 %v15718_v37  ;;  %6249 = vmatprep.mubr.f32.mxu0 %v15718_v37 }
0x23e6   :  { %9365 = vmatmul.mubr.msk.f32.vlgmr.msra.gmra.mrb[118].mxu1 %vm750_vm9, %v14770_v17 }
0x23e7   :  { %5991 = vmatprep.mubr.f32.mxu1 %v15718_v37  ;;  %11115 = vmatpush1.bf16.msra.mxu1 %v14208_v32 }
0x23e8   :  { %11117 = vmatprep.subr.bf16.mxu1 %v14210_v45 }
0x23ea   :  { %9366 = vmatmul.mubr.msk.f32.gmra.mrb[86].mxu1 %vm750_vm9, %v14802_v11 }
0x23eb   :  { %11119 = vmatpush1.bf16.msra.mxu1 %v14216_v22  ;;  %6174 = vmatprep.mubr.f32.mxu1 %v15718_v37 }
0x23ec   :  { %11121 = vmatprep.subr.bf16.mxu1 %v14219_v31 }
0x23ef   :  { %11123 = vmatpush1.bf16.msra.mxu1 %v14225_v58 }
0x23f0   :  { %11125 = vmatprep.subr.bf16.mxu1 %v14228_v3 }
0x23f3   :  { %11127 = vmatpush1.bf16.msra.mxu1 %v14234_v9 }
0x23f4   :  { %11129 = vmatprep.subr.bf16.mxu1 %v14237_v28 }
0x23f7   :  { %11131 = vmatpush1.bf16.msra.mxu1 %v14243_v43 }
0x23f8   :  { %11133 = vmatprep.subr.bf16.mxu1 %v14246_v39 }
0x23fb   :  { %11135 = vmatpush1.bf16.msra.mxu1 %v14252_v51 }
0x23fc   :  { %11161 = vmatprep.subr.bf16.mxu1 %v14280_v36 }
0x2480   :  { %v5839_v54 = vpop.f32.mrb[56].mxu1  ;;  %v5914_v18 = vpop.f32.mrb[76].mxu0 }
0x2481   :  { %v14829_v56 = vadd.f32 %v5914_v18, %v15796_v62  ;;  %v5841_v7 = vpop.f32.mrb[57].mxu1  ;;  %v5916_v21 = vpop.f32.mrb[77].mxu0 }
0x2482   :  { %v11645_v57 = vadd.f32 %v5841_v7, %v14378_v27 }
0x2483   :  { %12285 = vtanh.f32 %v14829_v56 }
0x2484   :  { %12287 = vtanh.f32 %v11645_v57 }
0x248d   :  { %v12286_v4 = vpop.eup %12285 }
0x248e   :  { %v12288_v44 = vpop.eup %12287  ;;  %6054 = vrot.lane.b32.xlu1 %v12286_v4, %s12694_s2 }
0x248f   :  { %6052 = vrot.lane.b32.xlu0 %v12288_v44, %s12694_s2 }
0x24b5   :  { %v5845_v30 = vpop.f32.mrb[116].mxu1  ;;  %v5919_v55 = vpop.f32.mrb[78].mxu0 }
0x24b6   :  { %v5846_v8 = vpop.f32.mrb[117].mxu1  ;;  %v5920_v14 = vpop.f32.mrb[79].mxu0  ;;  %v15798_v30 = vld [vmem:[#allocation37_spill] sm:$0xff] }
0x24b7   :  { %v6001_v41 = vadd.f32 %v5920_v14, %v15797_v46  ;;  %v11644_v55 = vadd.f32 %v5839_v54, %v15798_v30 }
0x24b9   :  { %v5989_v2 = vpop.f32.mrb[118].mxu1  ;;  %v9367_v8 = vmul.f32 -1.442695, %v11644_v55  ;;  %v9369_v23 = vmul.f32 -1.442695, %v6001_v41 }
0x24ba   :  { %v5990_v18 = vpop.f32.mrb[119].mxu1 }
0x24bd   :  { %v5993_v62 = vpop.f32.mrb[86].mxu1 }
0x24be   :  { %v11658_v7 = vadd.f32 %v5993_v62, %v14389_v52  ;;  %v5995_v21 = vpop.f32.mrb[87].mxu1 }
0x24bf   :  { %v14838_v17 = vadd.f32 %v5995_v21, %v15783_v15 }
0x24c0   :  { %12289 = vtanh.f32 %v11658_v7 }
0x24c1   :  { %12291 = vtanh.f32 %v14838_v17 }
0x24c2   :  { %12293 = vpow2.f32 %v9367_v8 }
0x24ca   :  { %v12290_v4 = vpop.eup %12289 }
0x24cb   :  { %v12292_v44 = vpop.eup %12291  ;;  %6056 = vrot.lane.b32.xlu0 %v12290_v4, %s12694_s2 }
0x24cc   :  { %6058 = vrot.lane.b32.xlu1 %v12292_v44, %s12694_s2  ;;  %v12294_v14 = vpop.eup %12293 }
0x24cd   :  { %v6016_v46 = vadd.f32 1.0, %v12294_v14 }
0x24cf   :  { %12295 = vrcp.f32 %v6016_v46  ;;  %v9368_v46 = vmul.f32 -1.442695, %v11645_v57 }
0x24d0   :  { %12297 = vpow2.f32 %v9369_v23 }
0x24d9   :  { %v12296_v62 = vpop.eup %12295 }
0x24da   :  { %v12298_v4 = vpop.eup %12297 }
0x24db   :  { %v6018_v63 = vadd.f32 1.0, %v12298_v4 }
0x24dd   :  { %12299 = vrcp.f32 %v6018_v63 }
0x24de   :  { %12301 = vpow2.f32 %v9368_v46 }
0x24e7   :  { %v12300_v55 = vpop.eup %12299 }
0x24e8   :  { %v12302_v30 = vpop.eup %12301 }
0x2500   :  { %v6055_v2 = vpop.permute.xlu1 %6054 }
0x2501   :  { %v6053_v18 = vpop.permute.xlu0 %6052 }
0x2502   :  { %v6060_v21 = vsel %vm1041_vm8, %v6053_v18, %v6055_v2  ;;  %v6017_v2 = vadd.f32 1.0, %v12302_v30  ;;  %v9370_v30 = vmul.f32 -1.442695, %v11658_v7 }
0x2503   :  { %v6064_v11 = vmul.f32 %v12296_v62, %v6060_v21 }
0x2504   :  { %12303 = vrcp.f32 %v6017_v2 }
0x2505   :  { %6068 = vrot.lane.b32.xlu0 %v6064_v11, %s12695_s20  ;;  %v6044_v11 = vmul.f32 %v12296_v62, %v14740_v33 }
0x250e   :  { %v12304_v18 = vpop.eup %12303 }
0x250f   :  { %v6045_v23 = vmul.f32 %v12304_v18, %v14742_v47  ;;  %v9371_v18 = vmul.f32 -1.442695, %v14829_v56 }
0x253d   :  { %v6057_v44 = vpop.permute.xlu0 %6056 }
0x253e   :  { %v6059_v54 = vpop.permute.xlu1 %6058 }
0x253f   :  { %v6061_v8 = vsel %vm1041_vm8, %v6057_v44, %v6059_v54  ;;  %v6046_v44 = vmul.f32 %v12300_v55, %v14750_v26 }
0x2540   :  { %v6065_v14 = vmul.f32 %v12300_v55, %v6061_v8 }
0x2542   :  { %6070 = vrot.lane.b32.xlu1 %v6065_v14, %s12695_s20 }
0x2577   :  { %v6069_v41 = vpop.permute.xlu0 %6068 }
0x2578   :  { %v14850_v63 = vadd.f32 %v6069_v41, %v6044_v11  ;;  %v14852_v21 = vadd.f32 %v6069_v41, %v6045_v23 }
0x257a   :  { %12305 = vtanh.f32 %v14850_v63 }
0x257b   :  { %12307 = vtanh.f32 %v14852_v21 }
0x257c   :  { %12309 = vpow2.f32 %v9370_v30 }
0x2584   :  { %v12306_v4 = vpop.eup %12305 }
0x2585   :  { %v12308_v57 = vpop.eup %12307  ;;  %6086 = vrot.lane.b32.xlu0 %v12306_v4, %s12694_s2 }
0x2586   :  { %6088 = vrot.lane.b32.xlu1 %v12308_v57, %s12694_s2  ;;  %v12310_v33 = vpop.eup %12309  ;;  %v9372_v57 = vmul.f32 -1.442695, %v14838_v17 }
0x2587   :  { %v6019_v62 = vadd.f32 1.0, %v12310_v33 }
0x2589   :  { %12311 = vrcp.f32 %v6019_v62 }
0x2593   :  { %v12312_v47 = vpop.eup %12311 }
0x2594   :  { %v6047_v54 = vmul.f32 %v12312_v47, %v14752_v10 }
0x25b4   :  { %v6071_v8 = vpop.permute.xlu1 %6070 }
0x25b5   :  { %v14860_v14 = vadd.f32 %v6071_v8, %v6046_v44  ;;  %v14862_v46 = vadd.f32 %v6071_v8, %v6047_v54 }
0x25b7   :  { %12313 = vtanh.f32 %v14860_v14 }
0x25b8   :  { %12315 = vtanh.f32 %v14862_v46 }
0x25b9   :  { %12317 = vpow2.f32 %v9371_v18 }
0x25c1   :  { %v12314_v2 = vpop.eup %12313 }
0x25c2   :  { %v12316_v7 = vpop.eup %12315  ;;  %6090 = vrot.lane.b32.xlu0 %v12314_v2, %s12694_s2 }
0x25c3   :  { %6092 = vrot.lane.b32.xlu1 %v12316_v7, %s12694_s2  ;;  %v12318_v26 = vpop.eup %12317  ;;  %v15803_v7 = vld [vmem:[#allocation26_spill] sm:$0xff] }
0x25c4   :  { %v6038_v10 = vadd.f32 1.0, %v12318_v26 }
0x25c6   :  { %12319 = vrcp.f32 %v6038_v10 }
0x25c7   :  { %12321 = vpow2.f32 %v9372_v57 }
0x25d0   :  { %v12320_v23 = vpop.eup %12319 }
0x25d1   :  { %v12322_v30 = vpop.eup %12321 }
0x25d2   :  { %v6039_v33 = vadd.f32 1.0, %v12322_v30 }
0x25d4   :  { %12323 = vrcp.f32 %v6039_v33 }
0x25de   :  { %v12324_v47 = vpop.eup %12323 }
0x25f7   :  { %v6087_v55 = vpop.permute.xlu0 %6086 }
0x25f8   :  { %v6089_v11 = vpop.permute.xlu1 %6088 }
0x25f9   :  { %v6094_v41 = vsel %vm1041_vm8, %v6087_v55, %v6089_v11 }
0x25fa   :  { %v14870_v4 = vmul.f32 %v12320_v23, %v6094_v41 }
0x25fc   :  { %15799 = vst [vmem:[#allocation31_spill] sm:$0xff] %v14870_v4  ;;  %6102 = vrot.lane.b32.xlu0 %v14870_v4, %s12695_s20 }
0x2634   :  { %v6091_v56 = vpop.permute.xlu0 %6090 }
0x2635   :  { %v6093_v62 = vpop.permute.xlu1 %6092 }
0x2636   :  { %v6095_v44 = vsel %vm1041_vm8, %v6091_v56, %v6093_v62  ;;  %v15804_v56 = vld [vmem:[#allocation36_spill] sm:$0xff] }
0x2637   :  { %v14876_v54 = vmul.f32 %v12324_v47, %v6095_v44 }
0x2639   :  { %15800 = vst [vmem:[#allocation23_spill] sm:$0xff] %v14876_v54  ;;  %6104 = vrot.lane.b32.xlu1 %v14876_v54, %s12695_s20 }
0x266e   :  { %v14880_v8 = vpop.permute.xlu0 %6102 }
0x266f   :  { %15801 = vst [vmem:[#allocation48_spill] sm:$0xff] %v14880_v8  ;;  %9373 = vmatmul.mubr.msk.f32.vlgmr.msra.gmra.mrb[58].mxu1 %vm750_vm9, %v14880_v8  ;;  %9375 = vmatmul.mubr.msk.f32.vlgmr.msra.gmra.mrb[80].mxu0 %vm750_vm9, %v14880_v8 }
0x2670   :  { %11163 = vmatpush1.bf16.msra.mxu1 %v14283_v6  ;;  %6180 = vmatprep.mubr.f32.mxu1 %v15718_v37 }
0x2671   :  { %11165 = vmatprep.subr.bf16.mxu1 %v14286_v25  ;;  %6254 = vmatprep.mubr.f32.mxu0 %v15718_v37 }
0x2672   :  { %11211 = vmatpush1.bf16.msra.mxu0 %v14102_v35 }
0x2673   :  { %11213 = vmatprep.subr.bf16.mxu0 %v14109_v16 }
0x2674   :  { %11167 = vmatpush1.bf16.msra.mxu1 %v14291_v29 }
0x2675   :  { %11169 = vmatprep.subr.bf16.mxu1 %v14294_v61 }
0x2676   :  { %11215 = vmatpush1.bf16.msra.mxu0 %v14113_v0 }
0x2677   :  { %11217 = vmatprep.subr.bf16.mxu0 %v14117_v50 }
0x2678   :  { %11171 = vmatpush1.bf16.msra.mxu1 %v14298_v12 }
0x2679   :  { %11173 = vmatprep.subr.bf16.mxu1 %v14302_v20 }
0x267a   :  { %11219 = vmatpush1.bf16.msra.mxu0 %v14122_v53 }
0x267b   :  { %11221 = vmatprep.subr.bf16.mxu0 %v14126_v59 }
0x267c   :  { %11175 = vmatpush1.bf16.msra.mxu1 %v14305_v38 }
0x267d   :  { %11177 = vmatprep.subr.bf16.mxu1 %v14308_v40 }
0x267e   :  { %11223 = vmatpush1.bf16.msra.mxu0 %v14131_v13 }
0x267f   :  { %11225 = vmatprep.subr.bf16.mxu0 %v14135_v24 }
0x2680   :  { %11179 = vmatpush1.bf16.msra.mxu1 %v14311_v34 }
0x2681   :  { %11181 = vmatprep.subr.bf16.mxu1 %v14314_v48 }
0x2682   :  { %11227 = vmatpush1.bf16.msra.mxu0 %v14140_v49 }
0x2683   :  { %11229 = vmatprep.subr.bf16.mxu0 %v14144_v5 }
0x2684   :  { %11183 = vmatpush1.bf16.msra.mxu1 %v14317_v1 }
0x2685   :  { %11185 = vmatprep.subr.bf16.mxu1 %v14196_v19 }
0x2686   :  { %11231 = vmatpush1.bf16.msra.mxu0 %v14149_v60 }
0x2687   :  { %11281 = vmatprep.subr.bf16.mxu0 %v14100_v42 }
0x26ab   :  { %v14912_v17 = vpop.permute.xlu1 %6104 }
0x26ac   :  { %15802 = vst [vmem:[#allocation49_spill] sm:$0xff] %v14912_v17  ;;  %9374 = vmatmul.mubr.msk.f32.gmra.mrb[120].mxu1 %vm750_vm9, %v14912_v17  ;;  %9376 = vmatmul.mubr.msk.f32.gmra.mrb[82].mxu0 %vm750_vm9, %v14912_v17 }
0x26ad   :  { %6324 = vmatprep.mubr.f32.mxu1 %v15718_v37  ;;  %6586 = vmatprep.mubr.f32.mxu0 %v15718_v37 }
0x26b0   :  { %9377 = vmatmul.mubr.msk.f32.vlgmr.msra.gmra.mrb[122].mxu1 %vm750_vm9, %v14880_v8 }
0x26b1   :  { %6328 = vmatprep.mubr.f32.mxu1 %v15718_v37  ;;  %11187 = vmatpush1.bf16.msra.mxu1 %v14208_v32 }
0x26b2   :  { %11189 = vmatprep.subr.bf16.mxu1 %v14210_v45 }
0x26b4   :  { %9378 = vmatmul.mubr.msk.f32.gmra.mrb[84].mxu1 %vm750_vm9, %v14912_v17 }
0x26b5   :  { %11191 = vmatpush1.bf16.msra.mxu1 %v14216_v22  ;;  %6511 = vmatprep.mubr.f32.mxu1 %v15718_v37 }
0x26b6   :  { %11193 = vmatprep.subr.bf16.mxu1 %v14219_v31 }
0x26b9   :  { %11195 = vmatpush1.bf16.msra.mxu1 %v14225_v58 }
0x26ba   :  { %11197 = vmatprep.subr.bf16.mxu1 %v14228_v3 }
0x26bd   :  { %11199 = vmatpush1.bf16.msra.mxu1 %v14234_v9 }
0x26be   :  { %11201 = vmatprep.subr.bf16.mxu1 %v14237_v28 }
0x26c1   :  { %11203 = vmatpush1.bf16.msra.mxu1 %v14243_v43 }
0x26c2   :  { %11205 = vmatprep.subr.bf16.mxu1 %v14246_v39 }
0x26c5   :  { %11207 = vmatpush1.bf16.msra.mxu1 %v14252_v51 }
0x26c6   :  { %11233 = vmatprep.subr.bf16.mxu1 %v14280_v36 }
0x2742   :  { %v6176_v42 = vpop.f32.mrb[58].mxu1  ;;  %v6251_v2 = vpop.f32.mrb[80].mxu0 }
0x2743   :  { %v14939_v18 = vadd.f32 %v6251_v2, %v15803_v7  ;;  %v6178_v26 = vpop.f32.mrb[59].mxu1  ;;  %v6253_v10 = vpop.f32.mrb[81].mxu0 }
0x2744   :  { %v11647_v55 = vadd.f32 %v6178_v26, %v14378_v27 }
0x2745   :  { %12325 = vtanh.f32 %v14939_v18 }
0x2746   :  { %12327 = vtanh.f32 %v11647_v55 }
0x274f   :  { %v12326_v11 = vpop.eup %12325 }
0x2750   :  { %v12328_v23 = vpop.eup %12327  ;;  %6391 = vrot.lane.b32.xlu1 %v12326_v11, %s12694_s2 }
0x2751   :  { %6389 = vrot.lane.b32.xlu0 %v12328_v23, %s12694_s2 }
0x277f   :  { %v6182_v41 = vpop.f32.mrb[120].mxu1  ;;  %v6256_v57 = vpop.f32.mrb[82].mxu0 }
0x2780   :  { %v6183_v30 = vpop.f32.mrb[121].mxu1  ;;  %v6257_v33 = vpop.f32.mrb[83].mxu0  ;;  %v15805_v41 = vld [vmem:[#allocation37_spill] sm:$0xff] }
0x2781   :  { %v6338_v62 = vadd.f32 %v6257_v33, %v15804_v56  ;;  %v11646_v57 = vadd.f32 %v6176_v42, %v15805_v41 }
0x2783   :  { %v6326_v47 = vpop.f32.mrb[122].mxu1  ;;  %v9379_v30 = vmul.f32 -1.442695, %v11646_v57  ;;  %v9381_v17 = vmul.f32 -1.442695, %v6338_v62 }
0x2784   :  { %v6327_v44 = vpop.f32.mrb[123].mxu1 }
0x2787   :  { %v6330_v2 = vpop.f32.mrb[84].mxu1 }
0x2788   :  { %v11656_v7 = vadd.f32 %v6330_v2, %v14389_v52  ;;  %v6332_v26 = vpop.f32.mrb[85].mxu1 }
0x2789   :  { %v14948_v10 = vadd.f32 %v6332_v26, %v15783_v15 }
0x278a   :  { %12329 = vtanh.f32 %v11656_v7 }
0x278b   :  { %12331 = vtanh.f32 %v14948_v10 }
0x278c   :  { %12333 = vpow2.f32 %v9379_v30 }
0x2794   :  { %v12330_v11 = vpop.eup %12329 }
0x2795   :  { %v12332_v23 = vpop.eup %12331  ;;  %6393 = vrot.lane.b32.xlu0 %v12330_v11, %s12694_s2 }
0x2796   :  { %6395 = vrot.lane.b32.xlu1 %v12332_v23, %s12694_s2  ;;  %v12334_v33 = vpop.eup %12333 }
0x2797   :  { %v6353_v56 = vadd.f32 1.0, %v12334_v33 }
0x2799   :  { %12335 = vrcp.f32 %v6353_v56  ;;  %v9380_v56 = vmul.f32 -1.442695, %v11647_v55 }
0x279a   :  { %12337 = vpow2.f32 %v9381_v17 }
0x27a3   :  { %v12336_v2 = vpop.eup %12335 }
0x27a4   :  { %v12338_v11 = vpop.eup %12337 }
0x27a5   :  { %v6355_v54 = vadd.f32 1.0, %v12338_v11 }
0x27a7   :  { %12339 = vrcp.f32 %v6355_v54 }
0x27a8   :  { %12341 = vpow2.f32 %v9380_v56 }
0x27b1   :  { %v12340_v57 = vpop.eup %12339 }
0x27b2   :  { %v12342_v4 = vpop.eup %12341 }
0x27c2   :  { %v6392_v47 = vpop.permute.xlu1 %6391 }
0x27c3   :  { %v6390_v44 = vpop.permute.xlu0 %6389 }
0x27c4   :  { %v6397_v26 = vsel %vm1041_vm8, %v6390_v44, %v6392_v47  ;;  %v6354_v47 = vadd.f32 1.0, %v12342_v4  ;;  %v9382_v4 = vmul.f32 -1.442695, %v11656_v7 }
0x27c5   :  { %v6401_v8 = vmul.f32 %v12336_v2, %v6397_v26 }
0x27c6   :  { %12343 = vrcp.f32 %v6354_v47 }
0x27c7   :  { %6405 = vrot.lane.b32.xlu0 %v6401_v8, %s12695_s20  ;;  %v6381_v8 = vmul.f32 %v12336_v2, %v14850_v63 }
0x27d0   :  { %v12344_v44 = vpop.eup %12343 }
0x27d1   :  { %v6382_v17 = vmul.f32 %v12344_v44, %v14852_v21  ;;  %v9383_v44 = vmul.f32 -1.442695, %v14939_v18 }
0x2807   :  { %v6394_v23 = vpop.permute.xlu0 %6393 }
0x2808   :  { %v6396_v42 = vpop.permute.xlu1 %6395 }
0x2809   :  { %v6398_v30 = vsel %vm1041_vm8, %v6394_v23, %v6396_v42  ;;  %v6383_v23 = vmul.f32 %v12340_v57, %v14860_v14 }
0x280a   :  { %v6402_v33 = vmul.f32 %v12340_v57, %v6398_v30 }
0x280c   :  { %6407 = vrot.lane.b32.xlu1 %v6402_v33, %s12695_s20 }
0x2839   :  { %v6406_v62 = vpop.permute.xlu0 %6405 }
0x283a   :  { %v14960_v54 = vadd.f32 %v6406_v62, %v6381_v8  ;;  %v14962_v26 = vadd.f32 %v6406_v62, %v6382_v17 }
0x283c   :  { %12345 = vtanh.f32 %v14960_v54 }
0x283d   :  { %12347 = vtanh.f32 %v14962_v26 }
0x283e   :  { %12349 = vpow2.f32 %v9382_v4 }
0x2846   :  { %v12346_v11 = vpop.eup %12345 }
0x2847   :  { %v12348_v55 = vpop.eup %12347  ;;  %6423 = vrot.lane.b32.xlu0 %v12346_v11, %s12694_s2 }
0x2848   :  { %6425 = vrot.lane.b32.xlu1 %v12348_v55, %s12694_s2  ;;  %v12350_v63 = vpop.eup %12349  ;;  %v9384_v55 = vmul.f32 -1.442695, %v14948_v10 }
0x2849   :  { %v6356_v2 = vadd.f32 1.0, %v12350_v63 }
0x284b   :  { %12351 = vrcp.f32 %v6356_v2 }
0x2855   :  { %v12352_v21 = vpop.eup %12351 }
0x2856   :  { %v6384_v42 = vmul.f32 %v12352_v21, %v14862_v46 }
0x287e   :  { %v6408_v30 = vpop.permute.xlu1 %6407 }
0x287f   :  { %v14970_v33 = vadd.f32 %v6408_v30, %v6383_v23  ;;  %v14972_v56 = vadd.f32 %v6408_v30, %v6384_v42 }
0x2881   :  { %12353 = vtanh.f32 %v14970_v33 }
0x2882   :  { %12355 = vtanh.f32 %v14972_v56 }
0x2883   :  { %12357 = vpow2.f32 %v9383_v44 }
0x288b   :  { %v12354_v47 = vpop.eup %12353 }
0x288c   :  { %v12356_v7 = vpop.eup %12355  ;;  %6427 = vrot.lane.b32.xlu0 %v12354_v47, %s12694_s2 }
0x288d   :  { %6429 = vrot.lane.b32.xlu1 %v12356_v7, %s12694_s2  ;;  %v12358_v14 = vpop.eup %12357 }
0x288e   :  { %v6375_v46 = vadd.f32 1.0, %v12358_v14 }
0x2890   :  { %12359 = vrcp.f32 %v6375_v46 }
0x2891   :  { %12361 = vpow2.f32 %v9384_v55 }
0x289a   :  { %v12360_v17 = vpop.eup %12359 }
0x289b   :  { %v12362_v4 = vpop.eup %12361 }
0x289c   :  { %v6376_v63 = vadd.f32 1.0, %v12362_v4 }
0x289e   :  { %12363 = vrcp.f32 %v6376_v63 }
0x28a8   :  { %v12364_v21 = vpop.eup %12363 }
0x28b9   :  { %v6424_v57 = vpop.permute.xlu0 %6423 }
0x28ba   :  { %v6426_v8 = vpop.permute.xlu1 %6425 }
0x28bb   :  { %v6431_v62 = vsel %vm1041_vm8, %v6424_v57, %v6426_v8 }
0x28bc   :  { %v14980_v11 = vmul.f32 %v12360_v17, %v6431_v62 }
0x28be   :  { %6439 = vrot.lane.b32.xlu0 %v14980_v11, %s12695_s20 }
0x28fe   :  { %v6428_v18 = vpop.permute.xlu0 %6427 }
0x28ff   :  { %v6430_v2 = vpop.permute.xlu1 %6429 }
0x2900   :  { %v6432_v23 = vsel %vm1041_vm8, %v6428_v18, %v6430_v2 }
0x2901   :  { %v14986_v42 = vmul.f32 %v12364_v21, %v6432_v23 }
0x2903   :  { %6441 = vrot.lane.b32.xlu1 %v14986_v42, %s12695_s20 }
0x2930   :  { %v14990_v30 = vpop.permute.xlu0 %6439 }
0x2931   :  { %9385 = vmatmul.mubr.msk.f32.vlgmr.msra.gmra.mrb[60].mxu1 %vm750_vm9, %v14990_v30  ;;  %9387 = vmatmul.mubr.msk.f32.vlgmr.msra.gmra.mrb[84].mxu0 %vm750_vm9, %v14990_v30 }
0x2932   :  { %11235 = vmatpush1.bf16.msra.mxu1 %v14283_v6  ;;  %6517 = vmatprep.mubr.f32.mxu1 %v15718_v37 }
0x2933   :  { %11237 = vmatprep.subr.bf16.mxu1 %v14286_v25  ;;  %6591 = vmatprep.mubr.f32.mxu0 %v15718_v37 }
0x2934   :  { %11283 = vmatpush1.bf16.msra.mxu0 %v14102_v35 }
0x2935   :  { %11285 = vmatprep.subr.bf16.mxu0 %v14109_v16 }
0x2936   :  { %11239 = vmatpush1.bf16.msra.mxu1 %v14291_v29 }
0x2937   :  { %11241 = vmatprep.subr.bf16.mxu1 %v14294_v61 }
0x2938   :  { %11287 = vmatpush1.bf16.msra.mxu0 %v14113_v0 }
0x2939   :  { %11289 = vmatprep.subr.bf16.mxu0 %v14117_v50  ;;  %v15806_v50 = vld [vmem:[#allocation34_spill] sm:$0xff] }
0x293a   :  { %11243 = vmatpush1.bf16.msra.mxu1 %v14298_v12 }
0x293b   :  { %11245 = vmatprep.subr.bf16.mxu1 %v14302_v20 }
0x293c   :  { %11291 = vmatpush1.bf16.msra.mxu0 %v14122_v53 }
0x293d   :  { %11293 = vmatprep.subr.bf16.mxu0 %v14126_v59 }
0x293e   :  { %11247 = vmatpush1.bf16.msra.mxu1 %v14305_v38 }
0x293f   :  { %11249 = vmatprep.subr.bf16.mxu1 %v14308_v40 }
0x2940   :  { %11295 = vmatpush1.bf16.msra.mxu0 %v14131_v13 }
0x2941   :  { %11297 = vmatprep.subr.bf16.mxu0 %v14135_v24 }
0x2942   :  { %11251 = vmatpush1.bf16.msra.mxu1 %v14311_v34 }
0x2943   :  { %11253 = vmatprep.subr.bf16.mxu1 %v14314_v48 }
0x2944   :  { %11299 = vmatpush1.bf16.msra.mxu0 %v14140_v49 }
0x2945   :  { %11301 = vmatprep.subr.bf16.mxu0 %v14144_v5 }
0x2946   :  { %11255 = vmatpush1.bf16.msra.mxu1 %v14317_v1 }
0x2947   :  { %11257 = vmatprep.subr.bf16.mxu1 %v14196_v19 }
0x2948   :  { %11303 = vmatpush1.bf16.msra.mxu0 %v14149_v60 }
0x2975   :  { %v15021_v35 = vpop.permute.xlu1 %6441 }
0x2976   :  { %9386 = vmatmul.mubr.msk.f32.gmra.mrb[124].mxu1 %vm750_vm9, %v15021_v35  ;;  %9388 = vmatmul.mubr.msk.f32.gmra.mrb[86].mxu0 %vm750_vm9, %v15021_v35 }
0x2977   :  { %6661 = vmatprep.mubr.f32.mxu1 %v15718_v37  ;;  %6923 = vmatprep.mubr.f32.mxu0 %v15718_v37 }
0x297a   :  { %9389 = vmatmul.mubr.msk.f32.vlgmr.msra.gmra.mrb[126].mxu1 %vm750_vm9, %v14990_v30 }
0x297b   :  { %6665 = vmatprep.mubr.f32.mxu1 %v15718_v37  ;;  %11259 = vmatpush1.bf16.msra.mxu1 %v14208_v32 }
0x297c   :  { %11261 = vmatprep.subr.bf16.mxu1 %v14210_v45 }
0x297e   :  { %9390 = vmatmul.mubr.msk.f32.gmra.mrb[82].mxu1 %vm750_vm9, %v15021_v35 }
0x297f   :  { %11263 = vmatpush1.bf16.msra.mxu1 %v14216_v22  ;;  %6848 = vmatprep.mubr.f32.mxu1 %v15718_v37  ;;  %v15807_v22 = vld [vmem:[#allocation24_spill] sm:$0xff] }
0x2980   :  { %11265 = vmatprep.subr.bf16.mxu1 %v14219_v31 }
0x2983   :  { %11267 = vmatpush1.bf16.msra.mxu1 %v14225_v58 }
0x2984   :  { %11269 = vmatprep.subr.bf16.mxu1 %v14228_v3 }
0x2987   :  { %11271 = vmatpush1.bf16.msra.mxu1 %v14234_v9 }
0x2988   :  { %11273 = vmatprep.subr.bf16.mxu1 %v14237_v28 }
0x298b   :  { %11275 = vmatpush1.bf16.msra.mxu1 %v14243_v43 }
0x298c   :  { %11277 = vmatprep.subr.bf16.mxu1 %v14246_v39 }
0x298f   :  { %11279 = vmatpush1.bf16.msra.mxu1 %v14252_v51 }
0x2990   :  { %11305 = vmatprep.subr.bf16.mxu1 %v14280_v36 }
0x2a04   :  { %v6513_v16 = vpop.f32.mrb[60].mxu1  ;;  %v6588_v0 = vpop.f32.mrb[84].mxu0 }
0x2a05   :  { %v15048_v53 = vadd.f32 %v6588_v0, %v15806_v50  ;;  %v6515_v59 = vpop.f32.mrb[61].mxu1  ;;  %v6590_v13 = vpop.f32.mrb[85].mxu0  ;;  %v11648_v10 = vadd.f32 %v6513_v16, %v15805_v41 }
0x2a06   :  { %v11649_v24 = vadd.f32 %v6515_v59, %v14378_v27 }
0x2a07   :  { %12365 = vtanh.f32 %v15048_v53  ;;  %v9391_v47 = vmul.f32 -1.442695, %v11648_v10 }
0x2a08   :  { %12367 = vtanh.f32 %v11649_v24  ;;  %v9392_v16 = vmul.f32 -1.442695, %v11649_v24 }
0x2a11   :  { %v12366_v49 = vpop.eup %12365 }
0x2a12   :  { %v12368_v5 = vpop.eup %12367  ;;  %6728 = vrot.lane.b32.xlu1 %v12366_v49, %s12694_s2 }
0x2a13   :  { %6726 = vrot.lane.b32.xlu0 %v12368_v5, %s12694_s2 }
0x2a49   :  { %v6519_v60 = vpop.f32.mrb[124].mxu1  ;;  %v6593_v19 = vpop.f32.mrb[86].mxu0 }
0x2a4a   :  { %v6520_v32 = vpop.f32.mrb[125].mxu1  ;;  %v6594_v45 = vpop.f32.mrb[87].mxu0 }
0x2a4b   :  { %v6675_v31 = vadd.f32 %v6594_v45, %v15807_v22 }
0x2a4d   :  { %v6663_v58 = vpop.f32.mrb[126].mxu1  ;;  %v9393_v62 = vmul.f32 -1.442695, %v6675_v31 }
0x2a4e   :  { %v6664_v3 = vpop.f32.mrb[127].mxu1 }
0x2a51   :  { %v6667_v9 = vpop.f32.mrb[82].mxu1 }
0x2a52   :  { %v11654_v28 = vadd.f32 %v6667_v9, %v14389_v52  ;;  %v6669_v43 = vpop.f32.mrb[83].mxu1 }
0x2a53   :  { %v15057_v39 = vadd.f32 %v6669_v43, %v15783_v15 }
0x2a54   :  { %12369 = vtanh.f32 %v11654_v28  ;;  %v9394_v45 = vmul.f32 -1.442695, %v11654_v28 }
0x2a55   :  { %12371 = vtanh.f32 %v15057_v39 }
0x2a56   :  { %12373 = vpow2.f32 %v9391_v47 }
0x2a5e   :  { %v12370_v51 = vpop.eup %12369 }
0x2a5f   :  { %v12372_v36 = vpop.eup %12371  ;;  %6730 = vrot.lane.b32.xlu0 %v12370_v51, %s12694_s2 }
0x2a60   :  { %6732 = vrot.lane.b32.xlu1 %v12372_v36, %s12694_s2  ;;  %v12374_v7 = vpop.eup %12373  ;;  %v9395_v36 = vmul.f32 -1.442695, %v15048_v53 }
0x2a61   :  { %v6690_v44 = vadd.f32 1.0, %v12374_v7 }
0x2a63   :  { %12375 = vrcp.f32 %v6690_v44 }
0x2a64   :  { %12377 = vpow2.f32 %v9393_v62 }
0x2a6d   :  { %v12376_v57 = vpop.eup %12375 }
0x2a6e   :  { %v12378_v55 = vpop.eup %12377  ;;  %v6718_v13 = vmul.f32 %v12376_v57, %v14960_v54 }
0x2a6f   :  { %v6692_v4 = vadd.f32 1.0, %v12378_v55 }
0x2a71   :  { %12379 = vrcp.f32 %v6692_v4 }
0x2a72   :  { %12381 = vpow2.f32 %v9392_v16 }
0x2a7b   :  { %v12380_v2 = vpop.eup %12379 }
0x2a7c   :  { %v12382_v0 = vpop.eup %12381  ;;  %v6720_v31 = vmul.f32 %v12380_v2, %v14970_v33 }
0x2a7d   :  { %v6691_v50 = vadd.f32 1.0, %v12382_v0 }
0x2a7f   :  { %12383 = vrcp.f32 %v6691_v50 }
0x2a84   :  { %v6729_v14 = vpop.permute.xlu1 %6728 }
0x2a85   :  { %v6727_v46 = vpop.permute.xlu0 %6726 }
0x2a86   :  { %v6734_v8 = vsel %vm1041_vm8, %v6727_v46, %v6729_v14  ;;  %v9396_v46 = vmul.f32 -1.442695, %v15057_v39 }
0x2a87   :  { %v6738_v17 = vmul.f32 %v12376_v57, %v6734_v8 }
0x2a89   :  { %6742 = vrot.lane.b32.xlu0 %v6738_v17, %s12695_s20  ;;  %v12384_v59 = vpop.eup %12383 }
0x2a8a   :  { %v6719_v49 = vmul.f32 %v12384_v59, %v14962_v26 }
0x2ad1   :  { %v6731_v63 = vpop.permute.xlu0 %6730 }
0x2ad2   :  { %v6733_v18 = vpop.permute.xlu1 %6732 }
0x2ad3   :  { %v6735_v21 = vsel %vm1041_vm8, %v6731_v63, %v6733_v18 }
0x2ad4   :  { %v6739_v23 = vmul.f32 %v12380_v2, %v6735_v21  ;;  %v15809_v21 = vld [vmem:[#allocation29_spill] sm:$0xff] }
0x2ad6   :  { %6744 = vrot.lane.b32.xlu1 %v6739_v23, %s12695_s20 }
0x2afb   :  { %v6743_v5 = vpop.permute.xlu0 %6742 }
0x2afc   :  { %v15069_v60 = vadd.f32 %v6743_v5, %v6718_v13  ;;  %v15071_v19 = vadd.f32 %v6743_v5, %v6719_v49 }
0x2afe   :  { %12385 = vtanh.f32 %v15069_v60 }
0x2aff   :  { %12387 = vtanh.f32 %v15071_v19 }
0x2b00   :  { %12389 = vpow2.f32 %v9394_v45 }
0x2b08   :  { %v12386_v32 = vpop.eup %12385 }
0x2b09   :  { %v12388_v24 = vpop.eup %12387  ;;  %6760 = vrot.lane.b32.xlu0 %v12386_v32, %s12694_s2 }
0x2b0a   :  { %6762 = vrot.lane.b32.xlu1 %v12388_v24, %s12694_s2  ;;  %v12390_v54 = vpop.eup %12389 }
0x2b0b   :  { %v6693_v22 = vadd.f32 1.0, %v12390_v54 }
0x2b0d   :  { %12391 = vrcp.f32 %v6693_v22 }
0x2b17   :  { %v12392_v26 = vpop.eup %12391 }
0x2b18   :  { %v6721_v58 = vmul.f32 %v12392_v26, %v14972_v56 }
0x2b48   :  { %v6745_v3 = vpop.permute.xlu1 %6744 }
0x2b49   :  { %v15079_v9 = vadd.f32 %v6745_v3, %v6720_v31  ;;  %v15081_v43 = vadd.f32 %v6745_v3, %v6721_v58 }
0x2b4b   :  { %12393 = vtanh.f32 %v15079_v9 }
0x2b4c   :  { %12395 = vtanh.f32 %v15081_v43 }
0x2b4d   :  { %12397 = vpow2.f32 %v9395_v36 }
0x2b55   :  { %v12394_v51 = vpop.eup %12393 }
0x2b56   :  { %v12396_v28 = vpop.eup %12395  ;;  %6764 = vrot.lane.b32.xlu0 %v12394_v51, %s12694_s2 }
0x2b57   :  { %6766 = vrot.lane.b32.xlu1 %v12396_v28, %s12694_s2  ;;  %v12398_v33 = vpop.eup %12397 }
0x2b58   :  { %v6712_v56 = vadd.f32 1.0, %v12398_v33 }
0x2b5a   :  { %12399 = vrcp.f32 %v6712_v56 }
0x2b5b   :  { %12401 = vpow2.f32 %v9396_v46 }
0x2b64   :  { %v12400_v7 = vpop.eup %12399 }
0x2b65   :  { %v12402_v57 = vpop.eup %12401 }
0x2b66   :  { %v6713_v8 = vadd.f32 1.0, %v12402_v57 }
0x2b68   :  { %12403 = vrcp.f32 %v6713_v8 }
0x2b72   :  { %v12404_v62 = vpop.eup %12403 }
0x2b7b   :  { %v6761_v10 = vpop.permute.xlu0 %6760 }
0x2b7c   :  { %v6763_v47 = vpop.permute.xlu1 %6762 }
0x2b7d   :  { %v6768_v44 = vsel %vm1041_vm8, %v6761_v10, %v6763_v47 }
0x2b7e   :  { %v15089_v14 = vmul.f32 %v12400_v7, %v6768_v44 }
0x2b80   :  { %6776 = vrot.lane.b32.xlu0 %v15089_v14, %s12695_s20 }
0x2bc8   :  { %v6765_v53 = vpop.permute.xlu0 %6764 }
0x2bc9   :  { %v6767_v17 = vpop.permute.xlu1 %6766 }
0x2bca   :  { %v6769_v55 = vsel %vm1041_vm8, %v6765_v53, %v6767_v17 }
0x2bcb   :  { %v15095_v4 = vmul.f32 %v12404_v62, %v6769_v55 }
0x2bcd   :  { %6778 = vrot.lane.b32.xlu1 %v15095_v4, %s12695_s20 }
0x2bf2   :  { %v15099_v63 = vpop.permute.xlu0 %6776 }
0x2bf3   :  { %9397 = vmatmul.mubr.msk.f32.vlgmr.msra.gmra.mrb[62].mxu1 %vm750_vm9, %v15099_v63  ;;  %9399 = vmatmul.mubr.msk.f32.vlgmr.msra.gmra.mrb[88].mxu0 %vm750_vm9, %v15099_v63 }
0x2bf4   :  { %11307 = vmatpush1.bf16.msra.mxu1 %v14283_v6  ;;  %6854 = vmatprep.mubr.f32.mxu1 %v15718_v37 }
0x2bf5   :  { %11309 = vmatprep.subr.bf16.mxu1 %v14286_v25  ;;  %6928 = vmatprep.mubr.f32.mxu0 %v15718_v37 }
0x2bf8   :  { %11311 = vmatpush1.bf16.msra.mxu1 %v14291_v29 }
0x2bf9   :  { %11313 = vmatprep.subr.bf16.mxu1 %v14294_v61  ;;  %v15808_v61 = vld [vmem:[#allocation40_spill] sm:$0xff] }
0x2bfc   :  { %11315 = vmatpush1.bf16.msra.mxu1 %v14298_v12 }
0x2bfd   :  { %11317 = vmatprep.subr.bf16.mxu1 %v14302_v20 }
0x2c00   :  { %11319 = vmatpush1.bf16.msra.mxu1 %v14305_v38 }
0x2c01   :  { %11321 = vmatprep.subr.bf16.mxu1 %v14308_v40 }
0x2c04   :  { %11323 = vmatpush1.bf16.msra.mxu1 %v14311_v34 }
0x2c05   :  { %11325 = vmatprep.subr.bf16.mxu1 %v14314_v48 }
0x2c08   :  { %11327 = vmatpush1.bf16.msra.mxu1 %v14317_v1 }
0x2c3f   :  { %v15118_v6 = vpop.permute.xlu1 %6778 }
0x2c40   :  { %9398 = vmatmul.mubr.msk.f32.gmra.mrb[128].mxu1 %vm750_vm9, %v15118_v6  ;;  %9400 = vmatmul.mubr.msk.f32.gmra.mrb[90].mxu0 %vm750_vm9, %v15118_v6 }
0x2c41   :  { %6998 = vmatprep.mubr.f32.mxu1 %v15718_v37 }
0x2c44   :  { %9401 = vmatmul.mubr.msk.f32.vlgmr.msra.gmra.mrb[130].mxu1 %vm750_vm9, %v15099_v63 }
0x2c45   :  { %7002 = vmatprep.mubr.f32.mxu1 %v15718_v37 }
0x2c48   :  { %9402 = vmatmul.mubr.msk.f32.gmra.mrb[80].mxu1 %vm750_vm9, %v15118_v6 }
0x2cc6   :  { %v6850_v25 = vpop.f32.mrb[62].mxu1  ;;  %v6925_v29 = vpop.f32.mrb[88].mxu0 }
0x2cc7   :  { %v15131_v12 = vadd.f32 %v6925_v29, %v15808_v61  ;;  %v6852_v20 = vpop.f32.mrb[63].mxu1  ;;  %v6927_v38 = vpop.f32.mrb[89].mxu0  ;;  %v11650_v49 = vadd.f32 %v6850_v25, %v15805_v41 }
0x2cc8   :  { %v11651_v40 = vadd.f32 %v6852_v20, %v14378_v27 }
0x2cc9   :  { %12405 = vtanh.f32 %v15131_v12  ;;  %v9403_v24 = vmul.f32 -1.442695, %v11650_v49 }
0x2cca   :  { %12407 = vtanh.f32 %v11651_v40  ;;  %v9404_v51 = vmul.f32 -1.442695, %v11651_v40 }
0x2cd3   :  { %v12406_v34 = vpop.eup %12405 }
0x2cd4   :  { %v12408_v48 = vpop.eup %12407  ;;  %7065 = vrot.lane.b32.xlu1 %v12406_v34, %s12694_s2 }
0x2cd5   :  { %7063 = vrot.lane.b32.xlu0 %v12408_v48, %s12694_s2 }
0x2d13   :  { %v6856_v1 = vpop.f32.mrb[128].mxu1  ;;  %v6930_v39 = vpop.f32.mrb[90].mxu0 }
0x2d14   :  { %v6857_v18 = vpop.f32.mrb[129].mxu1  ;;  %v6931_v2 = vpop.f32.mrb[91].mxu0  ;;  %v9407_v39 = vmul.f32 -1.442695, %v15131_v12  ;;  %v15811_v12 = vld [vmem:[#allocation20_spill] sm:$0xff] }
0x2d15   :  { %v7012_v23 = vadd.f32 %v6931_v2, %v15809_v21 }
0x2d17   :  { %v7000_v16 = vpop.f32.mrb[130].mxu1  ;;  %v9405_v41 = vmul.f32 -1.442695, %v7012_v23 }
0x2d18   :  { %v7001_v0 = vpop.f32.mrb[131].mxu1 }
0x2d19   :  { %v15810_v0 = vld [vmem:[#allocation39_spill] sm:$0xff] }
0x2d1b   :  { %v7004_v50 = vpop.f32.mrb[80].mxu1 }
0x2d1c   :  { %v11652_v27 = vadd.f32 %v7004_v50, %v14389_v52  ;;  %v7006_v59 = vpop.f32.mrb[81].mxu1 }
0x2d1d   :  { %v15140_v13 = vadd.f32 %v7006_v59, %v15783_v15  ;;  %v15812_v59 = vld [vmem:[#allocation28_spill] sm:$0xff] }
0x2d1e   :  { %12409 = vtanh.f32 %v11652_v27  ;;  %v9406_v25 = vmul.f32 -1.442695, %v11652_v27 }
0x2d1f   :  { %12411 = vtanh.f32 %v15140_v13 }
0x2d20   :  { %12413 = vpow2.f32 %v9403_v24  ;;  %v15814_v24 = vld [vmem:[#allocation31_spill] sm:$0xff] }
0x2d28   :  { %v12410_v5 = vpop.eup %12409 }
0x2d29   :  { %v12412_v32 = vpop.eup %12411  ;;  %7067 = vrot.lane.b32.xlu0 %v12410_v5, %s12694_s2  ;;  %v15813_v5 = vld [vmem:[#allocation30_spill] sm:$0xff] }
0x2d2a   :  { %7069 = vrot.lane.b32.xlu1 %v12412_v32, %s12694_s2  ;;  %v12414_v45 = vpop.eup %12413 }
0x2d2b   :  { %v7027_v54 = vadd.f32 1.0, %v12414_v45 }
0x2d2d   :  { %12415 = vrcp.f32 %v7027_v54  ;;  %v7111_v54 = vld [vmem:[%s15615_s8] sm:$0xff] }
0x2d2e   :  { %12417 = vpow2.f32 %v9405_v41  ;;  %v7115_v41 = vld [vmem:[%s15615_s8 + $0x20] sm:$0xff] }
0x2d37   :  { %v12416_v15 = vpop.eup %12415 }
0x2d38   :  { %v12418_v58 = vpop.eup %12417  ;;  %v7055_v46 = vmul.f32 %v12416_v15, %v15069_v60 }
0x2d39   :  { %v7029_v3 = vadd.f32 1.0, %v12418_v58  ;;  %v7116_v58 = vld [vmem:[%s15615_s8 + $0x28] sm:$0xff] }
0x2d3b   :  { %12419 = vrcp.f32 %v7029_v3 }
0x2d3c   :  { %12421 = vpow2.f32 %v9404_v51  ;;  %v15204_v51 = vpack.c.bf16 %v7116_v58, %v7115_v41 }
0x2d45   :  { %v12420_v33 = vpop.eup %12419 }
0x2d46   :  { %v7066_v52 = vpop.permute.xlu1 %7065  ;;  %v12422_v47 = vpop.eup %12421  ;;  %v7057_v60 = vmul.f32 %v12420_v33, %v15079_v9 }
0x2d47   :  { %v7064_v22 = vpop.permute.xlu0 %7063  ;;  %v7028_v7 = vadd.f32 1.0, %v12422_v47 }
0x2d48   :  { %v7071_v26 = vsel %vm1041_vm8, %v7064_v22, %v7066_v52  ;;  %v7112_v52 = vld [vmem:[%s15615_s8 + $0x8] sm:$0xff]  ;;  %v7113_v22 = vld [vmem:[%s15615_s8 + $0x10] sm:$0xff] }
0x2d49   :  { %v7075_v31 = vmul.f32 %v12416_v15, %v7071_v26  ;;  %12423 = vrcp.f32 %v7028_v7  ;;  %v15185_v15 = vpack.c.bf16 %v7112_v52, %v7111_v54  ;;  %v7114_v26 = vld [vmem:[%s15615_s8 + $0x18] sm:$0xff]  ;;  %v7121_v7 = vld [vmem:[%s15615_s8 + $0x50] sm:$0xff] }
0x2d4b   :  { %7079 = vrot.lane.b32.xlu0 %v7075_v31, %s12695_s20  ;;  %v15191_v31 = vpack.c.bf16 %v7114_v26, %v7113_v22  ;;  %11329 = vmatprep.subr.bf16.mxu0 %v15185_v15 }
0x2d4c   :  { %11331 = vmatpush3.bf16.msra.mxu0 %v15185_v15 }
0x2d4d   :  { %11333 = vmatprep.subr.bf16.mxu0 %v15191_v31 }
0x2d50   :  { %11335 = vmatpush3.bf16.msra.mxu0 %v15191_v31 }
0x2d51   :  { %11337 = vmatprep.subr.bf16.mxu0 %v15204_v51 }
0x2d53   :  { %v12424_v44 = vpop.eup %12423 }
0x2d54   :  { %v7056_v57 = vmul.f32 %v12424_v44, %v15071_v19  ;;  %11339 = vmatpush3.bf16.msra.mxu0 %v15204_v51  ;;  %v7122_v44 = vld [vmem:[%s15615_s8 + $0x58] sm:$0xff] }
0x2d9b   :  { %v7068_v28 = vpop.permute.xlu0 %7067 }
0x2d9c   :  { %v7070_v36 = vpop.permute.xlu1 %7069 }
0x2d9d   :  { %v7072_v56 = vsel %vm1041_vm8, %v7068_v28, %v7070_v36  ;;  %v7117_v28 = vld [vmem:[%s15615_s8 + $0x30] sm:$0xff]  ;;  %v7118_v36 = vld [vmem:[%s15615_s8 + $0x38] sm:$0xff] }
0x2d9e   :  { %v7076_v10 = vmul.f32 %v12420_v33, %v7072_v56  ;;  %v7119_v56 = vld [vmem:[%s15615_s8 + $0x40] sm:$0xff] }
0x2da0   :  { %7081 = vrot.lane.b32.xlu1 %v7076_v10, %s12695_s20  ;;  %v7120_v10 = vld [vmem:[%s15615_s8 + $0x48] sm:$0xff] }
0x2dbd   :  { %v7080_v8 = vpop.permute.xlu0 %7079 }
0x2dbe   :  { %v7085_v53 = vadd.f32 %v7080_v8, %v7055_v46  ;;  %v7086_v17 = vadd.f32 %v7080_v8, %v7056_v57  ;;  %v15241_v46 = vpack.c.bf16 %v7122_v44, %v7121_v7  ;;  %v9408_v57 = vmul.f32 -1.442695, %v15140_v13  ;;  %v15817_v13 = vld [vmem:[#allocation38_spill] sm:$0xff] }
0x2dc0   :  { %12425 = vtanh.f32 %v7085_v53 }
0x2dc1   :  { %12427 = vtanh.f32 %v7086_v17 }
0x2dc2   :  { %12429 = vpow2.f32 %v9406_v25 }
0x2dca   :  { %v12426_v62 = vpop.eup %12425 }
0x2dcb   :  { %v12428_v55 = vpop.eup %12427  ;;  %7097 = vrot.lane.b32.xlu0 %v12426_v62, %s12694_s2 }
0x2dcc   :  { %7099 = vrot.lane.b32.xlu1 %v12428_v55, %s12694_s2  ;;  %v12430_v29 = vpop.eup %12429 }
0x2dcd   :  { %v7030_v61 = vadd.f32 1.0, %v12430_v29 }
0x2dcf   :  { %12431 = vrcp.f32 %v7030_v61  ;;  %v15815_v61 = vld [vmem:[#allocation33_spill] sm:$0xff] }
0x2dd9   :  { %v12432_v20 = vpop.eup %12431 }
0x2dda   :  { %v7058_v19 = vmul.f32 %v12432_v20, %v15081_v43 }
0x2e12   :  { %v7082_v38 = vpop.permute.xlu1 %7081 }
0x2e13   :  { %v7087_v40 = vadd.f32 %v7082_v38, %v7057_v60  ;;  %v7088_v34 = vadd.f32 %v7082_v38, %v7058_v19  ;;  %v15816_v60 = vld [vmem:[#allocation41_spill] sm:$0xff] }
0x2e15   :  { %12433 = vtanh.f32 %v7087_v40  ;;  %v15818_v40 = vld [vmem:[#allocation22_spill] sm:$0xff] }
0x2e16   :  { %12435 = vtanh.f32 %v7088_v34 }
0x2e17   :  { %12437 = vpow2.f32 %v9407_v39 }
0x2e1f   :  { %v12434_v48 = vpop.eup %12433 }
0x2e20   :  { %v12436_v1 = vpop.eup %12435  ;;  %7101 = vrot.lane.b32.xlu0 %v12434_v48, %s12694_s2  ;;  %v15819_v48 = vld [vmem:[#allocation23_spill] sm:$0xff] }
0x2e21   :  { %7103 = vrot.lane.b32.xlu1 %v12436_v1, %s12694_s2  ;;  %v12438_v18 = vpop.eup %12437 }
0x2e22   :  { %v7049_v2 = vadd.f32 1.0, %v12438_v18 }
0x2e24   :  { %12439 = vrcp.f32 %v7049_v2 }
0x2e25   :  { %12441 = vpow2.f32 %v9408_v57 }
0x2e2e   :  { %v12440_v43 = vpop.eup %12439 }
0x2e2f   :  { %v12442_v8 = vpop.eup %12441 }
0x2e30   :  { %v7050_v53 = vadd.f32 1.0, %v12442_v8 }
0x2e32   :  { %12443 = vrcp.f32 %v7050_v53 }
0x2e3c   :  { %v12444_v55 = vpop.eup %12443 }
0x2e3d   :  { %v7098_v9 = vpop.permute.xlu0 %7097 }
0x2e3e   :  { %v7100_v21 = vpop.permute.xlu1 %7099 }
0x2e3f   :  { %v7105_v23 = vsel %vm1041_vm8, %v7098_v9, %v7100_v21 }
0x2e40   :  { %v15160_v16 = vmul.f32 %v12440_v43, %v7105_v23 }
0x2e42   :  { %v7124_v50 = vmul.f32 %v15160_v16, %v15810_v0  ;;  %v7211_v27 = vmul.f32 %v15160_v16, %v15811_v12  ;;  %v7298_v49 = vmul.f32 %v15160_v16, %v15812_v59  ;;  %v7385_v32 = vmul.f32 %v15160_v16, %v15813_v5 }
0x2e43   :  { %v7472_v45 = vmul.f32 %v15160_v16, %v15814_v24  ;;  %v7559_v3 = vmul.f32 %v15160_v16, %v14980_v11  ;;  %v7646_v33 = vmul.f32 %v15160_v16, %v15089_v14  ;;  %v15217_v11 = vpack.c.bf16 %v7118_v36, %v7117_v28 }
0x2e44   :  { %7128 = vrot.lane.b32.xlu0 %v7124_v50, %s12695_s20  ;;  %v7733_v47 = vmul.f32 %v15160_v16, %v15160_v16  ;;  %v15230_v14 = vpack.c.bf16 %v7120_v10, %v7119_v56 }
0x2e45   :  { %11341 = vmatprep.subr.bf16.mxu0 %v15217_v11 }
0x2e46   :  { %11343 = vmatpush3.bf16.msra.mxu0 %v15217_v11 }
0x2e47   :  { %11345 = vmatprep.subr.bf16.mxu0 %v15230_v14 }
0x2e48   :  { %7215 = vrot.lane.b32.xlu0 %v7211_v27, %s12695_s20 }
0x2e4a   :  { %11347 = vmatpush3.bf16.msra.mxu0 %v15230_v14 }
0x2e4b   :  { %11349 = vmatprep.subr.bf16.mxu0 %v15241_v46 }
0x2e4c   :  { %7302 = vrot.lane.b32.xlu0 %v7298_v49, %s12695_s20 }
0x2e4e   :  { %11351 = vmatpush3.bf16.msra.mxu0 %v15241_v46 }
0x2e4f   :  { %11353 = vmatprep.subr.bf16.mxu0 %v15185_v15 }
0x2e50   :  { %7389 = vrot.lane.b32.xlu0 %v7385_v32, %s12695_s20 }
0x2e54   :  { %7476 = vrot.lane.b32.xlu0 %v7472_v45, %s12695_s20 }
0x2e58   :  { %7563 = vrot.lane.b32.xlu0 %v7559_v3, %s12695_s20 }
0x2e5c   :  { %7650 = vrot.lane.b32.xlu0 %v7646_v33, %s12695_s20  ;;  %v15381_v33 = vld [vmem:[%s15616_s9] sm:$0x7] }
0x2e5d   :  { %9867 = vmatprep.subr.msk.mxu1 %vm7903_vm10, %v15381_v33 }
0x2e5e   :  { %9868 = vmatpush3.msk.msra.mxu1 %vm7903_vm10, %v15381_v33 }
0x2e5f   :  { %9877 = vmatprep.subr.msk.mxu1 %vm7903_vm10, %v15381_v33 }
0x2e60   :  { %7737 = vrot.lane.b32.xlu0 %v7733_v47, %s12695_s20 }
0x2e92   :  { %v7102_v17 = vpop.permute.xlu0 %7101 }
0x2e93   :  { %v7104_v62 = vpop.permute.xlu1 %7103 }
0x2e94   :  { %v7106_v25 = vsel %vm1041_vm8, %v7102_v17, %v7104_v62 }
0x2e95   :  { %v7110_v29 = vmul.f32 %v12444_v55, %v7106_v25 }
0x2e97   :  { %8581 = vrot.lane.b32.xlu0 %v7110_v29, %s12695_s20  ;;  %v7125_v20 = vmul.f32 %v7110_v29, %v15815_v61  ;;  %v7212_v19 = vmul.f32 %v7110_v29, %v15816_v60  ;;  %v7299_v38 = vmul.f32 %v7110_v29, %v15817_v13  ;;  %v7386_v34 = vmul.f32 %v7110_v29, %v15818_v40 }
0x2e98   :  { %v7473_v1 = vmul.f32 %v7110_v29, %v15819_v48  ;;  %v7560_v39 = vmul.f32 %v7110_v29, %v14986_v42  ;;  %v7647_v18 = vmul.f32 %v7110_v29, %v15095_v4  ;;  %v7734_v2 = vmul.f32 %v7110_v29, %v7110_v29 }
0x2e99   :  { %7130 = vrot.lane.b32.xlu1 %v7125_v20, %s12695_s20 }
0x2e9d   :  { %7217 = vrot.lane.b32.xlu1 %v7212_v19, %s12695_s20 }
0x2ea1   :  { %7304 = vrot.lane.b32.xlu1 %v7299_v38, %s12695_s20 }
0x2ea5   :  { %7391 = vrot.lane.b32.xlu1 %v7386_v34, %s12695_s20 }
0x2ea9   :  { %7478 = vrot.lane.b32.xlu1 %v7473_v1, %s12695_s20 }
0x2ead   :  { %7565 = vrot.lane.b32.xlu1 %v7560_v39, %s12695_s20 }
0x2eb1   :  { %7652 = vrot.lane.b32.xlu1 %v7647_v18, %s12695_s20 }
0x2eb5   :  { %7739 = vrot.lane.b32.xlu1 %v7734_v2, %s12695_s20 }
0x2eb6   :  { %v7129_v9 = vpop.permute.xlu0 %7128 }
0x2eb7   :  { %9645 = vmatprep.mubr.msk.f32.mxu0 %vm750_vm9, %v7129_v9 }
0x2eb9   :  { %8579 = vrot.lane.b32.xlu1 %v15160_v16, %s12695_s20 }
0x2eba   :  { %v7216_v43 = vpop.permute.xlu0 %7215 }
0x2ebe   :  { %v7303_v4 = vpop.permute.xlu0 %7302 }
0x2ec2   :  { %v7390_v16 = vpop.permute.xlu0 %7389 }
0x2ec6   :  { %v7477_v50 = vpop.permute.xlu0 %7476 }
0x2eca   :  { %v7564_v27 = vpop.permute.xlu0 %7563 }
0x2ece   :  { %v7651_v49 = vpop.permute.xlu0 %7650 }
0x2ed2   :  { %v7738_v32 = vpop.permute.xlu0 %7737 }
0x2f0b   :  { %v7131_v21 = vpop.permute.xlu1 %7130 }
0x2f0c   :  { %9646 = vmatmul.mubr.msk.f32.vlgmr.msra.gmra.mrb[92].mxu0 %vm750_vm9, %v7131_v21 }
0x2f0d   :  { %11355 = vmatpush3.bf16.msra.mxu0 %v15185_v15  ;;  %9672 = vmatprep.mubr.msk.f32.mxu0 %vm750_vm9, %v7216_v43 }
0x2f0e   :  { %11357 = vmatprep.subr.bf16.mxu0 %v15191_v31 }
0x2f0f   :  { %v7218_v42 = vpop.permute.xlu1 %7217 }
0x2f11   :  { %11359 = vmatpush3.bf16.msra.mxu0 %v15191_v31 }
0x2f12   :  { %11361 = vmatprep.subr.bf16.mxu0 %v15204_v51 }
0x2f13   :  { %v7305_v23 = vpop.permute.xlu1 %7304 }
0x2f15   :  { %11363 = vmatpush3.bf16.msra.mxu0 %v15204_v51 }
0x2f16   :  { %11365 = vmatprep.subr.bf16.mxu0 %v15217_v11 }
0x2f17   :  { %v7392_v0 = vpop.permute.xlu1 %7391 }
0x2f19   :  { %11367 = vmatpush3.bf16.msra.mxu0 %v15217_v11 }
0x2f1a   :  { %11369 = vmatprep.subr.bf16.mxu0 %v15230_v14 }
0x2f1b   :  { %v7479_v12 = vpop.permute.xlu1 %7478 }
0x2f1d   :  { %11371 = vmatpush3.bf16.msra.mxu0 %v15230_v14 }
0x2f1e   :  { %11373 = vmatprep.subr.bf16.mxu0 %v15241_v46 }
0x2f1f   :  { %v7566_v59 = vpop.permute.xlu1 %7565 }
0x2f21   :  { %11375 = vmatpush3.bf16.msra.mxu0 %v15241_v46 }
0x2f22   :  { %11377 = vmatprep.subr.bf16.mxu0 %v15185_v15 }
0x2f23   :  { %v7653_v5 = vpop.permute.xlu1 %7652 }
0x2f24   :  { %9673 = vmatmul.mubr.msk.f32.vlgmr.msra.gmra.mrb[94].mxu0 %vm750_vm9, %v7218_v42 }
0x2f25   :  { %11379 = vmatpush3.bf16.msra.mxu0 %v15185_v15  ;;  %9699 = vmatprep.mubr.msk.f32.mxu0 %vm750_vm9, %v7303_v4 }
0x2f26   :  { %11381 = vmatprep.subr.bf16.mxu0 %v15191_v31 }
0x2f27   :  { %v7740_v24 = vpop.permute.xlu1 %7739 }
0x2f29   :  { %11383 = vmatpush3.bf16.msra.mxu0 %v15191_v31 }
0x2f2a   :  { %11385 = vmatprep.subr.bf16.mxu0 %v15204_v51 }
0x2f2d   :  { %11387 = vmatpush3.bf16.msra.mxu0 %v15204_v51 }
0x2f2e   :  { %11389 = vmatprep.subr.bf16.mxu0 %v15217_v11 }
0x2f31   :  { %11391 = vmatpush3.bf16.msra.mxu0 %v15217_v11 }
0x2f32   :  { %11393 = vmatprep.subr.bf16.mxu0 %v15230_v14 }
0x2f35   :  { %11395 = vmatpush3.bf16.msra.mxu0 %v15230_v14 }
0x2f36   :  { %11397 = vmatprep.subr.bf16.mxu0 %v15241_v46 }
0x2f39   :  { %11399 = vmatpush3.bf16.msra.mxu0 %v15241_v46 }
0x2f3a   :  { %11401 = vmatprep.subr.bf16.mxu0 %v15185_v15 }
0x2f3c   :  { %9700 = vmatmul.mubr.msk.f32.vlgmr.msra.gmra.mrb[96].mxu0 %vm750_vm9, %v7305_v23 }
0x2f3d   :  { %11403 = vmatpush3.bf16.msra.mxu0 %v15185_v15  ;;  %9726 = vmatprep.mubr.msk.f32.mxu0 %vm750_vm9, %v7390_v16 }
0x2f3e   :  { %11405 = vmatprep.subr.bf16.mxu0 %v15191_v31 }
0x2f41   :  { %11407 = vmatpush3.bf16.msra.mxu0 %v15191_v31 }
0x2f42   :  { %11409 = vmatprep.subr.bf16.mxu0 %v15204_v51 }
0x2f45   :  { %11411 = vmatpush3.bf16.msra.mxu0 %v15204_v51 }
0x2f46   :  { %11413 = vmatprep.subr.bf16.mxu0 %v15217_v11 }
0x2f49   :  { %11415 = vmatpush3.bf16.msra.mxu0 %v15217_v11 }
0x2f4a   :  { %11417 = vmatprep.subr.bf16.mxu0 %v15230_v14 }
0x2f4d   :  { %11419 = vmatpush3.bf16.msra.mxu0 %v15230_v14 }
0x2f4e   :  { %11421 = vmatprep.subr.bf16.mxu0 %v15241_v46 }
0x2f51   :  { %11423 = vmatpush3.bf16.msra.mxu0 %v15241_v46 }
0x2f52   :  { %11425 = vmatprep.subr.bf16.mxu0 %v15185_v15 }
0x2f54   :  { %9727 = vmatmul.mubr.msk.f32.vlgmr.msra.gmra.mrb[98].mxu0 %vm750_vm9, %v7392_v0 }
0x2f55   :  { %11427 = vmatpush3.bf16.msra.mxu0 %v15185_v15  ;;  %9753 = vmatprep.mubr.msk.f32.mxu0 %vm750_vm9, %v7477_v50 }
0x2f56   :  { %11429 = vmatprep.subr.bf16.mxu0 %v15191_v31 }
0x2f59   :  { %11431 = vmatpush3.bf16.msra.mxu0 %v15191_v31 }
0x2f5a   :  { %11433 = vmatprep.subr.bf16.mxu0 %v15204_v51 }
0x2f5d   :  { %11435 = vmatpush3.bf16.msra.mxu0 %v15204_v51 }
0x2f5e   :  { %11437 = vmatprep.subr.bf16.mxu0 %v15217_v11 }
0x2f61   :  { %11439 = vmatpush3.bf16.msra.mxu0 %v15217_v11 }
0x2f62   :  { %11441 = vmatprep.subr.bf16.mxu0 %v15230_v14 }
0x2f65   :  { %11443 = vmatpush3.bf16.msra.mxu0 %v15230_v14 }
0x2f66   :  { %11445 = vmatprep.subr.bf16.mxu0 %v15241_v46 }
0x2f69   :  { %11447 = vmatpush3.bf16.msra.mxu0 %v15241_v46 }
0x2f6a   :  { %11449 = vmatprep.subr.bf16.mxu0 %v15185_v15 }
0x2f6c   :  { %9754 = vmatmul.mubr.msk.f32.vlgmr.msra.gmra.mrb[100].mxu0 %vm750_vm9, %v7479_v12 }
0x2f6d   :  { %11451 = vmatpush3.bf16.msra.mxu0 %v15185_v15  ;;  %9780 = vmatprep.mubr.msk.f32.mxu0 %vm750_vm9, %v7564_v27 }
0x2f6e   :  { %11453 = vmatprep.subr.bf16.mxu0 %v15191_v31 }
0x2f71   :  { %11455 = vmatpush3.bf16.msra.mxu0 %v15191_v31 }
0x2f72   :  { %11457 = vmatprep.subr.bf16.mxu0 %v15204_v51 }
0x2f75   :  { %11459 = vmatpush3.bf16.msra.mxu0 %v15204_v51 }
0x2f76   :  { %11461 = vmatprep.subr.bf16.mxu0 %v15217_v11 }
0x2f79   :  { %11463 = vmatpush3.bf16.msra.mxu0 %v15217_v11 }
0x2f7a   :  { %11465 = vmatprep.subr.bf16.mxu0 %v15230_v14 }
0x2f7d   :  { %11467 = vmatpush3.bf16.msra.mxu0 %v15230_v14 }
0x2f7e   :  { %11469 = vmatprep.subr.bf16.mxu0 %v15241_v46 }
0x2f81   :  { %11471 = vmatpush3.bf16.msra.mxu0 %v15241_v46 }
0x2f82   :  { %11473 = vmatprep.subr.bf16.mxu0 %v15185_v15 }
0x2f84   :  { %9781 = vmatmul.mubr.msk.f32.vlgmr.msra.gmra.mrb[102].mxu0 %vm750_vm9, %v7566_v59 }
0x2f85   :  { %11475 = vmatpush3.bf16.msra.mxu0 %v15185_v15  ;;  %9807 = vmatprep.mubr.msk.f32.mxu0 %vm750_vm9, %v7651_v49 }
0x2f86   :  { %11477 = vmatprep.subr.bf16.mxu0 %v15191_v31 }
0x2f89   :  { %11479 = vmatpush3.bf16.msra.mxu0 %v15191_v31 }
0x2f8a   :  { %11481 = vmatprep.subr.bf16.mxu0 %v15204_v51 }
0x2f8d   :  { %11483 = vmatpush3.bf16.msra.mxu0 %v15204_v51 }
0x2f8e   :  { %11485 = vmatprep.subr.bf16.mxu0 %v15217_v11 }
0x2f91   :  { %11487 = vmatpush3.bf16.msra.mxu0 %v15217_v11 }
0x2f92   :  { %11489 = vmatprep.subr.bf16.mxu0 %v15230_v14 }
0x2f95   :  { %11491 = vmatpush3.bf16.msra.mxu0 %v15230_v14 }
0x2f96   :  { %11493 = vmatprep.subr.bf16.mxu0 %v15241_v46 }
0x2f99   :  { %11495 = vmatpush3.bf16.msra.mxu0 %v15241_v46 }
0x2f9a   :  { %11497 = vmatprep.subr.bf16.mxu0 %v15185_v15 }
0x2f9c   :  { %9808 = vmatmul.mubr.msk.f32.vlgmr.msra.gmra.mrb[104].mxu0 %vm750_vm9, %v7653_v5 }
0x2f9d   :  { %11499 = vmatpush3.bf16.msra.mxu0 %v15185_v15  ;;  %9834 = vmatprep.mubr.msk.f32.mxu0 %vm750_vm9, %v7738_v32 }
0x2f9e   :  { %11501 = vmatprep.subr.bf16.mxu0 %v15191_v31 }
0x2fa1   :  { %11503 = vmatpush3.bf16.msra.mxu0 %v15191_v31 }
0x2fa2   :  { %11505 = vmatprep.subr.bf16.mxu0 %v15204_v51 }
0x2fa5   :  { %11507 = vmatpush3.bf16.msra.mxu0 %v15204_v51 }
0x2fa6   :  { %11509 = vmatprep.subr.bf16.mxu0 %v15217_v11 }
0x2fa9   :  { %11511 = vmatpush3.bf16.msra.mxu0 %v15217_v11 }
0x2faa   :  { %11513 = vmatprep.subr.bf16.mxu0 %v15230_v14 }
0x2fad   :  { %11515 = vmatpush3.bf16.msra.mxu0 %v15230_v14 }
0x2fae   :  { %11517 = vmatprep.subr.bf16.mxu0 %v15241_v46 }
0x2fb1   :  { %11519 = vmatpush3.bf16.msra.mxu0 %v15241_v46 }
0x2fb2   :  { %9837 = vmatprep.subr.msk.mxu0 %vm7903_vm10, %v15381_v33 }
0x2fb4   :  { %9835 = vmatmul.mubr.msk.f32.vlgmr.msra.gmra.mrb[106].mxu0 %vm750_vm9, %v7740_v24 }
0x2fb5   :  { %9838 = vmatpush3.msk.msra.mxu0 %vm7903_vm10, %v15381_v33 }
0x2fb6   :  { %9842 = vmatprep.subr.msk.mxu0 %vm7903_vm10, %v15381_v33 }
0x2fdf   :  { %v9647_v45 = vpop.f32.mrb[92].mxu0 }
0x2fe0   :  { %v15366_v54 = vpop.f32.mrb[93].mxu0 }
0x2ff7   :  { %v9674_v52 = vpop.f32.mrb[94].mxu0 }
0x2ff8   :  { %v7821_v22 = vmax.f32 %v9647_v45, %v9674_v52  ;;  %v15368_v15 = vpop.f32.mrb[95].mxu0 }
0x2ff9   :  { %v7820_v26 = vmax.f32 %v15366_v54, %v15368_v15 }
0x300f   :  { %v9701_v31 = vpop.f32.mrb[96].mxu0 }
0x3010   :  { %v15372_v41 = vpop.f32.mrb[97].mxu0 }
0x3027   :  { %v9728_v58 = vpop.f32.mrb[98].mxu0 }
0x3028   :  { %v7823_v3 = vmax.f32 %v9701_v31, %v9728_v58  ;;  %v15374_v51 = vpop.f32.mrb[99].mxu0 }
0x3029   :  { %v7822_v28 = vmax.f32 %v15372_v41, %v15374_v51 }
0x302a   :  { %v7829_v36 = vmax.f32 %v7821_v22, %v7823_v3 }
0x302b   :  { %v7828_v11 = vmax.f32 %v7820_v26, %v7822_v28 }
0x303f   :  { %v9755_v56 = vpop.f32.mrb[100].mxu0 }
0x3040   :  { %v7550_v10 = vpop.f32.mrb[101].mxu0 }
0x3057   :  { %v9782_v47 = vpop.f32.mrb[102].mxu0 }
0x3058   :  { %v7825_v14 = vmax.f32 %v9755_v56, %v9782_v47  ;;  %v7637_v7 = vpop.f32.mrb[103].mxu0 }
0x3059   :  { %v7824_v44 = vmax.f32 %v7550_v10, %v7637_v7 }
0x306f   :  { %v9809_v46 = vpop.f32.mrb[104].mxu0 }
0x3070   :  { %v7724_v57 = vpop.f32.mrb[105].mxu0 }
0x3087   :  { %v9836_v8 = vpop.f32.mrb[106].mxu0 }
0x3088   :  { %v7827_v53 = vmax.f32 %v9809_v46, %v9836_v8  ;;  %v7811_v17 = vpop.f32.mrb[107].mxu0 }
0x3089   :  { %v7826_v62 = vmax.f32 %v7724_v57, %v7811_v17 }
0x308a   :  { %v7831_v55 = vmax.f32 %v7825_v14, %v7827_v53 }
0x308b   :  { %v7830_v25 = vmax.f32 %v7824_v44, %v7826_v62 }
0x308c   :  { %v7833_v29 = vmax.f32 %v7829_v36, %v7831_v55 }
0x308d   :  { %v7832_v61 = vmax.f32 %v7828_v11, %v7830_v25 }
0x308e   :  { %v7835_v20 = vsub.f32 %v9647_v45, %v7833_v29  ;;  %v7841_v60 = vsub.f32 %v9674_v52, %v7833_v29  ;;  %v7847_v19 = vsub.f32 %v9701_v31, %v7833_v29  ;;  %v7853_v13 = vsub.f32 %v9728_v58, %v7833_v29 }
0x308f   :  { %v7859_v38 = vsub.f32 %v9755_v56, %v7833_v29  ;;  %v7865_v40 = vsub.f32 %v9782_v47, %v7833_v29  ;;  %v7871_v34 = vsub.f32 %v9809_v46, %v7833_v29  ;;  %v7877_v48 = vsub.f32 %v9836_v8, %v7833_v29 }
0x3090   :  { %v7838_v1 = vmul.f32 1.442695, %v7835_v20  ;;  %v7844_v39 = vmul.f32 1.442695, %v7841_v60  ;;  %v7850_v18 = vmul.f32 1.442695, %v7847_v19  ;;  %v7834_v2 = vsub.f32 %v15366_v54, %v7832_v61 }
0x3091   :  { %v7856_v9 = vmul.f32 1.442695, %v7853_v13  ;;  %v7840_v21 = vsub.f32 %v15368_v15, %v7832_v61  ;;  %v7862_v43 = vmul.f32 1.442695, %v7859_v38  ;;  %v7868_v42 = vmul.f32 1.442695, %v7865_v40 }
0x3092   :  { %12445 = vpow2.f32 %v7838_v1  ;;  %v7874_v4 = vmul.f32 1.442695, %v7871_v34  ;;  %v7846_v23 = vsub.f32 %v15372_v41, %v7832_v61  ;;  %v7852_v16 = vsub.f32 %v15374_v51, %v7832_v61  ;;  %v8725_v34 = vld [vmem:[#allocation10 + $0x8] sm:$0xff]  ;;  %v8724_v1 = vld [vmem:[#allocation10] sm:$0xff] }
0x3093   :  { %12447 = vpow2.f32 %v7844_v39  ;;  %v7858_v0 = vsub.f32 %v7550_v10, %v7832_v61  ;;  %v7864_v50 = vsub.f32 %v7637_v7, %v7832_v61  ;;  %v7870_v12 = vsub.f32 %v7724_v57, %v7832_v61 }
0x3094   :  { %12449 = vpow2.f32 %v7850_v18  ;;  %v7880_v27 = vmul.f32 1.442695, %v7877_v48  ;;  %v7876_v59 = vsub.f32 %v7811_v17, %v7832_v61  ;;  %v7836_v49 = vmul.f32 1.442695, %v7834_v2  ;;  %v8728_v48 = vld [vmem:[#allocation10 + $0x20] sm:$0xff]  ;;  %v8726_v2 = vld [vmem:[#allocation10 + $0x10] sm:$0xff] }
0x3095   :  { %12451 = vpow2.f32 %v7856_v9  ;;  %v7842_v5 = vmul.f32 1.442695, %v7840_v21  ;;  %v7848_v32 = vmul.f32 1.442695, %v7846_v23  ;;  %v7854_v24 = vmul.f32 1.442695, %v7852_v16 }
0x3096   :  { %12453 = vpow2.f32 %v7862_v43  ;;  %v7860_v45 = vmul.f32 1.442695, %v7858_v0  ;;  %v7866_v54 = vmul.f32 1.442695, %v7864_v50  ;;  %v7872_v22 = vmul.f32 1.442695, %v7870_v12 }
0x3097   :  { %12455 = vpow2.f32 %v7868_v42  ;;  %v7878_v26 = vmul.f32 1.442695, %v7876_v59  ;;  %v11520_v39 = vpack.c.bf16 %v8728_v48, %v8725_v34  ;;  %v12696_v18 = vmov 0.0|0.0   ;;  %v8729_v9 = vld [vmem:[#allocation10 + $0x28] sm:$0xff]  ;;  %v8731_v42 = vld [vmem:[#allocation10 + $0x38] sm:$0xff]  ;;  %v8730_v23 = vld [vmem:[#allocation10 + $0x30] sm:$0xff] }
0x3098   :  { %12457 = vpow2.f32 %v7874_v4  ;;  %v11545_v43 = vpack.c.bf16 %v8729_v9, %v8726_v2  ;;  %v8734_v4 = vld [vmem:[#allocation10 + $0x50] sm:$0xff]  ;;  %v8733_v0 = vld [vmem:[#allocation10 + $0x48] sm:$0xff]  ;;  %v8732_v50 = vld [vmem:[#allocation10 + $0x40] sm:$0xff] }
0x3099   :  { %12459 = vpow2.f32 %v7880_v27  ;;  %v11524_v16 = vpack.c.bf16 %v8734_v4, %v8731_v42  ;;  %v8735_v12 = vld [vmem:[#allocation10 + $0x58] sm:$0xff]  ;;  %v11526_v27 = vpack.c.bf16 %v8733_v0, %v8730_v23 }
0x309a   :  { %12461 = vpow2.f32 %v7836_v49  ;;  %v11548_v59 = vpack.c.bf16 %v8735_v12, %v8732_v50  ;;  %v8737_v49 = vld [vmem:[#allocation10 + $0x68] sm:$0xff]  ;;  %v15823_v4 = vld [vmem:[#allocation42_spill] sm:$0xff] }
0x309b   :  { %12463 = vpow2.f32 %v7842_v5  ;;  %v8740_v5 = vld [vmem:[#allocation10 + $0x80] sm:$0xff] }
0x309c   :  { %v12446_v52 = vpop.eup %12445  ;;  %12465 = vpow2.f32 %v7848_v32  ;;  %v11528_v32 = vpack.c.bf16 %v8740_v5, %v8737_v49  ;;  %v15824_v49 = vld [vmem:[#allocation45_spill] sm:$0xff] }
0x309d   :  { %v12448_v15 = vpop.eup %12447  ;;  %12467 = vpow2.f32 %v7854_v24  ;;  %v8736_v24 = vld [vmem:[#allocation10 + $0x60] sm:$0xff] }
0x309e   :  { %v12450_v31 = vpop.eup %12449  ;;  %v7883_v41 = vadd.f32 %v12448_v15, %v12446_v52  ;;  %12469 = vpow2.f32 %v7860_v45  ;;  %v8739_v45 = vld [vmem:[#allocation10 + $0x78] sm:$0xff] }
0x309f   :  { %v12452_v58 = vpop.eup %12451  ;;  %12471 = vpow2.f32 %v7866_v54  ;;  %v8738_v54 = vld [vmem:[#allocation10 + $0x70] sm:$0xff] }
0x30a0   :  { %v12454_v3 = vpop.eup %12453  ;;  %v7885_v51 = vadd.f32 %v12452_v58, %v12450_v31  ;;  %12473 = vpow2.f32 %v7872_v22  ;;  %v8741_v22 = vld [vmem:[#allocation10 + $0x88] sm:$0xff] }
0x30a1   :  { %v12456_v28 = vpop.eup %12455  ;;  %12475 = vpow2.f32 %v7878_v26  ;;  %v8743_v26 = vld [vmem:[#allocation10 + $0x98] sm:$0xff] }
0x30a2   :  { %v12458_v36 = vpop.eup %12457  ;;  %v7887_v11 = vadd.f32 %v12456_v28, %v12454_v3  ;;  %v7891_v56 = vadd.f32 %v7885_v51, %v7883_v41  ;;  %v8742_v41 = vld [vmem:[#allocation10 + $0x90] sm:$0xff]  ;;  %v8744_v51 = vld [vmem:[#allocation10 + $0xa0] sm:$0xff] }
0x30a3   :  { %v12460_v10 = vpop.eup %12459 }
0x30a4   :  { %v12462_v47 = vpop.eup %12461  ;;  %v7889_v14 = vadd.f32 %v12460_v10, %v12458_v36 }
0x30a5   :  { %v12464_v7 = vpop.eup %12463  ;;  %9839 = vmatprep.mubr.msk.f32.mxu0 %vm7896_vm11, %v12462_v47 }
0x30a6   :  { %v12466_v44 = vpop.eup %12465  ;;  %v7893_v46 = vadd.f32 %v7889_v14, %v7887_v11  ;;  %v7882_v57 = vadd.f32 %v12464_v7, %v12462_v47  ;;  %9840 = vmatmul.mubr.msk.f32.vlgmr.msra.gmra.mrb[108].mxu0 %vm7896_vm11, %v12446_v52  ;;  %v11530_v52 = vpack.c.bf16 %v8739_v45, %v8736_v24  ;;  %v8748_v14 = vld [vmem:[#allocation10 + $0xc0] sm:$0xff] }
0x30a7   :  { %v12468_v8 = vpop.eup %12467  ;;  %9843 = vmatpush3.msk.msra.mxu0 %vm7903_vm10, %v15381_v33  ;;  %9844 = vmatprep.mubr.msk.f32.mxu0 %vm7896_vm11, %v12464_v7  ;;  %v8751_v7 = vld [vmem:[#allocation10 + $0xd8] sm:$0xff] }
0x30a8   :  { %v12470_v53 = vpop.eup %12469  ;;  %v7895_v17 = vadd.f32 %v7893_v46, %v7891_v56  ;;  %v7884_v62 = vadd.f32 %v12468_v8, %v12466_v44  ;;  %9847 = vmatprep.subr.msk.mxu0 %vm7903_vm10, %v15381_v33  ;;  %v8749_v56 = vld [vmem:[#allocation10 + $0xc8] sm:$0xff]  ;;  %v11538_v46 = vpack.c.bf16 %v8751_v7, %v8748_v14 }
0x30a9   :  { %v12472_v55 = vpop.eup %12471 }
0x30aa   :  { %v12474_v25 = vpop.eup %12473  ;;  %v7886_v29 = vadd.f32 %v12472_v55, %v12470_v53  ;;  %v7890_v61 = vadd.f32 %v7884_v62, %v7882_v57  ;;  %9845 = vmatmul.mubr.msk.f32.vlgmr.msra.gmra.mrb[110].mxu0 %vm7896_vm11, %v12448_v15  ;;  %v11551_v15 = vpack.c.bf16 %v8741_v22, %v8738_v54  ;;  %v8753_v57 = vld [vmem:[#allocation10 + $0xe8] sm:$0xff]  ;;  %v8754_v62 = vld [vmem:[#allocation10 + $0xf0] sm:$0xff] }
0x30ab   :  { %v12476_v20 = vpop.eup %12475  ;;  %9869 = vmatprep.mubr.msk.f32.mxu1 %vm7896_vm11, %v12474_v25  ;;  %9848 = vmatpush3.msk.msra.mxu0 %vm7903_vm10, %v15381_v33  ;;  %v15826_v54 = vld [vmem:[#allocation44_spill] sm:$0xff]  ;;  %v15827_v22 = vld [vmem:[#allocation46_spill] sm:$0xff] }
0x30ac   :  { %v7888_v60 = vadd.f32 %v12476_v20, %v12474_v25  ;;  %9870 = vmatmul.mubr.msk.f32.vlgmr.msra.gmra.mrb[132].mxu1 %vm7896_vm11, %v12458_v36  ;;  %9849 = vmatprep.mubr.msk.f32.mxu0 %vm7896_vm11, %v12466_v44  ;;  %v8750_v44 = vld [vmem:[#allocation10 + $0xd0] sm:$0xff]  ;;  %v8757_v25 = vld [vmem:[#allocation10 + $0x108] sm:$0xff] }
0x30ad   :  { %9852 = vmatprep.subr.msk.mxu0 %vm7903_vm10, %v15381_v33  ;;  %9878 = vmatpush3.msk.msra.mxu1 %vm7903_vm10, %v15381_v33 }
0x30ae   :  { %v7892_v19 = vadd.f32 %v7888_v60, %v7886_v29  ;;  %9850 = vmatmul.mubr.msk.f32.vlgmr.msra.gmra.mrb[112].mxu0 %vm7896_vm11, %v12450_v31  ;;  %11544 = vmatprep.subr.bf16.mxu1 %v12696_v18  ;;  %v8746_v31 = vld [vmem:[#allocation10 + $0xb0] sm:$0xff]  ;;  %v8756_v29 = vld [vmem:[#allocation10 + $0x100] sm:$0xff] }
0x30af   :  { %9853 = vmatpush3.msk.msra.mxu0 %vm7903_vm10, %v15381_v33  ;;  %9854 = vmatprep.mubr.msk.f32.mxu0 %vm7896_vm11, %v12468_v8  ;;  %v11557_v8 = vpack.c.bf16 %v8753_v57, %v8750_v44  ;;  %v8582_v44 = vpop.permute.xlu0 %8581 }
0x30b0   :  { %v7894_v13 = vadd.f32 %v7892_v19, %v7890_v61  ;;  %9857 = vmatprep.subr.msk.mxu0 %vm7903_vm10, %v15381_v33  ;;  %v8759_v61 = vld [vmem:[#allocation10 + $0x118] sm:$0xff]  ;;  %v8689_v19 = vld [vmem:[%s15617_s10 + $0x8] sm:$0xff] }
0x30b1   :  { %v11560_v60 = vpack.c.bf16 %v8759_v61, %v8756_v29 }
0x30b2   :  { %12477 = vrcp.f32 %v7894_v13  ;;  %9855 = vmatmul.mubr.msk.f32.vlgmr.msra.gmra.mrb[114].mxu0 %vm7896_vm11, %v12452_v58  ;;  %v11532_v58 = vpack.c.bf16 %v8746_v31, %v8743_v26  ;;  %v8692_v13 = vld [vmem:[%s15617_s10 + $0x20] sm:$0xff] }
0x30b3   :  { %12479 = vrcp.f32 %v7895_v17  ;;  %9858 = vmatpush3.msk.msra.mxu0 %vm7903_vm10, %v15381_v33  ;;  %9859 = vmatprep.mubr.msk.f32.mxu0 %vm7896_vm11, %v12470_v53  ;;  %v8755_v53 = vld [vmem:[#allocation10 + $0xf8] sm:$0xff]  ;;  %v8758_v17 = vld [vmem:[#allocation10 + $0x110] sm:$0xff] }
0x30b4   :  { %9862 = vmatprep.subr.msk.mxu0 %vm7903_vm10, %v15381_v33 }
0x30b6   :  { %9860 = vmatmul.mubr.msk.f32.vlgmr.msra.gmra.mrb[116].mxu0 %vm7896_vm11, %v12454_v3  ;;  %v8745_v3 = vld [vmem:[#allocation10 + $0xa8] sm:$0xff] }
0x30b7   :  { %9863 = vmatpush3.msk.msra.mxu0 %vm7903_vm10, %v15381_v33  ;;  %9864 = vmatprep.mubr.msk.f32.mxu0 %vm7896_vm11, %v12472_v55  ;;  %v11534_v36 = vpack.c.bf16 %v8745_v3, %v8742_v41  ;;  %v11540_v55 = vpack.c.bf16 %v8758_v17, %v8755_v53 }
0x30b8   :  { %9872 = vmatprep.subr.msk.mxu0 %vm7903_vm10, %v15381_v33 }
0x30ba   :  { %9865 = vmatmul.mubr.msk.f32.vlgmr.msra.gmra.mrb[118].mxu0 %vm7896_vm11, %v12456_v28  ;;  %v8747_v28 = vld [vmem:[#allocation10 + $0xb8] sm:$0xff] }
0x30bb   :  { %9873 = vmatpush3.msk.msra.mxu0 %vm7903_vm10, %v15381_v33  ;;  %9874 = vmatprep.mubr.msk.f32.mxu0 %vm7896_vm11, %v12476_v20  ;;  %v8727_v33 = vld [vmem:[#allocation10 + $0x18] sm:$0xff]  ;;  %v11554_v11 = vpack.c.bf16 %v8747_v28, %v8744_v51  ;;  %v11542_v20 = vpack.c.bf16 %v8757_v25, %v8754_v62 }
0x30bc   :  { %v12478_v38 = vpop.eup %12477  ;;  %v11522_v21 = vpack.c.bf16 %v8727_v33, %v8724_v1  ;;  %11521 = vmatprep.subr.bf16.mxu0 %v11520_v39  ;;  %v15820_v1 = vld [vmem:[#allocation27_spill] sm:$0xff] }
0x30bd   :  { %v12480_v40 = vpop.eup %12479  ;;  %9879 = vmatprep.mubr.msk.f32.mxu1 %vm7896_vm11, %v12478_v38  ;;  %v11562_v38 = vpack.c.bf16 %v8692_v13, %v8689_v19  ;;  %v15821_v33 = vld [vmem:[#allocation43_spill] sm:$0xff] }
0x30be   :  { %9880 = vmatmul.mubr.msk.f32.vlgmr.msra.gmra.mrb[134].mxu1 %vm7896_vm11, %v12480_v40  ;;  %9875 = vmatmul.mubr.msk.f32.vlgmr.msra.gmra.mrb[120].mxu0 %vm7896_vm11, %v12460_v10  ;;  %v8752_v10 = vld [vmem:[#allocation10 + $0xe0] sm:$0xff]  ;;  %v8691_v13 = vld [vmem:[%s15617_s10 + $0x18] sm:$0xff] }
0x30bf   :  { %8827 = vmatprep.mubr.f32.mxu0 %v15718_v37  ;;  %11523 = vmatpush1.bf16.msra.mxu0 %v11522_v21  ;;  %v11536_v47 = vpack.c.bf16 %v8752_v10, %v8749_v56 }
0x30c0   :  { %11546 = vmatpush3.bf16.msra.mxu1 %v11545_v43  ;;  %11525 = vmatprep.subr.bf16.mxu0 %v11524_v16  ;;  %v15822_v43 = vld [vmem:[#allocation25_spill] sm:$0xff] }
0x30c1   :  { %11547 = vmatprep.subr.bf16.mxu1 %v12696_v18  ;;  %9906 = vmatprep.mubr.msk.f32.mxu1 %vm12697_vm12, %v15718_v37 }
0x30c3   :  { %11527 = vmatpush1.bf16.msra.mxu0 %v11526_v27 }
0x30c4   :  { %11549 = vmatpush3.bf16.msra.mxu1 %v11548_v59  ;;  %11529 = vmatprep.subr.bf16.mxu0 %v11528_v32  ;;  %v15825_v32 = vld [vmem:[#allocation47_spill] sm:$0xff] }
0x30c5   :  { %11550 = vmatprep.subr.bf16.mxu1 %v12696_v18 }
0x30c7   :  { %11531 = vmatpush1.bf16.msra.mxu0 %v11530_v52 }
0x30c8   :  { %11552 = vmatpush3.bf16.msra.mxu1 %v11551_v15  ;;  %11533 = vmatprep.subr.bf16.mxu0 %v11532_v58 }
0x30c9   :  { %11553 = vmatprep.subr.bf16.mxu1 %v12696_v18 }
0x30cb   :  { %11535 = vmatpush1.bf16.msra.mxu0 %v11534_v36  ;;  %v15828_v36 = vld [vmem:[#allocation49_spill] sm:$0xff] }
0x30cc   :  { %11555 = vmatpush3.bf16.msra.mxu1 %v11554_v11  ;;  %11537 = vmatprep.subr.bf16.mxu0 %v11536_v47  ;;  %v15829_v47 = vld [vmem:[#allocation48_spill] sm:$0xff] }
0x30cd   :  { %11556 = vmatprep.subr.bf16.mxu1 %v12696_v18 }
0x30cf   :  { %11539 = vmatpush1.bf16.msra.mxu0 %v11538_v46  ;;  %v8580_v46 = vpop.permute.xlu1 %8579 }
0x30d0   :  { %11558 = vmatpush3.bf16.msra.mxu1 %v11557_v8  ;;  %11541 = vmatprep.subr.bf16.mxu0 %v11540_v55 }
0x30d1   :  { %11559 = vmatprep.subr.bf16.mxu1 %v12696_v18 }
0x30d3   :  { %11543 = vmatpush1.bf16.msra.mxu0 %v11542_v20 }
0x30d4   :  { %11561 = vmatpush3.bf16.msra.mxu1 %v11560_v60  ;;  %11563 = vmatprep.subr.bf16.mxu0 %v11562_v38 }
0x30d5   :  { %11586 = vmatprep.subr.bf16.mxu1 %v12696_v18 }
0x3179   :  { %v9841_v40 = vpop.f32.mrb[108].mxu0 }
0x317a   :  { %v7973_v34 = vpop.f32.mrb[109].mxu0  ;;  %v7985_v39 = vmul.f32 %v9841_v40, %v15820_v1  ;;  %v8695_v40 = vld [vmem:[%s15617_s10 + $0x38] sm:$0xff] }
0x317b   :  { %v7984_v42 = vmul.f32 %v7973_v34, %v15822_v43  ;;  %v8698_v34 = vld [vmem:[%s15617_s10 + $0x50] sm:$0xff]  ;;  %v8697_v43 = vld [vmem:[%s15617_s10 + $0x48] sm:$0xff] }
0x317d   :  { %v9846_v48 = vpop.f32.mrb[110].mxu0 }
0x317e   :  { %v8070_v2 = vmul.f32 %v9846_v48, %v15821_v33  ;;  %v8058_v9 = vpop.f32.mrb[111].mxu0 }
0x317f   :  { %v9871_v21 = vpop.f32.mrb[132].mxu1  ;;  %v8069_v23 = vmul.f32 %v8058_v9, %v15823_v4  ;;  %v8699_v4 = vld [vmem:[%s15617_s10 + $0x58] sm:$0xff] }
0x3180   :  { %v8483_v16 = vpop.f32.mrb[133].mxu1  ;;  %v8588_v0 = vadd.f32 %v8070_v2, %v7985_v39  ;;  %v8495_v62 = vmul.f32 %v9871_v21, %v15118_v6  ;;  %v8690_v6 = vld [vmem:[%s15617_s10 + $0x10] sm:$0xff]  ;;  %v11566_v21 = vpack.c.bf16 %v8698_v34, %v8695_v40  ;;  %v15832_v40 = vld [vmem:[#allocation35_spill] sm:$0xff] }
0x3181   :  { %v8587_v50 = vadd.f32 %v8069_v23, %v7984_v42  ;;  %v9851_v12 = vpop.f32.mrb[112].mxu0  ;;  %v8494_v61 = vmul.f32 %v8483_v16, %v15099_v63  ;;  %v8693_v63 = vld [vmem:[%s15617_s10 + $0x28] sm:$0xff]  ;;  %v8694_v2 = vld [vmem:[%s15617_s10 + $0x30] sm:$0xff]  ;;  %v8696_v42 = vld [vmem:[%s15617_s10 + $0x40] sm:$0xff] }
0x3182   :  { %v8143_v27 = vpop.f32.mrb[113].mxu0  ;;  %v8155_v5 = vmul.f32 %v9851_v12, %v15824_v49  ;;  %v11587_v33 = vpack.c.bf16 %v8693_v63, %v8690_v6  ;;  %v8701_v16 = vld [vmem:[%s15617_s10 + $0x68] sm:$0xff]  ;;  %v11590_v12 = vpack.c.bf16 %v8699_v4, %v8696_v42  ;;  %v8703_v49 = vld [vmem:[%s15617_s10 + $0x78] sm:$0xff] }
0x3183   :  { %v8154_v52 = vmul.f32 %v8143_v27, %v15826_v54  ;;  %v8700_v27 = vld [vmem:[%s15617_s10 + $0x60] sm:$0xff] }
0x3184   :  { %v11572_v54 = vpack.c.bf16 %v8703_v49, %v8700_v27  ;;  %v9101_v49 = vld [vmem:[#allocation13] sm:$0x3] }
0x3185   :  { %v9856_v59 = vpop.f32.mrb[114].mxu0 }
0x3186   :  { %v8240_v24 = vmul.f32 %v9856_v59, %v15825_v32  ;;  %v8228_v45 = vpop.f32.mrb[115].mxu0  ;;  %v8705_v32 = vld [vmem:[%s15617_s10 + $0x88] sm:$0xff] }
0x3187   :  { %v8239_v15 = vmul.f32 %v8228_v45, %v15827_v22  ;;  %v8710_v45 = vld [vmem:[%s15617_s10 + $0xb0] sm:$0xff] }
0x3188   :  { %v8590_v26 = vadd.f32 %v8240_v24, %v8155_v5  ;;  %v8702_v5 = vld [vmem:[%s15617_s10 + $0x70] sm:$0xff]  ;;  %v8707_v24 = vld [vmem:[%s15617_s10 + $0x98] sm:$0xff] }
0x3189   :  { %v8589_v31 = vadd.f32 %v8239_v15, %v8154_v52  ;;  %v9861_v41 = vpop.f32.mrb[116].mxu0  ;;  %v11593_v52 = vpack.c.bf16 %v8705_v32, %v8702_v5  ;;  %v8706_v22 = vld [vmem:[%s15617_s10 + $0x90] sm:$0xff]  ;;  %v11574_v15 = vpack.c.bf16 %v8710_v45, %v8707_v24  ;;  %v9117_v24 = vrot.slane %v9101_v49, %v15832_v40 }
0x318a   :  { %v8596_v58 = vadd.f32 %v8590_v26, %v8588_v0  ;;  %v8313_v3 = vpop.f32.mrb[117].mxu0  ;;  %v8325_v11 = vmul.f32 %v9861_v41, %v15828_v36  ;;  %v8704_v0 = vld [vmem:[%s15617_s10 + $0x80] sm:$0xff]  ;;  %v8709_v26 = vld [vmem:[%s15617_s10 + $0xa8] sm:$0xff] }
0x318b   :  { %v8595_v51 = vadd.f32 %v8589_v31, %v8587_v50  ;;  %v8324_v14 = vmul.f32 %v8313_v3, %v15829_v47  ;;  %v11568_v50 = vpack.c.bf16 %v8697_v43, %v8694_v2  ;;  %v11570_v59 = vpack.c.bf16 %v8704_v0, %v8701_v16  ;;  %v8711_v31 = vld [vmem:[%s15617_s10 + $0xb8] sm:$0xff]  ;;  %v8713_v41 = vld [vmem:[%s15617_s10 + $0xc8] sm:$0xff] }
0x318c   :  { %v11576_v3 = vpack.c.bf16 %v8709_v26, %v8706_v22  ;;  %v8719_v47 = vld [vmem:[%s15617_s10 + $0xf8] sm:$0xff] }
0x318d   :  { %v9866_v28 = vpop.f32.mrb[118].mxu0 }
0x318e   :  { %v8410_v56 = vmul.f32 %v9866_v28, %v15021_v35  ;;  %v8398_v10 = vpop.f32.mrb[119].mxu0  ;;  %v8712_v28 = vld [vmem:[%s15617_s10 + $0xc0] sm:$0xff] }
0x318f   :  { %v8409_v7 = vmul.f32 %v8398_v10, %v14990_v30  ;;  %v8688_v30 = vld [vmem:[%s15617_s10] sm:$0xff]  ;;  %v8717_v10 = vld [vmem:[%s15617_s10 + $0xe8] sm:$0xff] }
0x3190   :  { %v8592_v57 = vadd.f32 %v8410_v56, %v8325_v11  ;;  %v11564_v39 = vpack.c.bf16 %v8691_v13, %v8688_v30  ;;  %v8715_v11 = vld [vmem:[%s15617_s10 + $0xd8] sm:$0xff]  ;;  %v8714_v56 = vld [vmem:[%s15617_s10 + $0xd0] sm:$0xff] }
0x3191   :  { %v9881_v8 = vpop.f32.mrb[134].mxu1  ;;  %v8591_v53 = vadd.f32 %v8409_v7, %v8324_v14  ;;  %v9876_v17 = vpop.f32.mrb[120].mxu0  ;;  %v8722_v14 = vld [vmem:[%s15617_s10 + $0x110] sm:$0xff]  ;;  %v11580_v7 = vpack.c.bf16 %v8715_v11, %v8712_v28 }
0x3192   :  { %v8677_v55 = vpop.f32.mrb[135].mxu1  ;;  %v8586_v25 = vmul.f32 %v9876_v17, %v8582_v44  ;;  %v8568_v29 = vpop.f32.mrb[121].mxu0  ;;  %v11599_v44 = vpack.c.bf16 %v8717_v10, %v8714_v56  ;;  %v8723_v17 = vld [vmem:[%s15617_s10 + $0x118] sm:$0xff] }
0x3193   :  { %v8585_v20 = vmul.f32 %v8580_v46, %v8568_v29  ;;  %v8718_v46 = vld [vmem:[%s15617_s10 + $0xf0] sm:$0xff] }
0x3194   :  { %v8594_v35 = vadd.f32 %v8586_v25, %v8495_v62 }
0x3195   :  { %v8593_v60 = vadd.f32 %v8585_v20, %v8494_v61  ;;  %v9048_v61 = vld [vmem:[#allocation12] sm:$0x7]  ;;  %v15830_v20 = vld [vmem:[#allocation32_spill] sm:$0xff] }
0x3196   :  { %v8598_v19 = vadd.f32 %v8594_v35, %v8592_v57  ;;  %v11582_v57 = vpack.c.bf16 %v8722_v14, %v8719_v47  ;;  %v9057_v35 = vrot.slane %v9048_v61, %v15830_v20  ;;  %v9053_v34 = vrot.slane %v9048_v61, %v15832_v40 }
0x3197   :  { %v8597_v38 = vadd.f32 %v8593_v60, %v8591_v53  ;;  %v8720_v53 = vld [vmem:[%s15617_s10 + $0x100] sm:$0xff]  ;;  %v15831_v60 = vld [vmem:[#allocation21_spill] sm:$0xff]  ;;  %v9124_v32 = vrot.slane %v9101_v49, %v15830_v20 }
0x3198   :  { %v8600_v48 = vadd.f32 %v8598_v19, %v8596_v58  ;;  %v8716_v58 = vld [vmem:[%s15617_s10 + $0xe0] sm:$0xff]  ;;  %v9061_v30 = vrot.slane %v9048_v61, %v15831_v60 }
0x3199   :  { %v8599_v1 = vadd.f32 %v8597_v38, %v8595_v51  ;;  %v11578_v36 = vpack.c.bf16 %v8716_v58, %v8713_v41 }
0x319a   :  { %v8687_v9 = vmul.f32 %v9881_v8, %v8600_v48  ;;  %v8721_v8 = vld [vmem:[%s15617_s10 + $0x108] sm:$0xff] }
0x319b   :  { %v15501_v23 = vmul.f32 %v8677_v55, %v8599_v1  ;;  %v11584_v62 = vpack.c.bf16 %v8721_v8, %v8718_v46  ;;  %v11602_v55 = vpack.c.bf16 %v8723_v17, %v8720_v53 }
0x319c   :  { %9452 = vmatmul.mubr.msk.f32.vlgmr.msra.gmra.mrb[122].mxu0 %vm750_vm9, %v8687_v9  ;;  %9907 = vmatmul.mubr.msk.f32.vlgmr.msra.gmra.mrb[136].mxu1 %vm750_vm9, %v8687_v9 }
0x319d   :  { %11565 = vmatpush1.bf16.msra.mxu0 %v11564_v39  ;;  %11588 = vmatpush3.bf16.msra.mxu1 %v11587_v33 }
0x319e   :  { %11567 = vmatprep.subr.bf16.mxu0 %v11566_v21  ;;  %11589 = vmatprep.subr.bf16.mxu1 %v12696_v18 }
0x319f   :  { %8971 = vmatprep.mubr.f32.mxu0 %v15718_v37  ;;  %9933 = vmatprep.mubr.msk.f32.mxu1 %vm12697_vm12, %v15718_v37  ;;  %v8708_v37 = vld [vmem:[%s15617_s10 + $0xa0] sm:$0xff] }
0x31a0   :  { %v11596_v51 = vpack.c.bf16 %v8711_v31, %v8708_v37  ;;  %v9099_v37 = vld [vmem:[%s15621_s14] sm:$0xff]  ;;  %s12699_s14 = smov 2  }
0x31a1   :  { %11569 = vmatpush1.bf16.msra.mxu0 %v11568_v50  ;;  %11591 = vmatpush3.bf16.msra.mxu1 %v11590_v12  ;;  %v9098_v31 = vld [vmem:[%s15620_s13] sm:$0xff]  ;;  %s12698_s13 = smov 3  }
0x31a2   :  { %11571 = vmatprep.subr.bf16.mxu0 %v11570_v59  ;;  %11592 = vmatprep.subr.bf16.mxu1 %v12696_v18 }
0x31a5   :  { %11573 = vmatpush1.bf16.msra.mxu0 %v11572_v54  ;;  %11594 = vmatpush3.bf16.msra.mxu1 %v11593_v52 }
0x31a6   :  { %11575 = vmatprep.subr.bf16.mxu0 %v11574_v15  ;;  %11595 = vmatprep.subr.bf16.mxu1 %v12696_v18 }
0x31a9   :  { %11577 = vmatpush1.bf16.msra.mxu0 %v11576_v3  ;;  %11597 = vmatpush3.bf16.msra.mxu1 %v11596_v51 }
0x31aa   :  { %11579 = vmatprep.subr.bf16.mxu0 %v11578_v36  ;;  %11598 = vmatprep.subr.bf16.mxu1 %v12696_v18  ;;  %v9100_v36 = vld [vmem:[%s15622_s15] sm:$0xff] }
0x31ad   :  { %11581 = vmatpush1.bf16.msra.mxu0 %v11580_v7  ;;  %11600 = vmatpush3.bf16.msra.mxu1 %v11599_v44 }
0x31ae   :  { %11583 = vmatprep.subr.bf16.mxu0 %v11582_v57  ;;  %11601 = vmatprep.subr.bf16.mxu1 %v12696_v18 }
0x31b1   :  { %11585 = vmatpush1.bf16.msra.mxu0 %v11584_v62  ;;  %11603 = vmatpush3.bf16.msra.mxu1 %v11602_v55 }
0x31b4   :  { %9454 = vmatmul.mubr.msk.f32.vlgmr.msra.gmra.mrb[122].mxu0 %vm750_vm9, %v15501_v23  ;;  %9934 = vmatmul.mubr.msk.f32.vlgmr.msra.gmra.mrb[138].mxu1 %vm750_vm9, %v15501_v23 }
0x326f   :  { %v8900_v25 = vpop.f32.mrb[136].mxu1 }
0x3270   :  { %v9908_v29 = vpop.f32.mrb[137].mxu1 }
0x3287   :  { %v8973_v19 = vpop.f32.mrb[122].mxu0  ;;  %v9044_v13 = vpop.f32.mrb[138].mxu1 }
0x3288   :  { %v9045_v6 = vadd.f32 %v9044_v13, %v8900_v25  ;;  %v8975_v63 = vpop.f32.mrb[123].mxu0  ;;  %v9935_v18 = vpop.f32.mrb[139].mxu1  ;;  %v9065_v1 = vadd.f32 %v9053_v34, %v8973_v19 }
0x3289   :  { %v9066_v38 = vadd.f32 %v9057_v35, %v8975_v63 }
0x328a   :  { %v9067_v48 = vadd.f32 %v9061_v30, %v9045_v6 }
0x328b   :  { %9078 = vmax.xlane.f32.xlu1 %v9066_v38 }
0x328c   :  { %9088 = vmax.xlane.f32.xlu0 %v9067_v48 }
0x3290   :  { %9068 = vmax.xlane.f32.xlu0 %v9065_v1 }
0x3318   :  { %v9079_v39 = vpop.xlane.xlu1 %9078 }
0x3319   :  { %v9080_v33 = vsub.f32 %v9066_v38, %v9079_v39  ;;  %v9089_v2 = vpop.xlane.xlu0 %9088 }
0x331a   :  { %v9090_v9 = vsub.f32 %v9067_v48, %v9089_v2 }
0x331b   :  { %v9081_v21 = vmul.f32 1.442695, %v9080_v33 }
0x331c   :  { %v9091_v43 = vmul.f32 1.442695, %v9090_v9 }
0x331d   :  { %12481 = vpow2.f32 %v9081_v21  ;;  %v9069_v42 = vpop.xlane.xlu0 %9068 }
0x331e   :  { %12483 = vpow2.f32 %v9091_v43  ;;  %v9070_v4 = vsub.f32 %v9065_v1, %v9069_v42 }
0x3320   :  { %v9071_v23 = vmul.f32 1.442695, %v9070_v4 }
0x3322   :  { %12485 = vpow2.f32 %v9071_v23 }
0x3327   :  { %v12482_v16 = vpop.eup %12481 }
0x3328   :  { %v12484_v0 = vpop.eup %12483  ;;  %9083 = vadd.xlane.f32.xlu1 %v12482_v16 }
0x3329   :  { %9093 = vadd.xlane.f32.xlu0 %v12484_v0 }
0x332c   :  { %v12486_v50 = vpop.eup %12485 }
0x332d   :  { %9073 = vadd.xlane.f32.xlu0 %v12486_v50 }
0x33b5   :  { %v9084_v12 = vpop.xlane.xlu1 %9083 }
0x33b6   :  { %12487 = vrcp.f32 %v9084_v12  ;;  %v9094_v27 = vpop.xlane.xlu0 %9093 }
0x33b7   :  { %12489 = vrcp.f32 %v9094_v27 }
0x33ba   :  { %v9074_v59 = vpop.xlane.xlu0 %9073 }
0x33bb   :  { %12491 = vrcp.f32 %v9074_v59 }
0x33c0   :  { %v12488_v5 = vpop.eup %12487 }
0x33c1   :  { %v12490_v45 = vpop.eup %12489  ;;  %v9087_v15 = vmul.f32 %v12488_v5, %v12482_v16 }
0x33c2   :  { %v9097_v54 = vmul.f32 %v12490_v45, %v12484_v0 }
0x33c3   :  { %v9111_v41 = vmul.f32 %v9099_v37, %v9087_v15  ;;  %v9108_v58 = vmul.f32 %v9098_v31, %v9087_v15 }
0x33c4   :  { %v9125_v52 = vmul.f32 %v9124_v32, %v9097_v54  ;;  %v9118_v22 = vmul.f32 %v9117_v24, %v9097_v54 }
0x33c5   :  { %v12492_v26 = vpop.eup %12491 }
0x33c6   :  { %9126 = vadd.xlane.f32.xlu0 %v9125_v52  ;;  %9119 = vadd.xlane.f32.xlu1 %v9118_v22  ;;  %v9077_v3 = vmul.f32 %v12492_v26, %v12486_v50 }
0x33c8   :  { %v9105_v51 = vmul.f32 %v9099_v37, %v9077_v3  ;;  %v9102_v28 = vmul.f32 %v9098_v31, %v9077_v3 }
0x33ca   :  { %9112 = vadd.xlane.f32.xlu0 %v9111_v41  ;;  %9109 = vadd.xlane.f32.xlu1 %v9108_v58 }
0x33ce   :  { %9106 = vadd.xlane.f32.xlu0 %v9105_v51  ;;  %9103 = vadd.xlane.f32.xlu1 %v9102_v28 }
0x3453   :  { %v9127_v11 = vpop.xlane.xlu0 %9126  ;;  %v9120_v56 = vpop.xlane.xlu1 %9119 }
0x3454   :  { %v9130_v10 = vmul.f32 %v9127_v11, %v9100_v36  ;;  %v9128_v47 = vmul.f32 %v9120_v56, %v9100_v36 }
0x3457   :  { %v9113_v14 = vpop.xlane.xlu0 %9112  ;;  %v9110_v7 = vpop.xlane.xlu1 %9109 }
0x3458   :  { %v9131_v44 = vadd.f32 %v9130_v10, %v9113_v14  ;;  %v9129_v46 = vadd.f32 %v9128_v47, %v9110_v7 }
0x345a   :  { %9137 = vrot.lane.b32.xlu0 %v9131_v44, %s12698_s13  ;;  %9133 = vrot.lane.b32.xlu1 %v9129_v46, %s12699_s14 }
0x345b   :  { %v9107_v57 = vpop.xlane.xlu0 %9106  ;;  %v9104_v8 = vpop.xlane.xlu1 %9103 }
0x345c   :  { %v9141_v53 = vsel %vm9140_vm13, %v9104_v8, %v9107_v57 }
0x34cc   :  { %v9138_v17 = vpop.permute.xlu0 %9137  ;;  %v9134_v62 = vpop.permute.xlu1 %9133 }
0x34cd   :  { %v9143_v55 = vsel %vm9142_vm14, %v9141_v53, %v9134_v62 }
0x34ce   :  { %v9144_v25 = vsel %vm7896_vm11, %v9143_v55, %v9138_v17 }
0x34cf   :  { %v9146_v29 = vsel %vm9145_vm15, %v9144_v25, 0.0 }
0x34d0   :  { %9147 = vst [vmem:[%s15624_s17] sm:$0xff] %v9146_v29 }
0x34d1   :  { %9152 = vsyncpa [#allocation3], 1 }
0x34d2   :  { %9153 = vsyncpa [#allocation5], 1 }
0x34d3   :  { %9154 = vsyncpa [#allocation8], 1 }
0x34d4   :  { %9155 = vsyncpa [#allocation11], 1 }
0x34d5   :  { %9156 = vsyncpa [#allocation14], 1 }

</bundles_post_ra>
